<compile_context>
chip_gen: v7x
topology: tpu7x:2x2x1
jax: 0.10.0
libtpu: 0.0.40
codegen_flags: <defaults>
</compile_context>

<pallas_src>
import functools
import math

import jax
import jax.numpy as jnp
import numpy as np
from jax import lax
from jax.experimental import pallas as pl
from jax.experimental.pallas import tpu as pltpu

KH = KW = 5   # conv kernel size
POOL = 4      # MaxPool2d(4, 4)


def _cparams(semantics):
    return pltpu.CompilerParams(dimension_semantics=semantics,
                                vmem_limit_bytes=32 * 1024 * 1024)


# ----------------------------------------------------------------------------
# Pallas kernels
# ----------------------------------------------------------------------------
def conv1_relu_hpool_kernel(x_ref, w_ref, b_ref, o_ref, *, wp, prg):
    """Merged-tap conv1 (one K-dot per output row) + bias + ReLU + 4:1 height pool.

    x_ref: (1, Kp, rows_per_grp*wp) bf16  im2col-over-taps slab, row stride wp
    w_ref: (Cout, Kp)               bf16
    b_ref: (Cout, 1)                f32
    o_ref: (1, prg, Cout, wp)       bf16  prg pooled rows (dense tile stores)
    """
    w = w_ref[...]            # hoisted: loaded once, reused by every dot
    b = b_ref[...]            # hoisted: broadcast built once
    for p in range(prg):                      # static, unrolled
        base = POOL * p * wp
        m = jnp.dot(w, x_ref[0, :, base:base + wp],
                    preferred_element_type=jnp.float32)
        for r in range(1, POOL):
            s = base + r * wp                 # static, 128-aligned
            z = jnp.dot(w, x_ref[0, :, s:s + wp],
                        preferred_element_type=jnp.float32)
            m = jnp.maximum(m, z)
        # relu(max_r(conv_r) + b) == max_r relu(conv_r + b): height pool fused.
        o_ref[0, p, :, :] = jnp.maximum(m + b, 0.0).astype(o_ref.dtype)


def conv2_bn_relu_pool_kernel(x_ref, w_ref, b_ref, o_ref):
    """Dense im2col GEMM per pooling phase + folded BN/bias + ReLU + phase max.

    x_ref: (1, 16, Kp, Lp) bf16  per-phase im2col columns, lanes = pooled 11x11
    w_ref: (Cout, Kp)      bf16  BN scale folded into weights
    b_ref: (Cout, 1)       f32   bias*scale + shift
    o_ref: (1, Cout, Lp)   bf16  == MaxPool2d(4,4)(relu(bn(conv2(x)))), flattened
    """
    w = w_ref[...]
    b = b_ref[...]
    n_phase = x_ref.shape[1]
    acc = jnp.maximum(
        jnp.dot(w, x_ref[0, 0], preferred_element_type=jnp.float32) + b, 0.0)
    for t in range(1, n_phase):               # static, unrolled (16 phases)
        z = jnp.dot(w, x_ref[0, t], preferred_element_type=jnp.float32)
        acc = jnp.maximum(acc, z + b)         # acc >= 0, so this is max of relus
    o_ref[0] = acc.astype(o_ref.dtype)


def fc_head_kernel(x_ref, w1_ref, b1_ref, w2_ref, b2_ref, w3_ref, b3_ref, o_ref):
    """relu(x@w1+b1) -> relu(.@w2+b2) -> .@w3+b3 (BN folded; bf16 MXU, f32 acc)."""
    h = jnp.dot(x_ref[...], w1_ref[...], preferred_element_type=jnp.float32)
    h = jnp.maximum(h + b1_ref[...], 0.0).astype(jnp.bfloat16)
    # TODO(synk): dropout is identity here (eval mode).
    h = jnp.dot(h, w2_ref[...], preferred_element_type=jnp.float32)
    h = jnp.maximum(h + b2_ref[...], 0.0).astype(jnp.bfloat16)
    o_ref[...] = (jnp.dot(h, w3_ref[...], preferred_element_type=jnp.float32)
                  + b3_ref[...])


# ----------------------------------------------------------------------------
# Wrappers around pallas_call
# ----------------------------------------------------------------------------
def conv1_relu_hpool(x, w, bias, *, wp=256, rows_per_grp=32):
    """x: (N,Cin,H,W) f32 -> (N, PH, Cout, wp) bf16 (height-pooled, width unpooled).

    Valid width is OW = W-4; columns [OW, wp) are garbage and must be cropped
    by the caller (done in `wpool_to_nchw`).
    """
    N, Cin, H, W = x.shape
    Cout = w.shape[0]
    OH, OW = H - KH + 1, W - KW + 1
    assert wp % 128 == 0 and wp >= OW and wp + KW - 1 >= W
    assert OH % rows_per_grp == 0 and rows_per_grp % POOL == 0 and OW % POOL == 0
    G = OH // rows_per_grp
    PH = OH // POOL
    prg = rows_per_grp // POOL
    kdim = KH * KW * Cin
    kpad = -(-kdim // 16) * 16

    # slab[n, (dh*KW+dw)*Cin+ci, oh*wp + ow] = x[n, ci, oh+dh, ow+dw]  (bf16, zero pad)
    xpad = jnp.pad(x, ((0, 0), (0, 0), (0, 0),
                       (0, wp + KW - 1 - W))).astype(jnp.bfloat16)
    taps = [xpad[:, :, dh:dh + OH, dw:dw + wp]
            for dh in range(KH) for dw in range(KW)]
    xs = jnp.stack(taps, axis=1).reshape(N, kdim, OH * wp)
    xs = jnp.pad(xs, ((0, 0), (0, kpad - kdim), (0, 0)))

    wk = jnp.pad(w.transpose(0, 2, 3, 1).reshape(Cout, kdim),
                 ((0, 0), (0, kpad - kdim))).astype(jnp.bfloat16)
    beff = bias.reshape(Cout, 1).astype(jnp.float32)

    out = pl.pallas_call(
        functools.partial(conv1_relu_hpool_kernel, wp=wp, prg=prg),
        out_shape=jax.ShapeDtypeStruct((N, PH, Cout, wp), jnp.bfloat16),
        grid=(N, G),
        in_specs=[
            pl.BlockSpec((1, kpad, rows_per_grp * wp), lambda n, g: (n, 0, g)),
            pl.BlockSpec((Cout, kpad), lambda n, g: (0, 0)),
            pl.BlockSpec((Cout, 1), lambda n, g: (0, 0)),
        ],
        out_specs=pl.BlockSpec((1, prg, Cout, wp), lambda n, g: (n, g, 0, 0)),
        compiler_params=_cparams(("parallel", "parallel")),
    )(xs, wk, beff)
    return out, OW


def wpool_to_nchw(y, ow):
    """Width 4:1 max-pool on the small height-pooled tensor + NCHW layout fix."""
    N, PH, C, _ = y.shape
    PW = ow // POOL
    p = jnp.max(y[:, :, :, :POOL * PW].reshape(N, PH, C, PW, POOL), axis=-1)
    return p.transpose(0, 2, 1, 3)            # (N, C, PH, PW)


def conv2_bn_relu_pool(x1, w, bias, scale, shift):
    """x1: (N,Cin,48,48) bf16 -> (N, Cout, Lp) bf16 == pool(relu(bn(conv2(x1)))).

    Lanes 0..120 are the flattened 11x11 pooled positions; lanes 121..Lp-1 are
    garbage and are neutralised downstream by zero rows in the folded fc1 weight.
    """
    N, Cin, H1, W1 = x1.shape
    Cout = w.shape[0]
    OH, OW = H1 - KH + 1, W1 - KW + 1          # 44, 44
    PH, PW = OH // POOL, OW // POOL            # 11, 11
    kdim = KH * KW * Cin                       # 600
    kpad = -(-kdim // 16) * 16                 # 608
    npos = PH * PW                             # 121
    lpad = -(-npos // 128) * 128               # 128

    # per-phase im2col: cols[n, i*4+j, (dh*5+dw)*Cin+ci, ph*PW+pw]
    #   = x1[n, ci, 4*ph+i+dh, 4*pw+j+dw]
    cols = jnp.stack([x1[:, :, dh:dh + OH, dw:dw + OW]
                      for dh in range(KH) for dw in range(KW)], axis=1)
    cols = cols.reshape(N, kdim, PH, POOL, PW, POOL)
    cols = cols.transpose(0, 3, 5, 1, 2, 4).reshape(N, POOL * POOL, kdim, npos)
    cols = jnp.pad(cols, ((0, 0), (0, 0), (0, kpad - kdim), (0, lpad - npos)))

    wk = (w * scale[:, None, None, None]).transpose(0, 2, 3, 1).reshape(Cout, kdim)
    wk = jnp.pad(wk, ((0, 0), (0, kpad - kdim))).astype(jnp.bfloat16)
    beff = (bias * scale + shift).reshape(Cout, 1).astype(jnp.float32)

    out = pl.pallas_call(
        conv2_bn_relu_pool_kernel,
        out_shape=jax.ShapeDtypeStruct((N, Cout, lpad), jnp.bfloat16),
        grid=(N,),
        in_specs=[
            pl.BlockSpec((1, POOL * POOL, kpad, lpad), lambda n: (n, 0, 0, 0)),
            pl.BlockSpec((Cout, kpad), lambda n: (0, 0)),
            pl.BlockSpec((Cout, 1), lambda n: (0, 0)),
        ],
        out_specs=pl.BlockSpec((1, Cout, lpad), lambda n: (n, 0, 0)),
        compiler_params=_cparams(("parallel",)),
    )(cols, wk, beff)
    return out


def fc_head(x, w1, b1, w2, b2, w3, b3):
    """x: (N, K) bf16. Weights (K, N)-oriented, BN folded, bf16. Returns (N, 12) f32."""
    N = x.shape[0]
    Mp = max(8, -(-N // 8) * 8)
    xp = jnp.pad(x, ((0, Mp - N), (0, 0)))
    out = pl.pallas_call(
        fc_head_kernel,
        out_shape=jax.ShapeDtypeStruct((Mp, w3.shape[1]), jnp.float32),
        grid=(1,),
        in_specs=[
            pl.BlockSpec(xp.shape, lambda i: (0, 0)),
            pl.BlockSpec(w1.shape, lambda i: (0, 0)),
            pl.BlockSpec(b1.shape, lambda i: (0, 0)),
            pl.BlockSpec(w2.shape, lambda i: (0, 0)),
            pl.BlockSpec(b2.shape, lambda i: (0, 0)),
            pl.BlockSpec(w3.shape, lambda i: (0, 0)),
            pl.BlockSpec(b3.shape, lambda i: (0, 0)),
        ],
        out_specs=pl.BlockSpec((Mp, w3.shape[1]), lambda i: (0, 0)),
        compiler_params=_cparams(("arbitrary",)),
    )(xp, w1, b1, w2, b2, w3, b3)
    return out[:N]


# ----------------------------------------------------------------------------
# Parameter construction (deterministic, PyTorch-default-style init)
# ----------------------------------------------------------------------------
def _uniform(key, shape, bound):
    return jax.random.uniform(key, shape, jnp.float32, -bound, bound)


def init_params(key):
    ks = jax.random.split(key, 10)
    p = {}
    fan = 3 * 5 * 5
    p["conv1_w"] = _uniform(ks[0], (24, 3, 5, 5), 1.0 / math.sqrt(fan))
    p["conv1_b"] = _uniform(ks[1], (24,), 1.0 / math.sqrt(fan))
    fan = 24 * 5 * 5
    p["conv2_w"] = _uniform(ks[2], (32, 24, 5, 5), 1.0 / math.sqrt(fan))
    p["conv2_b"] = _uniform(ks[3], (32,), 1.0 / math.sqrt(fan))
    fan = 32 * 11 * 11
    p["fc1_w"] = _uniform(ks[4], (120, fan), 1.0 / math.sqrt(fan))
    p["fc1_b"] = _uniform(ks[5], (120,), 1.0 / math.sqrt(fan))
    p["fc2_w"] = _uniform(ks[6], (84, 120), 1.0 / math.sqrt(120))
    p["fc2_b"] = _uniform(ks[7], (84,), 1.0 / math.sqrt(120))
    p["fc3_w"] = _uniform(ks[8], (12, 84), 1.0 / math.sqrt(84))
    p["fc3_b"] = _uniform(ks[9], (12,), 1.0 / math.sqrt(84))
    eps = 1e-5
    for name, n in (("conv2_bn", 32), ("fc1_bn", 120), ("fc2_bn", 84)):
        gamma = jnp.ones((n,), jnp.float32)
        beta = jnp.zeros((n,), jnp.float32)
        mean = jnp.zeros((n,), jnp.float32)
        var = jnp.ones((n,), jnp.float32)
        s = gamma / jnp.sqrt(var + eps)
        p[name + "_scale"] = s
        p[name + "_shift"] = beta - mean * s
    return p


# ----------------------------------------------------------------------------
# Forward pass (eval mode)
# ----------------------------------------------------------------------------
def net_forward(params, x):
    N = x.shape[0]
    # conv1 + ReLU + height pool (Pallas); width pool + layout fix (tiny, XLA)
    y1, ow1 = conv1_relu_hpool(x, params["conv1_w"], params["conv1_b"])
    x1 = wpool_to_nchw(y1, ow1)                        # (N, 24, 48, 48) bf16
    # conv2 + BN + ReLU + MaxPool(4,4) + flatten, fully fused (Pallas)
    x2 = conv2_bn_relu_pool(x1, params["conv2_w"], params["conv2_b"],
                            params["conv2_bn_scale"], params["conv2_bn_shift"])
    Cout2, lpad = x2.shape[1], x2.shape[2]
    x2 = x2.reshape(N, Cout2 * lpad)                   # (N, 32*128) bf16
    # FC head: fc1+bn+relu, (dropout=id), fc2+bn+relu, (dropout=id), fc3
    s1, t1 = params["fc1_bn_scale"], params["fc1_bn_shift"]
    s2, t2 = params["fc2_bn_scale"], params["fc2_bn_shift"]
    f1, nfeat = params["fc1_w"].shape                  # (120, 32*11*11)
    npos = nfeat // Cout2                              # 121
    # Fold BN into fc1 and pad the per-channel spatial axis 121 -> 128 with zero
    # rows so the garbage lanes of x2 contribute nothing.
    w1r = params["fc1_w"].reshape(f1, Cout2, npos) * s1[:, None, None]
    w1 = jnp.pad(w1r, ((0, 0), (0, 0), (0, lpad - npos)))
    w1 = w1.reshape(f1, Cout2 * lpad).T.astype(jnp.bfloat16)
    b1 = (params["fc1_b"] * s1 + t1).reshape(1, -1).astype(jnp.float32)
    w2 = (params["fc2_w"].T * s2[None, :]).astype(jnp.bfloat16)
    b2 = (params["fc2_b"] * s2 + t2).reshape(1, -1).astype(jnp.float32)
    w3 = params["fc3_w"].T.astype(jnp.bfloat16)
    b3 = params["fc3_b"].reshape(1, -1).astype(jnp.float32)
    return fc_head(x2, w1, b1, w2, b2, w3, b3)


# ----------------------------------------------------------------------------
# Pure-JAX (XLA, f32) reference for a sanity check
# ----------------------------------------------------------------------------
def net_forward_ref(params, x):
    def conv(x, w, b):
        y = lax.conv_general_dilated(x, w, (1, 1), "VALID",
                                     dimension_numbers=("NCHW", "OIHW", "NCHW"))
        return y + b.reshape(1, -1, 1, 1)

    def pool(x):
        return lax.reduce_window(x, -jnp.inf, lax.max,
                                 (1, 1, 4, 4), (1, 1, 4, 4), "VALID")

    x = pool(jax.nn.relu(conv(x, params["conv1_w"], params["conv1_b"])))
    y = conv(x, params["conv2_w"], params["conv2_b"])
    y = (y * params["conv2_bn_scale"].reshape(1, -1, 1, 1)
         + params["conv2_bn_shift"].reshape(1, -1, 1, 1))
    x = pool(jax.nn.relu(y))
    x = x.reshape(x.shape[0], -1)
    x = jax.nn.relu((x @ params["fc1_w"].T + params["fc1_b"])
                    * params["fc1_bn_scale"] + params["fc1_bn_shift"])
    x = jax.nn.relu((x @ params["fc2_w"].T + params["fc2_b"])
                    * params["fc2_bn_scale"] + params["fc2_bn_shift"])
    return x @ params["fc3_w"].T + params["fc3_b"]


if __name__ == "__main__":
    key = jax.random.PRNGKey(0)
    k_param, k_input = jax.random.split(key)
    params = init_params(k_param)

    # Input spatial size implied by fc1 = Linear(32*11*11, 120):
    #   196 -> conv5 -> 192 -> pool4 -> 48 -> conv5 -> 44 -> pool4 -> 11
    x = jax.random.normal(k_input, (2, 3, 196, 196), jnp.float32)

    out = jax.block_until_ready(jax.jit(net_forward)(params, x))
    assert out.shape == (2, 12), out.shape

    ref = jax.block_until_ready(jax.jit(net_forward_ref)(params, x))
    # Conv/FC MXU inputs and activations are bf16 (f32 accumulation) -> slightly
    # looser tolerance than the pure-f32 reference.
    np.testing.assert_allclose(np.asarray(out), np.asarray(ref),
                               rtol=2e-2, atol=2e-2)

    print("KERNEL_OK")
</pallas_src>

<mosaic_0001>
module attributes {stable_mosaic.version = 11 : i64} {
  func.func @conv1_relu_hpool_kernel(%arg0: i32, %arg1: i32, %arg2: memref<1x80x8192xbf16, #tpu.memory_space<vmem>>, %arg3: memref<24x80xbf16, #tpu.memory_space<vmem>>, %arg4: memref<24x1xf32, #tpu.memory_space<vmem>>, %arg5: memref<1x8x24x256xbf16, #tpu.memory_space<vmem>>) attributes {dimension_semantics = [#tpu.dimension_semantics<parallel>, #tpu.dimension_semantics<parallel>], iteration_bounds = array<i64: 2, 6>, scalar_prefetch = 0 : i64, scratch_operands = 0 : i64, tpu.core_type = #tpu.core_type<tc>, window_params = [{transform_indices = @transform_0, window_bounds = array<i64: 1, 80, 8192>}, {pipeline_mode = #tpu.pipeline_mode<synchronous>, transform_indices = @transform_1, window_bounds = array<i64: 24, 80>}, {pipeline_mode = #tpu.pipeline_mode<synchronous>, transform_indices = @transform_2, window_bounds = array<i64: 24, 1>}, {transform_indices = @transform_3, window_bounds = array<i64: 1, 8, 24, 256>}]} {
    %c0 = arith.constant 0 : index
    %c0_0 = arith.constant 0 : index
    %0 = vector.load %arg3[%c0, %c0_0] : memref<24x80xbf16, #tpu.memory_space<vmem>>, vector<24x80xbf16>
    %c0_1 = arith.constant 0 : index
    %c0_2 = arith.constant 0 : index
    %1 = vector.load %arg4[%c0_1, %c0_2] : memref<24x1xf32, #tpu.memory_space<vmem>>, vector<24x1xf32>
    %c0_3 = arith.constant 0 : index
    %c0_4 = arith.constant 0 : index
    %c0_5 = arith.constant 0 : index
    %2 = vector.load %arg2[%c0_3, %c0_4, %c0_5] : memref<1x80x8192xbf16, #tpu.memory_space<vmem>>, vector<1x80x256xbf16>
    %3 = vector.shape_cast %2 : vector<1x80x256xbf16> to vector<80x256xbf16>
    %cst = arith.constant dense<0.000000e+00> : vector<24x256xf32>
    %4 = tpu.matmul %0, %3, %cst {dimension_numbers = #tpu.dot_dimension_numbers<[1], [0], [0], [1], [0, 0, 1, 1], [], []>} : vector<24x80xbf16>, vector<80x256xbf16>, vector<24x256xf32> -> vector<24x256xf32>
    %c0_6 = arith.constant 0 : index
    %c0_7 = arith.constant 0 : index
    %c256 = arith.constant 256 : index
    %5 = vector.load %arg2[%c0_6, %c0_7, %c256] : memref<1x80x8192xbf16, #tpu.memory_space<vmem>>, vector<1x80x256xbf16>
    %6 = vector.shape_cast %5 : vector<1x80x256xbf16> to vector<80x256xbf16>
    %cst_8 = arith.constant dense<0.000000e+00> : vector<24x256xf32>
    %7 = tpu.matmul %0, %6, %cst_8 {dimension_numbers = #tpu.dot_dimension_numbers<[1], [0], [0], [1], [0, 0, 1, 1], [], []>} : vector<24x80xbf16>, vector<80x256xbf16>, vector<24x256xf32> -> vector<24x256xf32>
    %8 = arith.maximumf %4, %7 : vector<24x256xf32>
    %c0_9 = arith.constant 0 : index
    %c0_10 = arith.constant 0 : index
    %c512 = arith.constant 512 : index
    %9 = vector.load %arg2[%c0_9, %c0_10, %c512] : memref<1x80x8192xbf16, #tpu.memory_space<vmem>>, vector<1x80x256xbf16>
    %10 = vector.shape_cast %9 : vector<1x80x256xbf16> to vector<80x256xbf16>
    %cst_11 = arith.constant dense<0.000000e+00> : vector<24x256xf32>
    %11 = tpu.matmul %0, %10, %cst_11 {dimension_numbers = #tpu.dot_dimension_numbers<[1], [0], [0], [1], [0, 0, 1, 1], [], []>} : vector<24x80xbf16>, vector<80x256xbf16>, vector<24x256xf32> -> vector<24x256xf32>
    %12 = arith.maximumf %8, %11 : vector<24x256xf32>
    %c0_12 = arith.constant 0 : index
    %c0_13 = arith.constant 0 : index
    %c768 = arith.constant 768 : index
    %13 = vector.load %arg2[%c0_12, %c0_13, %c768] : memref<1x80x8192xbf16, #tpu.memory_space<vmem>>, vector<1x80x256xbf16>
    %14 = vector.shape_cast %13 : vector<1x80x256xbf16> to vector<80x256xbf16>
    %cst_14 = arith.constant dense<0.000000e+00> : vector<24x256xf32>
    %15 = tpu.matmul %0, %14, %cst_14 {dimension_numbers = #tpu.dot_dimension_numbers<[1], [0], [0], [1], [0, 0, 1, 1], [], []>} : vector<24x80xbf16>, vector<80x256xbf16>, vector<24x256xf32> -> vector<24x256xf32>
    %16 = arith.maximumf %12, %15 : vector<24x256xf32>
    %17 = vector.broadcast %1 : vector<24x1xf32> to vector<24x256xf32>
    %18 = arith.addf %16, %17 : vector<24x256xf32>
    %cst_15 = arith.constant 0.000000e+00 : f32
    %19 = vector.broadcast %cst_15 : f32 to vector<24x256xf32>
    %20 = arith.maximumf %18, %19 : vector<24x256xf32>
    %21 = arith.truncf %20 : vector<24x256xf32> to vector<24x256xbf16>
    %c0_16 = arith.constant 0 : index
    %c0_17 = arith.constant 0 : index
    %c0_18 = arith.constant 0 : index
    %c0_19 = arith.constant 0 : index
    %22 = vector.load %arg5[%c0_16, %c0_17, %c0_18, %c0_19] : memref<1x8x24x256xbf16, #tpu.memory_space<vmem>>, vector<1x1x24x256xbf16>
    %23 = vector.shape_cast %22 : vector<1x1x24x256xbf16> to vector<24x256xbf16>
    %24 = vector.shape_cast %21 : vector<24x256xbf16> to vector<1x1x24x256xbf16>
    tpu.vector_store %arg5[%c0_16, %c0_17, %c0_18, %c0_19], %24 {strides = array<i32>} : memref<1x8x24x256xbf16, #tpu.memory_space<vmem>>, vector<1x1x24x256xbf16>,
    %c0_20 = arith.constant 0 : index
    %c0_21 = arith.constant 0 : index
    %c1024 = arith.constant 1024 : index
    %25 = vector.load %arg2[%c0_20, %c0_21, %c1024] : memref<1x80x8192xbf16, #tpu.memory_space<vmem>>, vector<1x80x256xbf16>
    %26 = vector.shape_cast %25 : vector<1x80x256xbf16> to vector<80x256xbf16>
    %cst_22 = arith.constant dense<0.000000e+00> : vector<24x256xf32>
    %27 = tpu.matmul %0, %26, %cst_22 {dimension_numbers = #tpu.dot_dimension_numbers<[1], [0], [0], [1], [0, 0, 1, 1], [], []>} : vector<24x80xbf16>, vector<80x256xbf16>, vector<24x256xf32> -> vector<24x256xf32>
    %c0_23 = arith.constant 0 : index
    %c0_24 = arith.constant 0 : index
    %c1280 = arith.constant 1280 : index
    %28 = vector.load %arg2[%c0_23, %c0_24, %c1280] : memref<1x80x8192xbf16, #tpu.memory_space<vmem>>, vector<1x80x256xbf16>
    %29 = vector.shape_cast %28 : vector<1x80x256xbf16> to vector<80x256xbf16>
    %cst_25 = arith.constant dense<0.000000e+00> : vector<24x256xf32>
    %30 = tpu.matmul %0, %29, %cst_25 {dimension_numbers = #tpu.dot_dimension_numbers<[1], [0], [0], [1], [0, 0, 1, 1], [], []>} : vector<24x80xbf16>, vector<80x256xbf16>, vector<24x256xf32> -> vector<24x256xf32>
    %31 = arith.maximumf %27, %30 : vector<24x256xf32>
    %c0_26 = arith.constant 0 : index
    %c0_27 = arith.constant 0 : index
    %c1536 = arith.constant 1536 : index
    %32 = vector.load %arg2[%c0_26, %c0_27, %c1536] : memref<1x80x8192xbf16, #tpu.memory_space<vmem>>, vector<1x80x256xbf16>
    %33 = vector.shape_cast %32 : vector<1x80x256xbf16> to vector<80x256xbf16>
    %cst_28 = arith.constant dense<0.000000e+00> : vector<24x256xf32>
    %34 = tpu.matmul %0, %33, %cst_28 {dimension_numbers = #tpu.dot_dimension_numbers<[1], [0], [0], [1], [0, 0, 1, 1], [], []>} : vector<24x80xbf16>, vector<80x256xbf16>, vector<24x256xf32> -> vector<24x256xf32>
    %35 = arith.maximumf %31, %34 : vector<24x256xf32>
    %c0_29 = arith.constant 0 : index
    %c0_30 = arith.constant 0 : index
    %c1792 = arith.constant 1792 : index
    %36 = vector.load %arg2[%c0_29, %c0_30, %c1792] : memref<1x80x8192xbf16, #tpu.memory_space<vmem>>, vector<1x80x256xbf16>
    %37 = vector.shape_cast %36 : vector<1x80x256xbf16> to vector<80x256xbf16>
    %cst_31 = arith.constant dense<0.000000e+00> : vector<24x256xf32>
    %38 = tpu.matmul %0, %37, %cst_31 {dimension_numbers = #tpu.dot_dimension_numbers<[1], [0], [0], [1], [0, 0, 1, 1], [], []>} : vector<24x80xbf16>, vector<80x256xbf16>, vector<24x256xf32> -> vector<24x256xf32>
    %39 = arith.maximumf %35, %38 : vector<24x256xf32>
    %40 = vector.broadcast %1 : vector<24x1xf32> to vector<24x256xf32>
    %41 = arith.addf %39, %40 : vector<24x256xf32>
    %cst_32 = arith.constant 0.000000e+00 : f32
    %42 = vector.broadcast %cst_32 : f32 to vector<24x256xf32>
    %43 = arith.maximumf %41, %42 : vector<24x256xf32>
    %44 = arith.truncf %43 : vector<24x256xf32> to vector<24x256xbf16>
    %c0_33 = arith.constant 0 : index
    %c1 = arith.constant 1 : index
    %c0_34 = arith.constant 0 : index
    %c0_35 = arith.constant 0 : index
    %45 = vector.load %arg5[%c0_33, %c1, %c0_34, %c0_35] : memref<1x8x24x256xbf16, #tpu.memory_space<vmem>>, vector<1x1x24x256xbf16>
    %46 = vector.shape_cast %45 : vector<1x1x24x256xbf16> to vector<24x256xbf16>
    %47 = vector.shape_cast %44 : vector<24x256xbf16> to vector<1x1x24x256xbf16>
    tpu.vector_store %arg5[%c0_33, %c1, %c0_34, %c0_35], %47 {strides = array<i32>} : memref<1x8x24x256xbf16, #tpu.memory_space<vmem>>, vector<1x1x24x256xbf16>,
    %c0_36 = arith.constant 0 : index
    %c0_37 = arith.constant 0 : index
    %c2048 = arith.constant 2048 : index
    %48 = vector.load %arg2[%c0_36, %c0_37, %c2048] : memref<1x80x8192xbf16, #tpu.memory_space<vmem>>, vector<1x80x256xbf16>
    %49 = vector.shape_cast %48 : vector<1x80x256xbf16> to vector<80x256xbf16>
    %cst_38 = arith.constant dense<0.000000e+00> : vector<24x256xf32>
    %50 = tpu.matmul %0, %49, %cst_38 {dimension_numbers = #tpu.dot_dimension_numbers<[1], [0], [0], [1], [0, 0, 1, 1], [], []>} : vector<24x80xbf16>, vector<80x256xbf16>, vector<24x256xf32> -> vector<24x256xf32>
    %c0_39 = arith.constant 0 : index
    %c0_40 = arith.constant 0 : index
    %c2304 = arith.constant 2304 : index
    %51 = vector.load %arg2[%c0_39, %c0_40, %c2304] : memref<1x80x8192xbf16, #tpu.memory_space<vmem>>, vector<1x80x256xbf16>
    %52 = vector.shape_cast %51 : vector<1x80x256xbf16> to vector<80x256xbf16>
    %cst_41 = arith.constant dense<0.000000e+00> : vector<24x256xf32>
    %53 = tpu.matmul %0, %52, %cst_41 {dimension_numbers = #tpu.dot_dimension_numbers<[1], [0], [0], [1], [0, 0, 1, 1], [], []>} : vector<24x80xbf16>, vector<80x256xbf16>, vector<24x256xf32> -> vector<24x256xf32>
    %54 = arith.maximumf %50, %53 : vector<24x256xf32>
    %c0_42 = arith.constant 0 : index
    %c0_43 = arith.constant 0 : index
    %c2560 = arith.constant 2560 : index
    %55 = vector.load %arg2[%c0_42, %c0_43, %c2560] : memref<1x80x8192xbf16, #tpu.memory_space<vmem>>, vector<1x80x256xbf16>
    %56 = vector.shape_cast %55 : vector<1x80x256xbf16> to vector<80x256xbf16>
    %cst_44 = arith.constant dense<0.000000e+00> : vector<24x256xf32>
    %57 = tpu.matmul %0, %56, %cst_44 {dimension_numbers = #tpu.dot_dimension_numbers<[1], [0], [0], [1], [0, 0, 1, 1], [], []>} : vector<24x80xbf16>, vector<80x256xbf16>, vector<24x256xf32> -> vector<24x256xf32>
    %58 = arith.maximumf %54, %57 : vector<24x256xf32>
    %c0_45 = arith.constant 0 : index
    %c0_46 = arith.constant 0 : index
    %c2816 = arith.constant 2816 : index
    %59 = vector.load %arg2[%c0_45, %c0_46, %c2816] : memref<1x80x8192xbf16, #tpu.memory_space<vmem>>, vector<1x80x256xbf16>
    %60 = vector.shape_cast %59 : vector<1x80x256xbf16> to vector<80x256xbf16>
    %cst_47 = arith.constant dense<0.000000e+00> : vector<24x256xf32>
    %61 = tpu.matmul %0, %60, %cst_47 {dimension_numbers = #tpu.dot_dimension_numbers<[1], [0], [0], [1], [0, 0, 1, 1], [], []>} : vector<24x80xbf16>, vector<80x256xbf16>, vector<24x256xf32> -> vector<24x256xf32>
    %62 = arith.maximumf %58, %61 : vector<24x256xf32>
    %63 = vector.broadcast %1 : vector<24x1xf32> to vector<24x256xf32>
    %64 = arith.addf %62, %63 : vector<24x256xf32>
    %cst_48 = arith.constant 0.000000e+00 : f32
    %65 = vector.broadcast %cst_48 : f32 to vector<24x256xf32>
    %66 = arith.maximumf %64, %65 : vector<24x256xf32>
    %67 = arith.truncf %66 : vector<24x256xf32> to vector<24x256xbf16>
    %c0_49 = arith.constant 0 : index
    %c2 = arith.constant 2 : index
    %c0_50 = arith.constant 0 : index
    %c0_51 = arith.constant 0 : index
    %68 = vector.load %arg5[%c0_49, %c2, %c0_50, %c0_51] : memref<1x8x24x256xbf16, #tpu.memory_space<vmem>>, vector<1x1x24x256xbf16>
    %69 = vector.shape_cast %68 : vector<1x1x24x256xbf16> to vector<24x256xbf16>
    %70 = vector.shape_cast %67 : vector<24x256xbf16> to vector<1x1x24x256xbf16>
    tpu.vector_store %arg5[%c0_49, %c2, %c0_50, %c0_51], %70 {strides = array<i32>} : memref<1x8x24x256xbf16, #tpu.memory_space<vmem>>, vector<1x1x24x256xbf16>,
    %c0_52 = arith.constant 0 : index
    %c0_53 = arith.constant 0 : index
    %c3072 = arith.constant 3072 : index
    %71 = vector.load %arg2[%c0_52, %c0_53, %c3072] : memref<1x80x8192xbf16, #tpu.memory_space<vmem>>, vector<1x80x256xbf16>
    %72 = vector.shape_cast %71 : vector<1x80x256xbf16> to vector<80x256xbf16>
    %cst_54 = arith.constant dense<0.000000e+00> : vector<24x256xf32>
    %73 = tpu.matmul %0, %72, %cst_54 {dimension_numbers = #tpu.dot_dimension_numbers<[1], [0], [0], [1], [0, 0, 1, 1], [], []>} : vector<24x80xbf16>, vector<80x256xbf16>, vector<24x256xf32> -> vector<24x256xf32>
    %c0_55 = arith.constant 0 : index
    %c0_56 = arith.constant 0 : index
    %c3328 = arith.constant 3328 : index
    %74 = vector.load %arg2[%c0_55, %c0_56, %c3328] : memref<1x80x8192xbf16, #tpu.memory_space<vmem>>, vector<1x80x256xbf16>
    %75 = vector.shape_cast %74 : vector<1x80x256xbf16> to vector<80x256xbf16>
    %cst_57 = arith.constant dense<0.000000e+00> : vector<24x256xf32>
    %76 = tpu.matmul %0, %75, %cst_57 {dimension_numbers = #tpu.dot_dimension_numbers<[1], [0], [0], [1], [0, 0, 1, 1], [], []>} : vector<24x80xbf16>, vector<80x256xbf16>, vector<24x256xf32> -> vector<24x256xf32>
    %77 = arith.maximumf %73, %76 : vector<24x256xf32>
    %c0_58 = arith.constant 0 : index
    %c0_59 = arith.constant 0 : index
    %c3584 = arith.constant 3584 : index
    %78 = vector.load %arg2[%c0_58, %c0_59, %c3584] : memref<1x80x8192xbf16, #tpu.memory_space<vmem>>, vector<1x80x256xbf16>
    %79 = vector.shape_cast %78 : vector<1x80x256xbf16> to vector<80x256xbf16>
    %cst_60 = arith.constant dense<0.000000e+00> : vector<24x256xf32>
    %80 = tpu.matmul %0, %79, %cst_60 {dimension_numbers = #tpu.dot_dimension_numbers<[1], [0], [0], [1], [0, 0, 1, 1], [], []>} : vector<24x80xbf16>, vector<80x256xbf16>, vector<24x256xf32> -> vector<24x256xf32>
    %81 = arith.maximumf %77, %80 : vector<24x256xf32>
    %c0_61 = arith.constant 0 : index
    %c0_62 = arith.constant 0 : index
    %c3840 = arith.constant 3840 : index
    %82 = vector.load %arg2[%c0_61, %c0_62, %c3840] : memref<1x80x8192xbf16, #tpu.memory_space<vmem>>, vector<1x80x256xbf16>
    %83 = vector.shape_cast %82 : vector<1x80x256xbf16> to vector<80x256xbf16>
    %cst_63 = arith.constant dense<0.000000e+00> : vector<24x256xf32>
    %84 = tpu.matmul %0, %83, %cst_63 {dimension_numbers = #tpu.dot_dimension_numbers<[1], [0], [0], [1], [0, 0, 1, 1], [], []>} : vector<24x80xbf16>, vector<80x256xbf16>, vector<24x256xf32> -> vector<24x256xf32>
    %85 = arith.maximumf %81, %84 : vector<24x256xf32>
    %86 = vector.broadcast %1 : vector<24x1xf32> to vector<24x256xf32>
    %87 = arith.addf %85, %86 : vector<24x256xf32>
    %cst_64 = arith.constant 0.000000e+00 : f32
    %88 = vector.broadcast %cst_64 : f32 to vector<24x256xf32>
    %89 = arith.maximumf %87, %88 : vector<24x256xf32>
    %90 = arith.truncf %89 : vector<24x256xf32> to vector<24x256xbf16>
    %c0_65 = arith.constant 0 : index
    %c3 = arith.constant 3 : index
    %c0_66 = arith.constant 0 : index
    %c0_67 = arith.constant 0 : index
    %91 = vector.load %arg5[%c0_65, %c3, %c0_66, %c0_67] : memref<1x8x24x256xbf16, #tpu.memory_space<vmem>>, vector<1x1x24x256xbf16>
    %92 = vector.shape_cast %91 : vector<1x1x24x256xbf16> to vector<24x256xbf16>
    %93 = vector.shape_cast %90 : vector<24x256xbf16> to vector<1x1x24x256xbf16>
    tpu.vector_store %arg5[%c0_65, %c3, %c0_66, %c0_67], %93 {strides = array<i32>} : memref<1x8x24x256xbf16, #tpu.memory_space<vmem>>, vector<1x1x24x256xbf16>,
    %c0_68 = arith.constant 0 : index
    %c0_69 = arith.constant 0 : index
    %c4096 = arith.constant 4096 : index
    %94 = vector.load %arg2[%c0_68, %c0_69, %c4096] : memref<1x80x8192xbf16, #tpu.memory_space<vmem>>, vector<1x80x256xbf16>
    %95 = vector.shape_cast %94 : vector<1x80x256xbf16> to vector<80x256xbf16>
    %cst_70 = arith.constant dense<0.000000e+00> : vector<24x256xf32>
    %96 = tpu.matmul %0, %95, %cst_70 {dimension_numbers = #tpu.dot_dimension_numbers<[1], [0], [0], [1], [0, 0, 1, 1], [], []>} : vector<24x80xbf16>, vector<80x256xbf16>, vector<24x256xf32> -> vector<24x256xf32>
    %c0_71 = arith.constant 0 : index
    %c0_72 = arith.constant 0 : index
    %c4352 = arith.constant 4352 : index
    %97 = vector.load %arg2[%c0_71, %c0_72, %c4352] : memref<1x80x8192xbf16, #tpu.memory_space<vmem>>, vector<1x80x256xbf16>
    %98 = vector.shape_cast %97 : vector<1x80x256xbf16> to vector<80x256xbf16>
    %cst_73 = arith.constant dense<0.000000e+00> : vector<24x256xf32>
    %99 = tpu.matmul %0, %98, %cst_73 {dimension_numbers = #tpu.dot_dimension_numbers<[1], [0], [0], [1], [0, 0, 1, 1], [], []>} : vector<24x80xbf16>, vector<80x256xbf16>, vector<24x256xf32> -> vector<24x256xf32>
    %100 = arith.maximumf %96, %99 : vector<24x256xf32>
    %c0_74 = arith.constant 0 : index
    %c0_75 = arith.constant 0 : index
    %c4608 = arith.constant 4608 : index
    %101 = vector.load %arg2[%c0_74, %c0_75, %c4608] : memref<1x80x8192xbf16, #tpu.memory_space<vmem>>, vector<1x80x256xbf16>
    %102 = vector.shape_cast %101 : vector<1x80x256xbf16> to vector<80x256xbf16>
    %cst_76 = arith.constant dense<0.000000e+00> : vector<24x256xf32>
    %103 = tpu.matmul %0, %102, %cst_76 {dimension_numbers = #tpu.dot_dimension_numbers<[1], [0], [0], [1], [0, 0, 1, 1], [], []>} : vector<24x80xbf16>, vector<80x256xbf16>, vector<24x256xf32> -> vector<24x256xf32>
    %104 = arith.maximumf %100, %103 : vector<24x256xf32>
    %c0_77 = arith.constant 0 : index
    %c0_78 = arith.constant 0 : index
    %c4864 = arith.constant 4864 : index
    %105 = vector.load %arg2[%c0_77, %c0_78, %c4864] : memref<1x80x8192xbf16, #tpu.memory_space<vmem>>, vector<1x80x256xbf16>
    %106 = vector.shape_cast %105 : vector<1x80x256xbf16> to vector<80x256xbf16>
    %cst_79 = arith.constant dense<0.000000e+00> : vector<24x256xf32>
    %107 = tpu.matmul %0, %106, %cst_79 {dimension_numbers = #tpu.dot_dimension_numbers<[1], [0], [0], [1], [0, 0, 1, 1], [], []>} : vector<24x80xbf16>, vector<80x256xbf16>, vector<24x256xf32> -> vector<24x256xf32>
    %108 = arith.maximumf %104, %107 : vector<24x256xf32>
    %109 = vector.broadcast %1 : vector<24x1xf32> to vector<24x256xf32>
    %110 = arith.addf %108, %109 : vector<24x256xf32>
    %cst_80 = arith.constant 0.000000e+00 : f32
    %111 = vector.broadcast %cst_80 : f32 to vector<24x256xf32>
    %112 = arith.maximumf %110, %111 : vector<24x256xf32>
    %113 = arith.truncf %112 : vector<24x256xf32> to vector<24x256xbf16>
    %c0_81 = arith.constant 0 : index
    %c4 = arith.constant 4 : index
    %c0_82 = arith.constant 0 : index
    %c0_83 = arith.constant 0 : index
    %114 = vector.load %arg5[%c0_81, %c4, %c0_82, %c0_83] : memref<1x8x24x256xbf16, #tpu.memory_space<vmem>>, vector<1x1x24x256xbf16>
    %115 = vector.shape_cast %114 : vector<1x1x24x256xbf16> to vector<24x256xbf16>
    %116 = vector.shape_cast %113 : vector<24x256xbf16> to vector<1x1x24x256xbf16>
    tpu.vector_store %arg5[%c0_81, %c4, %c0_82, %c0_83], %116 {strides = array<i32>} : memref<1x8x24x256xbf16, #tpu.memory_space<vmem>>, vector<1x1x24x256xbf16>,
    %c0_84 = arith.constant 0 : index
    %c0_85 = arith.constant 0 : index
    %c5120 = arith.constant 5120 : index
    %117 = vector.load %arg2[%c0_84, %c0_85, %c5120] : memref<1x80x8192xbf16, #tpu.memory_space<vmem>>, vector<1x80x256xbf16>
    %118 = vector.shape_cast %117 : vector<1x80x256xbf16> to vector<80x256xbf16>
    %cst_86 = arith.constant dense<0.000000e+00> : vector<24x256xf32>
    %119 = tpu.matmul %0, %118, %cst_86 {dimension_numbers = #tpu.dot_dimension_numbers<[1], [0], [0], [1], [0, 0, 1, 1], [], []>} : vector<24x80xbf16>, vector<80x256xbf16>, vector<24x256xf32> -> vector<24x256xf32>
    %c0_87 = arith.constant 0 : index
    %c0_88 = arith.constant 0 : index
    %c5376 = arith.constant 5376 : index
    %120 = vector.load %arg2[%c0_87, %c0_88, %c5376] : memref<1x80x8192xbf16, #tpu.memory_space<vmem>>, vector<1x80x256xbf16>
    %121 = vector.shape_cast %120 : vector<1x80x256xbf16> to vector<80x256xbf16>
    %cst_89 = arith.constant dense<0.000000e+00> : vector<24x256xf32>
    %122 = tpu.matmul %0, %121, %cst_89 {dimension_numbers = #tpu.dot_dimension_numbers<[1], [0], [0], [1], [0, 0, 1, 1], [], []>} : vector<24x80xbf16>, vector<80x256xbf16>, vector<24x256xf32> -> vector<24x256xf32>
    %123 = arith.maximumf %119, %122 : vector<24x256xf32>
    %c0_90 = arith.constant 0 : index
    %c0_91 = arith.constant 0 : index
    %c5632 = arith.constant 5632 : index
    %124 = vector.load %arg2[%c0_90, %c0_91, %c5632] : memref<1x80x8192xbf16, #tpu.memory_space<vmem>>, vector<1x80x256xbf16>
    %125 = vector.shape_cast %124 : vector<1x80x256xbf16> to vector<80x256xbf16>
    %cst_92 = arith.constant dense<0.000000e+00> : vector<24x256xf32>
    %126 = tpu.matmul %0, %125, %cst_92 {dimension_numbers = #tpu.dot_dimension_numbers<[1], [0], [0], [1], [0, 0, 1, 1], [], []>} : vector<24x80xbf16>, vector<80x256xbf16>, vector<24x256xf32> -> vector<24x256xf32>
    %127 = arith.maximumf %123, %126 : vector<24x256xf32>
    %c0_93 = arith.constant 0 : index
    %c0_94 = arith.constant 0 : index
    %c5888 = arith.constant 5888 : index
    %128 = vector.load %arg2[%c0_93, %c0_94, %c5888] : memref<1x80x8192xbf16, #tpu.memory_space<vmem>>, vector<1x80x256xbf16>
    %129 = vector.shape_cast %128 : vector<1x80x256xbf16> to vector<80x256xbf16>
    %cst_95 = arith.constant dense<0.000000e+00> : vector<24x256xf32>
    %130 = tpu.matmul %0, %129, %cst_95 {dimension_numbers = #tpu.dot_dimension_numbers<[1], [0], [0], [1], [0, 0, 1, 1], [], []>} : vector<24x80xbf16>, vector<80x256xbf16>, vector<24x256xf32> -> vector<24x256xf32>
    %131 = arith.maximumf %127, %130 : vector<24x256xf32>
    %132 = vector.broadcast %1 : vector<24x1xf32> to vector<24x256xf32>
    %133 = arith.addf %131, %132 : vector<24x256xf32>
    %cst_96 = arith.constant 0.000000e+00 : f32
    %134 = vector.broadcast %cst_96 : f32 to vector<24x256xf32>
    %135 = arith.maximumf %133, %134 : vector<24x256xf32>
    %136 = arith.truncf %135 : vector<24x256xf32> to vector<24x256xbf16>
    %c0_97 = arith.constant 0 : index
    %c5 = arith.constant 5 : index
    %c0_98 = arith.constant 0 : index
    %c0_99 = arith.constant 0 : index
    %137 = vector.load %arg5[%c0_97, %c5, %c0_98, %c0_99] : memref<1x8x24x256xbf16, #tpu.memory_space<vmem>>, vector<1x1x24x256xbf16>
    %138 = vector.shape_cast %137 : vector<1x1x24x256xbf16> to vector<24x256xbf16>
    %139 = vector.shape_cast %136 : vector<24x256xbf16> to vector<1x1x24x256xbf16>
    tpu.vector_store %arg5[%c0_97, %c5, %c0_98, %c0_99], %139 {strides = array<i32>} : memref<1x8x24x256xbf16, #tpu.memory_space<vmem>>, vector<1x1x24x256xbf16>,
    %c0_100 = arith.constant 0 : index
    %c0_101 = arith.constant 0 : index
    %c6144 = arith.constant 6144 : index
    %140 = vector.load %arg2[%c0_100, %c0_101, %c6144] : memref<1x80x8192xbf16, #tpu.memory_space<vmem>>, vector<1x80x256xbf16>
    %141 = vector.shape_cast %140 : vector<1x80x256xbf16> to vector<80x256xbf16>
    %cst_102 = arith.constant dense<0.000000e+00> : vector<24x256xf32>
    %142 = tpu.matmul %0, %141, %cst_102 {dimension_numbers = #tpu.dot_dimension_numbers<[1], [0], [0], [1], [0, 0, 1, 1], [], []>} : vector<24x80xbf16>, vector<80x256xbf16>, vector<24x256xf32> -> vector<24x256xf32>
    %c0_103 = arith.constant 0 : index
    %c0_104 = arith.constant 0 : index
    %c6400 = arith.constant 6400 : index
    %143 = vector.load %arg2[%c0_103, %c0_104, %c6400] : memref<1x80x8192xbf16, #tpu.memory_space<vmem>>, vector<1x80x256xbf16>
    %144 = vector.shape_cast %143 : vector<1x80x256xbf16> to vector<80x256xbf16>
    %cst_105 = arith.constant dense<0.000000e+00> : vector<24x256xf32>
    %145 = tpu.matmul %0, %144, %cst_105 {dimension_numbers = #tpu.dot_dimension_numbers<[1], [0], [0], [1], [0, 0, 1, 1], [], []>} : vector<24x80xbf16>, vector<80x256xbf16>, vector<24x256xf32> -> vector<24x256xf32>
    %146 = arith.maximumf %142, %145 : vector<24x256xf32>
    %c0_106 = arith.constant 0 : index
    %c0_107 = arith.constant 0 : index
    %c6656 = arith.constant 6656 : index
    %147 = vector.load %arg2[%c0_106, %c0_107, %c6656] : memref<1x80x8192xbf16, #tpu.memory_space<vmem>>, vector<1x80x256xbf16>
    %148 = vector.shape_cast %147 : vector<1x80x256xbf16> to vector<80x256xbf16>
    %cst_108 = arith.constant dense<0.000000e+00> : vector<24x256xf32>
    %149 = tpu.matmul %0, %148, %cst_108 {dimension_numbers = #tpu.dot_dimension_numbers<[1], [0], [0], [1], [0, 0, 1, 1], [], []>} : vector<24x80xbf16>, vector<80x256xbf16>, vector<24x256xf32> -> vector<24x256xf32>
    %150 = arith.maximumf %146, %149 : vector<24x256xf32>
    %c0_109 = arith.constant 0 : index
    %c0_110 = arith.constant 0 : index
    %c6912 = arith.constant 6912 : index
    %151 = vector.load %arg2[%c0_109, %c0_110, %c6912] : memref<1x80x8192xbf16, #tpu.memory_space<vmem>>, vector<1x80x256xbf16>
    %152 = vector.shape_cast %151 : vector<1x80x256xbf16> to vector<80x256xbf16>
    %cst_111 = arith.constant dense<0.000000e+00> : vector<24x256xf32>
    %153 = tpu.matmul %0, %152, %cst_111 {dimension_numbers = #tpu.dot_dimension_numbers<[1], [0], [0], [1], [0, 0, 1, 1], [], []>} : vector<24x80xbf16>, vector<80x256xbf16>, vector<24x256xf32> -> vector<24x256xf32>
    %154 = arith.maximumf %150, %153 : vector<24x256xf32>
    %155 = vector.broadcast %1 : vector<24x1xf32> to vector<24x256xf32>
    %156 = arith.addf %154, %155 : vector<24x256xf32>
    %cst_112 = arith.constant 0.000000e+00 : f32
    %157 = vector.broadcast %cst_112 : f32 to vector<24x256xf32>
    %158 = arith.maximumf %156, %157 : vector<24x256xf32>
    %159 = arith.truncf %158 : vector<24x256xf32> to vector<24x256xbf16>
    %c0_113 = arith.constant 0 : index
    %c6 = arith.constant 6 : index
    %c0_114 = arith.constant 0 : index
    %c0_115 = arith.constant 0 : index
    %160 = vector.load %arg5[%c0_113, %c6, %c0_114, %c0_115] : memref<1x8x24x256xbf16, #tpu.memory_space<vmem>>, vector<1x1x24x256xbf16>
    %161 = vector.shape_cast %160 : vector<1x1x24x256xbf16> to vector<24x256xbf16>
    %162 = vector.shape_cast %159 : vector<24x256xbf16> to vector<1x1x24x256xbf16>
    tpu.vector_store %arg5[%c0_113, %c6, %c0_114, %c0_115], %162 {strides = array<i32>} : memref<1x8x24x256xbf16, #tpu.memory_space<vmem>>, vector<1x1x24x256xbf16>,
    %c0_116 = arith.constant 0 : index
    %c0_117 = arith.constant 0 : index
    %c7168 = arith.constant 7168 : index
    %163 = vector.load %arg2[%c0_116, %c0_117, %c7168] : memref<1x80x8192xbf16, #tpu.memory_space<vmem>>, vector<1x80x256xbf16>
    %164 = vector.shape_cast %163 : vector<1x80x256xbf16> to vector<80x256xbf16>
    %cst_118 = arith.constant dense<0.000000e+00> : vector<24x256xf32>
    %165 = tpu.matmul %0, %164, %cst_118 {dimension_numbers = #tpu.dot_dimension_numbers<[1], [0], [0], [1], [0, 0, 1, 1], [], []>} : vector<24x80xbf16>, vector<80x256xbf16>, vector<24x256xf32> -> vector<24x256xf32>
    %c0_119 = arith.constant 0 : index
    %c0_120 = arith.constant 0 : index
    %c7424 = arith.constant 7424 : index
    %166 = vector.load %arg2[%c0_119, %c0_120, %c7424] : memref<1x80x8192xbf16, #tpu.memory_space<vmem>>, vector<1x80x256xbf16>
    %167 = vector.shape_cast %166 : vector<1x80x256xbf16> to vector<80x256xbf16>
    %cst_121 = arith.constant dense<0.000000e+00> : vector<24x256xf32>
    %168 = tpu.matmul %0, %167, %cst_121 {dimension_numbers = #tpu.dot_dimension_numbers<[1], [0], [0], [1], [0, 0, 1, 1], [], []>} : vector<24x80xbf16>, vector<80x256xbf16>, vector<24x256xf32> -> vector<24x256xf32>
    %169 = arith.maximumf %165, %168 : vector<24x256xf32>
    %c0_122 = arith.constant 0 : index
    %c0_123 = arith.constant 0 : index
    %c7680 = arith.constant 7680 : index
    %170 = vector.load %arg2[%c0_122, %c0_123, %c7680] : memref<1x80x8192xbf16, #tpu.memory_space<vmem>>, vector<1x80x256xbf16>
    %171 = vector.shape_cast %170 : vector<1x80x256xbf16> to vector<80x256xbf16>
    %cst_124 = arith.constant dense<0.000000e+00> : vector<24x256xf32>
    %172 = tpu.matmul %0, %171, %cst_124 {dimension_numbers = #tpu.dot_dimension_numbers<[1], [0], [0], [1], [0, 0, 1, 1], [], []>} : vector<24x80xbf16>, vector<80x256xbf16>, vector<24x256xf32> -> vector<24x256xf32>
    %173 = arith.maximumf %169, %172 : vector<24x256xf32>
    %c0_125 = arith.constant 0 : index
    %c0_126 = arith.constant 0 : index
    %c7936 = arith.constant 7936 : index
    %174 = vector.load %arg2[%c0_125, %c0_126, %c7936] : memref<1x80x8192xbf16, #tpu.memory_space<vmem>>, vector<1x80x256xbf16>
    %175 = vector.shape_cast %174 : vector<1x80x256xbf16> to vector<80x256xbf16>
    %cst_127 = arith.constant dense<0.000000e+00> : vector<24x256xf32>
    %176 = tpu.matmul %0, %175, %cst_127 {dimension_numbers = #tpu.dot_dimension_numbers<[1], [0], [0], [1], [0, 0, 1, 1], [], []>} : vector<24x80xbf16>, vector<80x256xbf16>, vector<24x256xf32> -> vector<24x256xf32>
    %177 = arith.maximumf %173, %176 : vector<24x256xf32>
    %178 = vector.broadcast %1 : vector<24x1xf32> to vector<24x256xf32>
    %179 = arith.addf %177, %178 : vector<24x256xf32>
    %cst_128 = arith.constant 0.000000e+00 : f32
    %180 = vector.broadcast %cst_128 : f32 to vector<24x256xf32>
    %181 = arith.maximumf %179, %180 : vector<24x256xf32>
    %182 = arith.truncf %181 : vector<24x256xf32> to vector<24x256xbf16>
    %c0_129 = arith.constant 0 : index
    %c7 = arith.constant 7 : index
    %c0_130 = arith.constant 0 : index
    %c0_131 = arith.constant 0 : index
    %183 = vector.load %arg5[%c0_129, %c7, %c0_130, %c0_131] : memref<1x8x24x256xbf16, #tpu.memory_space<vmem>>, vector<1x1x24x256xbf16>
    %184 = vector.shape_cast %183 : vector<1x1x24x256xbf16> to vector<24x256xbf16>
    %185 = vector.shape_cast %182 : vector<24x256xbf16> to vector<1x1x24x256xbf16>
    tpu.vector_store %arg5[%c0_129, %c7, %c0_130, %c0_131], %185 {strides = array<i32>} : memref<1x8x24x256xbf16, #tpu.memory_space<vmem>>, vector<1x1x24x256xbf16>,
    return
  }
  func.func @transform_0(%arg0: i32, %arg1: i32) -> (i32, i32, i32) {
    %c0_i32 = arith.constant 0 : i32
    %c0_i32_0 = arith.constant 0 : i32
    return %arg0, %c0_i32, %arg1 : i32, i32, i32
  }
  func.func @transform_1(%arg0: i32, %arg1: i32) -> (i32, i32) {
    %c0_i32 = arith.constant 0 : i32
    %c0_i32_0 = arith.constant 0 : i32
    %c0_i32_1 = arith.constant 0 : i32
    return %c0_i32, %c0_i32_0 : i32, i32
  }
  func.func @transform_2(%arg0: i32, %arg1: i32) -> (i32, i32) {
    %c0_i32 = arith.constant 0 : i32
    %c0_i32_0 = arith.constant 0 : i32
    %c0_i32_1 = arith.constant 0 : i32
    return %c0_i32, %c0_i32_0 : i32, i32
  }
  func.func @transform_3(%arg0: i32, %arg1: i32) -> (i32, i32, i32, i32) {
    %c0_i32 = arith.constant 0 : i32
    %c0_i32_0 = arith.constant 0 : i32
    %c0_i32_1 = arith.constant 0 : i32
    return %arg0, %arg1, %c0_i32, %c0_i32_0 : i32, i32, i32, i32
  }
}

module attributes {stable_mosaic.version = 11 : i64} {
  func.func @conv2_bn_relu_pool_kernel(%arg0: i32, %arg1: memref<1x16x608x128xbf16, #tpu.memory_space<vmem>>, %arg2: memref<32x608xbf16, #tpu.memory_space<vmem>>, %arg3: memref<32x1xf32, #tpu.memory_space<vmem>>, %arg4: memref<1x32x128xbf16, #tpu.memory_space<vmem>>) attributes {dimension_semantics = [#tpu.dimension_semantics<parallel>], iteration_bounds = array<i64: 2>, scalar_prefetch = 0 : i64, scratch_operands = 0 : i64, tpu.core_type = #tpu.core_type<tc>, window_params = [{transform_indices = @transform_0, window_bounds = array<i64: 1, 16, 608, 128>}, {pipeline_mode = #tpu.pipeline_mode<synchronous>, transform_indices = @transform_1, window_bounds = array<i64: 32, 608>}, {pipeline_mode = #tpu.pipeline_mode<synchronous>, transform_indices = @transform_2, window_bounds = array<i64: 32, 1>}, {transform_indices = @transform_3, window_bounds = array<i64: 1, 32, 128>}]} {
    %c0 = arith.constant 0 : index
    %c0_0 = arith.constant 0 : index
    %0 = vector.load %arg2[%c0, %c0_0] : memref<32x608xbf16, #tpu.memory_space<vmem>>, vector<32x608xbf16>
    %c0_1 = arith.constant 0 : index
    %c0_2 = arith.constant 0 : index
    %1 = vector.load %arg3[%c0_1, %c0_2] : memref<32x1xf32, #tpu.memory_space<vmem>>, vector<32x1xf32>
    %c0_3 = arith.constant 0 : index
    %c0_4 = arith.constant 0 : index
    %c0_5 = arith.constant 0 : index
    %c0_6 = arith.constant 0 : index
    %2 = vector.load %arg1[%c0_3, %c0_4, %c0_5, %c0_6] : memref<1x16x608x128xbf16, #tpu.memory_space<vmem>>, vector<1x1x608x128xbf16>
    %3 = vector.shape_cast %2 : vector<1x1x608x128xbf16> to vector<608x128xbf16>
    %cst = arith.constant dense<0.000000e+00> : vector<32x128xf32>
    %4 = tpu.matmul %0, %3, %cst {dimension_numbers = #tpu.dot_dimension_numbers<[1], [0], [0], [1], [0, 0, 1, 1], [], []>} : vector<32x608xbf16>, vector<608x128xbf16>, vector<32x128xf32> -> vector<32x128xf32>
    %5 = vector.broadcast %1 : vector<32x1xf32> to vector<32x128xf32>
    %6 = arith.addf %4, %5 : vector<32x128xf32>
    %cst_7 = arith.constant 0.000000e+00 : f32
    %7 = vector.broadcast %cst_7 : f32 to vector<32x128xf32>
    %8 = arith.maximumf %6, %7 : vector<32x128xf32>
    %c0_8 = arith.constant 0 : index
    %c1 = arith.constant 1 : index
    %c0_9 = arith.constant 0 : index
    %c0_10 = arith.constant 0 : index
    %9 = vector.load %arg1[%c0_8, %c1, %c0_9, %c0_10] : memref<1x16x608x128xbf16, #tpu.memory_space<vmem>>, vector<1x1x608x128xbf16>
    %10 = vector.shape_cast %9 : vector<1x1x608x128xbf16> to vector<608x128xbf16>
    %cst_11 = arith.constant dense<0.000000e+00> : vector<32x128xf32>
    %11 = tpu.matmul %0, %10, %cst_11 {dimension_numbers = #tpu.dot_dimension_numbers<[1], [0], [0], [1], [0, 0, 1, 1], [], []>} : vector<32x608xbf16>, vector<608x128xbf16>, vector<32x128xf32> -> vector<32x128xf32>
    %12 = vector.broadcast %1 : vector<32x1xf32> to vector<32x128xf32>
    %13 = arith.addf %11, %12 : vector<32x128xf32>
    %14 = arith.maximumf %8, %13 : vector<32x128xf32>
    %c0_12 = arith.constant 0 : index
    %c2 = arith.constant 2 : index
    %c0_13 = arith.constant 0 : index
    %c0_14 = arith.constant 0 : index
    %15 = vector.load %arg1[%c0_12, %c2, %c0_13, %c0_14] : memref<1x16x608x128xbf16, #tpu.memory_space<vmem>>, vector<1x1x608x128xbf16>
    %16 = vector.shape_cast %15 : vector<1x1x608x128xbf16> to vector<608x128xbf16>
    %cst_15 = arith.constant dense<0.000000e+00> : vector<32x128xf32>
    %17 = tpu.matmul %0, %16, %cst_15 {dimension_numbers = #tpu.dot_dimension_numbers<[1], [0], [0], [1], [0, 0, 1, 1], [], []>} : vector<32x608xbf16>, vector<608x128xbf16>, vector<32x128xf32> -> vector<32x128xf32>
    %18 = vector.broadcast %1 : vector<32x1xf32> to vector<32x128xf32>
    %19 = arith.addf %17, %18 : vector<32x128xf32>
    %20 = arith.maximumf %14, %19 : vector<32x128xf32>
    %c0_16 = arith.constant 0 : index
    %c3 = arith.constant 3 : index
    %c0_17 = arith.constant 0 : index
    %c0_18 = arith.constant 0 : index
    %21 = vector.load %arg1[%c0_16, %c3, %c0_17, %c0_18] : memref<1x16x608x128xbf16, #tpu.memory_space<vmem>>, vector<1x1x608x128xbf16>
    %22 = vector.shape_cast %21 : vector<1x1x608x128xbf16> to vector<608x128xbf16>
    %cst_19 = arith.constant dense<0.000000e+00> : vector<32x128xf32>
    %23 = tpu.matmul %0, %22, %cst_19 {dimension_numbers = #tpu.dot_dimension_numbers<[1], [0], [0], [1], [0, 0, 1, 1], [], []>} : vector<32x608xbf16>, vector<608x128xbf16>, vector<32x128xf32> -> vector<32x128xf32>
    %24 = vector.broadcast %1 : vector<32x1xf32> to vector<32x128xf32>
    %25 = arith.addf %23, %24 : vector<32x128xf32>
    %26 = arith.maximumf %20, %25 : vector<32x128xf32>
    %c0_20 = arith.constant 0 : index
    %c4 = arith.constant 4 : index
    %c0_21 = arith.constant 0 : index
    %c0_22 = arith.constant 0 : index
    %27 = vector.load %arg1[%c0_20, %c4, %c0_21, %c0_22] : memref<1x16x608x128xbf16, #tpu.memory_space<vmem>>, vector<1x1x608x128xbf16>
    %28 = vector.shape_cast %27 : vector<1x1x608x128xbf16> to vector<608x128xbf16>
    %cst_23 = arith.constant dense<0.000000e+00> : vector<32x128xf32>
    %29 = tpu.matmul %0, %28, %cst_23 {dimension_numbers = #tpu.dot_dimension_numbers<[1], [0], [0], [1], [0, 0, 1, 1], [], []>} : vector<32x608xbf16>, vector<608x128xbf16>, vector<32x128xf32> -> vector<32x128xf32>
    %30 = vector.broadcast %1 : vector<32x1xf32> to vector<32x128xf32>
    %31 = arith.addf %29, %30 : vector<32x128xf32>
    %32 = arith.maximumf %26, %31 : vector<32x128xf32>
    %c0_24 = arith.constant 0 : index
    %c5 = arith.constant 5 : index
    %c0_25 = arith.constant 0 : index
    %c0_26 = arith.constant 0 : index
    %33 = vector.load %arg1[%c0_24, %c5, %c0_25, %c0_26] : memref<1x16x608x128xbf16, #tpu.memory_space<vmem>>, vector<1x1x608x128xbf16>
    %34 = vector.shape_cast %33 : vector<1x1x608x128xbf16> to vector<608x128xbf16>
    %cst_27 = arith.constant dense<0.000000e+00> : vector<32x128xf32>
    %35 = tpu.matmul %0, %34, %cst_27 {dimension_numbers = #tpu.dot_dimension_numbers<[1], [0], [0], [1], [0, 0, 1, 1], [], []>} : vector<32x608xbf16>, vector<608x128xbf16>, vector<32x128xf32> -> vector<32x128xf32>
    %36 = vector.broadcast %1 : vector<32x1xf32> to vector<32x128xf32>
    %37 = arith.addf %35, %36 : vector<32x128xf32>
    %38 = arith.maximumf %32, %37 : vector<32x128xf32>
    %c0_28 = arith.constant 0 : index
    %c6 = arith.constant 6 : index
    %c0_29 = arith.constant 0 : index
    %c0_30 = arith.constant 0 : index
    %39 = vector.load %arg1[%c0_28, %c6, %c0_29, %c0_30] : memref<1x16x608x128xbf16, #tpu.memory_space<vmem>>, vector<1x1x608x128xbf16>
    %40 = vector.shape_cast %39 : vector<1x1x608x128xbf16> to vector<608x128xbf16>
    %cst_31 = arith.constant dense<0.000000e+00> : vector<32x128xf32>
    %41 = tpu.matmul %0, %40, %cst_31 {dimension_numbers = #tpu.dot_dimension_numbers<[1], [0], [0], [1], [0, 0, 1, 1], [], []>} : vector<32x608xbf16>, vector<608x128xbf16>, vector<32x128xf32> -> vector<32x128xf32>
    %42 = vector.broadcast %1 : vector<32x1xf32> to vector<32x128xf32>
    %43 = arith.addf %41, %42 : vector<32x128xf32>
    %44 = arith.maximumf %38, %43 : vector<32x128xf32>
    %c0_32 = arith.constant 0 : index
    %c7 = arith.constant 7 : index
    %c0_33 = arith.constant 0 : index
    %c0_34 = arith.constant 0 : index
    %45 = vector.load %arg1[%c0_32, %c7, %c0_33, %c0_34] : memref<1x16x608x128xbf16, #tpu.memory_space<vmem>>, vector<1x1x608x128xbf16>
    %46 = vector.shape_cast %45 : vector<1x1x608x128xbf16> to vector<608x128xbf16>
    %cst_35 = arith.constant dense<0.000000e+00> : vector<32x128xf32>
    %47 = tpu.matmul %0, %46, %cst_35 {dimension_numbers = #tpu.dot_dimension_numbers<[1], [0], [0], [1], [0, 0, 1, 1], [], []>} : vector<32x608xbf16>, vector<608x128xbf16>, vector<32x128xf32> -> vector<32x128xf32>
    %48 = vector.broadcast %1 : vector<32x1xf32> to vector<32x128xf32>
    %49 = arith.addf %47, %48 : vector<32x128xf32>
    %50 = arith.maximumf %44, %49 : vector<32x128xf32>
    %c0_36 = arith.constant 0 : index
    %c8 = arith.constant 8 : index
    %c0_37 = arith.constant 0 : index
    %c0_38 = arith.constant 0 : index
    %51 = vector.load %arg1[%c0_36, %c8, %c0_37, %c0_38] : memref<1x16x608x128xbf16, #tpu.memory_space<vmem>>, vector<1x1x608x128xbf16>
    %52 = vector.shape_cast %51 : vector<1x1x608x128xbf16> to vector<608x128xbf16>
    %cst_39 = arith.constant dense<0.000000e+00> : vector<32x128xf32>
    %53 = tpu.matmul %0, %52, %cst_39 {dimension_numbers = #tpu.dot_dimension_numbers<[1], [0], [0], [1], [0, 0, 1, 1], [], []>} : vector<32x608xbf16>, vector<608x128xbf16>, vector<32x128xf32> -> vector<32x128xf32>
    %54 = vector.broadcast %1 : vector<32x1xf32> to vector<32x128xf32>
    %55 = arith.addf %53, %54 : vector<32x128xf32>
    %56 = arith.maximumf %50, %55 : vector<32x128xf32>
    %c0_40 = arith.constant 0 : index
    %c9 = arith.constant 9 : index
    %c0_41 = arith.constant 0 : index
    %c0_42 = arith.constant 0 : index
    %57 = vector.load %arg1[%c0_40, %c9, %c0_41, %c0_42] : memref<1x16x608x128xbf16, #tpu.memory_space<vmem>>, vector<1x1x608x128xbf16>
    %58 = vector.shape_cast %57 : vector<1x1x608x128xbf16> to vector<608x128xbf16>
    %cst_43 = arith.constant dense<0.000000e+00> : vector<32x128xf32>
    %59 = tpu.matmul %0, %58, %cst_43 {dimension_numbers = #tpu.dot_dimension_numbers<[1], [0], [0], [1], [0, 0, 1, 1], [], []>} : vector<32x608xbf16>, vector<608x128xbf16>, vector<32x128xf32> -> vector<32x128xf32>
    %60 = vector.broadcast %1 : vector<32x1xf32> to vector<32x128xf32>
    %61 = arith.addf %59, %60 : vector<32x128xf32>
    %62 = arith.maximumf %56, %61 : vector<32x128xf32>
    %c0_44 = arith.constant 0 : index
    %c10 = arith.constant 10 : index
    %c0_45 = arith.constant 0 : index
    %c0_46 = arith.constant 0 : index
    %63 = vector.load %arg1[%c0_44, %c10, %c0_45, %c0_46] : memref<1x16x608x128xbf16, #tpu.memory_space<vmem>>, vector<1x1x608x128xbf16>
    %64 = vector.shape_cast %63 : vector<1x1x608x128xbf16> to vector<608x128xbf16>
    %cst_47 = arith.constant dense<0.000000e+00> : vector<32x128xf32>
    %65 = tpu.matmul %0, %64, %cst_47 {dimension_numbers = #tpu.dot_dimension_numbers<[1], [0], [0], [1], [0, 0, 1, 1], [], []>} : vector<32x608xbf16>, vector<608x128xbf16>, vector<32x128xf32> -> vector<32x128xf32>
    %66 = vector.broadcast %1 : vector<32x1xf32> to vector<32x128xf32>
    %67 = arith.addf %65, %66 : vector<32x128xf32>
    %68 = arith.maximumf %62, %67 : vector<32x128xf32>
    %c0_48 = arith.constant 0 : index
    %c11 = arith.constant 11 : index
    %c0_49 = arith.constant 0 : index
    %c0_50 = arith.constant 0 : index
    %69 = vector.load %arg1[%c0_48, %c11, %c0_49, %c0_50] : memref<1x16x608x128xbf16, #tpu.memory_space<vmem>>, vector<1x1x608x128xbf16>
    %70 = vector.shape_cast %69 : vector<1x1x608x128xbf16> to vector<608x128xbf16>
    %cst_51 = arith.constant dense<0.000000e+00> : vector<32x128xf32>
    %71 = tpu.matmul %0, %70, %cst_51 {dimension_numbers = #tpu.dot_dimension_numbers<[1], [0], [0], [1], [0, 0, 1, 1], [], []>} : vector<32x608xbf16>, vector<608x128xbf16>, vector<32x128xf32> -> vector<32x128xf32>
    %72 = vector.broadcast %1 : vector<32x1xf32> to vector<32x128xf32>
    %73 = arith.addf %71, %72 : vector<32x128xf32>
    %74 = arith.maximumf %68, %73 : vector<32x128xf32>
    %c0_52 = arith.constant 0 : index
    %c12 = arith.constant 12 : index
    %c0_53 = arith.constant 0 : index
    %c0_54 = arith.constant 0 : index
    %75 = vector.load %arg1[%c0_52, %c12, %c0_53, %c0_54] : memref<1x16x608x128xbf16, #tpu.memory_space<vmem>>, vector<1x1x608x128xbf16>
    %76 = vector.shape_cast %75 : vector<1x1x608x128xbf16> to vector<608x128xbf16>
    %cst_55 = arith.constant dense<0.000000e+00> : vector<32x128xf32>
    %77 = tpu.matmul %0, %76, %cst_55 {dimension_numbers = #tpu.dot_dimension_numbers<[1], [0], [0], [1], [0, 0, 1, 1], [], []>} : vector<32x608xbf16>, vector<608x128xbf16>, vector<32x128xf32> -> vector<32x128xf32>
    %78 = vector.broadcast %1 : vector<32x1xf32> to vector<32x128xf32>
    %79 = arith.addf %77, %78 : vector<32x128xf32>
    %80 = arith.maximumf %74, %79 : vector<32x128xf32>
    %c0_56 = arith.constant 0 : index
    %c13 = arith.constant 13 : index
    %c0_57 = arith.constant 0 : index
    %c0_58 = arith.constant 0 : index
    %81 = vector.load %arg1[%c0_56, %c13, %c0_57, %c0_58] : memref<1x16x608x128xbf16, #tpu.memory_space<vmem>>, vector<1x1x608x128xbf16>
    %82 = vector.shape_cast %81 : vector<1x1x608x128xbf16> to vector<608x128xbf16>
    %cst_59 = arith.constant dense<0.000000e+00> : vector<32x128xf32>
    %83 = tpu.matmul %0, %82, %cst_59 {dimension_numbers = #tpu.dot_dimension_numbers<[1], [0], [0], [1], [0, 0, 1, 1], [], []>} : vector<32x608xbf16>, vector<608x128xbf16>, vector<32x128xf32> -> vector<32x128xf32>
    %84 = vector.broadcast %1 : vector<32x1xf32> to vector<32x128xf32>
    %85 = arith.addf %83, %84 : vector<32x128xf32>
    %86 = arith.maximumf %80, %85 : vector<32x128xf32>
    %c0_60 = arith.constant 0 : index
    %c14 = arith.constant 14 : index
    %c0_61 = arith.constant 0 : index
    %c0_62 = arith.constant 0 : index
    %87 = vector.load %arg1[%c0_60, %c14, %c0_61, %c0_62] : memref<1x16x608x128xbf16, #tpu.memory_space<vmem>>, vector<1x1x608x128xbf16>
    %88 = vector.shape_cast %87 : vector<1x1x608x128xbf16> to vector<608x128xbf16>
    %cst_63 = arith.constant dense<0.000000e+00> : vector<32x128xf32>
    %89 = tpu.matmul %0, %88, %cst_63 {dimension_numbers = #tpu.dot_dimension_numbers<[1], [0], [0], [1], [0, 0, 1, 1], [], []>} : vector<32x608xbf16>, vector<608x128xbf16>, vector<32x128xf32> -> vector<32x128xf32>
    %90 = vector.broadcast %1 : vector<32x1xf32> to vector<32x128xf32>
    %91 = arith.addf %89, %90 : vector<32x128xf32>
    %92 = arith.maximumf %86, %91 : vector<32x128xf32>
    %c0_64 = arith.constant 0 : index
    %c15 = arith.constant 15 : index
    %c0_65 = arith.constant 0 : index
    %c0_66 = arith.constant 0 : index
    %93 = vector.load %arg1[%c0_64, %c15, %c0_65, %c0_66] : memref<1x16x608x128xbf16, #tpu.memory_space<vmem>>, vector<1x1x608x128xbf16>
    %94 = vector.shape_cast %93 : vector<1x1x608x128xbf16> to vector<608x128xbf16>
    %cst_67 = arith.constant dense<0.000000e+00> : vector<32x128xf32>
    %95 = tpu.matmul %0, %94, %cst_67 {dimension_numbers = #tpu.dot_dimension_numbers<[1], [0], [0], [1], [0, 0, 1, 1], [], []>} : vector<32x608xbf16>, vector<608x128xbf16>, vector<32x128xf32> -> vector<32x128xf32>
    %96 = vector.broadcast %1 : vector<32x1xf32> to vector<32x128xf32>
    %97 = arith.addf %95, %96 : vector<32x128xf32>
    %98 = arith.maximumf %92, %97 : vector<32x128xf32>
    %99 = arith.truncf %98 : vector<32x128xf32> to vector<32x128xbf16>
    %c0_68 = arith.constant 0 : index
    %c0_69 = arith.constant 0 : index
    %c0_70 = arith.constant 0 : index
    %100 = vector.load %arg4[%c0_68, %c0_69, %c0_70] : memref<1x32x128xbf16, #tpu.memory_space<vmem>>, vector<1x32x128xbf16>
    %101 = vector.shape_cast %100 : vector<1x32x128xbf16> to vector<32x128xbf16>
    %102 = vector.shape_cast %99 : vector<32x128xbf16> to vector<1x32x128xbf16>
    tpu.vector_store %arg4[%c0_68, %c0_69, %c0_70], %102 {strides = array<i32>} : memref<1x32x128xbf16, #tpu.memory_space<vmem>>, vector<1x32x128xbf16>,
    return
  }
  func.func @transform_0(%arg0: i32) -> (i32, i32, i32, i32) {
    %c0_i32 = arith.constant 0 : i32
    %c0_i32_0 = arith.constant 0 : i32
    %c0_i32_1 = arith.constant 0 : i32
    %c0_i32_2 = arith.constant 0 : i32
    return %arg0, %c0_i32, %c0_i32_0, %c0_i32_1 : i32, i32, i32, i32
  }
  func.func @transform_1(%arg0: i32) -> (i32, i32) {
    %c0_i32 = arith.constant 0 : i32
    %c0_i32_0 = arith.constant 0 : i32
    %c0_i32_1 = arith.constant 0 : i32
    return %c0_i32, %c0_i32_0 : i32, i32
  }
  func.func @transform_2(%arg0: i32) -> (i32, i32) {
    %c0_i32 = arith.constant 0 : i32
    %c0_i32_0 = arith.constant 0 : i32
    %c0_i32_1 = arith.constant 0 : i32
    return %c0_i32, %c0_i32_0 : i32, i32
  }
  func.func @transform_3(%arg0: i32) -> (i32, i32, i32) {
    %c0_i32 = arith.constant 0 : i32
    %c0_i32_0 = arith.constant 0 : i32
    %c0_i32_1 = arith.constant 0 : i32
    return %arg0, %c0_i32, %c0_i32_0 : i32, i32, i32
  }
}

module attributes {stable_mosaic.version = 11 : i64} {
  func.func @fc_head_kernel(%arg0: i32, %arg1: memref<8x4096xbf16, #tpu.memory_space<vmem>>, %arg2: memref<4096x120xbf16, #tpu.memory_space<vmem>>, %arg3: memref<1x120xf32, #tpu.memory_space<vmem>>, %arg4: memref<120x84xbf16, #tpu.memory_space<vmem>>, %arg5: memref<1x84xf32, #tpu.memory_space<vmem>>, %arg6: memref<84x12xbf16, #tpu.memory_space<vmem>>, %arg7: memref<1x12xf32, #tpu.memory_space<vmem>>, %arg8: memref<8x12xf32, #tpu.memory_space<vmem>>) attributes {dimension_semantics = [#tpu.dimension_semantics<arbitrary>], iteration_bounds = array<i64: 1>, scalar_prefetch = 0 : i64, scratch_operands = 0 : i64, tpu.core_type = #tpu.core_type<tc>, window_params = [{pipeline_mode = #tpu.pipeline_mode<synchronous>, transform_indices = @transform_0, window_bounds = array<i64: 8, 4096>}, {pipeline_mode = #tpu.pipeline_mode<synchronous>, transform_indices = @transform_1, window_bounds = array<i64: 4096, 120>}, {pipeline_mode = #tpu.pipeline_mode<synchronous>, transform_indices = @transform_2, window_bounds = array<i64: 1, 120>}, {pipeline_mode = #tpu.pipeline_mode<synchronous>, transform_indices = @transform_3, window_bounds = array<i64: 120, 84>}, {pipeline_mode = #tpu.pipeline_mode<synchronous>, transform_indices = @transform_4, window_bounds = array<i64: 1, 84>}, {pipeline_mode = #tpu.pipeline_mode<synchronous>, transform_indices = @transform_5, window_bounds = array<i64: 84, 12>}, {pipeline_mode = #tpu.pipeline_mode<synchronous>, transform_indices = @transform_6, window_bounds = array<i64: 1, 12>}, {pipeline_mode = #tpu.pipeline_mode<synchronous>, transform_indices = @transform_7, window_bounds = array<i64: 8, 12>}]} {
    %c0 = arith.constant 0 : index
    %c0_0 = arith.constant 0 : index
    %0 = vector.load %arg1[%c0, %c0_0] : memref<8x4096xbf16, #tpu.memory_space<vmem>>, vector<8x4096xbf16>
    %c0_1 = arith.constant 0 : index
    %c0_2 = arith.constant 0 : index
    %1 = vector.load %arg2[%c0_1, %c0_2] : memref<4096x120xbf16, #tpu.memory_space<vmem>>, vector<4096x120xbf16>
    %cst = arith.constant dense<0.000000e+00> : vector<8x120xf32>
    %2 = tpu.matmul %0, %1, %cst {dimension_numbers = #tpu.dot_dimension_numbers<[1], [0], [0], [1], [0, 0, 1, 1], [], []>} : vector<8x4096xbf16>, vector<4096x120xbf16>, vector<8x120xf32> -> vector<8x120xf32>
    %c0_3 = arith.constant 0 : index
    %c0_4 = arith.constant 0 : index
    %3 = vector.load %arg3[%c0_3, %c0_4] : memref<1x120xf32, #tpu.memory_space<vmem>>, vector<1x120xf32>
    %4 = vector.broadcast %3 : vector<1x120xf32> to vector<8x120xf32>
    %5 = arith.addf %2, %4 : vector<8x120xf32>
    %cst_5 = arith.constant 0.000000e+00 : f32
    %6 = vector.broadcast %cst_5 : f32 to vector<8x120xf32>
    %7 = arith.maximumf %5, %6 : vector<8x120xf32>
    %8 = arith.truncf %7 : vector<8x120xf32> to vector<8x120xbf16>
    %c0_6 = arith.constant 0 : index
    %c0_7 = arith.constant 0 : index
    %9 = vector.load %arg4[%c0_6, %c0_7] : memref<120x84xbf16, #tpu.memory_space<vmem>>, vector<120x84xbf16>
    %cst_8 = arith.constant dense<0.000000e+00> : vector<8x84xf32>
    %10 = tpu.matmul %8, %9, %cst_8 {dimension_numbers = #tpu.dot_dimension_numbers<[1], [0], [0], [1], [0, 0, 1, 1], [], []>} : vector<8x120xbf16>, vector<120x84xbf16>, vector<8x84xf32> -> vector<8x84xf32>
    %c0_9 = arith.constant 0 : index
    %c0_10 = arith.constant 0 : index
    %11 = vector.load %arg5[%c0_9, %c0_10] : memref<1x84xf32, #tpu.memory_space<vmem>>, vector<1x84xf32>
    %12 = vector.broadcast %11 : vector<1x84xf32> to vector<8x84xf32>
    %13 = arith.addf %10, %12 : vector<8x84xf32>
    %cst_11 = arith.constant 0.000000e+00 : f32
    %14 = vector.broadcast %cst_11 : f32 to vector<8x84xf32>
    %15 = arith.maximumf %13, %14 : vector<8x84xf32>
    %16 = arith.truncf %15 : vector<8x84xf32> to vector<8x84xbf16>
    %c0_12 = arith.constant 0 : index
    %c0_13 = arith.constant 0 : index
    %17 = vector.load %arg6[%c0_12, %c0_13] : memref<84x12xbf16, #tpu.memory_space<vmem>>, vector<84x12xbf16>
    %cst_14 = arith.constant dense<0.000000e+00> : vector<8x12xf32>
    %18 = tpu.matmul %16, %17, %cst_14 {dimension_numbers = #tpu.dot_dimension_numbers<[1], [0], [0], [1], [0, 0, 1, 1], [], []>} : vector<8x84xbf16>, vector<84x12xbf16>, vector<8x12xf32> -> vector<8x12xf32>
    %c0_15 = arith.constant 0 : index
    %c0_16 = arith.constant 0 : index
    %19 = vector.load %arg7[%c0_15, %c0_16] : memref<1x12xf32, #tpu.memory_space<vmem>>, vector<1x12xf32>
    %20 = vector.broadcast %19 : vector<1x12xf32> to vector<8x12xf32>
    %21 = arith.addf %18, %20 : vector<8x12xf32>
    %c0_17 = arith.constant 0 : index
    %c0_18 = arith.constant 0 : index
    %22 = vector.load %arg8[%c0_17, %c0_18] : memref<8x12xf32, #tpu.memory_space<vmem>>, vector<8x12xf32>
    tpu.vector_store %arg8[%c0_17, %c0_18], %21 {strides = array<i32>} : memref<8x12xf32, #tpu.memory_space<vmem>>, vector<8x12xf32>,
    return
  }
  func.func @transform_0(%arg0: i32) -> (i32, i32) {
    %c0_i32 = arith.constant 0 : i32
    %c0_i32_0 = arith.constant 0 : i32
    %c0_i32_1 = arith.constant 0 : i32
    return %c0_i32, %c0_i32_0 : i32, i32
  }
  func.func @transform_1(%arg0: i32) -> (i32, i32) {
    %c0_i32 = arith.constant 0 : i32
    %c0_i32_0 = arith.constant 0 : i32
    %c0_i32_1 = arith.constant 0 : i32
    return %c0_i32, %c0_i32_0 : i32, i32
  }
  func.func @transform_2(%arg0: i32) -> (i32, i32) {
    %c0_i32 = arith.constant 0 : i32
    %c0_i32_0 = arith.constant 0 : i32
    %c0_i32_1 = arith.constant 0 : i32
    return %c0_i32, %c0_i32_0 : i32, i32
  }
  func.func @transform_3(%arg0: i32) -> (i32, i32) {
    %c0_i32 = arith.constant 0 : i32
    %c0_i32_0 = arith.constant 0 : i32
    %c0_i32_1 = arith.constant 0 : i32
    return %c0_i32, %c0_i32_0 : i32, i32
  }
  func.func @transform_4(%arg0: i32) -> (i32, i32) {
    %c0_i32 = arith.constant 0 : i32
    %c0_i32_0 = arith.constant 0 : i32
    %c0_i32_1 = arith.constant 0 : i32
    return %c0_i32, %c0_i32_0 : i32, i32
  }
  func.func @transform_5(%arg0: i32) -> (i32, i32) {
    %c0_i32 = arith.constant 0 : i32
    %c0_i32_0 = arith.constant 0 : i32
    %c0_i32_1 = arith.constant 0 : i32
    return %c0_i32, %c0_i32_0 : i32, i32
  }
  func.func @transform_6(%arg0: i32) -> (i32, i32) {
    %c0_i32 = arith.constant 0 : i32
    %c0_i32_0 = arith.constant 0 : i32
    %c0_i32_1 = arith.constant 0 : i32
    return %c0_i32, %c0_i32_0 : i32, i32
  }
  func.func @transform_7(%arg0: i32) -> (i32, i32) {
    %c0_i32 = arith.constant 0 : i32
    %c0_i32_0 = arith.constant 0 : i32
    %c0_i32_1 = arith.constant 0 : i32
    return %c0_i32, %c0_i32_0 : i32, i32
  }
}

</mosaic_0001>

<bundles_post_ra>
// kernel: net_forward.3
= control target key start
LH: loop header
LB: loop body
LE: loop exit
PB: predicated region body
PF: predicated region fallthrough
CT: control target
= control target key end

     0   :  { %s5591_s12 = smov 0   ;;  %s5593_s13 = smov 0   ;;  %s7103_s0 = inlined_call_operand.vmem [shape: bf16[2,80,49152], index: 0, kind: input, shape index: {}]   ;;  %s7104_s1 = inlined_call_operand.vmem [shape: bf16[24,80], index: 1, kind: input, shape index: {}]   ;;  %s7105_s2 = inlined_call_operand.vmem [shape: f32[24,1], index: 2, kind: input, shape index: {}]   ;;  %s7106_s3 = inlined_call_operand.vmem [shape: bf16[2,48,24,256], index: 3, kind: output, shape index: {}]  }
   0x1   :  { %s5595_s14 = smov 0   ;;  %s5597_s15 = smov 0  }
   0x2   :  { %s5599_s16 = smov 0   ;;  %s5601_s17 = smov 0  }
   0x3   :  { %s5603_s18 = smov 0  }
   0x4 LB: > { %s22_s19 = sadd.s32 1, %s5560_s16  ;;  %s25_s20 = sadd.s32 1, %s5564_s17  ;;  %s5568_s18 = sphi %s5603_s18, %s13_s18   ;;  %s5564_s17 = sphi %s5601_s17, %s7113_s17   ;;  %s5560_s16 = sphi %s5599_s16, %s7112_s16   ;;  %s5556_s15 = sphi %s5597_s15, %s7111_s15   ;;  %s5552_s14 = sphi %s5595_s14, %s7110_s14   ;;  %s5548_s13 = sphi %s5593_s13, %s7109_s13   ;;  %s5544_s12 = sphi %s5591_s12, %s7108_s12  }
   0x5   : > { %p23_p0 = scmp.ge.s32.totalorder %s22_s19, 6  ;;  %p41_p1 = scmp.ne.s32.totalorder %s5548_s13, %s5544_s12 }
   0x6   : > { %p42_p2 = scmp.eq.s32.totalorder %s5568_s18, 0  ;;  %s34_s24 = sadd.s32 1, %s5548_s13 }
   0x7   : > { %s7115_s19 = smov (%p23_p0, %s22_s19), 0  ;;  %s7117_s20 = smov (!%p23_p0, %s25_s20), %s5564_s17 }
   0x8   : > { %p43_p3 = por %p42_p2, %p41_p1  ;;  %p27_p4 = scmp.ge.s32.totalorder %s7117_s20, 2 }
   0x9   : > { %s30_s21 = ssub.s32 %s5560_s16, %s7115_s19  ;;  %p4981_p6 = scmp.ge.s32.totalorder %s5568_s18, 12 }
   0xa   : > { %s7119_s20 = smov (%p27_p4, %s7117_s20), 0 }
   0xb   : > { %s29_s22 = ssub.s32 %s5564_s17, %s7119_s20  ;;  %143 = sbr.rel (%p4981_p6) target bundleno = 186 (0xba), region = 24 }
   0xc   : > { %s31_s23 = sor.u32 %s30_s21, %s29_s22 }
   0xd   : > { %p32_p5 = scmp.eq.s32.totalorder %s31_s23, 0 }
   0xf   : > { %s5642_s25 = scalar_select %p32_p5, %s5548_s13, %s34_s24  }
  0x12   : > { %146 = sbr.rel (!%p43_p3) target bundleno = 186 (0xba), region = 28  ;;  %s148_s26 = sand.u32 (%p43_p3), 1, %s5548_s13  }
  0x13   : > { %s5444_s27 = smul.u32 (%p43_p3), 2560, %s148_s26  ;;  %s4982_s28 = sshll.u32 (%p43_p3), %s5560_s16, 6 }
  0x14   : > { %s5445_s29 = smul.u32 (%p43_p3), 3840, %s5564_s17 }
  0x15   : > { %s5656_s8 = scalar_lea.vmem (%p43_p3), [#allocation2], %s5444_s27 }
  0x16   : > { %s153_s30 = sadd.s32 (%p43_p3), %s5445_s29, %s4982_s28 }
  0x17   : > { %s4983_s4 = sshll.u32 (%p43_p3), %s153_s30, 2 }
  0x18   : > { %s5651_s7 = scalar_lea.vmem (%p43_p3), %s7103_s0, %s4983_s4 }
  0x19   : > { %v168_v0 = vld [vmem:[%s5651_s7] sm:$0xff]  ;;  %v170_v1 = vld [vmem:[%s5651_s7 + $0x8] sm:$0xff]  ;;  %v172_v2 = vld [vmem:[%s5651_s7 + $0x10] sm:$0xff] }
  0x1a   : > { %169 = vst [vmem:[%s5656_s8] sm:$0xff] %v168_v0  ;;  %171 = vst [vmem:[%s5656_s8 + $0x8] sm:$0xff] %v170_v1  ;;  %v174_v3 = vld [vmem:[%s5651_s7 + $0x18] sm:$0xff]  ;;  %v176_v4 = vld [vmem:[%s5651_s7 + $0x20] sm:$0xff] }
  0x1b   : > { %173 = vst [vmem:[%s5656_s8 + $0x10] sm:$0xff] %v172_v2  ;;  %v178_v5 = vld [vmem:[%s5651_s7 + $0x28] sm:$0xff]  ;;  %175 = vst [vmem:[%s5656_s8 + $0x18] sm:$0xff] %v174_v3  ;;  %v180_v6 = vld [vmem:[%s5651_s7 + $0x30] sm:$0xff] }
  0x1c   : > { %177 = vst [vmem:[%s5656_s8 + $0x20] sm:$0xff] %v176_v4  ;;  %179 = vst [vmem:[%s5656_s8 + $0x28] sm:$0xff] %v178_v5  ;;  %v182_v7 = vld [vmem:[%s5651_s7 + $0x38] sm:$0xff]  ;;  %v184_v8 = vld [vmem:[%s5651_s7 + $0x40] sm:$0xff] }
  0x1d   : > { %181 = vst [vmem:[%s5656_s8 + $0x30] sm:$0xff] %v180_v6  ;;  %183 = vst [vmem:[%s5656_s8 + $0x38] sm:$0xff] %v182_v7  ;;  %v186_v9 = vld [vmem:[%s5651_s7 + $0x48] sm:$0xff]  ;;  %v188_v10 = vld [vmem:[%s5651_s7 + $0x50] sm:$0xff] }
  0x1e   : > { %185 = vst [vmem:[%s5656_s8 + $0x40] sm:$0xff] %v184_v8  ;;  %v190_v11 = vld [vmem:[%s5651_s7 + $0x58] sm:$0xff]  ;;  %187 = vst [vmem:[%s5656_s8 + $0x48] sm:$0xff] %v186_v9  ;;  %v192_v12 = vld [vmem:[%s5651_s7 + $0x60] sm:$0xff] }
  0x1f   : > { %189 = vst [vmem:[%s5656_s8 + $0x50] sm:$0xff] %v188_v10  ;;  %191 = vst [vmem:[%s5656_s8 + $0x58] sm:$0xff] %v190_v11  ;;  %v194_v13 = vld [vmem:[%s5651_s7 + $0x68] sm:$0xff]  ;;  %v196_v14 = vld [vmem:[%s5651_s7 + $0x70] sm:$0xff] }
  0x20   : > { %193 = vst [vmem:[%s5656_s8 + $0x60] sm:$0xff] %v192_v12  ;;  %195 = vst [vmem:[%s5656_s8 + $0x68] sm:$0xff] %v194_v13  ;;  %v198_v15 = vld [vmem:[%s5651_s7 + $0x78] sm:$0xff]  ;;  %v200_v16 = vld [vmem:[%s5651_s7 + $0x80] sm:$0xff] }
  0x21   : > { %197 = vst [vmem:[%s5656_s8 + $0x70] sm:$0xff] %v196_v14  ;;  %v202_v17 = vld [vmem:[%s5651_s7 + $0x88] sm:$0xff]  ;;  %199 = vst [vmem:[%s5656_s8 + $0x78] sm:$0xff] %v198_v15  ;;  %v204_v18 = vld [vmem:[%s5651_s7 + $0x90] sm:$0xff] }
  0x22   : > { %201 = vst [vmem:[%s5656_s8 + $0x80] sm:$0xff] %v200_v16  ;;  %203 = vst [vmem:[%s5656_s8 + $0x88] sm:$0xff] %v202_v17  ;;  %v206_v19 = vld [vmem:[%s5651_s7 + $0x98] sm:$0xff]  ;;  %v208_v20 = vld [vmem:[%s5651_s7 + $0xa0] sm:$0xff] }
  0x23   : > { %205 = vst [vmem:[%s5656_s8 + $0x90] sm:$0xff] %v204_v18  ;;  %207 = vst [vmem:[%s5656_s8 + $0x98] sm:$0xff] %v206_v19  ;;  %v210_v21 = vld [vmem:[%s5651_s7 + $0xa8] sm:$0xff]  ;;  %v212_v22 = vld [vmem:[%s5651_s7 + $0xb0] sm:$0xff] }
  0x24   : > { %209 = vst [vmem:[%s5656_s8 + $0xa0] sm:$0xff] %v208_v20  ;;  %v214_v23 = vld [vmem:[%s5651_s7 + $0xb8] sm:$0xff]  ;;  %211 = vst [vmem:[%s5656_s8 + $0xa8] sm:$0xff] %v210_v21  ;;  %v216_v24 = vld [vmem:[%s5651_s7 + $0xc0] sm:$0xff] }
  0x25   : > { %213 = vst [vmem:[%s5656_s8 + $0xb0] sm:$0xff] %v212_v22  ;;  %215 = vst [vmem:[%s5656_s8 + $0xb8] sm:$0xff] %v214_v23  ;;  %v218_v25 = vld [vmem:[%s5651_s7 + $0xc8] sm:$0xff]  ;;  %v220_v26 = vld [vmem:[%s5651_s7 + $0xd0] sm:$0xff] }
  0x26   : > { %217 = vst [vmem:[%s5656_s8 + $0xc0] sm:$0xff] %v216_v24  ;;  %219 = vst [vmem:[%s5656_s8 + $0xc8] sm:$0xff] %v218_v25  ;;  %v222_v27 = vld [vmem:[%s5651_s7 + $0xd8] sm:$0xff]  ;;  %v224_v28 = vld [vmem:[%s5651_s7 + $0xe0] sm:$0xff] }
  0x27   : > { %221 = vst [vmem:[%s5656_s8 + $0xd0] sm:$0xff] %v220_v26  ;;  %v226_v29 = vld [vmem:[%s5651_s7 + $0xe8] sm:$0xff]  ;;  %223 = vst [vmem:[%s5656_s8 + $0xd8] sm:$0xff] %v222_v27  ;;  %v228_v30 = vld [vmem:[%s5651_s7 + $0xf0] sm:$0xff] }
  0x28   : > { %225 = vst [vmem:[%s5656_s8 + $0xe0] sm:$0xff] %v224_v28  ;;  %227 = vst [vmem:[%s5656_s8 + $0xe8] sm:$0xff] %v226_v29  ;;  %v230_v31 = vld [vmem:[%s5651_s7 + $0xf8] sm:$0xff]  ;;  %v232_v32 = vld [vmem:[%s5651_s7 + $0x600] sm:$0xff] }
  0x29   : > { %229 = vst [vmem:[%s5656_s8 + $0xf0] sm:$0xff] %v228_v30  ;;  %231 = vst [vmem:[%s5656_s8 + $0xf8] sm:$0xff] %v230_v31  ;;  %v234_v33 = vld [vmem:[%s5651_s7 + $0x608] sm:$0xff]  ;;  %v236_v34 = vld [vmem:[%s5651_s7 + $0x610] sm:$0xff] }
  0x2a   : > { %233 = vst [vmem:[%s5656_s8 + $0x100] sm:$0xff] %v232_v32  ;;  %v238_v35 = vld [vmem:[%s5651_s7 + $0x618] sm:$0xff]  ;;  %235 = vst [vmem:[%s5656_s8 + $0x108] sm:$0xff] %v234_v33  ;;  %v240_v36 = vld [vmem:[%s5651_s7 + $0x620] sm:$0xff] }
  0x2b   : > { %237 = vst [vmem:[%s5656_s8 + $0x110] sm:$0xff] %v236_v34  ;;  %239 = vst [vmem:[%s5656_s8 + $0x118] sm:$0xff] %v238_v35  ;;  %v242_v37 = vld [vmem:[%s5651_s7 + $0x628] sm:$0xff]  ;;  %v244_v38 = vld [vmem:[%s5651_s7 + $0x630] sm:$0xff] }
  0x2c   : > { %241 = vst [vmem:[%s5656_s8 + $0x120] sm:$0xff] %v240_v36  ;;  %243 = vst [vmem:[%s5656_s8 + $0x128] sm:$0xff] %v242_v37  ;;  %v246_v39 = vld [vmem:[%s5651_s7 + $0x638] sm:$0xff]  ;;  %v248_v40 = vld [vmem:[%s5651_s7 + $0x640] sm:$0xff] }
  0x2d   : > { %245 = vst [vmem:[%s5656_s8 + $0x130] sm:$0xff] %v244_v38  ;;  %v250_v41 = vld [vmem:[%s5651_s7 + $0x648] sm:$0xff]  ;;  %247 = vst [vmem:[%s5656_s8 + $0x138] sm:$0xff] %v246_v39  ;;  %v252_v42 = vld [vmem:[%s5651_s7 + $0x650] sm:$0xff] }
  0x2e   : > { %249 = vst [vmem:[%s5656_s8 + $0x140] sm:$0xff] %v248_v40  ;;  %251 = vst [vmem:[%s5656_s8 + $0x148] sm:$0xff] %v250_v41  ;;  %v254_v43 = vld [vmem:[%s5651_s7 + $0x658] sm:$0xff]  ;;  %v256_v44 = vld [vmem:[%s5651_s7 + $0x660] sm:$0xff] }
  0x2f   : > { %253 = vst [vmem:[%s5656_s8 + $0x150] sm:$0xff] %v252_v42  ;;  %255 = vst [vmem:[%s5656_s8 + $0x158] sm:$0xff] %v254_v43  ;;  %v258_v45 = vld [vmem:[%s5651_s7 + $0x668] sm:$0xff]  ;;  %v260_v46 = vld [vmem:[%s5651_s7 + $0x670] sm:$0xff] }
  0x30   : > { %257 = vst [vmem:[%s5656_s8 + $0x160] sm:$0xff] %v256_v44  ;;  %v262_v47 = vld [vmem:[%s5651_s7 + $0x678] sm:$0xff]  ;;  %259 = vst [vmem:[%s5656_s8 + $0x168] sm:$0xff] %v258_v45  ;;  %v264_v48 = vld [vmem:[%s5651_s7 + $0x680] sm:$0xff] }
  0x31   : > { %261 = vst [vmem:[%s5656_s8 + $0x170] sm:$0xff] %v260_v46  ;;  %263 = vst [vmem:[%s5656_s8 + $0x178] sm:$0xff] %v262_v47  ;;  %v266_v49 = vld [vmem:[%s5651_s7 + $0x688] sm:$0xff]  ;;  %v268_v50 = vld [vmem:[%s5651_s7 + $0x690] sm:$0xff] }
  0x32   : > { %265 = vst [vmem:[%s5656_s8 + $0x180] sm:$0xff] %v264_v48  ;;  %267 = vst [vmem:[%s5656_s8 + $0x188] sm:$0xff] %v266_v49  ;;  %v270_v51 = vld [vmem:[%s5651_s7 + $0x698] sm:$0xff]  ;;  %v272_v52 = vld [vmem:[%s5651_s7 + $0x6a0] sm:$0xff] }
  0x33   : > { %269 = vst [vmem:[%s5656_s8 + $0x190] sm:$0xff] %v268_v50  ;;  %v274_v53 = vld [vmem:[%s5651_s7 + $0x6a8] sm:$0xff]  ;;  %271 = vst [vmem:[%s5656_s8 + $0x198] sm:$0xff] %v270_v51  ;;  %v276_v54 = vld [vmem:[%s5651_s7 + $0x6b0] sm:$0xff] }
  0x34   : > { %273 = vst [vmem:[%s5656_s8 + $0x1a0] sm:$0xff] %v272_v52  ;;  %275 = vst [vmem:[%s5656_s8 + $0x1a8] sm:$0xff] %v274_v53  ;;  %v278_v55 = vld [vmem:[%s5651_s7 + $0x6b8] sm:$0xff]  ;;  %v280_v56 = vld [vmem:[%s5651_s7 + $0x6c0] sm:$0xff] }
  0x35   : > { %277 = vst [vmem:[%s5656_s8 + $0x1b0] sm:$0xff] %v276_v54  ;;  %279 = vst [vmem:[%s5656_s8 + $0x1b8] sm:$0xff] %v278_v55  ;;  %v282_v57 = vld [vmem:[%s5651_s7 + $0x6c8] sm:$0xff]  ;;  %v284_v58 = vld [vmem:[%s5651_s7 + $0x6d0] sm:$0xff] }
  0x36   : > { %281 = vst [vmem:[%s5656_s8 + $0x1c0] sm:$0xff] %v280_v56  ;;  %v286_v59 = vld [vmem:[%s5651_s7 + $0x6d8] sm:$0xff]  ;;  %283 = vst [vmem:[%s5656_s8 + $0x1c8] sm:$0xff] %v282_v57  ;;  %v288_v60 = vld [vmem:[%s5651_s7 + $0x6e0] sm:$0xff] }
  0x37   : > { %285 = vst [vmem:[%s5656_s8 + $0x1d0] sm:$0xff] %v284_v58  ;;  %287 = vst [vmem:[%s5656_s8 + $0x1d8] sm:$0xff] %v286_v59  ;;  %v290_v61 = vld [vmem:[%s5651_s7 + $0x6e8] sm:$0xff]  ;;  %v292_v62 = vld [vmem:[%s5651_s7 + $0x6f0] sm:$0xff] }
  0x38   : > { %289 = vst [vmem:[%s5656_s8 + $0x1e0] sm:$0xff] %v288_v60  ;;  %291 = vst [vmem:[%s5656_s8 + $0x1e8] sm:$0xff] %v290_v61  ;;  %v294_v63 = vld [vmem:[%s5651_s7 + $0x6f8] sm:$0xff]  ;;  %v296_v0 = vld [vmem:[%s5651_s7 + $0xc00] sm:$0xff] }
  0x39   : > { %293 = vst [vmem:[%s5656_s8 + $0x1f0] sm:$0xff] %v292_v62  ;;  %v298_v1 = vld [vmem:[%s5651_s7 + $0xc08] sm:$0xff]  ;;  %295 = vst [vmem:[%s5656_s8 + $0x1f8] sm:$0xff] %v294_v63  ;;  %v300_v2 = vld [vmem:[%s5651_s7 + $0xc10] sm:$0xff] }
  0x3a   : > { %297 = vst [vmem:[%s5656_s8 + $0x200] sm:$0xff] %v296_v0  ;;  %299 = vst [vmem:[%s5656_s8 + $0x208] sm:$0xff] %v298_v1  ;;  %v302_v3 = vld [vmem:[%s5651_s7 + $0xc18] sm:$0xff]  ;;  %v304_v4 = vld [vmem:[%s5651_s7 + $0xc20] sm:$0xff] }
  0x3b   : > { %301 = vst [vmem:[%s5656_s8 + $0x210] sm:$0xff] %v300_v2  ;;  %303 = vst [vmem:[%s5656_s8 + $0x218] sm:$0xff] %v302_v3  ;;  %v306_v5 = vld [vmem:[%s5651_s7 + $0xc28] sm:$0xff]  ;;  %v308_v6 = vld [vmem:[%s5651_s7 + $0xc30] sm:$0xff] }
  0x3c   : > { %305 = vst [vmem:[%s5656_s8 + $0x220] sm:$0xff] %v304_v4  ;;  %v310_v7 = vld [vmem:[%s5651_s7 + $0xc38] sm:$0xff]  ;;  %307 = vst [vmem:[%s5656_s8 + $0x228] sm:$0xff] %v306_v5  ;;  %v312_v8 = vld [vmem:[%s5651_s7 + $0xc40] sm:$0xff] }
  0x3d   : > { %309 = vst [vmem:[%s5656_s8 + $0x230] sm:$0xff] %v308_v6  ;;  %311 = vst [vmem:[%s5656_s8 + $0x238] sm:$0xff] %v310_v7  ;;  %v314_v9 = vld [vmem:[%s5651_s7 + $0xc48] sm:$0xff]  ;;  %v316_v10 = vld [vmem:[%s5651_s7 + $0xc50] sm:$0xff] }
  0x3e   : > { %313 = vst [vmem:[%s5656_s8 + $0x240] sm:$0xff] %v312_v8  ;;  %315 = vst [vmem:[%s5656_s8 + $0x248] sm:$0xff] %v314_v9  ;;  %v318_v11 = vld [vmem:[%s5651_s7 + $0xc58] sm:$0xff]  ;;  %v320_v12 = vld [vmem:[%s5651_s7 + $0xc60] sm:$0xff] }
  0x3f   : > { %317 = vst [vmem:[%s5656_s8 + $0x250] sm:$0xff] %v316_v10  ;;  %v322_v13 = vld [vmem:[%s5651_s7 + $0xc68] sm:$0xff]  ;;  %319 = vst [vmem:[%s5656_s8 + $0x258] sm:$0xff] %v318_v11  ;;  %v324_v14 = vld [vmem:[%s5651_s7 + $0xc70] sm:$0xff] }
  0x40   : > { %321 = vst [vmem:[%s5656_s8 + $0x260] sm:$0xff] %v320_v12  ;;  %323 = vst [vmem:[%s5656_s8 + $0x268] sm:$0xff] %v322_v13  ;;  %v326_v15 = vld [vmem:[%s5651_s7 + $0xc78] sm:$0xff]  ;;  %v328_v16 = vld [vmem:[%s5651_s7 + $0xc80] sm:$0xff] }
  0x41   : > { %325 = vst [vmem:[%s5656_s8 + $0x270] sm:$0xff] %v324_v14  ;;  %327 = vst [vmem:[%s5656_s8 + $0x278] sm:$0xff] %v326_v15  ;;  %v330_v17 = vld [vmem:[%s5651_s7 + $0xc88] sm:$0xff]  ;;  %v332_v18 = vld [vmem:[%s5651_s7 + $0xc90] sm:$0xff] }
  0x42   : > { %329 = vst [vmem:[%s5656_s8 + $0x280] sm:$0xff] %v328_v16  ;;  %v334_v19 = vld [vmem:[%s5651_s7 + $0xc98] sm:$0xff]  ;;  %331 = vst [vmem:[%s5656_s8 + $0x288] sm:$0xff] %v330_v17  ;;  %v336_v20 = vld [vmem:[%s5651_s7 + $0xca0] sm:$0xff] }
  0x43   : > { %333 = vst [vmem:[%s5656_s8 + $0x290] sm:$0xff] %v332_v18  ;;  %335 = vst [vmem:[%s5656_s8 + $0x298] sm:$0xff] %v334_v19  ;;  %v338_v21 = vld [vmem:[%s5651_s7 + $0xca8] sm:$0xff]  ;;  %v340_v22 = vld [vmem:[%s5651_s7 + $0xcb0] sm:$0xff] }
  0x44   : > { %337 = vst [vmem:[%s5656_s8 + $0x2a0] sm:$0xff] %v336_v20  ;;  %339 = vst [vmem:[%s5656_s8 + $0x2a8] sm:$0xff] %v338_v21  ;;  %v342_v23 = vld [vmem:[%s5651_s7 + $0xcb8] sm:$0xff]  ;;  %v344_v24 = vld [vmem:[%s5651_s7 + $0xcc0] sm:$0xff] }
  0x45   : > { %341 = vst [vmem:[%s5656_s8 + $0x2b0] sm:$0xff] %v340_v22  ;;  %v346_v25 = vld [vmem:[%s5651_s7 + $0xcc8] sm:$0xff]  ;;  %343 = vst [vmem:[%s5656_s8 + $0x2b8] sm:$0xff] %v342_v23  ;;  %v348_v26 = vld [vmem:[%s5651_s7 + $0xcd0] sm:$0xff] }
  0x46   : > { %345 = vst [vmem:[%s5656_s8 + $0x2c0] sm:$0xff] %v344_v24  ;;  %347 = vst [vmem:[%s5656_s8 + $0x2c8] sm:$0xff] %v346_v25  ;;  %v350_v27 = vld [vmem:[%s5651_s7 + $0xcd8] sm:$0xff]  ;;  %v352_v28 = vld [vmem:[%s5651_s7 + $0xce0] sm:$0xff] }
  0x47   : > { %349 = vst [vmem:[%s5656_s8 + $0x2d0] sm:$0xff] %v348_v26  ;;  %351 = vst [vmem:[%s5656_s8 + $0x2d8] sm:$0xff] %v350_v27  ;;  %v354_v29 = vld [vmem:[%s5651_s7 + $0xce8] sm:$0xff]  ;;  %v356_v30 = vld [vmem:[%s5651_s7 + $0xcf0] sm:$0xff] }
  0x48   : > { %353 = vst [vmem:[%s5656_s8 + $0x2e0] sm:$0xff] %v352_v28  ;;  %v358_v31 = vld [vmem:[%s5651_s7 + $0xcf8] sm:$0xff]  ;;  %355 = vst [vmem:[%s5656_s8 + $0x2e8] sm:$0xff] %v354_v29  ;;  %v360_v32 = vld [vmem:[%s5651_s7 + $0x1200] sm:$0xff] }
  0x49   : > { %357 = vst [vmem:[%s5656_s8 + $0x2f0] sm:$0xff] %v356_v30  ;;  %359 = vst [vmem:[%s5656_s8 + $0x2f8] sm:$0xff] %v358_v31  ;;  %v362_v33 = vld [vmem:[%s5651_s7 + $0x1208] sm:$0xff]  ;;  %v364_v34 = vld [vmem:[%s5651_s7 + $0x1210] sm:$0xff] }
  0x4a   : > { %361 = vst [vmem:[%s5656_s8 + $0x300] sm:$0xff] %v360_v32  ;;  %363 = vst [vmem:[%s5656_s8 + $0x308] sm:$0xff] %v362_v33  ;;  %v366_v35 = vld [vmem:[%s5651_s7 + $0x1218] sm:$0xff]  ;;  %v368_v36 = vld [vmem:[%s5651_s7 + $0x1220] sm:$0xff] }
  0x4b   : > { %365 = vst [vmem:[%s5656_s8 + $0x310] sm:$0xff] %v364_v34  ;;  %v370_v37 = vld [vmem:[%s5651_s7 + $0x1228] sm:$0xff]  ;;  %367 = vst [vmem:[%s5656_s8 + $0x318] sm:$0xff] %v366_v35  ;;  %v372_v38 = vld [vmem:[%s5651_s7 + $0x1230] sm:$0xff] }
  0x4c   : > { %369 = vst [vmem:[%s5656_s8 + $0x320] sm:$0xff] %v368_v36  ;;  %371 = vst [vmem:[%s5656_s8 + $0x328] sm:$0xff] %v370_v37  ;;  %v374_v39 = vld [vmem:[%s5651_s7 + $0x1238] sm:$0xff]  ;;  %v376_v40 = vld [vmem:[%s5651_s7 + $0x1240] sm:$0xff] }
  0x4d   : > { %373 = vst [vmem:[%s5656_s8 + $0x330] sm:$0xff] %v372_v38  ;;  %375 = vst [vmem:[%s5656_s8 + $0x338] sm:$0xff] %v374_v39  ;;  %v378_v41 = vld [vmem:[%s5651_s7 + $0x1248] sm:$0xff]  ;;  %v380_v42 = vld [vmem:[%s5651_s7 + $0x1250] sm:$0xff] }
  0x4e   : > { %377 = vst [vmem:[%s5656_s8 + $0x340] sm:$0xff] %v376_v40  ;;  %v382_v43 = vld [vmem:[%s5651_s7 + $0x1258] sm:$0xff]  ;;  %379 = vst [vmem:[%s5656_s8 + $0x348] sm:$0xff] %v378_v41  ;;  %v384_v44 = vld [vmem:[%s5651_s7 + $0x1260] sm:$0xff] }
  0x4f   : > { %381 = vst [vmem:[%s5656_s8 + $0x350] sm:$0xff] %v380_v42  ;;  %383 = vst [vmem:[%s5656_s8 + $0x358] sm:$0xff] %v382_v43  ;;  %v386_v45 = vld [vmem:[%s5651_s7 + $0x1268] sm:$0xff]  ;;  %v388_v46 = vld [vmem:[%s5651_s7 + $0x1270] sm:$0xff] }
  0x50   : > { %385 = vst [vmem:[%s5656_s8 + $0x360] sm:$0xff] %v384_v44  ;;  %387 = vst [vmem:[%s5656_s8 + $0x368] sm:$0xff] %v386_v45  ;;  %v390_v47 = vld [vmem:[%s5651_s7 + $0x1278] sm:$0xff]  ;;  %v392_v48 = vld [vmem:[%s5651_s7 + $0x1280] sm:$0xff] }
  0x51   : > { %389 = vst [vmem:[%s5656_s8 + $0x370] sm:$0xff] %v388_v46  ;;  %v394_v49 = vld [vmem:[%s5651_s7 + $0x1288] sm:$0xff]  ;;  %391 = vst [vmem:[%s5656_s8 + $0x378] sm:$0xff] %v390_v47  ;;  %v396_v50 = vld [vmem:[%s5651_s7 + $0x1290] sm:$0xff] }
  0x52   : > { %393 = vst [vmem:[%s5656_s8 + $0x380] sm:$0xff] %v392_v48  ;;  %395 = vst [vmem:[%s5656_s8 + $0x388] sm:$0xff] %v394_v49  ;;  %v398_v51 = vld [vmem:[%s5651_s7 + $0x1298] sm:$0xff]  ;;  %v400_v52 = vld [vmem:[%s5651_s7 + $0x12a0] sm:$0xff] }
  0x53   : > { %397 = vst [vmem:[%s5656_s8 + $0x390] sm:$0xff] %v396_v50  ;;  %399 = vst [vmem:[%s5656_s8 + $0x398] sm:$0xff] %v398_v51  ;;  %v402_v53 = vld [vmem:[%s5651_s7 + $0x12a8] sm:$0xff]  ;;  %v404_v54 = vld [vmem:[%s5651_s7 + $0x12b0] sm:$0xff] }
  0x54   : > { %401 = vst [vmem:[%s5656_s8 + $0x3a0] sm:$0xff] %v400_v52  ;;  %v406_v55 = vld [vmem:[%s5651_s7 + $0x12b8] sm:$0xff]  ;;  %403 = vst [vmem:[%s5656_s8 + $0x3a8] sm:$0xff] %v402_v53  ;;  %v408_v56 = vld [vmem:[%s5651_s7 + $0x12c0] sm:$0xff] }
  0x55   : > { %405 = vst [vmem:[%s5656_s8 + $0x3b0] sm:$0xff] %v404_v54  ;;  %407 = vst [vmem:[%s5656_s8 + $0x3b8] sm:$0xff] %v406_v55  ;;  %v410_v57 = vld [vmem:[%s5651_s7 + $0x12c8] sm:$0xff]  ;;  %v412_v58 = vld [vmem:[%s5651_s7 + $0x12d0] sm:$0xff] }
  0x56   : > { %409 = vst [vmem:[%s5656_s8 + $0x3c0] sm:$0xff] %v408_v56  ;;  %411 = vst [vmem:[%s5656_s8 + $0x3c8] sm:$0xff] %v410_v57  ;;  %v414_v59 = vld [vmem:[%s5651_s7 + $0x12d8] sm:$0xff]  ;;  %v416_v60 = vld [vmem:[%s5651_s7 + $0x12e0] sm:$0xff] }
  0x57   : > { %413 = vst [vmem:[%s5656_s8 + $0x3d0] sm:$0xff] %v412_v58  ;;  %v418_v61 = vld [vmem:[%s5651_s7 + $0x12e8] sm:$0xff]  ;;  %415 = vst [vmem:[%s5656_s8 + $0x3d8] sm:$0xff] %v414_v59  ;;  %v420_v62 = vld [vmem:[%s5651_s7 + $0x12f0] sm:$0xff] }
  0x58   : > { %417 = vst [vmem:[%s5656_s8 + $0x3e0] sm:$0xff] %v416_v60  ;;  %419 = vst [vmem:[%s5656_s8 + $0x3e8] sm:$0xff] %v418_v61  ;;  %v422_v63 = vld [vmem:[%s5651_s7 + $0x12f8] sm:$0xff]  ;;  %v424_v0 = vld [vmem:[%s5651_s7 + $0x1800] sm:$0xff] }
  0x59   : > { %421 = vst [vmem:[%s5656_s8 + $0x3f0] sm:$0xff] %v420_v62  ;;  %423 = vst [vmem:[%s5656_s8 + $0x3f8] sm:$0xff] %v422_v63  ;;  %v426_v1 = vld [vmem:[%s5651_s7 + $0x1808] sm:$0xff]  ;;  %v428_v2 = vld [vmem:[%s5651_s7 + $0x1810] sm:$0xff] }
  0x5a   : > { %425 = vst [vmem:[%s5656_s8 + $0x400] sm:$0xff] %v424_v0  ;;  %v430_v3 = vld [vmem:[%s5651_s7 + $0x1818] sm:$0xff]  ;;  %427 = vst [vmem:[%s5656_s8 + $0x408] sm:$0xff] %v426_v1  ;;  %v432_v4 = vld [vmem:[%s5651_s7 + $0x1820] sm:$0xff] }
  0x5b   : > { %429 = vst [vmem:[%s5656_s8 + $0x410] sm:$0xff] %v428_v2  ;;  %431 = vst [vmem:[%s5656_s8 + $0x418] sm:$0xff] %v430_v3  ;;  %v434_v5 = vld [vmem:[%s5651_s7 + $0x1828] sm:$0xff]  ;;  %v436_v6 = vld [vmem:[%s5651_s7 + $0x1830] sm:$0xff] }
  0x5c   : > { %433 = vst [vmem:[%s5656_s8 + $0x420] sm:$0xff] %v432_v4  ;;  %435 = vst [vmem:[%s5656_s8 + $0x428] sm:$0xff] %v434_v5  ;;  %v438_v7 = vld [vmem:[%s5651_s7 + $0x1838] sm:$0xff]  ;;  %v440_v8 = vld [vmem:[%s5651_s7 + $0x1840] sm:$0xff] }
  0x5d   : > { %437 = vst [vmem:[%s5656_s8 + $0x430] sm:$0xff] %v436_v6  ;;  %v442_v9 = vld [vmem:[%s5651_s7 + $0x1848] sm:$0xff]  ;;  %439 = vst [vmem:[%s5656_s8 + $0x438] sm:$0xff] %v438_v7  ;;  %v444_v10 = vld [vmem:[%s5651_s7 + $0x1850] sm:$0xff] }
  0x5e   : > { %441 = vst [vmem:[%s5656_s8 + $0x440] sm:$0xff] %v440_v8  ;;  %443 = vst [vmem:[%s5656_s8 + $0x448] sm:$0xff] %v442_v9  ;;  %v446_v11 = vld [vmem:[%s5651_s7 + $0x1858] sm:$0xff]  ;;  %v448_v12 = vld [vmem:[%s5651_s7 + $0x1860] sm:$0xff] }
  0x5f   : > { %445 = vst [vmem:[%s5656_s8 + $0x450] sm:$0xff] %v444_v10  ;;  %447 = vst [vmem:[%s5656_s8 + $0x458] sm:$0xff] %v446_v11  ;;  %v450_v13 = vld [vmem:[%s5651_s7 + $0x1868] sm:$0xff]  ;;  %v452_v14 = vld [vmem:[%s5651_s7 + $0x1870] sm:$0xff] }
  0x60   : > { %449 = vst [vmem:[%s5656_s8 + $0x460] sm:$0xff] %v448_v12  ;;  %v454_v15 = vld [vmem:[%s5651_s7 + $0x1878] sm:$0xff]  ;;  %451 = vst [vmem:[%s5656_s8 + $0x468] sm:$0xff] %v450_v13  ;;  %v456_v16 = vld [vmem:[%s5651_s7 + $0x1880] sm:$0xff] }
  0x61   : > { %453 = vst [vmem:[%s5656_s8 + $0x470] sm:$0xff] %v452_v14  ;;  %455 = vst [vmem:[%s5656_s8 + $0x478] sm:$0xff] %v454_v15  ;;  %v458_v17 = vld [vmem:[%s5651_s7 + $0x1888] sm:$0xff]  ;;  %v460_v18 = vld [vmem:[%s5651_s7 + $0x1890] sm:$0xff] }
  0x62   : > { %457 = vst [vmem:[%s5656_s8 + $0x480] sm:$0xff] %v456_v16  ;;  %459 = vst [vmem:[%s5656_s8 + $0x488] sm:$0xff] %v458_v17  ;;  %v462_v19 = vld [vmem:[%s5651_s7 + $0x1898] sm:$0xff]  ;;  %v464_v20 = vld [vmem:[%s5651_s7 + $0x18a0] sm:$0xff] }
  0x63   : > { %461 = vst [vmem:[%s5656_s8 + $0x490] sm:$0xff] %v460_v18  ;;  %v466_v21 = vld [vmem:[%s5651_s7 + $0x18a8] sm:$0xff]  ;;  %463 = vst [vmem:[%s5656_s8 + $0x498] sm:$0xff] %v462_v19  ;;  %v468_v22 = vld [vmem:[%s5651_s7 + $0x18b0] sm:$0xff] }
  0x64   : > { %465 = vst [vmem:[%s5656_s8 + $0x4a0] sm:$0xff] %v464_v20  ;;  %467 = vst [vmem:[%s5656_s8 + $0x4a8] sm:$0xff] %v466_v21  ;;  %v470_v23 = vld [vmem:[%s5651_s7 + $0x18b8] sm:$0xff]  ;;  %v472_v24 = vld [vmem:[%s5651_s7 + $0x18c0] sm:$0xff] }
  0x65   : > { %469 = vst [vmem:[%s5656_s8 + $0x4b0] sm:$0xff] %v468_v22  ;;  %471 = vst [vmem:[%s5656_s8 + $0x4b8] sm:$0xff] %v470_v23  ;;  %v474_v25 = vld [vmem:[%s5651_s7 + $0x18c8] sm:$0xff]  ;;  %v476_v26 = vld [vmem:[%s5651_s7 + $0x18d0] sm:$0xff] }
  0x66   : > { %473 = vst [vmem:[%s5656_s8 + $0x4c0] sm:$0xff] %v472_v24  ;;  %v478_v27 = vld [vmem:[%s5651_s7 + $0x18d8] sm:$0xff]  ;;  %475 = vst [vmem:[%s5656_s8 + $0x4c8] sm:$0xff] %v474_v25  ;;  %v480_v28 = vld [vmem:[%s5651_s7 + $0x18e0] sm:$0xff] }
  0x67   : > { %477 = vst [vmem:[%s5656_s8 + $0x4d0] sm:$0xff] %v476_v26  ;;  %479 = vst [vmem:[%s5656_s8 + $0x4d8] sm:$0xff] %v478_v27  ;;  %v482_v29 = vld [vmem:[%s5651_s7 + $0x18e8] sm:$0xff]  ;;  %v484_v30 = vld [vmem:[%s5651_s7 + $0x18f0] sm:$0xff] }
  0x68   : > { %481 = vst [vmem:[%s5656_s8 + $0x4e0] sm:$0xff] %v480_v28  ;;  %483 = vst [vmem:[%s5656_s8 + $0x4e8] sm:$0xff] %v482_v29  ;;  %v486_v31 = vld [vmem:[%s5651_s7 + $0x18f8] sm:$0xff]  ;;  %v488_v32 = vld [vmem:[%s5651_s7 + $0x1e00] sm:$0xff] }
  0x69   : > { %485 = vst [vmem:[%s5656_s8 + $0x4f0] sm:$0xff] %v484_v30  ;;  %v490_v33 = vld [vmem:[%s5651_s7 + $0x1e08] sm:$0xff]  ;;  %487 = vst [vmem:[%s5656_s8 + $0x4f8] sm:$0xff] %v486_v31  ;;  %v492_v34 = vld [vmem:[%s5651_s7 + $0x1e10] sm:$0xff] }
  0x6a   : > { %489 = vst [vmem:[%s5656_s8 + $0x500] sm:$0xff] %v488_v32  ;;  %491 = vst [vmem:[%s5656_s8 + $0x508] sm:$0xff] %v490_v33  ;;  %v494_v35 = vld [vmem:[%s5651_s7 + $0x1e18] sm:$0xff]  ;;  %v496_v36 = vld [vmem:[%s5651_s7 + $0x1e20] sm:$0xff] }
  0x6b   : > { %493 = vst [vmem:[%s5656_s8 + $0x510] sm:$0xff] %v492_v34  ;;  %495 = vst [vmem:[%s5656_s8 + $0x518] sm:$0xff] %v494_v35  ;;  %v498_v37 = vld [vmem:[%s5651_s7 + $0x1e28] sm:$0xff]  ;;  %v500_v38 = vld [vmem:[%s5651_s7 + $0x1e30] sm:$0xff] }
  0x6c   : > { %497 = vst [vmem:[%s5656_s8 + $0x520] sm:$0xff] %v496_v36  ;;  %v502_v39 = vld [vmem:[%s5651_s7 + $0x1e38] sm:$0xff]  ;;  %499 = vst [vmem:[%s5656_s8 + $0x528] sm:$0xff] %v498_v37  ;;  %v504_v40 = vld [vmem:[%s5651_s7 + $0x1e40] sm:$0xff] }
  0x6d   : > { %501 = vst [vmem:[%s5656_s8 + $0x530] sm:$0xff] %v500_v38  ;;  %503 = vst [vmem:[%s5656_s8 + $0x538] sm:$0xff] %v502_v39  ;;  %v506_v41 = vld [vmem:[%s5651_s7 + $0x1e48] sm:$0xff]  ;;  %v508_v42 = vld [vmem:[%s5651_s7 + $0x1e50] sm:$0xff] }
  0x6e   : > { %505 = vst [vmem:[%s5656_s8 + $0x540] sm:$0xff] %v504_v40  ;;  %507 = vst [vmem:[%s5656_s8 + $0x548] sm:$0xff] %v506_v41  ;;  %v510_v43 = vld [vmem:[%s5651_s7 + $0x1e58] sm:$0xff]  ;;  %v512_v44 = vld [vmem:[%s5651_s7 + $0x1e60] sm:$0xff] }
  0x6f   : > { %509 = vst [vmem:[%s5656_s8 + $0x550] sm:$0xff] %v508_v42  ;;  %v514_v45 = vld [vmem:[%s5651_s7 + $0x1e68] sm:$0xff]  ;;  %511 = vst [vmem:[%s5656_s8 + $0x558] sm:$0xff] %v510_v43  ;;  %v516_v46 = vld [vmem:[%s5651_s7 + $0x1e70] sm:$0xff] }
  0x70   : > { %513 = vst [vmem:[%s5656_s8 + $0x560] sm:$0xff] %v512_v44  ;;  %515 = vst [vmem:[%s5656_s8 + $0x568] sm:$0xff] %v514_v45  ;;  %v518_v47 = vld [vmem:[%s5651_s7 + $0x1e78] sm:$0xff]  ;;  %v520_v48 = vld [vmem:[%s5651_s7 + $0x1e80] sm:$0xff] }
  0x71   : > { %517 = vst [vmem:[%s5656_s8 + $0x570] sm:$0xff] %v516_v46  ;;  %519 = vst [vmem:[%s5656_s8 + $0x578] sm:$0xff] %v518_v47  ;;  %v522_v49 = vld [vmem:[%s5651_s7 + $0x1e88] sm:$0xff]  ;;  %v524_v50 = vld [vmem:[%s5651_s7 + $0x1e90] sm:$0xff] }
  0x72   : > { %521 = vst [vmem:[%s5656_s8 + $0x580] sm:$0xff] %v520_v48  ;;  %v526_v51 = vld [vmem:[%s5651_s7 + $0x1e98] sm:$0xff]  ;;  %523 = vst [vmem:[%s5656_s8 + $0x588] sm:$0xff] %v522_v49  ;;  %v528_v52 = vld [vmem:[%s5651_s7 + $0x1ea0] sm:$0xff] }
  0x73   : > { %525 = vst [vmem:[%s5656_s8 + $0x590] sm:$0xff] %v524_v50  ;;  %527 = vst [vmem:[%s5656_s8 + $0x598] sm:$0xff] %v526_v51  ;;  %v530_v53 = vld [vmem:[%s5651_s7 + $0x1ea8] sm:$0xff]  ;;  %v532_v54 = vld [vmem:[%s5651_s7 + $0x1eb0] sm:$0xff] }
  0x74   : > { %529 = vst [vmem:[%s5656_s8 + $0x5a0] sm:$0xff] %v528_v52  ;;  %531 = vst [vmem:[%s5656_s8 + $0x5a8] sm:$0xff] %v530_v53  ;;  %v534_v55 = vld [vmem:[%s5651_s7 + $0x1eb8] sm:$0xff]  ;;  %v536_v56 = vld [vmem:[%s5651_s7 + $0x1ec0] sm:$0xff] }
  0x75   : > { %533 = vst [vmem:[%s5656_s8 + $0x5b0] sm:$0xff] %v532_v54  ;;  %v538_v57 = vld [vmem:[%s5651_s7 + $0x1ec8] sm:$0xff]  ;;  %535 = vst [vmem:[%s5656_s8 + $0x5b8] sm:$0xff] %v534_v55  ;;  %v540_v58 = vld [vmem:[%s5651_s7 + $0x1ed0] sm:$0xff] }
  0x76   : > { %537 = vst [vmem:[%s5656_s8 + $0x5c0] sm:$0xff] %v536_v56  ;;  %539 = vst [vmem:[%s5656_s8 + $0x5c8] sm:$0xff] %v538_v57  ;;  %v542_v59 = vld [vmem:[%s5651_s7 + $0x1ed8] sm:$0xff]  ;;  %v544_v60 = vld [vmem:[%s5651_s7 + $0x1ee0] sm:$0xff] }
  0x77   : > { %541 = vst [vmem:[%s5656_s8 + $0x5d0] sm:$0xff] %v540_v58  ;;  %543 = vst [vmem:[%s5656_s8 + $0x5d8] sm:$0xff] %v542_v59  ;;  %v546_v61 = vld [vmem:[%s5651_s7 + $0x1ee8] sm:$0xff]  ;;  %v548_v62 = vld [vmem:[%s5651_s7 + $0x1ef0] sm:$0xff] }
  0x78   : > { %545 = vst [vmem:[%s5656_s8 + $0x5e0] sm:$0xff] %v544_v60  ;;  %v550_v63 = vld [vmem:[%s5651_s7 + $0x1ef8] sm:$0xff]  ;;  %547 = vst [vmem:[%s5656_s8 + $0x5e8] sm:$0xff] %v546_v61  ;;  %v552_v0 = vld [vmem:[%s5651_s7 + $0x2400] sm:$0xff] }
  0x79   : > { %549 = vst [vmem:[%s5656_s8 + $0x5f0] sm:$0xff] %v548_v62  ;;  %551 = vst [vmem:[%s5656_s8 + $0x5f8] sm:$0xff] %v550_v63  ;;  %v554_v1 = vld [vmem:[%s5651_s7 + $0x2408] sm:$0xff]  ;;  %v556_v2 = vld [vmem:[%s5651_s7 + $0x2410] sm:$0xff] }
  0x7a   : > { %553 = vst [vmem:[%s5656_s8 + $0x600] sm:$0xff] %v552_v0  ;;  %555 = vst [vmem:[%s5656_s8 + $0x608] sm:$0xff] %v554_v1  ;;  %v558_v3 = vld [vmem:[%s5651_s7 + $0x2418] sm:$0xff]  ;;  %v560_v4 = vld [vmem:[%s5651_s7 + $0x2420] sm:$0xff] }
  0x7b   : > { %557 = vst [vmem:[%s5656_s8 + $0x610] sm:$0xff] %v556_v2  ;;  %v562_v5 = vld [vmem:[%s5651_s7 + $0x2428] sm:$0xff]  ;;  %559 = vst [vmem:[%s5656_s8 + $0x618] sm:$0xff] %v558_v3  ;;  %v564_v6 = vld [vmem:[%s5651_s7 + $0x2430] sm:$0xff] }
  0x7c   : > { %561 = vst [vmem:[%s5656_s8 + $0x620] sm:$0xff] %v560_v4  ;;  %563 = vst [vmem:[%s5656_s8 + $0x628] sm:$0xff] %v562_v5  ;;  %v566_v7 = vld [vmem:[%s5651_s7 + $0x2438] sm:$0xff]  ;;  %v568_v8 = vld [vmem:[%s5651_s7 + $0x2440] sm:$0xff] }
  0x7d   : > { %565 = vst [vmem:[%s5656_s8 + $0x630] sm:$0xff] %v564_v6  ;;  %567 = vst [vmem:[%s5656_s8 + $0x638] sm:$0xff] %v566_v7  ;;  %v570_v9 = vld [vmem:[%s5651_s7 + $0x2448] sm:$0xff]  ;;  %v572_v10 = vld [vmem:[%s5651_s7 + $0x2450] sm:$0xff] }
  0x7e   : > { %569 = vst [vmem:[%s5656_s8 + $0x640] sm:$0xff] %v568_v8  ;;  %v574_v11 = vld [vmem:[%s5651_s7 + $0x2458] sm:$0xff]  ;;  %571 = vst [vmem:[%s5656_s8 + $0x648] sm:$0xff] %v570_v9  ;;  %v576_v12 = vld [vmem:[%s5651_s7 + $0x2460] sm:$0xff] }
  0x7f   : > { %573 = vst [vmem:[%s5656_s8 + $0x650] sm:$0xff] %v572_v10  ;;  %575 = vst [vmem:[%s5656_s8 + $0x658] sm:$0xff] %v574_v11  ;;  %v578_v13 = vld [vmem:[%s5651_s7 + $0x2468] sm:$0xff]  ;;  %v580_v14 = vld [vmem:[%s5651_s7 + $0x2470] sm:$0xff] }
  0x80   : > { %577 = vst [vmem:[%s5656_s8 + $0x660] sm:$0xff] %v576_v12  ;;  %579 = vst [vmem:[%s5656_s8 + $0x668] sm:$0xff] %v578_v13  ;;  %v582_v15 = vld [vmem:[%s5651_s7 + $0x2478] sm:$0xff]  ;;  %v584_v16 = vld [vmem:[%s5651_s7 + $0x2480] sm:$0xff] }
  0x81   : > { %581 = vst [vmem:[%s5656_s8 + $0x670] sm:$0xff] %v580_v14  ;;  %v586_v17 = vld [vmem:[%s5651_s7 + $0x2488] sm:$0xff]  ;;  %583 = vst [vmem:[%s5656_s8 + $0x678] sm:$0xff] %v582_v15  ;;  %v588_v18 = vld [vmem:[%s5651_s7 + $0x2490] sm:$0xff] }
  0x82   : > { %585 = vst [vmem:[%s5656_s8 + $0x680] sm:$0xff] %v584_v16  ;;  %587 = vst [vmem:[%s5656_s8 + $0x688] sm:$0xff] %v586_v17  ;;  %v590_v19 = vld [vmem:[%s5651_s7 + $0x2498] sm:$0xff]  ;;  %v592_v20 = vld [vmem:[%s5651_s7 + $0x24a0] sm:$0xff] }
  0x83   : > { %589 = vst [vmem:[%s5656_s8 + $0x690] sm:$0xff] %v588_v18  ;;  %591 = vst [vmem:[%s5656_s8 + $0x698] sm:$0xff] %v590_v19  ;;  %v594_v21 = vld [vmem:[%s5651_s7 + $0x24a8] sm:$0xff]  ;;  %v596_v22 = vld [vmem:[%s5651_s7 + $0x24b0] sm:$0xff] }
  0x84   : > { %593 = vst [vmem:[%s5656_s8 + $0x6a0] sm:$0xff] %v592_v20  ;;  %v598_v23 = vld [vmem:[%s5651_s7 + $0x24b8] sm:$0xff]  ;;  %595 = vst [vmem:[%s5656_s8 + $0x6a8] sm:$0xff] %v594_v21  ;;  %v600_v24 = vld [vmem:[%s5651_s7 + $0x24c0] sm:$0xff] }
  0x85   : > { %597 = vst [vmem:[%s5656_s8 + $0x6b0] sm:$0xff] %v596_v22  ;;  %599 = vst [vmem:[%s5656_s8 + $0x6b8] sm:$0xff] %v598_v23  ;;  %v602_v25 = vld [vmem:[%s5651_s7 + $0x24c8] sm:$0xff]  ;;  %v604_v26 = vld [vmem:[%s5651_s7 + $0x24d0] sm:$0xff] }
  0x86   : > { %601 = vst [vmem:[%s5656_s8 + $0x6c0] sm:$0xff] %v600_v24  ;;  %603 = vst [vmem:[%s5656_s8 + $0x6c8] sm:$0xff] %v602_v25  ;;  %v606_v27 = vld [vmem:[%s5651_s7 + $0x24d8] sm:$0xff]  ;;  %v608_v28 = vld [vmem:[%s5651_s7 + $0x24e0] sm:$0xff] }
  0x87   : > { %605 = vst [vmem:[%s5656_s8 + $0x6d0] sm:$0xff] %v604_v26  ;;  %v610_v29 = vld [vmem:[%s5651_s7 + $0x24e8] sm:$0xff]  ;;  %607 = vst [vmem:[%s5656_s8 + $0x6d8] sm:$0xff] %v606_v27  ;;  %v612_v30 = vld [vmem:[%s5651_s7 + $0x24f0] sm:$0xff] }
  0x88   : > { %609 = vst [vmem:[%s5656_s8 + $0x6e0] sm:$0xff] %v608_v28  ;;  %611 = vst [vmem:[%s5656_s8 + $0x6e8] sm:$0xff] %v610_v29  ;;  %v614_v31 = vld [vmem:[%s5651_s7 + $0x24f8] sm:$0xff]  ;;  %v616_v32 = vld [vmem:[%s5651_s7 + $0x2a00] sm:$0xff] }
  0x89   : > { %613 = vst [vmem:[%s5656_s8 + $0x6f0] sm:$0xff] %v612_v30  ;;  %615 = vst [vmem:[%s5656_s8 + $0x6f8] sm:$0xff] %v614_v31  ;;  %v618_v33 = vld [vmem:[%s5651_s7 + $0x2a08] sm:$0xff]  ;;  %v620_v34 = vld [vmem:[%s5651_s7 + $0x2a10] sm:$0xff] }
  0x8a   : > { %617 = vst [vmem:[%s5656_s8 + $0x700] sm:$0xff] %v616_v32  ;;  %v622_v35 = vld [vmem:[%s5651_s7 + $0x2a18] sm:$0xff]  ;;  %619 = vst [vmem:[%s5656_s8 + $0x708] sm:$0xff] %v618_v33  ;;  %v624_v36 = vld [vmem:[%s5651_s7 + $0x2a20] sm:$0xff] }
  0x8b   : > { %621 = vst [vmem:[%s5656_s8 + $0x710] sm:$0xff] %v620_v34  ;;  %623 = vst [vmem:[%s5656_s8 + $0x718] sm:$0xff] %v622_v35  ;;  %v626_v37 = vld [vmem:[%s5651_s7 + $0x2a28] sm:$0xff]  ;;  %v628_v38 = vld [vmem:[%s5651_s7 + $0x2a30] sm:$0xff] }
  0x8c   : > { %625 = vst [vmem:[%s5656_s8 + $0x720] sm:$0xff] %v624_v36  ;;  %627 = vst [vmem:[%s5656_s8 + $0x728] sm:$0xff] %v626_v37  ;;  %v630_v39 = vld [vmem:[%s5651_s7 + $0x2a38] sm:$0xff]  ;;  %v632_v40 = vld [vmem:[%s5651_s7 + $0x2a40] sm:$0xff] }
  0x8d   : > { %629 = vst [vmem:[%s5656_s8 + $0x730] sm:$0xff] %v628_v38  ;;  %v634_v41 = vld [vmem:[%s5651_s7 + $0x2a48] sm:$0xff]  ;;  %631 = vst [vmem:[%s5656_s8 + $0x738] sm:$0xff] %v630_v39  ;;  %v636_v42 = vld [vmem:[%s5651_s7 + $0x2a50] sm:$0xff] }
  0x8e   : > { %633 = vst [vmem:[%s5656_s8 + $0x740] sm:$0xff] %v632_v40  ;;  %635 = vst [vmem:[%s5656_s8 + $0x748] sm:$0xff] %v634_v41  ;;  %v638_v43 = vld [vmem:[%s5651_s7 + $0x2a58] sm:$0xff]  ;;  %v640_v44 = vld [vmem:[%s5651_s7 + $0x2a60] sm:$0xff] }
  0x8f   : > { %637 = vst [vmem:[%s5656_s8 + $0x750] sm:$0xff] %v636_v42  ;;  %639 = vst [vmem:[%s5656_s8 + $0x758] sm:$0xff] %v638_v43  ;;  %v642_v45 = vld [vmem:[%s5651_s7 + $0x2a68] sm:$0xff]  ;;  %v644_v46 = vld [vmem:[%s5651_s7 + $0x2a70] sm:$0xff] }
  0x90   : > { %641 = vst [vmem:[%s5656_s8 + $0x760] sm:$0xff] %v640_v44  ;;  %v646_v47 = vld [vmem:[%s5651_s7 + $0x2a78] sm:$0xff]  ;;  %643 = vst [vmem:[%s5656_s8 + $0x768] sm:$0xff] %v642_v45  ;;  %v648_v48 = vld [vmem:[%s5651_s7 + $0x2a80] sm:$0xff] }
  0x91   : > { %645 = vst [vmem:[%s5656_s8 + $0x770] sm:$0xff] %v644_v46  ;;  %647 = vst [vmem:[%s5656_s8 + $0x778] sm:$0xff] %v646_v47  ;;  %v650_v49 = vld [vmem:[%s5651_s7 + $0x2a88] sm:$0xff]  ;;  %v652_v50 = vld [vmem:[%s5651_s7 + $0x2a90] sm:$0xff] }
  0x92   : > { %649 = vst [vmem:[%s5656_s8 + $0x780] sm:$0xff] %v648_v48  ;;  %651 = vst [vmem:[%s5656_s8 + $0x788] sm:$0xff] %v650_v49  ;;  %v654_v51 = vld [vmem:[%s5651_s7 + $0x2a98] sm:$0xff]  ;;  %v656_v52 = vld [vmem:[%s5651_s7 + $0x2aa0] sm:$0xff] }
  0x93   : > { %653 = vst [vmem:[%s5656_s8 + $0x790] sm:$0xff] %v652_v50  ;;  %v658_v53 = vld [vmem:[%s5651_s7 + $0x2aa8] sm:$0xff]  ;;  %655 = vst [vmem:[%s5656_s8 + $0x798] sm:$0xff] %v654_v51  ;;  %v660_v54 = vld [vmem:[%s5651_s7 + $0x2ab0] sm:$0xff] }
  0x94   : > { %657 = vst [vmem:[%s5656_s8 + $0x7a0] sm:$0xff] %v656_v52  ;;  %659 = vst [vmem:[%s5656_s8 + $0x7a8] sm:$0xff] %v658_v53  ;;  %v662_v55 = vld [vmem:[%s5651_s7 + $0x2ab8] sm:$0xff]  ;;  %v664_v56 = vld [vmem:[%s5651_s7 + $0x2ac0] sm:$0xff] }
  0x95   : > { %661 = vst [vmem:[%s5656_s8 + $0x7b0] sm:$0xff] %v660_v54  ;;  %663 = vst [vmem:[%s5656_s8 + $0x7b8] sm:$0xff] %v662_v55  ;;  %v666_v57 = vld [vmem:[%s5651_s7 + $0x2ac8] sm:$0xff]  ;;  %v668_v58 = vld [vmem:[%s5651_s7 + $0x2ad0] sm:$0xff] }
  0x96   : > { %665 = vst [vmem:[%s5656_s8 + $0x7c0] sm:$0xff] %v664_v56  ;;  %v670_v59 = vld [vmem:[%s5651_s7 + $0x2ad8] sm:$0xff]  ;;  %667 = vst [vmem:[%s5656_s8 + $0x7c8] sm:$0xff] %v666_v57  ;;  %v672_v60 = vld [vmem:[%s5651_s7 + $0x2ae0] sm:$0xff] }
  0x97   : > { %669 = vst [vmem:[%s5656_s8 + $0x7d0] sm:$0xff] %v668_v58  ;;  %671 = vst [vmem:[%s5656_s8 + $0x7d8] sm:$0xff] %v670_v59  ;;  %v674_v61 = vld [vmem:[%s5651_s7 + $0x2ae8] sm:$0xff]  ;;  %v676_v62 = vld [vmem:[%s5651_s7 + $0x2af0] sm:$0xff] }
  0x98   : > { %673 = vst [vmem:[%s5656_s8 + $0x7e0] sm:$0xff] %v672_v60  ;;  %675 = vst [vmem:[%s5656_s8 + $0x7e8] sm:$0xff] %v674_v61  ;;  %v678_v63 = vld [vmem:[%s5651_s7 + $0x2af8] sm:$0xff]  ;;  %v680_v0 = vld [vmem:[%s5651_s7 + $0x3000] sm:$0xff] }
  0x99   : > { %677 = vst [vmem:[%s5656_s8 + $0x7f0] sm:$0xff] %v676_v62  ;;  %v682_v1 = vld [vmem:[%s5651_s7 + $0x3008] sm:$0xff]  ;;  %679 = vst [vmem:[%s5656_s8 + $0x7f8] sm:$0xff] %v678_v63  ;;  %v684_v2 = vld [vmem:[%s5651_s7 + $0x3010] sm:$0xff] }
  0x9a   : > { %681 = vst [vmem:[%s5656_s8 + $0x800] sm:$0xff] %v680_v0  ;;  %683 = vst [vmem:[%s5656_s8 + $0x808] sm:$0xff] %v682_v1  ;;  %v686_v3 = vld [vmem:[%s5651_s7 + $0x3018] sm:$0xff]  ;;  %v688_v4 = vld [vmem:[%s5651_s7 + $0x3020] sm:$0xff] }
  0x9b   : > { %685 = vst [vmem:[%s5656_s8 + $0x810] sm:$0xff] %v684_v2  ;;  %687 = vst [vmem:[%s5656_s8 + $0x818] sm:$0xff] %v686_v3  ;;  %v690_v5 = vld [vmem:[%s5651_s7 + $0x3028] sm:$0xff]  ;;  %v692_v6 = vld [vmem:[%s5651_s7 + $0x3030] sm:$0xff] }
  0x9c   : > { %689 = vst [vmem:[%s5656_s8 + $0x820] sm:$0xff] %v688_v4  ;;  %v694_v7 = vld [vmem:[%s5651_s7 + $0x3038] sm:$0xff]  ;;  %691 = vst [vmem:[%s5656_s8 + $0x828] sm:$0xff] %v690_v5  ;;  %v696_v8 = vld [vmem:[%s5651_s7 + $0x3040] sm:$0xff] }
  0x9d   : > { %693 = vst [vmem:[%s5656_s8 + $0x830] sm:$0xff] %v692_v6  ;;  %695 = vst [vmem:[%s5656_s8 + $0x838] sm:$0xff] %v694_v7  ;;  %v698_v9 = vld [vmem:[%s5651_s7 + $0x3048] sm:$0xff]  ;;  %v700_v10 = vld [vmem:[%s5651_s7 + $0x3050] sm:$0xff] }
  0x9e   : > { %697 = vst [vmem:[%s5656_s8 + $0x840] sm:$0xff] %v696_v8  ;;  %699 = vst [vmem:[%s5656_s8 + $0x848] sm:$0xff] %v698_v9  ;;  %v702_v11 = vld [vmem:[%s5651_s7 + $0x3058] sm:$0xff]  ;;  %v704_v12 = vld [vmem:[%s5651_s7 + $0x3060] sm:$0xff] }
  0x9f   : > { %701 = vst [vmem:[%s5656_s8 + $0x850] sm:$0xff] %v700_v10  ;;  %v706_v13 = vld [vmem:[%s5651_s7 + $0x3068] sm:$0xff]  ;;  %703 = vst [vmem:[%s5656_s8 + $0x858] sm:$0xff] %v702_v11  ;;  %v708_v14 = vld [vmem:[%s5651_s7 + $0x3070] sm:$0xff] }
  0xa0   : > { %705 = vst [vmem:[%s5656_s8 + $0x860] sm:$0xff] %v704_v12  ;;  %707 = vst [vmem:[%s5656_s8 + $0x868] sm:$0xff] %v706_v13  ;;  %v710_v15 = vld [vmem:[%s5651_s7 + $0x3078] sm:$0xff]  ;;  %v712_v16 = vld [vmem:[%s5651_s7 + $0x3080] sm:$0xff] }
  0xa1   : > { %709 = vst [vmem:[%s5656_s8 + $0x870] sm:$0xff] %v708_v14  ;;  %711 = vst [vmem:[%s5656_s8 + $0x878] sm:$0xff] %v710_v15  ;;  %v714_v17 = vld [vmem:[%s5651_s7 + $0x3088] sm:$0xff]  ;;  %v716_v18 = vld [vmem:[%s5651_s7 + $0x3090] sm:$0xff] }
  0xa2   : > { %713 = vst [vmem:[%s5656_s8 + $0x880] sm:$0xff] %v712_v16  ;;  %v718_v19 = vld [vmem:[%s5651_s7 + $0x3098] sm:$0xff]  ;;  %715 = vst [vmem:[%s5656_s8 + $0x888] sm:$0xff] %v714_v17  ;;  %v720_v20 = vld [vmem:[%s5651_s7 + $0x30a0] sm:$0xff] }
  0xa3   : > { %717 = vst [vmem:[%s5656_s8 + $0x890] sm:$0xff] %v716_v18  ;;  %719 = vst [vmem:[%s5656_s8 + $0x898] sm:$0xff] %v718_v19  ;;  %v722_v21 = vld [vmem:[%s5651_s7 + $0x30a8] sm:$0xff]  ;;  %v724_v22 = vld [vmem:[%s5651_s7 + $0x30b0] sm:$0xff] }
  0xa4   : > { %721 = vst [vmem:[%s5656_s8 + $0x8a0] sm:$0xff] %v720_v20  ;;  %723 = vst [vmem:[%s5656_s8 + $0x8a8] sm:$0xff] %v722_v21  ;;  %v726_v23 = vld [vmem:[%s5651_s7 + $0x30b8] sm:$0xff]  ;;  %v728_v24 = vld [vmem:[%s5651_s7 + $0x30c0] sm:$0xff] }
  0xa5   : > { %725 = vst [vmem:[%s5656_s8 + $0x8b0] sm:$0xff] %v724_v22  ;;  %v730_v25 = vld [vmem:[%s5651_s7 + $0x30c8] sm:$0xff]  ;;  %727 = vst [vmem:[%s5656_s8 + $0x8b8] sm:$0xff] %v726_v23  ;;  %v732_v26 = vld [vmem:[%s5651_s7 + $0x30d0] sm:$0xff] }
  0xa6   : > { %729 = vst [vmem:[%s5656_s8 + $0x8c0] sm:$0xff] %v728_v24  ;;  %731 = vst [vmem:[%s5656_s8 + $0x8c8] sm:$0xff] %v730_v25  ;;  %v734_v27 = vld [vmem:[%s5651_s7 + $0x30d8] sm:$0xff]  ;;  %v736_v28 = vld [vmem:[%s5651_s7 + $0x30e0] sm:$0xff] }
  0xa7   : > { %733 = vst [vmem:[%s5656_s8 + $0x8d0] sm:$0xff] %v732_v26  ;;  %735 = vst [vmem:[%s5656_s8 + $0x8d8] sm:$0xff] %v734_v27  ;;  %v738_v29 = vld [vmem:[%s5651_s7 + $0x30e8] sm:$0xff]  ;;  %v740_v30 = vld [vmem:[%s5651_s7 + $0x30f0] sm:$0xff] }
  0xa8   : > { %737 = vst [vmem:[%s5656_s8 + $0x8e0] sm:$0xff] %v736_v28  ;;  %v742_v31 = vld [vmem:[%s5651_s7 + $0x30f8] sm:$0xff]  ;;  %739 = vst [vmem:[%s5656_s8 + $0x8e8] sm:$0xff] %v738_v29  ;;  %v744_v32 = vld [vmem:[%s5651_s7 + $0x3600] sm:$0xff] }
  0xa9   : > { %741 = vst [vmem:[%s5656_s8 + $0x8f0] sm:$0xff] %v740_v30  ;;  %743 = vst [vmem:[%s5656_s8 + $0x8f8] sm:$0xff] %v742_v31  ;;  %v746_v33 = vld [vmem:[%s5651_s7 + $0x3608] sm:$0xff]  ;;  %v748_v34 = vld [vmem:[%s5651_s7 + $0x3610] sm:$0xff] }
  0xaa   : > { %745 = vst [vmem:[%s5656_s8 + $0x900] sm:$0xff] %v744_v32  ;;  %747 = vst [vmem:[%s5656_s8 + $0x908] sm:$0xff] %v746_v33  ;;  %v750_v35 = vld [vmem:[%s5651_s7 + $0x3618] sm:$0xff]  ;;  %v752_v36 = vld [vmem:[%s5651_s7 + $0x3620] sm:$0xff] }
  0xab   : > { %749 = vst [vmem:[%s5656_s8 + $0x910] sm:$0xff] %v748_v34  ;;  %v754_v37 = vld [vmem:[%s5651_s7 + $0x3628] sm:$0xff]  ;;  %751 = vst [vmem:[%s5656_s8 + $0x918] sm:$0xff] %v750_v35  ;;  %v756_v38 = vld [vmem:[%s5651_s7 + $0x3630] sm:$0xff] }
  0xac   : > { %753 = vst [vmem:[%s5656_s8 + $0x920] sm:$0xff] %v752_v36  ;;  %755 = vst [vmem:[%s5656_s8 + $0x928] sm:$0xff] %v754_v37  ;;  %v758_v39 = vld [vmem:[%s5651_s7 + $0x3638] sm:$0xff]  ;;  %v760_v40 = vld [vmem:[%s5651_s7 + $0x3640] sm:$0xff] }
  0xad   : > { %757 = vst [vmem:[%s5656_s8 + $0x930] sm:$0xff] %v756_v38  ;;  %759 = vst [vmem:[%s5656_s8 + $0x938] sm:$0xff] %v758_v39  ;;  %v762_v41 = vld [vmem:[%s5651_s7 + $0x3648] sm:$0xff]  ;;  %v764_v42 = vld [vmem:[%s5651_s7 + $0x3650] sm:$0xff] }
  0xae   : > { %761 = vst [vmem:[%s5656_s8 + $0x940] sm:$0xff] %v760_v40  ;;  %v766_v43 = vld [vmem:[%s5651_s7 + $0x3658] sm:$0xff]  ;;  %763 = vst [vmem:[%s5656_s8 + $0x948] sm:$0xff] %v762_v41  ;;  %v768_v44 = vld [vmem:[%s5651_s7 + $0x3660] sm:$0xff] }
  0xaf   : > { %765 = vst [vmem:[%s5656_s8 + $0x950] sm:$0xff] %v764_v42  ;;  %767 = vst [vmem:[%s5656_s8 + $0x958] sm:$0xff] %v766_v43  ;;  %v770_v45 = vld [vmem:[%s5651_s7 + $0x3668] sm:$0xff]  ;;  %v772_v46 = vld [vmem:[%s5651_s7 + $0x3670] sm:$0xff] }
  0xb0   : > { %769 = vst [vmem:[%s5656_s8 + $0x960] sm:$0xff] %v768_v44  ;;  %771 = vst [vmem:[%s5656_s8 + $0x968] sm:$0xff] %v770_v45  ;;  %v774_v47 = vld [vmem:[%s5651_s7 + $0x3678] sm:$0xff]  ;;  %v776_v48 = vld [vmem:[%s5651_s7 + $0x3680] sm:$0xff] }
  0xb1   : > { %773 = vst [vmem:[%s5656_s8 + $0x970] sm:$0xff] %v772_v46  ;;  %v778_v49 = vld [vmem:[%s5651_s7 + $0x3688] sm:$0xff]  ;;  %775 = vst [vmem:[%s5656_s8 + $0x978] sm:$0xff] %v774_v47  ;;  %v780_v50 = vld [vmem:[%s5651_s7 + $0x3690] sm:$0xff] }
  0xb2   : > { %777 = vst [vmem:[%s5656_s8 + $0x980] sm:$0xff] %v776_v48  ;;  %779 = vst [vmem:[%s5656_s8 + $0x988] sm:$0xff] %v778_v49  ;;  %v782_v51 = vld [vmem:[%s5651_s7 + $0x3698] sm:$0xff]  ;;  %v784_v52 = vld [vmem:[%s5651_s7 + $0x36a0] sm:$0xff] }
  0xb3   : > { %781 = vst [vmem:[%s5656_s8 + $0x990] sm:$0xff] %v780_v50  ;;  %783 = vst [vmem:[%s5656_s8 + $0x998] sm:$0xff] %v782_v51  ;;  %v786_v53 = vld [vmem:[%s5651_s7 + $0x36a8] sm:$0xff]  ;;  %v788_v54 = vld [vmem:[%s5651_s7 + $0x36b0] sm:$0xff] }
  0xb4   : > { %785 = vst [vmem:[%s5656_s8 + $0x9a0] sm:$0xff] %v784_v52  ;;  %v790_v55 = vld [vmem:[%s5651_s7 + $0x36b8] sm:$0xff]  ;;  %787 = vst [vmem:[%s5656_s8 + $0x9a8] sm:$0xff] %v786_v53  ;;  %v792_v56 = vld [vmem:[%s5651_s7 + $0x36c0] sm:$0xff] }
  0xb5   : > { %789 = vst [vmem:[%s5656_s8 + $0x9b0] sm:$0xff] %v788_v54  ;;  %791 = vst [vmem:[%s5656_s8 + $0x9b8] sm:$0xff] %v790_v55  ;;  %v794_v57 = vld [vmem:[%s5651_s7 + $0x36c8] sm:$0xff]  ;;  %v796_v58 = vld [vmem:[%s5651_s7 + $0x36d0] sm:$0xff] }
  0xb6   : > { %793 = vst [vmem:[%s5656_s8 + $0x9c0] sm:$0xff] %v792_v56  ;;  %795 = vst [vmem:[%s5656_s8 + $0x9c8] sm:$0xff] %v794_v57  ;;  %v798_v59 = vld [vmem:[%s5651_s7 + $0x36d8] sm:$0xff]  ;;  %v800_v60 = vld [vmem:[%s5651_s7 + $0x36e0] sm:$0xff] }
  0xb7   : > { %797 = vst [vmem:[%s5656_s8 + $0x9d0] sm:$0xff] %v796_v58  ;;  %v802_v61 = vld [vmem:[%s5651_s7 + $0x36e8] sm:$0xff]  ;;  %799 = vst [vmem:[%s5656_s8 + $0x9d8] sm:$0xff] %v798_v59  ;;  %v804_v62 = vld [vmem:[%s5651_s7 + $0x36f0] sm:$0xff] }
  0xb8   : > { %801 = vst [vmem:[%s5656_s8 + $0x9e0] sm:$0xff] %v800_v60  ;;  %803 = vst [vmem:[%s5656_s8 + $0x9e8] sm:$0xff] %v802_v61  ;;  %v806_v63 = vld [vmem:[%s5651_s7 + $0x36f8] sm:$0xff] }
  0xb9   : > { %805 = vst [vmem:[%s5656_s8 + $0x9f0] sm:$0xff] %v804_v62  ;;  %807 = vst [vmem:[%s5656_s8 + $0x9f8] sm:$0xff] %v806_v63 }
  0xba PF: > { %p4984_p7 = scmp.ge.s32.totalorder %s5568_s18, 1  ;;  %p812_p8 = scmp.lt.s32.totalorder %s5568_s18, 13 }
  0xbc   : > { %p813_p9 = pnand %p4984_p7, %p812_p8 }
  0xbd   : > { %s819_s9 = sand.u32 (!%p813_p9), 1, %s5544_s12   ;;  %v5570_v0 = vmov (!%p813_p9), 0   ;;  %v6333_v49 = vld [vmem:[%s7104_s1] sm:$0xff] (!%p813_p9)   ;;  %vm934_vm0 = vcmask (!%p813_p9), 654336   ;;  %s4985_s8 = sshll.u32 (!%p813_p9), %s5552_s14, 3 }
  0xbe   : > { %816 = sbr.rel (%p813_p9) target bundleno = 750 (0x2ee), region = 51  ;;  %973 = vmatprep.mubr.bf16.mxu0 (!%p813_p9), %v5570_v0  ;;  %1084 = vmatprep.mubr.bf16.mxu1 (!%p813_p9), %v5570_v0  ;;  %p849_p10 = scmp.lt.s32.totalorder (!%p813_p9), %s5556_s15, 1 }
  0xbf   : > { %s5446_s10 = smul.u32 (!%p813_p9), 2560, %s819_s9  ;;  %5506 = vset.pattern.permute.xlu0 (!%p813_p9), %v5570_v0  ;;  %5507 = vset.pattern.permute.xlu1 (!%p813_p9), %v5570_v0  ;;  %p6761_p11 = scmp.lt.s32.totalorder (!%p813_p9), %s4985_s8, 47 }
  0xc1   : > { %s6302_s11 = scalar_lea.vmem (!%p813_p9), [#allocation2], %s5446_s10 }
  0xc2   : > { %v866_v1 = vld [vmem:[%s6302_s11] sm:$0xff] (!%p813_p9)  ;;  %v992_v3 = vld [vmem:[%s6302_s11 + $0x8] sm:$0xff] (!%p813_p9)  ;;  %v1109_v39 = vld [vmem:[%s6302_s11 + $0x10] sm:$0xff] (!%p813_p9) }
  0xc3   : > { %v867_v2 = vld [vmem:[%s6302_s11 + $0x100] sm:$0xff] (!%p813_p9)  ;;  %v993_v5 = vld [vmem:[%s6302_s11 + $0x108] sm:$0xff] (!%p813_p9)  ;;  %v1110_v40 = vld [vmem:[%s6302_s11 + $0x110] sm:$0xff] (!%p813_p9) }
  0xc4   : > { %v4990_v4 = vcombine.high (!%p813_p9), %v866_v1, %v867_v2  ;;  %v4989_v6 = vcombine.low (!%p813_p9), %v866_v1, %v867_v2  ;;  %v868_v7 = vld [vmem:[%s6302_s11 + $0x200] sm:$0xff] (!%p813_p9)  ;;  %v5002_v9 = vcombine.high (!%p813_p9), %v992_v3, %v993_v5  ;;  %v5001_v10 = vcombine.low (!%p813_p9), %v992_v3, %v993_v5  ;;  %v994_v12 = vld [vmem:[%s6302_s11 + $0x208] sm:$0xff] (!%p813_p9)  ;;  %v1226_v41 = vld [vmem:[%s6302_s11 + $0x18] sm:$0xff] (!%p813_p9) }
  0xc5   : > { %v869_v8 = vld [vmem:[%s6302_s11 + $0x300] sm:$0xff]  ;;  %v995_v13 = vld [vmem:[%s6302_s11 + $0x308] sm:$0xff]  ;;  %v1227_v42 = vld [vmem:[%s6302_s11 + $0x118] sm:$0xff]  ;;  %v5014_v45 = vcombine.high %v1109_v39, %v1110_v40  ;;  %v5013_v52 = vcombine.low %v1109_v39, %v1110_v40  ;;  %s7121_s15 = smov (!%p849_p10, %s5556_s15), 1  ;;  %s7123_s8 = smov (!%p6761_p11, %s4985_s8), 47 }
  0xc6   : > { %v4992_v11 = vcombine.high %v868_v7, %v869_v8  ;;  %v870_v14 = vld [vmem:[%s6302_s11 + $0x400] sm:$0xff]  ;;  %941 = vmatprep.subr.bf16.mxu0 %v4990_v4  ;;  %v5004_v15 = vcombine.high %v994_v12, %v995_v13  ;;  %v996_v17 = vld [vmem:[%s6302_s11 + $0x408] sm:$0xff]  ;;  %1052 = vmatprep.subr.bf16.mxu1 %v5002_v9  ;;  %v4991_v19 = vcombine.low %v868_v7, %v869_v8  ;;  %v1111_v47 = vld [vmem:[%s6302_s11 + $0x210] sm:$0xff]  ;;  %s5448_s14 = smul.u32 288, %s7121_s15 }
  0xc7   : > { %v871_v16 = vld [vmem:[%s6302_s11 + $0x500] sm:$0xff]  ;;  %v997_v18 = vld [vmem:[%s6302_s11 + $0x508] sm:$0xff]  ;;  %942 = vmatpush1.bf16.msra.mxu0 %v4989_v6  ;;  %1053 = vmatpush1.bf16.msra.mxu1 %v5001_v10  ;;  %v5003_v20 = vcombine.low %v994_v12, %v995_v13  ;;  %v5026_v46 = vcombine.high %v1226_v41, %v1227_v42  ;;  %v1112_v48 = vld [vmem:[%s6302_s11 + $0x310] sm:$0xff]  ;;  %v5025_v53 = vcombine.low %v1226_v41, %v1227_v42  ;;  %s5447_s10 = smul.u32 6, %s7123_s8 }
  0xc8   : > { %943 = vmatprep.subr.bf16.mxu0 %v4992_v11  ;;  %v4994_v21 = vcombine.high %v870_v14, %v871_v16  ;;  %1054 = vmatprep.subr.bf16.mxu1 %v5004_v15  ;;  %v5006_v22 = vcombine.high %v996_v17, %v997_v18  ;;  %v872_v23 = vld [vmem:[%s6302_s11 + $0x600] sm:$0xff]  ;;  %v998_v25 = vld [vmem:[%s6302_s11 + $0x608] sm:$0xff]  ;;  %v4993_v27 = vcombine.low %v870_v14, %v871_v16  ;;  %v1228_v50 = vld [vmem:[%s6302_s11 + $0x218] sm:$0xff] }
  0xc9   : > { %v873_v24 = vld [vmem:[%s6302_s11 + $0x700] sm:$0xff]  ;;  %v999_v26 = vld [vmem:[%s6302_s11 + $0x708] sm:$0xff]  ;;  %v5005_v28 = vcombine.low %v996_v17, %v997_v18  ;;  %v1229_v51 = vld [vmem:[%s6302_s11 + $0x318] sm:$0xff]  ;;  %v5016_v54 = vcombine.high %v1111_v47, %v1112_v48  ;;  %v5015_v60 = vcombine.low %v1111_v47, %v1112_v48  ;;  %s6814_s15 = sadd.s32 %s5448_s14, %s5447_s10 }
  0xca   : > { %v4996_v29 = vcombine.high %v872_v23, %v873_v24  ;;  %v5008_v30 = vcombine.high %v998_v25, %v999_v26  ;;  %v874_v31 = vld [vmem:[%s6302_s11 + $0x800] sm:$0xff]  ;;  %v1000_v33 = vld [vmem:[%s6302_s11 + $0x808] sm:$0xff]  ;;  %v4995_v35 = vcombine.low %v872_v23, %v873_v24  ;;  %v5007_v36 = vcombine.low %v998_v25, %v999_v26  ;;  %v1113_v56 = vld [vmem:[%s6302_s11 + $0x410] sm:$0xff]  ;;  %s4986_s12 = sshll.u32 %s6814_s15, 2 }
  0xcb   : > { %944 = vmatpush1.bf16.msra.mxu0 %v4991_v19  ;;  %1055 = vmatpush1.bf16.msra.mxu1 %v5003_v20  ;;  %v875_v32 = vld [vmem:[%s6302_s11 + $0x900] sm:$0xff]  ;;  %v1001_v34 = vld [vmem:[%s6302_s11 + $0x908] sm:$0xff]  ;;  %v5028_v55 = vcombine.high %v1228_v50, %v1229_v51  ;;  %v1114_v57 = vld [vmem:[%s6302_s11 + $0x510] sm:$0xff]  ;;  %v5027_v61 = vcombine.low %v1228_v50, %v1229_v51  ;;  %s6851_s23 = scalar_lea.vmem %s7106_s3, %s4986_s12 }
  0xcc   : > { %945 = vmatprep.subr.bf16.mxu0 %v4994_v21  ;;  %1056 = vmatprep.subr.bf16.mxu1 %v5006_v22  ;;  %v4998_v37 = vcombine.high %v874_v31, %v875_v32  ;;  %v5010_v38 = vcombine.high %v1000_v33, %v1001_v34  ;;  %v4997_v43 = vcombine.low %v874_v31, %v875_v32  ;;  %v1230_v58 = vld [vmem:[%s6302_s11 + $0x418] sm:$0xff]  ;;  %v1115_v1 = vld [vmem:[%s6302_s11 + $0x610] sm:$0xff]  ;;  %v6351_v3 = vld [vmem:[%s7104_s1 + $0x8] ss:$0 sps:$4 sm:$0xff]  }
  0xcd   : > { %v5009_v44 = vcombine.low %v1000_v33, %v1001_v34  ;;  %v1231_v59 = vld [vmem:[%s6302_s11 + $0x518] sm:$0xff]  ;;  %v5018_v62 = vcombine.high %v1113_v56, %v1114_v57  ;;  %v1116_v2 = vld [vmem:[%s6302_s11 + $0x710] sm:$0xff]  ;;  %v5017_v6 = vcombine.low %v1113_v56, %v1114_v57  ;;  %v1393_v18 = vld [vmem:[%s6302_s11 + $0x20] sm:$0xff] }
  0xce   : > { %v5030_v63 = vcombine.high %v1230_v58, %v1231_v59  ;;  %v1232_v4 = vld [vmem:[%s6302_s11 + $0x618] sm:$0xff]  ;;  %v5029_v7 = vcombine.low %v1230_v58, %v1231_v59  ;;  %v5020_v8 = vcombine.high %v1115_v1, %v1116_v2  ;;  %v1117_v10 = vld [vmem:[%s6302_s11 + $0x810] sm:$0xff]  ;;  %v5019_v14 = vcombine.low %v1115_v1, %v1116_v2  ;;  %v1394_v19 = vld [vmem:[%s6302_s11 + $0x120] sm:$0xff] }
  0xcf   : > { %946 = vmatpush1.bf16.msra.mxu0 %v4993_v27  ;;  %1057 = vmatpush1.bf16.msra.mxu1 %v5005_v28  ;;  %v1233_v5 = vld [vmem:[%s6302_s11 + $0x718] sm:$0xff]  ;;  %v1118_v11 = vld [vmem:[%s6302_s11 + $0x910] sm:$0xff]  ;;  %v1504_v20 = vld [vmem:[%s6302_s11 + $0x28] sm:$0xff]  ;;  %v5041_v24 = vcombine.high %v1393_v18, %v1394_v19 }
  0xd0   : > { %947 = vmatprep.subr.bf16.mxu0 %v4996_v29  ;;  %1058 = vmatprep.subr.bf16.mxu1 %v5008_v30  ;;  %v5032_v9 = vcombine.high %v1232_v4, %v1233_v5  ;;  %v1234_v12 = vld [vmem:[%s6302_s11 + $0x818] sm:$0xff]  ;;  %v5031_v15 = vcombine.low %v1232_v4, %v1233_v5  ;;  %v5022_v16 = vcombine.high %v1117_v10, %v1118_v11  ;;  %v1505_v21 = vld [vmem:[%s6302_s11 + $0x128] sm:$0xff]  ;;  %v1395_v26 = vld [vmem:[%s6302_s11 + $0x220] sm:$0xff] }
  0xd1   : > { %v1235_v13 = vld [vmem:[%s6302_s11 + $0x918] sm:$0xff]  ;;  %v5021_v22 = vcombine.low %v1117_v10, %v1118_v11  ;;  %v5053_v25 = vcombine.high %v1504_v20, %v1505_v21  ;;  %v1396_v27 = vld [vmem:[%s6302_s11 + $0x320] sm:$0xff]  ;;  %v1506_v28 = vld [vmem:[%s6302_s11 + $0x228] sm:$0xff]  ;;  %v5040_v30 = vcombine.low %v1393_v18, %v1394_v19  ;;  %v5052_v31 = vcombine.low %v1504_v20, %v1505_v21 }
  0xd2   : > { %v5034_v17 = vcombine.high %v1234_v12, %v1235_v13  ;;  %v5033_v23 = vcombine.low %v1234_v12, %v1235_v13  ;;  %v1507_v29 = vld [vmem:[%s6302_s11 + $0x328] sm:$0xff]  ;;  %v5043_v32 = vcombine.high %v1395_v26, %v1396_v27  ;;  %v1397_v34 = vld [vmem:[%s6302_s11 + $0x420] sm:$0xff]  ;;  %v5042_v39 = vcombine.low %v1395_v26, %v1396_v27  ;;  %v1738_v1 = vld [vmem:[%s6302_s11 + $0x38] sm:$0xff] }
  0xd3   : > { %948 = vmatpush1.bf16.msra.mxu0 %v4995_v35  ;;  %1059 = vmatpush1.bf16.msra.mxu1 %v5007_v36  ;;  %v5055_v33 = vcombine.high %v1506_v28, %v1507_v29  ;;  %v1398_v35 = vld [vmem:[%s6302_s11 + $0x520] sm:$0xff]  ;;  %v864_v40 = vld [vmem:[%s7105_s2 + $0x8] sm:$0xff]  ;;  %v5054_v41 = vcombine.low %v1506_v28, %v1507_v29  ;;  %v1739_v2 = vld [vmem:[%s6302_s11 + $0x138] sm:$0xff] }
  0xd4   : > { %949 = vmatprep.subr.bf16.mxu0 %v4998_v37  ;;  %1060 = vmatprep.subr.bf16.mxu1 %v5010_v38  ;;  %v863_v36 = vld [vmem:[%s7105_s2] sm:$0xff]  ;;  %v1508_v37 = vld [vmem:[%s6302_s11 + $0x428] sm:$0xff]  ;;  %v5045_v42 = vcombine.high %v1397_v34, %v1398_v35  ;;  %v5044_v50 = vcombine.low %v1397_v34, %v1398_v35  ;;  %v1740_v10 = vld [vmem:[%s6302_s11 + $0x238] sm:$0xff]  ;;  %v5076_v13 = vcombine.low %v1738_v1, %v1739_v2 }
  0xd5   : > { %v1509_v38 = vld [vmem:[%s6302_s11 + $0x528] sm:$0xff]  ;;  %1345 = vperm.xlu0 %5506, %v863_v36   ;;  %v1741_v11 = vld [vmem:[%s6302_s11 + $0x338] sm:$0xff] }
  0xd6   : > { %v1510_v47 = vld [vmem:[%s6302_s11 + $0x628] sm:$0xff]  ;;  %v5056_v51 = vcombine.low %v1508_v37, %v1509_v38  ;;  %v1742_v18 = vld [vmem:[%s6302_s11 + $0x438] sm:$0xff]  ;;  %v5078_v21 = vcombine.low %v1740_v10, %v1741_v11 }
  0xd7   : > { %950 = vmatpush1.bf16.msra.mxu0 %v4997_v43  ;;  %1061 = vmatpush1.bf16.msra.mxu1 %v5009_v44  ;;  %v5057_v43 = vcombine.high %v1508_v37, %v1509_v38  ;;  %v1399_v44 = vld [vmem:[%s6302_s11 + $0x620] sm:$0xff]  ;;  %v1511_v48 = vld [vmem:[%s6302_s11 + $0x728] sm:$0xff]  ;;  %v1743_v19 = vld [vmem:[%s6302_s11 + $0x538] sm:$0xff] }
  0xd8   : > { %1169 = vmatprep.subr.bf16.mxu0 %v5014_v45  ;;  %1286 = vmatprep.subr.bf16.mxu1 %v5026_v46  ;;  %v1400_v45 = vld [vmem:[%s6302_s11 + $0x720] sm:$0xff]  ;;  %v865_v46 = vld [vmem:[%s7105_s2 + $0x10] sm:$0xff]  ;;  %v1512_v56 = vld [vmem:[%s6302_s11 + $0x828] sm:$0xff]  ;;  %v5058_v59 = vcombine.low %v1510_v47, %v1511_v48  ;;  %v5080_v29 = vcombine.low %v1742_v18, %v1743_v19 }
  0xd9   : > { %1350 = vperm.xlu0 %5506, %v864_v40   ;;  %1355 = vperm.xlu1 %5507, %v865_v46   ;;  %v1513_v57 = vld [vmem:[%s6302_s11 + $0x928] sm:$0xff]  ;;  %v5046_v58 = vcombine.low %v1399_v44, %v1400_v45  ;;  %v1744_v26 = vld [vmem:[%s6302_s11 + $0x638] sm:$0xff]  ;;  %v1891_v40 = vld [vmem:[%s6302_s11 + $0x40] sm:$0xff] }
  0xda   : > { %4999 = vmatmul.mubr.msk.bf16.vlgmr.msra.gmra.mrb[0].mxu0 %vm934_vm0, %v6333_v49  ;;  %5011 = vmatmul.mubr.msk.bf16.vlgmr.msra.gmra.mrb[0].mxu1 %vm934_vm0, %v6333_v49  ;;  %v5060_v5 = vcombine.low %v1512_v56, %v1513_v57  ;;  %v1745_v27 = vld [vmem:[%s6302_s11 + $0x738] sm:$0xff] }
  0xdb   : > { %1170 = vmatpush1.bf16.msra.mxu0 %v5013_v52  ;;  %1287 = vmatpush1.bf16.msra.mxu1 %v5025_v53  ;;  %v5047_v52 = vcombine.high %v1399_v44, %v1400_v45  ;;  %v5059_v53 = vcombine.high %v1510_v47, %v1511_v48  ;;  %v1746_v34 = vld [vmem:[%s6302_s11 + $0x838] sm:$0xff]  ;;  %v5082_v37 = vcombine.low %v1744_v26, %v1745_v27  ;;  %v1893_v48 = vld [vmem:[%s6302_s11 + $0x240] sm:$0xff] }
  0xdc   : > { %1171 = vmatprep.subr.bf16.mxu0 %v5016_v54  ;;  %1288 = vmatprep.subr.bf16.mxu1 %v5028_v55  ;;  %v1401_v54 = vld [vmem:[%s6302_s11 + $0x820] sm:$0xff]  ;;  %v1747_v35 = vld [vmem:[%s6302_s11 + $0x938] sm:$0xff] }
  0xdd   : > { %983 = vmatprep.mubr.bf16.mxu0 %v5570_v0  ;;  %1094 = vmatprep.mubr.bf16.mxu1 %v5570_v0  ;;  %v1402_v55 = vld [vmem:[%s6302_s11 + $0x920] sm:$0xff]  ;;  %v5084_v45 = vcombine.low %v1746_v34, %v1747_v35 }
  0xde   : > { %v5048_v4 = vcombine.low %v1401_v54, %v1402_v55 }
  0xdf   : > { %1172 = vmatpush1.bf16.msra.mxu0 %v5015_v60  ;;  %1289 = vmatpush1.bf16.msra.mxu1 %v5027_v61  ;;  %v5049_v60 = vcombine.high %v1401_v54, %v1402_v55  ;;  %v5061_v61 = vcombine.high %v1512_v56, %v1513_v57  ;;  %v1895_v57 = vld [vmem:[%s6302_s11 + $0x440] sm:$0xff] }
  0xe0   : > { %1173 = vmatprep.subr.bf16.mxu0 %v5018_v62  ;;  %1290 = vmatprep.subr.bf16.mxu1 %v5030_v63  ;;  %v1621_v62 = vld [vmem:[%s6302_s11 + $0x30] sm:$0xff] }
  0xe1   : > { %v1622_v63 = vld [vmem:[%s6302_s11 + $0x130] sm:$0xff] }
  0xe2   : > { %5000 = vmatmul.mubr.msk.bf16.gmra.mrb[4].mxu0 %vm934_vm0, %v6351_v3  ;;  %5012 = vmatmul.mubr.msk.bf16.gmra.mrb[4].mxu1 %vm934_vm0, %v6351_v3  ;;  %v5064_v12 = vcombine.low %v1621_v62, %v1622_v63 }
  0xe3   : > { %1174 = vmatpush1.bf16.msra.mxu0 %v5017_v6  ;;  %1291 = vmatpush1.bf16.msra.mxu1 %v5029_v7  ;;  %v5065_v6 = vcombine.high %v1621_v62, %v1622_v63  ;;  %v5077_v7 = vcombine.high %v1738_v1, %v1739_v2  ;;  %v1897_v2 = vld [vmem:[%s6302_s11 + $0x640] sm:$0xff] }
  0xe4   : > { %1175 = vmatprep.subr.bf16.mxu0 %v5020_v8  ;;  %1292 = vmatprep.subr.bf16.mxu1 %v5032_v9  ;;  %v1623_v8 = vld [vmem:[%s6302_s11 + $0x230] sm:$0xff] }
  0xe5   : > { %1201 = vmatprep.mubr.bf16.mxu0 %v5570_v0  ;;  %1318 = vmatprep.mubr.bf16.mxu1 %v5570_v0  ;;  %v1624_v9 = vld [vmem:[%s6302_s11 + $0x330] sm:$0xff] }
  0xe6   : > { %v5066_v20 = vcombine.low %v1623_v8, %v1624_v9 }
  0xe7   : > { %1176 = vmatpush1.bf16.msra.mxu0 %v5019_v14  ;;  %1293 = vmatpush1.bf16.msra.mxu1 %v5031_v15  ;;  %v5067_v14 = vcombine.high %v1623_v8, %v1624_v9  ;;  %v5079_v15 = vcombine.high %v1740_v10, %v1741_v11  ;;  %v1899_v11 = vld [vmem:[%s6302_s11 + $0x840] sm:$0xff] }
  0xe8   : > { %1177 = vmatprep.subr.bf16.mxu0 %v5022_v16  ;;  %1294 = vmatprep.subr.bf16.mxu1 %v5034_v17  ;;  %v1625_v16 = vld [vmem:[%s6302_s11 + $0x430] sm:$0xff] }
  0xe9   : > { %v1626_v17 = vld [vmem:[%s6302_s11 + $0x530] sm:$0xff] }
  0xea   : > { %v5068_v28 = vcombine.low %v1625_v16, %v1626_v17 }
  0xeb   : > { %1178 = vmatpush1.bf16.msra.mxu0 %v5021_v22  ;;  %1295 = vmatpush1.bf16.msra.mxu1 %v5033_v23  ;;  %v5069_v22 = vcombine.high %v1625_v16, %v1626_v17  ;;  %v5081_v23 = vcombine.high %v1742_v18, %v1743_v19  ;;  %v2119_v19 = vld [vmem:[%s6302_s11 + $0x50] sm:$0xff] }
  0xec   : > { %1453 = vmatprep.subr.bf16.mxu0 %v5041_v24  ;;  %1564 = vmatprep.subr.bf16.mxu1 %v5053_v25  ;;  %v1627_v24 = vld [vmem:[%s6302_s11 + $0x630] sm:$0xff] }
  0xed   : > { %v1628_v25 = vld [vmem:[%s6302_s11 + $0x730] sm:$0xff] }
  0xee   : > { %5023 = vmatmul.mubr.msk.bf16.vlgmr.msra.gmra.mrb[8].mxu0 %vm934_vm0, %v6333_v49  ;;  %5035 = vmatmul.mubr.msk.bf16.vlgmr.msra.gmra.mrb[8].mxu1 %vm934_vm0, %v6333_v49  ;;  %v5070_v36 = vcombine.low %v1627_v24, %v1628_v25 }
  0xef   : > { %1454 = vmatpush1.bf16.msra.mxu0 %v5040_v30  ;;  %1565 = vmatpush1.bf16.msra.mxu1 %v5052_v31  ;;  %v5071_v30 = vcombine.high %v1627_v24, %v1628_v25  ;;  %v5083_v31 = vcombine.high %v1744_v26, %v1745_v27  ;;  %v2121_v27 = vld [vmem:[%s6302_s11 + $0x250] sm:$0xff] }
  0xf0   : > { %1455 = vmatprep.subr.bf16.mxu0 %v5043_v32  ;;  %1566 = vmatprep.subr.bf16.mxu1 %v5055_v33  ;;  %v1629_v32 = vld [vmem:[%s6302_s11 + $0x830] sm:$0xff] }
  0xf1   : > { %1211 = vmatprep.mubr.bf16.mxu0 %v5570_v0  ;;  %1328 = vmatprep.mubr.bf16.mxu1 %v5570_v0  ;;  %v1630_v33 = vld [vmem:[%s6302_s11 + $0x930] sm:$0xff] }
  0xf2   : > { %v5073_v38 = vcombine.high %v1629_v32, %v1630_v33  ;;  %v5072_v44 = vcombine.low %v1629_v32, %v1630_v33 }
  0xf3   : > { %1456 = vmatpush1.bf16.msra.mxu0 %v5042_v39  ;;  %1567 = vmatpush1.bf16.msra.mxu1 %v5054_v41  ;;  %v5085_v39 = vcombine.high %v1746_v34, %v1747_v35  ;;  %v1892_v41 = vld [vmem:[%s6302_s11 + $0x140] sm:$0xff]  ;;  %v2123_v35 = vld [vmem:[%s6302_s11 + $0x450] sm:$0xff] }
  0xf4   : > { %1457 = vmatprep.subr.bf16.mxu0 %v5045_v42  ;;  %1568 = vmatprep.subr.bf16.mxu1 %v5057_v43  ;;  %v2002_v42 = vld [vmem:[%s6302_s11 + $0x48] sm:$0xff]  ;;  %v5095_v46 = vcombine.high %v1891_v40, %v1892_v41 }
  0xf5   : > { %v2003_v43 = vld [vmem:[%s6302_s11 + $0x148] sm:$0xff] }
  0xf6   : > { %5024 = vmatmul.mubr.msk.bf16.gmra.mrb[12].mxu0 %vm934_vm0, %v6351_v3  ;;  %5036 = vmatmul.mubr.msk.bf16.gmra.mrb[12].mxu1 %vm934_vm0, %v6351_v3  ;;  %v5107_v47 = vcombine.high %v2002_v42, %v2003_v43  ;;  %v5106_v54 = vcombine.low %v2002_v42, %v2003_v43  ;;  %v2125_v43 = vld [vmem:[%s6302_s11 + $0x650] sm:$0xff] }
  0xf7   : > { %1458 = vmatpush1.bf16.msra.mxu0 %v5044_v50  ;;  %1569 = vmatpush1.bf16.msra.mxu1 %v5056_v51  ;;  %v1894_v50 = vld [vmem:[%s6302_s11 + $0x340] sm:$0xff]  ;;  %v2004_v51 = vld [vmem:[%s6302_s11 + $0x248] sm:$0xff] }
  0xf8   : > { %1459 = vmatprep.subr.bf16.mxu0 %v5047_v52  ;;  %1570 = vmatprep.subr.bf16.mxu1 %v5059_v53  ;;  %v2005_v52 = vld [vmem:[%s6302_s11 + $0x348] sm:$0xff]  ;;  %v5094_v53 = vcombine.low %v1891_v40, %v1892_v41  ;;  %v5097_v55 = vcombine.high %v1893_v48, %v1894_v50 }
  0xf9   : > { %1485 = vmatprep.mubr.bf16.mxu0 %v5570_v0  ;;  %1596 = vmatprep.mubr.bf16.mxu1 %v5570_v0  ;;  %v5109_v56 = vcombine.high %v2004_v51, %v2005_v52  ;;  %v5108_v62 = vcombine.low %v2004_v51, %v2005_v52  ;;  %v2127_v52 = vld [vmem:[%s6302_s11 + $0x850] sm:$0xff] }
  0xfb   : > { %1460 = vmatpush1.bf16.msra.mxu0 %v5046_v58  ;;  %1571 = vmatpush1.bf16.msra.mxu1 %v5058_v59  ;;  %v1896_v58 = vld [vmem:[%s6302_s11 + $0x540] sm:$0xff]  ;;  %v2006_v59 = vld [vmem:[%s6302_s11 + $0x448] sm:$0xff] }
  0xfc   : > { %1461 = vmatprep.subr.bf16.mxu0 %v5049_v60  ;;  %1572 = vmatprep.subr.bf16.mxu1 %v5061_v61  ;;  %v2007_v60 = vld [vmem:[%s6302_s11 + $0x548] sm:$0xff]  ;;  %v5096_v61 = vcombine.low %v1893_v48, %v1894_v50  ;;  %v5099_v63 = vcombine.high %v1895_v57, %v1896_v58 }
  0xfd   : > { %v5111_v1 = vcombine.high %v2006_v59, %v2007_v60  ;;  %v5110_v8 = vcombine.low %v2006_v59, %v2007_v60  ;;  %v2389_v60 = vld [vmem:[%s6302_s11 + $0x60] sm:$0xff] }
  0xff   : > { %1462 = vmatpush1.bf16.msra.mxu0 %v5048_v4  ;;  %1573 = vmatpush1.bf16.msra.mxu1 %v5060_v5  ;;  %v1898_v4 = vld [vmem:[%s6302_s11 + $0x740] sm:$0xff]  ;;  %v2008_v5 = vld [vmem:[%s6302_s11 + $0x648] sm:$0xff] }
 0x100   : > { %1681 = vmatprep.subr.bf16.mxu0 %v5065_v6  ;;  %1798 = vmatprep.subr.bf16.mxu1 %v5077_v7  ;;  %v2009_v6 = vld [vmem:[%s6302_s11 + $0x748] sm:$0xff]  ;;  %v5098_v7 = vcombine.low %v1895_v57, %v1896_v58  ;;  %v5101_v9 = vcombine.high %v1897_v2, %v1898_v4 }
 0x101   : > { %v5113_v10 = vcombine.high %v2008_v5, %v2009_v6  ;;  %v5112_v16 = vcombine.low %v2008_v5, %v2009_v6  ;;  %v2391_v6 = vld [vmem:[%s6302_s11 + $0x260] sm:$0xff] }
 0x102   : > { %5050 = vmatmul.mubr.msk.bf16.vlgmr.msra.gmra.mrb[16].mxu0 %vm934_vm0, %v6333_v49  ;;  %5062 = vmatmul.mubr.msk.bf16.vlgmr.msra.gmra.mrb[16].mxu1 %vm934_vm0, %v6333_v49 }
 0x103   : > { %1682 = vmatpush1.bf16.msra.mxu0 %v5064_v12  ;;  %1799 = vmatpush1.bf16.msra.mxu1 %v5076_v13  ;;  %v1900_v12 = vld [vmem:[%s6302_s11 + $0x940] sm:$0xff]  ;;  %v2010_v13 = vld [vmem:[%s6302_s11 + $0x848] sm:$0xff] }
 0x104   : > { %1683 = vmatprep.subr.bf16.mxu0 %v5067_v14  ;;  %1800 = vmatprep.subr.bf16.mxu1 %v5079_v15  ;;  %v2011_v14 = vld [vmem:[%s6302_s11 + $0x948] sm:$0xff]  ;;  %v5100_v15 = vcombine.low %v1897_v2, %v1898_v4  ;;  %v5103_v17 = vcombine.high %v1899_v11, %v1900_v12 }
 0x105   : > { %1495 = vmatprep.mubr.bf16.mxu0 %v5570_v0  ;;  %1606 = vmatprep.mubr.bf16.mxu1 %v5570_v0  ;;  %v5115_v18 = vcombine.high %v2010_v13, %v2011_v14  ;;  %v5114_v24 = vcombine.low %v2010_v13, %v2011_v14  ;;  %v2393_v14 = vld [vmem:[%s6302_s11 + $0x460] sm:$0xff] }
 0x107   : > { %1684 = vmatpush1.bf16.msra.mxu0 %v5066_v20  ;;  %1801 = vmatpush1.bf16.msra.mxu1 %v5078_v21  ;;  %v2120_v20 = vld [vmem:[%s6302_s11 + $0x150] sm:$0xff]  ;;  %v2236_v21 = vld [vmem:[%s6302_s11 + $0x58] sm:$0xff] }
 0x108   : > { %1685 = vmatprep.subr.bf16.mxu0 %v5069_v22  ;;  %1802 = vmatprep.subr.bf16.mxu1 %v5081_v23  ;;  %v2237_v22 = vld [vmem:[%s6302_s11 + $0x158] sm:$0xff]  ;;  %v5102_v23 = vcombine.low %v1899_v11, %v1900_v12  ;;  %v5119_v25 = vcombine.high %v2119_v19, %v2120_v20 }
 0x109   : > { %v5131_v26 = vcombine.high %v2236_v21, %v2237_v22  ;;  %v5130_v32 = vcombine.low %v2236_v21, %v2237_v22  ;;  %v2395_v22 = vld [vmem:[%s6302_s11 + $0x660] sm:$0xff] }
 0x10a   : > { %5051 = vmatmul.mubr.msk.bf16.gmra.mrb[20].mxu0 %vm934_vm0, %v6351_v3  ;;  %5063 = vmatmul.mubr.msk.bf16.gmra.mrb[20].mxu1 %vm934_vm0, %v6351_v3 }
 0x10b   : > { %1686 = vmatpush1.bf16.msra.mxu0 %v5068_v28  ;;  %1803 = vmatpush1.bf16.msra.mxu1 %v5080_v29  ;;  %v2122_v28 = vld [vmem:[%s6302_s11 + $0x350] sm:$0xff]  ;;  %v2238_v29 = vld [vmem:[%s6302_s11 + $0x258] sm:$0xff] }
 0x10c   : > { %1687 = vmatprep.subr.bf16.mxu0 %v5071_v30  ;;  %1804 = vmatprep.subr.bf16.mxu1 %v5083_v31  ;;  %v2239_v30 = vld [vmem:[%s6302_s11 + $0x358] sm:$0xff]  ;;  %v5118_v31 = vcombine.low %v2119_v19, %v2120_v20  ;;  %v5121_v33 = vcombine.high %v2121_v27, %v2122_v28 }
 0x10d   : > { %1713 = vmatprep.mubr.bf16.mxu0 %v5570_v0  ;;  %1830 = vmatprep.mubr.bf16.mxu1 %v5570_v0  ;;  %v5133_v34 = vcombine.high %v2238_v29, %v2239_v30  ;;  %v5132_v40 = vcombine.low %v2238_v29, %v2239_v30  ;;  %v2397_v30 = vld [vmem:[%s6302_s11 + $0x860] sm:$0xff] }
 0x10f   : > { %1688 = vmatpush1.bf16.msra.mxu0 %v5070_v36  ;;  %1805 = vmatpush1.bf16.msra.mxu1 %v5082_v37  ;;  %v2124_v36 = vld [vmem:[%s6302_s11 + $0x550] sm:$0xff]  ;;  %v2240_v37 = vld [vmem:[%s6302_s11 + $0x458] sm:$0xff] }
 0x110   : > { %1689 = vmatprep.subr.bf16.mxu0 %v5073_v38  ;;  %1806 = vmatprep.subr.bf16.mxu1 %v5085_v39  ;;  %v2241_v38 = vld [vmem:[%s6302_s11 + $0x558] sm:$0xff]  ;;  %v5120_v39 = vcombine.low %v2121_v27, %v2122_v28  ;;  %v5123_v41 = vcombine.high %v2123_v35, %v2124_v36 }
 0x111   : > { %v5135_v42 = vcombine.high %v2240_v37, %v2241_v38  ;;  %v5134_v48 = vcombine.low %v2240_v37, %v2241_v38  ;;  %v2617_v38 = vld [vmem:[%s6302_s11 + $0x70] sm:$0xff] }
 0x113   : > { %1690 = vmatpush1.bf16.msra.mxu0 %v5072_v44  ;;  %1807 = vmatpush1.bf16.msra.mxu1 %v5084_v45  ;;  %v2126_v44 = vld [vmem:[%s6302_s11 + $0x750] sm:$0xff]  ;;  %v2242_v45 = vld [vmem:[%s6302_s11 + $0x658] sm:$0xff] }
 0x114   : > { %1951 = vmatprep.subr.bf16.mxu0 %v5095_v46  ;;  %2062 = vmatprep.subr.bf16.mxu1 %v5107_v47  ;;  %v2243_v46 = vld [vmem:[%s6302_s11 + $0x758] sm:$0xff]  ;;  %v5122_v47 = vcombine.low %v2123_v35, %v2124_v36  ;;  %v5125_v50 = vcombine.high %v2125_v43, %v2126_v44 }
 0x115   : > { %v5137_v51 = vcombine.high %v2242_v45, %v2243_v46  ;;  %v5136_v57 = vcombine.low %v2242_v45, %v2243_v46  ;;  %v2619_v46 = vld [vmem:[%s6302_s11 + $0x270] sm:$0xff] }
 0x116   : > { %5074 = vmatmul.mubr.msk.bf16.vlgmr.msra.gmra.mrb[24].mxu0 %vm934_vm0, %v6333_v49  ;;  %5086 = vmatmul.mubr.msk.bf16.vlgmr.msra.gmra.mrb[24].mxu1 %vm934_vm0, %v6333_v49 }
 0x117   : > { %1952 = vmatpush1.bf16.msra.mxu0 %v5094_v53  ;;  %2063 = vmatpush1.bf16.msra.mxu1 %v5106_v54  ;;  %v2128_v53 = vld [vmem:[%s6302_s11 + $0x950] sm:$0xff]  ;;  %v2244_v54 = vld [vmem:[%s6302_s11 + $0x858] sm:$0xff] }
 0x118   : > { %1953 = vmatprep.subr.bf16.mxu0 %v5097_v55  ;;  %2064 = vmatprep.subr.bf16.mxu1 %v5109_v56  ;;  %v2245_v55 = vld [vmem:[%s6302_s11 + $0x958] sm:$0xff]  ;;  %v5124_v56 = vcombine.low %v2125_v43, %v2126_v44  ;;  %v5127_v58 = vcombine.high %v2127_v52, %v2128_v53 }
 0x119   : > { %1723 = vmatprep.mubr.bf16.mxu0 %v5570_v0  ;;  %1840 = vmatprep.mubr.bf16.mxu1 %v5570_v0  ;;  %v5139_v59 = vcombine.high %v2244_v54, %v2245_v55  ;;  %v5138_v2 = vcombine.low %v2244_v54, %v2245_v55  ;;  %v2621_v55 = vld [vmem:[%s6302_s11 + $0x470] sm:$0xff] }
 0x11b   : > { %1954 = vmatpush1.bf16.msra.mxu0 %v5096_v61  ;;  %2065 = vmatpush1.bf16.msra.mxu1 %v5108_v62  ;;  %v2390_v61 = vld [vmem:[%s6302_s11 + $0x160] sm:$0xff]  ;;  %v2500_v62 = vld [vmem:[%s6302_s11 + $0x68] sm:$0xff] }
 0x11c   : > { %1955 = vmatprep.subr.bf16.mxu0 %v5099_v63  ;;  %2066 = vmatprep.subr.bf16.mxu1 %v5111_v1  ;;  %v2501_v63 = vld [vmem:[%s6302_s11 + $0x168] sm:$0xff]  ;;  %v5126_v1 = vcombine.low %v2127_v52, %v2128_v53  ;;  %v5149_v4 = vcombine.high %v2389_v60, %v2390_v61 }
 0x11d   : > { %v5161_v5 = vcombine.high %v2500_v62, %v2501_v63  ;;  %v5160_v11 = vcombine.low %v2500_v62, %v2501_v63  ;;  %v2623_v63 = vld [vmem:[%s6302_s11 + $0x670] sm:$0xff] }
 0x11e   : > { %5075 = vmatmul.mubr.msk.bf16.gmra.mrb[28].mxu0 %vm934_vm0, %v6351_v3  ;;  %5087 = vmatmul.mubr.msk.bf16.gmra.mrb[28].mxu1 %vm934_vm0, %v6351_v3 }
 0x11f   : > { %1956 = vmatpush1.bf16.msra.mxu0 %v5098_v7  ;;  %2067 = vmatpush1.bf16.msra.mxu1 %v5110_v8  ;;  %v2392_v7 = vld [vmem:[%s6302_s11 + $0x360] sm:$0xff]  ;;  %v2502_v8 = vld [vmem:[%s6302_s11 + $0x268] sm:$0xff] }
 0x120   : > { %1957 = vmatprep.subr.bf16.mxu0 %v5101_v9  ;;  %2068 = vmatprep.subr.bf16.mxu1 %v5113_v10  ;;  %v2503_v9 = vld [vmem:[%s6302_s11 + $0x368] sm:$0xff]  ;;  %v5148_v10 = vcombine.low %v2389_v60, %v2390_v61  ;;  %v5151_v12 = vcombine.high %v2391_v6, %v2392_v7 }
 0x121   : > { %1983 = vmatprep.mubr.bf16.mxu0 %v5570_v0  ;;  %2094 = vmatprep.mubr.bf16.mxu1 %v5570_v0  ;;  %v5163_v13 = vcombine.high %v2502_v8, %v2503_v9  ;;  %v5162_v19 = vcombine.low %v2502_v8, %v2503_v9  ;;  %v2625_v9 = vld [vmem:[%s6302_s11 + $0x870] sm:$0xff] }
 0x123   : > { %1958 = vmatpush1.bf16.msra.mxu0 %v5100_v15  ;;  %2069 = vmatpush1.bf16.msra.mxu1 %v5112_v16  ;;  %v2394_v15 = vld [vmem:[%s6302_s11 + $0x560] sm:$0xff]  ;;  %v2504_v16 = vld [vmem:[%s6302_s11 + $0x468] sm:$0xff] }
 0x124   : > { %1959 = vmatprep.subr.bf16.mxu0 %v5103_v17  ;;  %2070 = vmatprep.subr.bf16.mxu1 %v5115_v18  ;;  %v2505_v17 = vld [vmem:[%s6302_s11 + $0x568] sm:$0xff]  ;;  %v5150_v18 = vcombine.low %v2391_v6, %v2392_v7  ;;  %v5153_v20 = vcombine.high %v2393_v14, %v2394_v15 }
 0x125   : > { %v5165_v21 = vcombine.high %v2504_v16, %v2505_v17  ;;  %v5164_v27 = vcombine.low %v2504_v16, %v2505_v17  ;;  %v2887_v17 = vld [vmem:[%s6302_s11 + $0x80] sm:$0xff] }
 0x127   : > { %1960 = vmatpush1.bf16.msra.mxu0 %v5102_v23  ;;  %2071 = vmatpush1.bf16.msra.mxu1 %v5114_v24  ;;  %v2396_v23 = vld [vmem:[%s6302_s11 + $0x760] sm:$0xff]  ;;  %v2506_v24 = vld [vmem:[%s6302_s11 + $0x668] sm:$0xff] }
 0x128   : > { %2179 = vmatprep.subr.bf16.mxu0 %v5119_v25  ;;  %2296 = vmatprep.subr.bf16.mxu1 %v5131_v26  ;;  %v2507_v25 = vld [vmem:[%s6302_s11 + $0x768] sm:$0xff]  ;;  %v5152_v26 = vcombine.low %v2393_v14, %v2394_v15  ;;  %v5155_v28 = vcombine.high %v2395_v22, %v2396_v23 }
 0x129   : > { %v5167_v29 = vcombine.high %v2506_v24, %v2507_v25  ;;  %v5166_v35 = vcombine.low %v2506_v24, %v2507_v25  ;;  %v2889_v25 = vld [vmem:[%s6302_s11 + $0x280] sm:$0xff] }
 0x12a   : > { %5104 = vmatmul.mubr.msk.bf16.vlgmr.msra.gmra.mrb[32].mxu0 %vm934_vm0, %v6333_v49  ;;  %5116 = vmatmul.mubr.msk.bf16.vlgmr.msra.gmra.mrb[32].mxu1 %vm934_vm0, %v6333_v49 }
 0x12b   : > { %2180 = vmatpush1.bf16.msra.mxu0 %v5118_v31  ;;  %2297 = vmatpush1.bf16.msra.mxu1 %v5130_v32  ;;  %v2398_v31 = vld [vmem:[%s6302_s11 + $0x960] sm:$0xff]  ;;  %v2508_v32 = vld [vmem:[%s6302_s11 + $0x868] sm:$0xff] }
 0x12c   : > { %2181 = vmatprep.subr.bf16.mxu0 %v5121_v33  ;;  %2298 = vmatprep.subr.bf16.mxu1 %v5133_v34  ;;  %v2509_v33 = vld [vmem:[%s6302_s11 + $0x968] sm:$0xff]  ;;  %v5154_v34 = vcombine.low %v2395_v22, %v2396_v23  ;;  %v5157_v36 = vcombine.high %v2397_v30, %v2398_v31 }
 0x12d   : > { %1993 = vmatprep.mubr.bf16.mxu0 %v5570_v0  ;;  %2104 = vmatprep.mubr.bf16.mxu1 %v5570_v0  ;;  %v5169_v37 = vcombine.high %v2508_v32, %v2509_v33  ;;  %v5168_v43 = vcombine.low %v2508_v32, %v2509_v33  ;;  %v2891_v33 = vld [vmem:[%s6302_s11 + $0x480] sm:$0xff] }
 0x12f   : > { %2182 = vmatpush1.bf16.msra.mxu0 %v5120_v39  ;;  %2299 = vmatpush1.bf16.msra.mxu1 %v5132_v40  ;;  %v2618_v39 = vld [vmem:[%s6302_s11 + $0x170] sm:$0xff]  ;;  %v2734_v40 = vld [vmem:[%s6302_s11 + $0x78] sm:$0xff] }
 0x130   : > { %2183 = vmatprep.subr.bf16.mxu0 %v5123_v41  ;;  %2300 = vmatprep.subr.bf16.mxu1 %v5135_v42  ;;  %v2735_v41 = vld [vmem:[%s6302_s11 + $0x178] sm:$0xff]  ;;  %v5156_v42 = vcombine.low %v2397_v30, %v2398_v31  ;;  %v5173_v44 = vcombine.high %v2617_v38, %v2618_v39 }
 0x131   : > { %v5185_v45 = vcombine.high %v2734_v40, %v2735_v41  ;;  %v5184_v52 = vcombine.low %v2734_v40, %v2735_v41  ;;  %v2893_v41 = vld [vmem:[%s6302_s11 + $0x680] sm:$0xff] }
 0x132   : > { %5105 = vmatmul.mubr.msk.bf16.gmra.mrb[36].mxu0 %vm934_vm0, %v6351_v3  ;;  %5117 = vmatmul.mubr.msk.bf16.gmra.mrb[36].mxu1 %vm934_vm0, %v6351_v3 }
 0x133   : > { %2184 = vmatpush1.bf16.msra.mxu0 %v5122_v47  ;;  %2301 = vmatpush1.bf16.msra.mxu1 %v5134_v48  ;;  %v2620_v47 = vld [vmem:[%s6302_s11 + $0x370] sm:$0xff]  ;;  %v2736_v48 = vld [vmem:[%s6302_s11 + $0x278] sm:$0xff] }
 0x134   : > { %2185 = vmatprep.subr.bf16.mxu0 %v5125_v50  ;;  %2302 = vmatprep.subr.bf16.mxu1 %v5137_v51  ;;  %v2737_v50 = vld [vmem:[%s6302_s11 + $0x378] sm:$0xff]  ;;  %v5172_v51 = vcombine.low %v2617_v38, %v2618_v39  ;;  %v5175_v53 = vcombine.high %v2619_v46, %v2620_v47 }
 0x135   : > { %2211 = vmatprep.mubr.bf16.mxu0 %v5570_v0  ;;  %2328 = vmatprep.mubr.bf16.mxu1 %v5570_v0  ;;  %v5187_v54 = vcombine.high %v2736_v48, %v2737_v50  ;;  %v5186_v60 = vcombine.low %v2736_v48, %v2737_v50  ;;  %v2895_v48 = vld [vmem:[%s6302_s11 + $0x880] sm:$0xff] }
 0x136   : > { %v2896_v50 = vld [vmem:[%s6302_s11 + $0x980] sm:$0xff] }
 0x137   : > { %2186 = vmatpush1.bf16.msra.mxu0 %v5124_v56  ;;  %2303 = vmatpush1.bf16.msra.mxu1 %v5136_v57  ;;  %v2622_v56 = vld [vmem:[%s6302_s11 + $0x570] sm:$0xff]  ;;  %v2738_v57 = vld [vmem:[%s6302_s11 + $0x478] sm:$0xff] }
 0x138   : > { %2187 = vmatprep.subr.bf16.mxu0 %v5127_v58  ;;  %2304 = vmatprep.subr.bf16.mxu1 %v5139_v59  ;;  %v2739_v58 = vld [vmem:[%s6302_s11 + $0x578] sm:$0xff]  ;;  %v5174_v59 = vcombine.low %v2619_v46, %v2620_v47  ;;  %v5177_v61 = vcombine.high %v2621_v55, %v2622_v56 }
 0x139   : > { %v5189_v62 = vcombine.high %v2738_v57, %v2739_v58  ;;  %v5188_v6 = vcombine.low %v2738_v57, %v2739_v58  ;;  %v3115_v57 = vld [vmem:[%s6302_s11 + $0x90] sm:$0xff] }
 0x13a   : > { %v3116_v58 = vld [vmem:[%s6302_s11 + $0x190] sm:$0xff] }
 0x13b   : > { %2188 = vmatpush1.bf16.msra.mxu0 %v5126_v1  ;;  %2305 = vmatpush1.bf16.msra.mxu1 %v5138_v2  ;;  %v2624_v1 = vld [vmem:[%s6302_s11 + $0x770] sm:$0xff]  ;;  %v2740_v2 = vld [vmem:[%s6302_s11 + $0x678] sm:$0xff] }
 0x13c   : > { %2449 = vmatprep.subr.bf16.mxu0 %v5149_v4  ;;  %2560 = vmatprep.subr.bf16.mxu1 %v5161_v5  ;;  %v2741_v4 = vld [vmem:[%s6302_s11 + $0x778] sm:$0xff]  ;;  %v5176_v5 = vcombine.low %v2621_v55, %v2622_v56  ;;  %v5179_v7 = vcombine.high %v2623_v63, %v2624_v1  ;;  %v5211_v55 = vcombine.high %v2895_v48, %v2896_v50 }
 0x13d   : > { %v5191_v8 = vcombine.high %v2740_v2, %v2741_v4  ;;  %v5190_v14 = vcombine.low %v2740_v2, %v2741_v4  ;;  %v3118_v2 = vld [vmem:[%s6302_s11 + $0x390] sm:$0xff]  ;;  %v3234_v4 = vld [vmem:[%s6302_s11 + $0x298] sm:$0xff] }
 0x13e   : > { %5128 = vmatmul.mubr.msk.bf16.vlgmr.msra.gmra.mrb[40].mxu0 %vm934_vm0, %v6333_v49  ;;  %5140 = vmatmul.mubr.msk.bf16.vlgmr.msra.gmra.mrb[40].mxu1 %vm934_vm0, %v6333_v49 }
 0x13f   : > { %2450 = vmatpush1.bf16.msra.mxu0 %v5148_v10  ;;  %2561 = vmatpush1.bf16.msra.mxu1 %v5160_v11  ;;  %v2626_v10 = vld [vmem:[%s6302_s11 + $0x970] sm:$0xff]  ;;  %v2742_v11 = vld [vmem:[%s6302_s11 + $0x878] sm:$0xff] }
 0x140   : > { %2451 = vmatprep.subr.bf16.mxu0 %v5151_v12  ;;  %2562 = vmatprep.subr.bf16.mxu1 %v5163_v13  ;;  %v2743_v12 = vld [vmem:[%s6302_s11 + $0x978] sm:$0xff]  ;;  %v5178_v13 = vcombine.low %v2623_v63, %v2624_v1  ;;  %v5181_v15 = vcombine.high %v2625_v9, %v2626_v10  ;;  %v3117_v1 = vld [vmem:[%s6302_s11 + $0x290] sm:$0xff] }
 0x141   : > { %2221 = vmatprep.mubr.bf16.mxu0 %v5570_v0  ;;  %2338 = vmatprep.mubr.bf16.mxu1 %v5570_v0  ;;  %v5193_v16 = vcombine.high %v2742_v11, %v2743_v12  ;;  %v5192_v22 = vcombine.low %v2742_v11, %v2743_v12  ;;  %v3120_v11 = vld [vmem:[%s6302_s11 + $0x590] sm:$0xff]  ;;  %v6612_v12 = vld [vmem:[%s7104_s1] sm:$0xff]  }
 0x143   : > { %2452 = vmatpush1.bf16.msra.mxu0 %v5150_v18  ;;  %2563 = vmatpush1.bf16.msra.mxu1 %v5162_v19  ;;  %v2888_v18 = vld [vmem:[%s6302_s11 + $0x180] sm:$0xff]  ;;  %v2998_v19 = vld [vmem:[%s6302_s11 + $0x88] sm:$0xff] }
 0x144   : > { %2453 = vmatprep.subr.bf16.mxu0 %v5153_v20  ;;  %2564 = vmatprep.subr.bf16.mxu1 %v5165_v21  ;;  %v2999_v20 = vld [vmem:[%s6302_s11 + $0x188] sm:$0xff]  ;;  %v5180_v21 = vcombine.low %v2625_v9, %v2626_v10  ;;  %v5203_v23 = vcombine.high %v2887_v17, %v2888_v18  ;;  %v3119_v10 = vld [vmem:[%s6302_s11 + $0x490] sm:$0xff] }
 0x145   : > { %v5215_v24 = vcombine.high %v2998_v19, %v2999_v20  ;;  %v5214_v30 = vcombine.low %v2998_v19, %v2999_v20  ;;  %v3121_v19 = vld [vmem:[%s6302_s11 + $0x690] sm:$0xff] }
 0x146   : > { %5129 = vmatmul.mubr.msk.bf16.gmra.mrb[44].mxu0 %vm934_vm0, %v6351_v3  ;;  %5141 = vmatmul.mubr.msk.bf16.gmra.mrb[44].mxu1 %vm934_vm0, %v6351_v3  ;;  %v3122_v20 = vld [vmem:[%s6302_s11 + $0x790] sm:$0xff] }
 0x147   : > { %2454 = vmatpush1.bf16.msra.mxu0 %v5152_v26  ;;  %2565 = vmatpush1.bf16.msra.mxu1 %v5164_v27  ;;  %v2890_v26 = vld [vmem:[%s6302_s11 + $0x380] sm:$0xff]  ;;  %v3000_v27 = vld [vmem:[%s6302_s11 + $0x288] sm:$0xff] }
 0x148   : > { %2455 = vmatprep.subr.bf16.mxu0 %v5155_v28  ;;  %2566 = vmatprep.subr.bf16.mxu1 %v5167_v29  ;;  %v3001_v28 = vld [vmem:[%s6302_s11 + $0x388] sm:$0xff]  ;;  %v5202_v29 = vcombine.low %v2887_v17, %v2888_v18  ;;  %v5205_v31 = vcombine.high %v2889_v25, %v2890_v26  ;;  %v5231_v17 = vcombine.high %v3119_v10, %v3120_v11 }
 0x149   : > { %2481 = vmatprep.mubr.bf16.mxu0 %v5570_v0  ;;  %2592 = vmatprep.mubr.bf16.mxu1 %v5570_v0  ;;  %v5217_v32 = vcombine.high %v3000_v27, %v3001_v28  ;;  %v5216_v38 = vcombine.low %v3000_v27, %v3001_v28  ;;  %v3123_v27 = vld [vmem:[%s6302_s11 + $0x890] sm:$0xff] }
 0x14a   : > { %v3124_v28 = vld [vmem:[%s6302_s11 + $0x990] sm:$0xff] }
 0x14b   : > { %2456 = vmatpush1.bf16.msra.mxu0 %v5154_v34  ;;  %2567 = vmatpush1.bf16.msra.mxu1 %v5166_v35  ;;  %v2892_v34 = vld [vmem:[%s6302_s11 + $0x580] sm:$0xff]  ;;  %v3002_v35 = vld [vmem:[%s6302_s11 + $0x488] sm:$0xff] }
 0x14c   : > { %2457 = vmatprep.subr.bf16.mxu0 %v5157_v36  ;;  %2568 = vmatprep.subr.bf16.mxu1 %v5169_v37  ;;  %v3003_v36 = vld [vmem:[%s6302_s11 + $0x588] sm:$0xff]  ;;  %v5204_v37 = vcombine.low %v2889_v25, %v2890_v26  ;;  %v5207_v39 = vcombine.high %v2891_v33, %v2892_v34  ;;  %v5233_v25 = vcombine.high %v3121_v19, %v3122_v20 }
 0x14d   : > { %v5219_v40 = vcombine.high %v3002_v35, %v3003_v36 }
 0x14f   : > { %2458 = vmatpush1.bf16.msra.mxu0 %v5156_v42  ;;  %2569 = vmatpush1.bf16.msra.mxu1 %v5168_v43  ;;  %v2894_v42 = vld [vmem:[%s6302_s11 + $0x780] sm:$0xff]  ;;  %v3004_v43 = vld [vmem:[%s6302_s11 + $0x688] sm:$0xff] }
 0x150   : > { %2677 = vmatprep.subr.bf16.mxu0 %v5173_v44  ;;  %2794 = vmatprep.subr.bf16.mxu1 %v5185_v45  ;;  %v5206_v44 = vcombine.low %v2891_v33, %v2892_v34  ;;  %v5218_v45 = vcombine.low %v3002_v35, %v3003_v36  ;;  %v5209_v46 = vcombine.high %v2893_v41, %v2894_v42  ;;  %v3385_v36 = vld [vmem:[%s6302_s11 + $0xa0] sm:$0xff] }
 0x151   : > { %v5235_v34 = vcombine.high %v3123_v27, %v3124_v28 }
 0x152   : > { %5158 = vmatmul.mubr.msk.bf16.vlgmr.msra.gmra.mrb[48].mxu0 %vm934_vm0, %v6333_v49  ;;  %5170 = vmatmul.mubr.msk.bf16.vlgmr.msra.gmra.mrb[48].mxu1 %vm934_vm0, %v6333_v49 }
 0x153   : > { %2678 = vmatpush1.bf16.msra.mxu0 %v5172_v51  ;;  %2795 = vmatpush1.bf16.msra.mxu1 %v5184_v52  ;;  %v3006_v51 = vld [vmem:[%s6302_s11 + $0x888] sm:$0xff] }
 0x154   : > { %2679 = vmatprep.subr.bf16.mxu0 %v5175_v53  ;;  %2796 = vmatprep.subr.bf16.mxu1 %v5187_v54  ;;  %v3007_v52 = vld [vmem:[%s6302_s11 + $0x988] sm:$0xff]  ;;  %v5208_v53 = vcombine.low %v2893_v41, %v2894_v42 }
 0x155   : > { %2491 = vmatprep.mubr.bf16.mxu0 %v5570_v0  ;;  %2602 = vmatprep.mubr.bf16.mxu1 %v5570_v0  ;;  %v5223_v56 = vcombine.high %v3006_v51, %v3007_v52 }
 0x157   : > { %2680 = vmatpush1.bf16.msra.mxu0 %v5174_v59  ;;  %2797 = vmatpush1.bf16.msra.mxu1 %v5186_v60  ;;  %v3232_v59 = vld [vmem:[%s6302_s11 + $0x98] sm:$0xff] }
 0x158   : > { %2681 = vmatprep.subr.bf16.mxu0 %v5177_v61  ;;  %2798 = vmatprep.subr.bf16.mxu1 %v5189_v62  ;;  %v3233_v60 = vld [vmem:[%s6302_s11 + $0x198] sm:$0xff]  ;;  %v5222_v61 = vcombine.low %v3006_v51, %v3007_v52  ;;  %v5227_v62 = vcombine.high %v3115_v57, %v3116_v58  ;;  %v3389_v52 = vld [vmem:[%s6302_s11 + $0x4a0] sm:$0xff] }
 0x159   : > { %v5239_v63 = vcombine.high %v3232_v59, %v3233_v60 }
 0x15a   : > { %5159 = vmatmul.mubr.msk.bf16.gmra.mrb[52].mxu0 %vm934_vm0, %v6351_v3  ;;  %5171 = vmatmul.mubr.msk.bf16.gmra.mrb[52].mxu1 %vm934_vm0, %v6351_v3 }
 0x15b   : > { %2682 = vmatpush1.bf16.msra.mxu0 %v5176_v5  ;;  %2799 = vmatpush1.bf16.msra.mxu1 %v5188_v6  ;;  %v3235_v5 = vld [vmem:[%s6302_s11 + $0x398] sm:$0xff]  ;;  %v5226_v6 = vcombine.low %v3115_v57, %v3116_v58 }
 0x15c   : > { %2683 = vmatprep.subr.bf16.mxu0 %v5179_v7  ;;  %2800 = vmatprep.subr.bf16.mxu1 %v5191_v8  ;;  %v5238_v7 = vcombine.low %v3232_v59, %v3233_v60  ;;  %v5229_v8 = vcombine.high %v3117_v1, %v3118_v2  ;;  %v5241_v9 = vcombine.high %v3234_v4, %v3235_v5  ;;  %v3391_v60 = vld [vmem:[%s6302_s11 + $0x6a0] sm:$0xff] }
 0x15d   : > { %2709 = vmatprep.mubr.bf16.mxu0 %v5570_v0  ;;  %2826 = vmatprep.mubr.bf16.mxu1 %v5570_v0 }
 0x15f   : > { %2684 = vmatpush1.bf16.msra.mxu0 %v5178_v13  ;;  %2801 = vmatpush1.bf16.msra.mxu1 %v5190_v14  ;;  %v3236_v13 = vld [vmem:[%s6302_s11 + $0x498] sm:$0xff] }
 0x160   : > { %2685 = vmatprep.subr.bf16.mxu0 %v5181_v15  ;;  %2802 = vmatprep.subr.bf16.mxu1 %v5193_v16  ;;  %v3237_v14 = vld [vmem:[%s6302_s11 + $0x598] sm:$0xff]  ;;  %v5228_v15 = vcombine.low %v3117_v1, %v3118_v2  ;;  %v5240_v16 = vcombine.low %v3234_v4, %v3235_v5  ;;  %v3393_v5 = vld [vmem:[%s6302_s11 + $0x8a0] sm:$0xff] }
 0x161   : > { %v5243_v18 = vcombine.high %v3236_v13, %v3237_v14 }
 0x163   : > { %2686 = vmatpush1.bf16.msra.mxu0 %v5180_v21  ;;  %2803 = vmatpush1.bf16.msra.mxu1 %v5192_v22  ;;  %v3238_v21 = vld [vmem:[%s6302_s11 + $0x698] sm:$0xff] }
 0x164   : > { %2947 = vmatprep.subr.bf16.mxu0 %v5203_v23  ;;  %3058 = vmatprep.subr.bf16.mxu1 %v5215_v24  ;;  %v3239_v22 = vld [vmem:[%s6302_s11 + $0x798] sm:$0xff]  ;;  %v5230_v23 = vcombine.low %v3119_v10, %v3120_v11  ;;  %v5242_v24 = vcombine.low %v3236_v13, %v3237_v14  ;;  %v3613_v14 = vld [vmem:[%s6302_s11 + $0xb0] sm:$0xff] }
 0x165   : > { %v5245_v26 = vcombine.high %v3238_v21, %v3239_v22  ;;  %v5244_v33 = vcombine.low %v3238_v21, %v3239_v22  ;;  %v3615_v22 = vld [vmem:[%s6302_s11 + $0x2b0] sm:$0xff] }
 0x166   : > { %5182 = vmatmul.mubr.msk.bf16.vlgmr.msra.gmra.mrb[56].mxu0 %vm934_vm0, %v6333_v49  ;;  %5194 = vmatmul.mubr.msk.bf16.vlgmr.msra.gmra.mrb[56].mxu1 %vm934_vm0, %v6333_v49  ;;  %v3005_v49 = vld [vmem:[%s6302_s11 + $0x788] sm:$0xff] }
 0x167   : > { %2948 = vmatpush1.bf16.msra.mxu0 %v5202_v29  ;;  %3059 = vmatpush1.bf16.msra.mxu1 %v5214_v30  ;;  %v5221_v47 = vcombine.high %v3004_v43, %v3005_v49  ;;  %v5220_v54 = vcombine.low %v3004_v43, %v3005_v49  ;;  %v6631_v29 = vld [vmem:[%s7104_s1 + $0x8] ss:$0 sps:$4 sm:$0xff]   ;;  %v3240_v30 = vld [vmem:[%s6302_s11 + $0x898] sm:$0xff]  ;;  %v3387_v49 = vld [vmem:[%s6302_s11 + $0x2a0] sm:$0xff] }
 0x168   : > { %2949 = vmatprep.subr.bf16.mxu0 %v5205_v31  ;;  %3060 = vmatprep.subr.bf16.mxu1 %v5217_v32  ;;  %v3241_v31 = vld [vmem:[%s6302_s11 + $0x998] sm:$0xff]  ;;  %v5232_v32 = vcombine.low %v3121_v19, %v3122_v20 }
 0x169   : > { %2719 = vmatprep.mubr.bf16.mxu0 %v5570_v0  ;;  %2836 = vmatprep.mubr.bf16.mxu1 %v5570_v0  ;;  %v5247_v35 = vcombine.high %v3240_v30, %v3241_v31  ;;  %v5246_v41 = vcombine.low %v3240_v30, %v3241_v31  ;;  %v3617_v31 = vld [vmem:[%s6302_s11 + $0x4b0] sm:$0xff] }
 0x16b   : > { %2950 = vmatpush1.bf16.msra.mxu0 %v5204_v37  ;;  %3061 = vmatpush1.bf16.msra.mxu1 %v5216_v38  ;;  %v3386_v37 = vld [vmem:[%s6302_s11 + $0x1a0] sm:$0xff]  ;;  %v3496_v38 = vld [vmem:[%s6302_s11 + $0xa8] sm:$0xff] }
 0x16c   : > { %2951 = vmatprep.subr.bf16.mxu0 %v5207_v39  ;;  %3062 = vmatprep.subr.bf16.mxu1 %v5219_v40  ;;  %v3497_v39 = vld [vmem:[%s6302_s11 + $0x1a8] sm:$0xff]  ;;  %v5234_v40 = vcombine.low %v3123_v27, %v3124_v28  ;;  %v5257_v42 = vcombine.high %v3385_v36, %v3386_v37 }
 0x16d   : > { %v5269_v43 = vcombine.high %v3496_v38, %v3497_v39 }
 0x16e   : > { %5183 = vmatmul.mubr.msk.bf16.gmra.mrb[60].mxu0 %vm934_vm0, %v6351_v3  ;;  %5195 = vmatmul.mubr.msk.bf16.gmra.mrb[60].mxu1 %vm934_vm0, %v6351_v3  ;;  %v5210_v3 = vcombine.low %v2895_v48, %v2896_v50  ;;  %v5268_v48 = vcombine.low %v3496_v38, %v3497_v39  ;;  %v3619_v39 = vld [vmem:[%s6302_s11 + $0x6b0] sm:$0xff] }
 0x16f   : > { %2952 = vmatpush1.bf16.msra.mxu0 %v5206_v44  ;;  %3063 = vmatpush1.bf16.msra.mxu1 %v5218_v45  ;;  %v3388_v44 = vld [vmem:[%s6302_s11 + $0x3a0] sm:$0xff]  ;;  %v3498_v45 = vld [vmem:[%s6302_s11 + $0x2a8] sm:$0xff] }
 0x170   : > { %2953 = vmatprep.subr.bf16.mxu0 %v5209_v46  ;;  %3064 = vmatprep.subr.bf16.mxu1 %v5221_v47  ;;  %v3499_v46 = vld [vmem:[%s6302_s11 + $0x3a8] sm:$0xff]  ;;  %v5256_v47 = vcombine.low %v3385_v36, %v3386_v37  ;;  %v5259_v50 = vcombine.high %v3387_v49, %v3388_v44 }
 0x171   : > { %2979 = vmatprep.mubr.bf16.mxu0 %v5570_v0  ;;  %3090 = vmatprep.mubr.bf16.mxu1 %v5570_v0  ;;  %v5271_v51 = vcombine.high %v3498_v45, %v3499_v46  ;;  %v5270_v57 = vcombine.low %v3498_v45, %v3499_v46  ;;  %v3621_v46 = vld [vmem:[%s6302_s11 + $0x8b0] sm:$0xff] }
 0x173   : > { %2954 = vmatpush1.bf16.msra.mxu0 %v5208_v53  ;;  %3065 = vmatpush1.bf16.msra.mxu1 %v5220_v54  ;;  %v3390_v53 = vld [vmem:[%s6302_s11 + $0x5a0] sm:$0xff]  ;;  %v3500_v54 = vld [vmem:[%s6302_s11 + $0x4a8] sm:$0xff] }
 0x174   : > { %2955 = vmatprep.subr.bf16.mxu0 %v5211_v55  ;;  %3066 = vmatprep.subr.bf16.mxu1 %v5223_v56  ;;  %v3501_v55 = vld [vmem:[%s6302_s11 + $0x5a8] sm:$0xff]  ;;  %v5258_v56 = vcombine.low %v3387_v49, %v3388_v44  ;;  %v5261_v58 = vcombine.high %v3389_v52, %v3390_v53 }
 0x175   : > { %v5273_v59 = vcombine.high %v3500_v54, %v3501_v55  ;;  %v5272_v1 = vcombine.low %v3500_v54, %v3501_v55 }
 0x177   : > { %2956 = vmatpush1.bf16.msra.mxu0 %v5210_v3  ;;  %3067 = vmatpush1.bf16.msra.mxu1 %v5222_v61  ;;  %v3392_v3 = vld [vmem:[%s6302_s11 + $0x7a0] sm:$0xff]  ;;  %v3502_v61 = vld [vmem:[%s6302_s11 + $0x6a8] sm:$0xff] }
 0x178   : > { %3175 = vmatprep.subr.bf16.mxu0 %v5227_v62  ;;  %3292 = vmatprep.subr.bf16.mxu1 %v5239_v63  ;;  %v3503_v62 = vld [vmem:[%s6302_s11 + $0x7a8] sm:$0xff]  ;;  %v5260_v63 = vcombine.low %v3389_v52, %v3390_v53  ;;  %v5263_v2 = vcombine.high %v3391_v60, %v3392_v3 }
 0x179   : > { %v5275_v4 = vcombine.high %v3502_v61, %v3503_v62  ;;  %v5274_v10 = vcombine.low %v3502_v61, %v3503_v62 }
 0x17a   : > { %5212 = vmatmul.mubr.msk.bf16.vlgmr.msra.gmra.mrb[64].mxu0 %vm934_vm0, %v6612_v12  ;;  %5224 = vmatmul.mubr.msk.bf16.vlgmr.msra.gmra.mrb[64].mxu1 %vm934_vm0, %v6612_v12 }
 0x17b   : > { %3176 = vmatpush1.bf16.msra.mxu0 %v5226_v6  ;;  %3293 = vmatpush1.bf16.msra.mxu1 %v5238_v7  ;;  %v3394_v6 = vld [vmem:[%s6302_s11 + $0x9a0] sm:$0xff]  ;;  %v3504_v7 = vld [vmem:[%s6302_s11 + $0x8a8] sm:$0xff] }
 0x17c   : > { %3177 = vmatprep.subr.bf16.mxu0 %v5229_v8  ;;  %3294 = vmatprep.subr.bf16.mxu1 %v5241_v9  ;;  %v3505_v8 = vld [vmem:[%s6302_s11 + $0x9a8] sm:$0xff]  ;;  %v5262_v9 = vcombine.low %v3391_v60, %v3392_v3  ;;  %v5265_v11 = vcombine.high %v3393_v5, %v3394_v6 }
 0x17d   : > { %2989 = vmatprep.mubr.bf16.mxu0 %v5570_v0  ;;  %3100 = vmatprep.mubr.bf16.mxu1 %v5570_v0  ;;  %v5277_v13 = vcombine.high %v3504_v7, %v3505_v8  ;;  %v5276_v19 = vcombine.low %v3504_v7, %v3505_v8  ;;  %v3994_v60 = vld [vmem:[%s6302_s11 + $0xc8] sm:$0xff] }
 0x17e   : > { %v3995_v3 = vld [vmem:[%s6302_s11 + $0x1c8] sm:$0xff] }
 0x17f   : > { %3178 = vmatpush1.bf16.msra.mxu0 %v5228_v15  ;;  %3295 = vmatpush1.bf16.msra.mxu1 %v5240_v16  ;;  %v3614_v15 = vld [vmem:[%s6302_s11 + $0x1b0] sm:$0xff]  ;;  %v3730_v16 = vld [vmem:[%s6302_s11 + $0xb8] sm:$0xff] }
 0x180   : > { %3179 = vmatprep.subr.bf16.mxu0 %v5231_v17  ;;  %3296 = vmatprep.subr.bf16.mxu1 %v5243_v18  ;;  %v3731_v17 = vld [vmem:[%s6302_s11 + $0x1b8] sm:$0xff]  ;;  %v5264_v18 = vcombine.low %v3393_v5, %v3394_v6  ;;  %v5281_v20 = vcombine.high %v3613_v14, %v3614_v15 }
 0x181   : > { %v5293_v21 = vcombine.high %v3730_v16, %v3731_v17  ;;  %v5292_v27 = vcombine.low %v3730_v16, %v3731_v17  ;;  %v3997_v16 = vld [vmem:[%s6302_s11 + $0x3c8] sm:$0xff] }
 0x182   : > { %5213 = vmatmul.mubr.msk.bf16.gmra.mrb[68].mxu0 %vm934_vm0, %v6631_v29  ;;  %5225 = vmatmul.mubr.msk.bf16.gmra.mrb[68].mxu1 %vm934_vm0, %v6631_v29 }
 0x183   : > { %3180 = vmatpush1.bf16.msra.mxu0 %v5230_v23  ;;  %3297 = vmatpush1.bf16.msra.mxu1 %v5242_v24  ;;  %v3616_v23 = vld [vmem:[%s6302_s11 + $0x3b0] sm:$0xff]  ;;  %v3732_v24 = vld [vmem:[%s6302_s11 + $0x2b8] sm:$0xff] }
 0x184   : > { %3181 = vmatprep.subr.bf16.mxu0 %v5233_v25  ;;  %3298 = vmatprep.subr.bf16.mxu1 %v5245_v26  ;;  %v3733_v25 = vld [vmem:[%s6302_s11 + $0x3b8] sm:$0xff]  ;;  %v5280_v26 = vcombine.low %v3613_v14, %v3614_v15  ;;  %v5283_v28 = vcombine.high %v3615_v22, %v3616_v23  ;;  %v3996_v15 = vld [vmem:[%s6302_s11 + $0x2c8] sm:$0xff] }
 0x185   : > { %3207 = vmatprep.mubr.bf16.mxu0 %v5570_v0  ;;  %3324 = vmatprep.mubr.bf16.mxu1 %v5570_v0  ;;  %v5295_v30 = vcombine.high %v3732_v24, %v3733_v25  ;;  %v5294_v36 = vcombine.low %v3732_v24, %v3733_v25 }
 0x187   : > { %3182 = vmatpush1.bf16.msra.mxu0 %v5232_v32  ;;  %3299 = vmatpush1.bf16.msra.mxu1 %v5244_v33  ;;  %v3618_v32 = vld [vmem:[%s6302_s11 + $0x5b0] sm:$0xff]  ;;  %v3734_v33 = vld [vmem:[%s6302_s11 + $0x4b8] sm:$0xff] }
 0x188   : > { %3183 = vmatprep.subr.bf16.mxu0 %v5235_v34  ;;  %3300 = vmatprep.subr.bf16.mxu1 %v5247_v35  ;;  %v3735_v34 = vld [vmem:[%s6302_s11 + $0x5b8] sm:$0xff]  ;;  %v5282_v35 = vcombine.low %v3615_v22, %v3616_v23  ;;  %v5285_v37 = vcombine.high %v3617_v31, %v3618_v32  ;;  %v3887_v22 = vld [vmem:[%s6302_s11 + $0x4c0] sm:$0xff] }
 0x189   : > { %v5297_v38 = vcombine.high %v3734_v33, %v3735_v34  ;;  %v5296_v49 = vcombine.low %v3734_v33, %v3735_v34  ;;  %v3888_v23 = vld [vmem:[%s6302_s11 + $0x5c0] sm:$0xff] }
 0x18b   : > { %3184 = vmatpush1.bf16.msra.mxu0 %v5234_v40  ;;  %3301 = vmatpush1.bf16.msra.mxu1 %v5246_v41  ;;  %v3620_v40 = vld [vmem:[%s6302_s11 + $0x7b0] sm:$0xff]  ;;  %v3736_v41 = vld [vmem:[%s6302_s11 + $0x6b8] sm:$0xff] }
 0x18c   : > { %3445 = vmatprep.subr.bf16.mxu0 %v5257_v42  ;;  %3556 = vmatprep.subr.bf16.mxu1 %v5269_v43  ;;  %v3737_v42 = vld [vmem:[%s6302_s11 + $0x7b8] sm:$0xff]  ;;  %v5284_v43 = vcombine.low %v3617_v31, %v3618_v32  ;;  %v5287_v44 = vcombine.high %v3619_v39, %v3620_v40 }
 0x18d   : > { %v5299_v45 = vcombine.high %v3736_v41, %v3737_v42  ;;  %v5298_v52 = vcombine.low %v3736_v41, %v3737_v42  ;;  %v3890_v41 = vld [vmem:[%s6302_s11 + $0x7c0] sm:$0xff]  ;;  %v4000_v42 = vld [vmem:[%s6302_s11 + $0x6c8] sm:$0xff] }
 0x18e   : > { %5236 = vmatmul.mubr.msk.bf16.vlgmr.msra.gmra.mrb[72].mxu0 %vm934_vm0, %v6612_v12  ;;  %5248 = vmatmul.mubr.msk.bf16.vlgmr.msra.gmra.mrb[72].mxu1 %vm934_vm0, %v6612_v12 }
 0x18f   : > { %3446 = vmatpush1.bf16.msra.mxu0 %v5256_v47  ;;  %3557 = vmatpush1.bf16.msra.mxu1 %v5268_v48  ;;  %v3622_v47 = vld [vmem:[%s6302_s11 + $0x9b0] sm:$0xff]  ;;  %v3738_v48 = vld [vmem:[%s6302_s11 + $0x8b8] sm:$0xff] }
 0x190   : > { %3447 = vmatprep.subr.bf16.mxu0 %v5259_v50  ;;  %3558 = vmatprep.subr.bf16.mxu1 %v5271_v51  ;;  %v3739_v50 = vld [vmem:[%s6302_s11 + $0x9b8] sm:$0xff]  ;;  %v5286_v51 = vcombine.low %v3619_v39, %v3620_v40  ;;  %v5289_v53 = vcombine.high %v3621_v46, %v3622_v47  ;;  %v3889_v40 = vld [vmem:[%s6302_s11 + $0x6c0] sm:$0xff] }
 0x191   : > { %3217 = vmatprep.mubr.bf16.mxu0 %v5570_v0  ;;  %3334 = vmatprep.mubr.bf16.mxu1 %v5570_v0  ;;  %v5301_v55 = vcombine.high %v3738_v48, %v3739_v50  ;;  %v5300_v6 = vcombine.low %v3738_v48, %v3739_v50  ;;  %v3892_v48 = vld [vmem:[%s6302_s11 + $0x9c0] sm:$0xff]  ;;  %v4002_v50 = vld [vmem:[%s6302_s11 + $0x8c8] sm:$0xff] }
 0x193   : > { %3448 = vmatpush1.bf16.msra.mxu0 %v5258_v56  ;;  %3559 = vmatpush1.bf16.msra.mxu1 %v5270_v57  ;;  %v3883_v56 = vld [vmem:[%s6302_s11 + $0xc0] sm:$0xff] }
 0x194   : > { %3449 = vmatprep.subr.bf16.mxu0 %v5261_v58  ;;  %3560 = vmatprep.subr.bf16.mxu1 %v5273_v59  ;;  %v3884_v57 = vld [vmem:[%s6302_s11 + $0x1c0] sm:$0xff] }
 0x195   : > { %v5311_v7 = vcombine.high %v3883_v56, %v3884_v57  ;;  %v5310_v17 = vcombine.low %v3883_v56, %v3884_v57 }
 0x196   : > { %5237 = vmatmul.mubr.msk.bf16.gmra.mrb[76].mxu0 %vm934_vm0, %v6631_v29  ;;  %5249 = vmatmul.mubr.msk.bf16.gmra.mrb[76].mxu1 %vm934_vm0, %v6631_v29 }
 0x197   : > { %3450 = vmatpush1.bf16.msra.mxu0 %v5260_v63  ;;  %3561 = vmatpush1.bf16.msra.mxu1 %v5272_v1  ;;  %v5288_v1 = vcombine.low %v3621_v46, %v3622_v47  ;;  %v3891_v47 = vld [vmem:[%s6302_s11 + $0x8c0] sm:$0xff] }
 0x198   : > { %3451 = vmatprep.subr.bf16.mxu0 %v5263_v2  ;;  %3562 = vmatprep.subr.bf16.mxu1 %v5275_v4  ;;  %v5319_v56 = vcombine.high %v3891_v47, %v3892_v48 }
 0x199   : > { %3477 = vmatprep.mubr.bf16.mxu0 %v5570_v0  ;;  %3588 = vmatprep.mubr.bf16.mxu1 %v5570_v0 }
 0x19b   : > { %3452 = vmatpush1.bf16.msra.mxu0 %v5262_v9  ;;  %3563 = vmatpush1.bf16.msra.mxu1 %v5274_v10  ;;  %v5323_v10 = vcombine.high %v3994_v60, %v3995_v3 }
 0x19c   : > { %3453 = vmatprep.subr.bf16.mxu0 %v5265_v11  ;;  %3564 = vmatprep.subr.bf16.mxu1 %v5277_v13  ;;  %v3885_v11 = vld [vmem:[%s6302_s11 + $0x2c0] sm:$0xff] }
 0x19d   : > { %v3886_v13 = vld [vmem:[%s6302_s11 + $0x3c0] sm:$0xff] }
 0x19e   : > { %v5312_v32 = vcombine.low %v3885_v11, %v3886_v13 }
 0x19f   : > { %3454 = vmatpush1.bf16.msra.mxu0 %v5264_v18  ;;  %3565 = vmatpush1.bf16.msra.mxu1 %v5276_v19  ;;  %v5322_v18 = vcombine.low %v3994_v60, %v3995_v3  ;;  %v5313_v19 = vcombine.high %v3885_v11, %v3886_v13  ;;  %v6796_v3 = vld [vmem:[%s6302_s11 + $0xd0] sm:$0xff]  ;;  %v6806_v11 = vld [vmem:[%s6302_s11 + $0xd8] sm:$0xff] }
 0x1a0   : > { %3673 = vmatprep.subr.bf16.mxu0 %v5281_v20  ;;  %3790 = vmatprep.subr.bf16.mxu1 %v5293_v21  ;;  %v5325_v21 = vcombine.high %v3996_v15, %v3997_v16  ;;  %v6809_v13 = vld [vmem:[%s6302_s11 + $0x1d8] sm:$0xff] }
 0x1a2   : > { %5266 = vmatmul.mubr.msk.bf16.vlgmr.msra.gmra.mrb[80].mxu0 %vm934_vm0, %v6612_v12  ;;  %5278 = vmatmul.mubr.msk.bf16.vlgmr.msra.gmra.mrb[80].mxu1 %vm934_vm0, %v6612_v12 }
 0x1a3   : > { %3674 = vmatpush1.bf16.msra.mxu0 %v5280_v26  ;;  %3791 = vmatpush1.bf16.msra.mxu1 %v5292_v27  ;;  %v3998_v26 = vld [vmem:[%s6302_s11 + $0x4c8] sm:$0xff] }
 0x1a4   : > { %3675 = vmatprep.subr.bf16.mxu0 %v5283_v28  ;;  %3792 = vmatprep.subr.bf16.mxu1 %v5295_v30  ;;  %v3999_v27 = vld [vmem:[%s6302_s11 + $0x5c8] sm:$0xff] }
 0x1a5   : > { %3487 = vmatprep.mubr.bf16.mxu0 %v5570_v0  ;;  %3598 = vmatprep.mubr.bf16.mxu1 %v5570_v0  ;;  %v5327_v39 = vcombine.high %v3998_v26, %v3999_v27 }
 0x1a7   : > { %3676 = vmatpush1.bf16.msra.mxu0 %v5282_v35  ;;  %3793 = vmatpush1.bf16.msra.mxu1 %v5294_v36  ;;  %v5324_v35 = vcombine.low %v3996_v15, %v3997_v16 }
 0x1a8   : > { %3677 = vmatprep.subr.bf16.mxu0 %v5285_v37  ;;  %3794 = vmatprep.subr.bf16.mxu1 %v5297_v38  ;;  %v5315_v37 = vcombine.high %v3887_v22, %v3888_v23 }
 0x1aa   : > { %5267 = vmatmul.mubr.msk.bf16.gmra.mrb[84].mxu0 %vm934_vm0, %v6631_v29  ;;  %5279 = vmatmul.mubr.msk.bf16.gmra.mrb[84].mxu1 %vm934_vm0, %v6631_v29 }
 0x1ab   : > { %3678 = vmatpush1.bf16.msra.mxu0 %v5284_v43  ;;  %3795 = vmatpush1.bf16.msra.mxu1 %v5296_v49  ;;  %v4001_v43 = vld [vmem:[%s6302_s11 + $0x7c8] sm:$0xff]  ;;  %v5314_v49 = vcombine.low %v3887_v22, %v3888_v23 }
 0x1ac   : > { %3679 = vmatprep.subr.bf16.mxu0 %v5287_v44  ;;  %3796 = vmatprep.subr.bf16.mxu1 %v5299_v45  ;;  %v5326_v44 = vcombine.low %v3998_v26, %v3999_v27  ;;  %v5317_v45 = vcombine.high %v3889_v40, %v3890_v41  ;;  %v5329_v46 = vcombine.high %v4000_v42, %v4001_v43 }
 0x1ad   : > { %v6703_v54 = vpop.f32.mrb[0].mxu0  ;;  %3705 = vmatprep.mubr.bf16.mxu0 %v5570_v0  ;;  %v6708_v58 = vpop.f32.mrb[0].mxu1  ;;  %3822 = vmatprep.mubr.bf16.mxu1 %v5570_v0 }
 0x1ae   : > { %v6710_v59 = vpop.f32.mrb[1].mxu0  ;;  %v1103_v61 = vmax.f32 %v6703_v54, %v6708_v58  ;;  %v6717_v62 = vpop.f32.mrb[1].mxu1 }
 0x1af   : > { %v6719_v63 = vpop.f32.mrb[2].mxu0  ;;  %3680 = vmatpush1.bf16.msra.mxu0 %v5286_v51  ;;  %v1104_v2 = vmax.f32 %v6710_v59, %v6717_v62  ;;  %v6723_v4 = vpop.f32.mrb[2].mxu1  ;;  %3797 = vmatpush1.bf16.msra.mxu1 %v5298_v52  ;;  %v4003_v51 = vld [vmem:[%s6302_s11 + $0x9c8] sm:$0xff]  ;;  %v5316_v52 = vcombine.low %v3889_v40, %v3890_v41 }
 0x1b0   : > { %v6725_v5 = vpop.f32.mrb[3].mxu0  ;;  %3681 = vmatprep.subr.bf16.mxu0 %v5289_v53  ;;  %v1105_v8 = vmax.f32 %v6719_v63, %v6723_v4  ;;  %v6729_v9 = vpop.f32.mrb[3].mxu1  ;;  %3798 = vmatprep.subr.bf16.mxu1 %v5301_v55  ;;  %v5328_v55 = vcombine.low %v4000_v42, %v4001_v43  ;;  %v5331_v60 = vcombine.high %v4002_v50, %v4003_v51  ;;  %v6829_v4 = vld [vmem:[%s6302_s11 + $0x2d0] sm:$0xff] }
 0x1b1   : > { %v1106_v14 = vmax.f32 %v6725_v5, %v6729_v9  ;;  %v6790_v53 = vpop.permute.xlu0 %1345  ;;  %v5347_v63 = vcombine.high %v6806_v11, %v6809_v13  ;;  %v6844_v41 = vpop.permute.xlu1 %1355  ;;  %v4115_v43 = vld [vmem:[%s6302_s11 + $0x4d0] sm:$0xff] }
 0x1b3   : > { %3682 = vmatpush1.bf16.msra.mxu0 %v5288_v1  ;;  %3799 = vmatpush1.bf16.msra.mxu1 %v5300_v6  ;;  %v6799_v1 = vld [vmem:[%s6302_s11 + $0x1d0] sm:$0xff] }
 0x1b4   : > { %3943 = vmatprep.subr.bf16.mxu0 %v5311_v7  ;;  %4054 = vmatprep.subr.bf16.mxu1 %v5323_v10  ;;  %v5335_v62 = vcombine.high %v6796_v3, %v6799_v1  ;;  %v5334_v9 = vcombine.low %v6796_v3, %v6799_v1 }
 0x1b5   : > { %v6737_v20 = vpop.f32.mrb[4].mxu0  ;;  %v6746_v25 = vpop.f32.mrb[4].mxu1 }
 0x1b6   : > { %5290 = vmatmul.mubr.msk.bf16.vlgmr.msra.gmra.mrb[88].mxu0 %vm934_vm0, %v6612_v12  ;;  %v6744_v24 = vpop.f32.mrb[5].mxu0  ;;  %5302 = vmatmul.mubr.msk.bf16.vlgmr.msra.gmra.mrb[88].mxu1 %vm934_vm0, %v6612_v12  ;;  %v1107_v30 = vmax.f32 %v6737_v20, %v6746_v25  ;;  %v6754_v31 = vpop.f32.mrb[5].mxu1 }
 0x1b7   : > { %3944 = vmatpush1.bf16.msra.mxu0 %v5310_v17  ;;  %v989_v28 = vpop.f32.mrb[6].mxu0  ;;  %4055 = vmatpush1.bf16.msra.mxu1 %v5322_v18  ;;  %v1108_v34 = vmax.f32 %v6744_v24, %v6754_v31  ;;  %v1100_v36 = vpop.f32.mrb[6].mxu1  ;;  %v5318_v18 = vcombine.low %v3891_v47, %v3892_v48  ;;  %v4232_v48 = vld [vmem:[%s6302_s11 + $0x4d8] sm:$0xff] }
 0x1b8   : > { %v990_v33 = vpop.f32.mrb[7].mxu0  ;;  %3945 = vmatprep.subr.bf16.mxu0 %v5313_v19  ;;  %4056 = vmatprep.subr.bf16.mxu1 %v5325_v21  ;;  %v1101_v38 = vpop.f32.mrb[7].mxu1  ;;  %v5330_v19 = vcombine.low %v4002_v50, %v4003_v51  ;;  %v4230_v28 = vld [vmem:[%s6302_s11 + $0x2d8] sm:$0xff]  ;;  %v5346_v36 = vcombine.low %v6806_v11, %v6809_v13 }
 0x1b9   : > { %3715 = vmatprep.mubr.bf16.mxu0 %v5570_v0  ;;  %3832 = vmatprep.mubr.bf16.mxu1 %v5570_v0  ;;  %v6824_v23 = vpop.permute.xlu0 %1350  ;;  %v4233_v50 = vld [vmem:[%s6302_s11 + $0x5d8] sm:$0xff] }
 0x1ba   : > { %v4234_v13 = vld [vmem:[%s6302_s11 + $0x6d8] sm:$0xff] }
 0x1bb   : > { %3946 = vmatpush1.bf16.msra.mxu0 %v5312_v32  ;;  %4057 = vmatpush1.bf16.msra.mxu1 %v5324_v35  ;;  %v4231_v32 = vld [vmem:[%s6302_s11 + $0x3d8] sm:$0xff] }
 0x1bc   : > { %3947 = vmatprep.subr.bf16.mxu0 %v5315_v37  ;;  %4058 = vmatprep.subr.bf16.mxu1 %v5327_v39  ;;  %v5349_v42 = vcombine.high %v4230_v28, %v4231_v32 }
 0x1be   : > { %5291 = vmatmul.mubr.msk.bf16.gmra.mrb[92].mxu0 %vm934_vm0, %v6631_v29  ;;  %5303 = vmatmul.mubr.msk.bf16.gmra.mrb[92].mxu1 %vm934_vm0, %v6631_v29 }
 0x1bf   : > { %3948 = vmatpush1.bf16.msra.mxu0 %v5314_v49  ;;  %4059 = vmatpush1.bf16.msra.mxu1 %v5326_v44  ;;  %v4116_v49 = vld [vmem:[%s6302_s11 + $0x5d0] sm:$0xff] }
 0x1c0   : > { %3949 = vmatprep.subr.bf16.mxu0 %v5317_v45  ;;  %4060 = vmatprep.subr.bf16.mxu1 %v5329_v46  ;;  %v5339_v31 = vcombine.high %v4115_v43, %v4116_v49 }
 0x1c1   : > { %v1203_v57 = vpop.f32.mrb[8].mxu0  ;;  %3975 = vmatprep.mubr.bf16.mxu0 %v5570_v0  ;;  %v1320_v7 = vpop.f32.mrb[8].mxu1  ;;  %4086 = vmatprep.mubr.bf16.mxu1 %v5570_v0 }
 0x1c2   : > { %v1220_v6 = vmax.f32 %v1103_v61, %v1203_v57  ;;  %v1205_v10 = vpop.f32.mrb[9].mxu0  ;;  %v1322_v16 = vpop.f32.mrb[9].mxu1 }
 0x1c3   : > { %v1221_v15 = vmax.f32 %v1104_v2, %v1205_v10  ;;  %v1207_v17 = vpop.f32.mrb[10].mxu0  ;;  %3950 = vmatpush1.bf16.msra.mxu0 %v5316_v52  ;;  %v1324_v61 = vpop.f32.mrb[10].mxu1  ;;  %4061 = vmatpush1.bf16.msra.mxu1 %v5328_v55  ;;  %v4118_v10 = vld [vmem:[%s6302_s11 + $0x7d0] sm:$0xff] }
 0x1c4   : > { %v1337_v54 = vmax.f32 %v1220_v6, %v1320_v7  ;;  %v1222_v58 = vmax.f32 %v1105_v8, %v1207_v17  ;;  %v1209_v59 = vpop.f32.mrb[11].mxu0  ;;  %3951 = vmatprep.subr.bf16.mxu0 %v5319_v56  ;;  %v1326_v22 = vpop.f32.mrb[11].mxu1  ;;  %4062 = vmatprep.subr.bf16.mxu1 %v5331_v60  ;;  %v4114_v8 = vld [vmem:[%s6302_s11 + $0x3d0] sm:$0xff]  ;;  %v5348_v60 = vcombine.low %v4230_v28, %v4231_v32  ;;  %v4381_v28 = vld [vmem:[%s6302_s11 + $0xe0] sm:$0xff] }
 0x1c5   : > { %v1338_v2 = vmax.f32 %v1221_v15, %v1322_v16  ;;  %v1223_v21 = vmax.f32 %v1106_v14, %v1209_v59  ;;  %v5337_v37 = vcombine.high %v6829_v4, %v4114_v8  ;;  %v5351_v6 = vcombine.high %v4232_v48, %v4233_v50  ;;  %v4117_v7 = vld [vmem:[%s6302_s11 + $0x6d0] sm:$0xff]  ;;  %v4235_v15 = vld [vmem:[%s6302_s11 + $0x7d8] sm:$0xff]  ;;  %v4382_v32 = vld [vmem:[%s6302_s11 + $0x1e0] sm:$0xff] }
 0x1c6   : > { %v1358_v26 = vadd.f32 %v6790_v53, %v1337_v54  ;;  %v1339_v27 = vmax.f32 %v1222_v58, %v1324_v61  ;;  %v5338_v17 = vcombine.low %v4115_v43, %v4116_v49  ;;  %v5341_v54 = vcombine.high %v4117_v7, %v4118_v10  ;;  %v4119_v59 = vld [vmem:[%s6302_s11 + $0x8d0] sm:$0xff] }
 0x1c7   : > { %v1359_v33 = vadd.f32 %v6790_v53, %v1338_v2  ;;  %v1340_v5 = vmax.f32 %v1223_v21, %v1326_v22  ;;  %3952 = vmatpush1.bf16.msra.mxu0 %v5318_v18  ;;  %4063 = vmatpush1.bf16.msra.mxu1 %v5330_v19  ;;  %v5350_v19 = vcombine.low %v4232_v48, %v4233_v50  ;;  %v4236_v2 = vld [vmem:[%s6302_s11 + $0x8d8] sm:$0xff]  ;;  %v4384_v48 = vld [vmem:[%s6302_s11 + $0x3e0] sm:$0xff] }
 0x1c8   : > { %v1364_v14 = vmax.f32 %v1358_v26, 0.0  ;;  %v1360_v35 = vadd.f32 %v6824_v23, %v1339_v27  ;;  %4171 = vmatprep.subr.bf16.mxu0 %v5335_v62  ;;  %4288 = vmatprep.subr.bf16.mxu1 %v5347_v63  ;;  %v5353_v61 = vcombine.high %v4234_v13, %v4235_v15  ;;  %v4120_v62 = vld [vmem:[%s6302_s11 + $0x9d0] sm:$0xff]  ;;  %v4237_v21 = vld [vmem:[%s6302_s11 + $0x9d8] sm:$0xff]  ;;  %v5340_v63 = vcombine.low %v4117_v7, %v4118_v10 }
 0x1c9   : > { %v1365_v38 = vmax.f32 %v1359_v33, 0.0  ;;  %v1361_v39 = vadd.f32 %v6824_v23, %v1340_v5  ;;  %v1213_v40 = vpop.f32.mrb[12].mxu0  ;;  %v1330_v47 = vpop.f32.mrb[12].mxu1  ;;  %v5355_v27 = vcombine.high %v4236_v2, %v4237_v21  ;;  %v5354_v43 = vcombine.low %v4236_v2, %v4237_v21 }
 0x1ca   : > { %v1366_v44 = vmax.f32 %v1360_v35, 0.0  ;;  %v1224_v45 = vmax.f32 %v1107_v30, %v1213_v40  ;;  %v1215_v46 = vpop.f32.mrb[13].mxu0  ;;  %5320 = vmatmul.mubr.msk.bf16.vlgmr.msra.gmra.mrb[96].mxu0 %vm934_vm0, %v6612_v12  ;;  %5332 = vmatmul.mubr.msk.bf16.vlgmr.msra.gmra.mrb[96].mxu1 %vm934_vm0, %v6612_v12  ;;  %v1332_v20 = vpop.f32.mrb[13].mxu1  ;;  %v5336_v30 = vcombine.low %v6829_v4, %v4114_v8  ;;  %v5352_v4 = vcombine.low %v4234_v13, %v4235_v15 }
 0x1cb   : > { %v5420_v51 = vpack.c.bf16 %v1365_v38, %v1364_v14  ;;  %v1367_v52 = vmax.f32 %v1361_v39, 0.0  ;;  %v1225_v55 = vmax.f32 %v1108_v34, %v1215_v46  ;;  %4172 = vmatpush1.bf16.msra.mxu0 %v5334_v9  ;;  %v1217_v25 = vpop.f32.mrb[14].mxu0  ;;  %4289 = vmatpush1.bf16.msra.mxu1 %v5346_v36  ;;  %v1334_v24 = vpop.f32.mrb[14].mxu1  ;;  %v5343_v8 = vcombine.high %v4119_v59, %v4120_v62  ;;  %v4492_v9 = vld [vmem:[%s6302_s11 + $0xe8] sm:$0xff] }
 0x1cc   : > { %v1341_v56 = vmax.f32 %v1224_v45, %v1330_v47  ;;  %v1218_v57 = vpop.f32.mrb[15].mxu0  ;;  %4173 = vmatprep.subr.bf16.mxu0 %v5337_v37  ;;  %4290 = vmatprep.subr.bf16.mxu1 %v5349_v42  ;;  %v1335_v1 = vpop.f32.mrb[15].mxu1  ;;  %v4493_v14 = vld [vmem:[%s6302_s11 + $0x1e8] sm:$0xff]  ;;  %v5342_v38 = vcombine.low %v4119_v59, %v4120_v62  ;;  %v5365_v49 = vcombine.high %v4381_v28, %v4382_v32  ;;  %v4383_v47 = vld [vmem:[%s6302_s11 + $0x2e0] sm:$0xff] }
 0x1cd   : > { %1390 = vst [vmem:[%s6851_s23] sm:$0xff] %v5420_v51  ;;  %v5421_v34 = vpack.c.bf16 %v1367_v52, %v1366_v44  ;;  %v1342_v3 = vmax.f32 %v1225_v55, %v1332_v20  ;;  %3985 = vmatprep.mubr.bf16.mxu0 %v5570_v0  ;;  %4096 = vmatprep.mubr.bf16.mxu1 %v5570_v0  ;;  %v4494_v51 = vld [vmem:[%s6302_s11 + $0x2e8] sm:$0xff]  ;;  %v4385_v57 = vld [vmem:[%s6302_s11 + $0x4e0] sm:$0xff] }
 0x1ce   : > { %v1362_v11 = vadd.f32 %v6844_v41, %v1341_v56  ;;  %v5377_v46 = vcombine.high %v4492_v9, %v4493_v14  ;;  %v4495_v52 = vld [vmem:[%s6302_s11 + $0x3e8] sm:$0xff]  ;;  %v5364_v55 = vcombine.low %v4381_v28, %v4382_v32  ;;  %v5376_v20 = vcombine.low %v4492_v9, %v4493_v14 }
 0x1cf   : > { %1391 = vst [vmem:[%s6851_s23 + $0x8] sm:$0xff] %v5421_v34  ;;  %v1363_v16 = vadd.f32 %v6844_v41, %v1342_v3  ;;  %4174 = vmatpush1.bf16.msra.mxu0 %v5336_v30  ;;  %4291 = vmatpush1.bf16.msra.mxu1 %v5348_v60  ;;  %v5367_v25 = vcombine.high %v4383_v47, %v4384_v48  ;;  %v4386_v60 = vld [vmem:[%s6302_s11 + $0x5e0] sm:$0xff]  ;;  %v4496_v34 = vld [vmem:[%s6302_s11 + $0x4e8] sm:$0xff] }
 0x1d0   : > { %v1368_v18 = vmax.f32 %v1362_v11, 0.0  ;;  %4175 = vmatprep.subr.bf16.mxu0 %v5339_v31  ;;  %4292 = vmatprep.subr.bf16.mxu1 %v5351_v6  ;;  %v5379_v56 = vcombine.high %v4494_v51, %v4495_v52  ;;  %v4497_v3 = vld [vmem:[%s6302_s11 + $0x5e8] sm:$0xff]  ;;  %v5366_v10 = vcombine.low %v4383_v47, %v4384_v48  ;;  %v5378_v15 = vcombine.low %v4494_v51, %v4495_v52  ;;  %v4726_v47 = vld [vmem:[%s6302_s11 + $0xf8] sm:$0xff] }
 0x1d1   : > { %v1369_v58 = vmax.f32 %v1363_v16, 0.0  ;;  %v5369_v16 = vcombine.high %v4385_v57, %v4386_v60  ;;  %v5368_v59 = vcombine.low %v4385_v57, %v4386_v60  ;;  %v5380_v62 = vcombine.low %v4496_v34, %v4497_v3  ;;  %v4727_v48 = vld [vmem:[%s6302_s11 + $0x1f8] sm:$0xff] }
 0x1d2   : > { %5321 = vmatmul.mubr.msk.bf16.gmra.mrb[100].mxu0 %vm934_vm0, %v6631_v29  ;;  %5333 = vmatmul.mubr.msk.bf16.gmra.mrb[100].mxu1 %vm934_vm0, %v6631_v29  ;;  %v5401_v60 = vcombine.high %v4726_v47, %v4727_v48 }
 0x1d3   : > { %v5422_v22 = vpack.c.bf16 %v1369_v58, %v1368_v18  ;;  %4176 = vmatpush1.bf16.msra.mxu0 %v5338_v17  ;;  %4293 = vmatpush1.bf16.msra.mxu1 %v5350_v19  ;;  %v5381_v18 = vcombine.high %v4496_v34, %v4497_v3  ;;  %v4387_v19 = vld [vmem:[%s6302_s11 + $0x6e0] sm:$0xff]  ;;  %v4498_v58 = vld [vmem:[%s6302_s11 + $0x6e8] sm:$0xff]  ;;  %v4611_v34 = vld [vmem:[%s6302_s11 + $0x2f0] sm:$0xff] }
 0x1d4   : > { %4177 = vmatprep.subr.bf16.mxu0 %v5341_v54  ;;  %4294 = vmatprep.subr.bf16.mxu1 %v5353_v61  ;;  %v4388_v54 = vld [vmem:[%s6302_s11 + $0x7e0] sm:$0xff]  ;;  %v4499_v61 = vld [vmem:[%s6302_s11 + $0x7e8] sm:$0xff]  ;;  %v4612_v3 = vld [vmem:[%s6302_s11 + $0x3f0] sm:$0xff] }
 0x1d5   : > { %1392 = vst [vmem:[%s6851_s23 + $0x10] sm:$0xff] %v5422_v22  ;;  %v6885_v26 = vpop.f32.mrb[16].mxu0  ;;  %4203 = vmatprep.mubr.bf16.mxu0 %v5570_v0  ;;  %v6890_v33 = vpop.f32.mrb[16].mxu1  ;;  %4320 = vmatprep.mubr.bf16.mxu1 %v5570_v0  ;;  %v5371_v2 = vcombine.high %v4387_v19, %v4388_v54  ;;  %v5383_v21 = vcombine.high %v4498_v58, %v4499_v61  ;;  %v4389_v22 = vld [vmem:[%s6302_s11 + $0x8e0] sm:$0xff] }
 0x1d6   : > { %v6892_v5 = vpop.f32.mrb[17].mxu0  ;;  %v1615_v35 = vmax.f32 %v6885_v26, %v6890_v33  ;;  %v6899_v36 = vpop.f32.mrb[17].mxu1  ;;  %v5382_v28 = vcombine.low %v4498_v58, %v4499_v61  ;;  %v4614_v58 = vld [vmem:[%s6302_s11 + $0x5f0] sm:$0xff] }
 0x1d7   : > { %v6901_v37 = vpop.f32.mrb[18].mxu0  ;;  %4178 = vmatpush1.bf16.msra.mxu0 %v5340_v63  ;;  %v1616_v39 = vmax.f32 %v6892_v5, %v6899_v36  ;;  %v6905_v40 = vpop.f32.mrb[18].mxu1  ;;  %4295 = vmatpush1.bf16.msra.mxu1 %v5352_v4  ;;  %v4390_v63 = vld [vmem:[%s6302_s11 + $0x9e0] sm:$0xff]  ;;  %v4500_v4 = vld [vmem:[%s6302_s11 + $0x8e8] sm:$0xff] }
 0x1d8   : > { %v6907_v42 = vpop.f32.mrb[19].mxu0  ;;  %4179 = vmatprep.subr.bf16.mxu0 %v5343_v8  ;;  %v1617_v44 = vmax.f32 %v6901_v37, %v6905_v40  ;;  %v6911_v45 = vpop.f32.mrb[19].mxu1  ;;  %4296 = vmatprep.subr.bf16.mxu1 %v5355_v27  ;;  %v4501_v8 = vld [vmem:[%s6302_s11 + $0x9e8] sm:$0xff]  ;;  %v5370_v27 = vcombine.low %v4387_v19, %v4388_v54  ;;  %v5373_v32 = vcombine.high %v4389_v22, %v4390_v63  ;;  %v4613_v54 = vld [vmem:[%s6302_s11 + $0x4f0] sm:$0xff] }
 0x1d9   : > { %v1618_v50 = vmax.f32 %v6907_v42, %v6911_v45  ;;  %v5385_v14 = vcombine.high %v4500_v4, %v4501_v8  ;;  %v5400_v45 = vcombine.low %v4726_v47, %v4727_v48  ;;  %v4732_v47 = vld [vmem:[%s6302_s11 + $0x6f8] sm:$0xff] }
 0x1da   : > { %v4733_v48 = vld [vmem:[%s6302_s11 + $0x7f8] sm:$0xff] }
 0x1db   : > { %4180 = vmatpush1.bf16.msra.mxu0 %v5342_v38  ;;  %4297 = vmatpush1.bf16.msra.mxu1 %v5354_v43  ;;  %v4609_v38 = vld [vmem:[%s6302_s11 + $0xf0] sm:$0xff] }
 0x1dc   : > { %4441 = vmatprep.subr.bf16.mxu0 %v5365_v49  ;;  %4552 = vmatprep.subr.bf16.mxu1 %v5377_v46  ;;  %v4610_v43 = vld [vmem:[%s6302_s11 + $0x1f0] sm:$0xff] }
 0x1dd   : > { %v6919_v30 = vpop.f32.mrb[20].mxu0  ;;  %v6927_v31 = vpop.f32.mrb[20].mxu1  ;;  %v5389_v5 = vcombine.high %v4609_v38, %v4610_v43 }
 0x1de   : > { %5344 = vmatmul.mubr.msk.bf16.vlgmr.msra.gmra.mrb[104].mxu0 %vm934_vm0, %v6612_v12  ;;  %v6925_v24 = vpop.f32.mrb[21].mxu0  ;;  %5356 = vmatmul.mubr.msk.bf16.vlgmr.msra.gmra.mrb[104].mxu1 %vm934_vm0, %v6612_v12  ;;  %v1619_v6 = vmax.f32 %v6919_v30, %v6927_v31  ;;  %v6935_v7 = vpop.f32.mrb[21].mxu1 }
 0x1df   : > { %4442 = vmatpush1.bf16.msra.mxu0 %v5364_v55  ;;  %v1501_v1 = vpop.f32.mrb[22].mxu0  ;;  %4553 = vmatpush1.bf16.msra.mxu1 %v5376_v20  ;;  %v1620_v13 = vmax.f32 %v6925_v24, %v6935_v7  ;;  %v1612_v12 = vpop.f32.mrb[22].mxu1  ;;  %v5372_v20 = vcombine.low %v4389_v22, %v4390_v63  ;;  %v4730_v22 = vld [vmem:[%s6302_s11 + $0x4f8] sm:$0xff]  ;;  %v5393_v24 = vcombine.high %v4613_v54, %v4614_v58 }
 0x1e0   : > { %v1502_v11 = vpop.f32.mrb[23].mxu0  ;;  %4443 = vmatprep.subr.bf16.mxu0 %v5367_v25  ;;  %4554 = vmatprep.subr.bf16.mxu1 %v5379_v56  ;;  %v1613_v17 = vpop.f32.mrb[23].mxu1  ;;  %v5384_v25 = vcombine.low %v4500_v4, %v4501_v8  ;;  %v4729_v1 = vld [vmem:[%s6302_s11 + $0x3f8] sm:$0xff] }
 0x1e1   : > { %4213 = vmatprep.mubr.bf16.mxu0 %v5570_v0  ;;  %4330 = vmatprep.mubr.bf16.mxu1 %v5570_v0  ;;  %v4731_v63 = vld [vmem:[%s6302_s11 + $0x5f8] sm:$0xff] }
 0x1e3   : > { %4444 = vmatpush1.bf16.msra.mxu0 %v5366_v10  ;;  %4555 = vmatpush1.bf16.msra.mxu1 %v5378_v15  ;;  %v5388_v15 = vcombine.low %v4609_v38, %v4610_v43  ;;  %v5405_v43 = vcombine.high %v4730_v22, %v4731_v63 }
 0x1e4   : > { %4445 = vmatprep.subr.bf16.mxu0 %v5369_v16  ;;  %4556 = vmatprep.subr.bf16.mxu1 %v5381_v18 }
 0x1e6   : > { %5345 = vmatmul.mubr.msk.bf16.gmra.mrb[108].mxu0 %vm934_vm0, %v6631_v29  ;;  %5357 = vmatmul.mubr.msk.bf16.gmra.mrb[108].mxu1 %vm934_vm0, %v6631_v29 }
 0x1e7   : > { %4446 = vmatpush1.bf16.msra.mxu0 %v5368_v59  ;;  %4557 = vmatpush1.bf16.msra.mxu1 %v5380_v62 }
 0x1e8   : > { %4447 = vmatprep.subr.bf16.mxu0 %v5371_v2  ;;  %4558 = vmatprep.subr.bf16.mxu1 %v5383_v21  ;;  %v6987_v2 = vld [vmem:[%s7104_s1] sm:$0xff]  }
 0x1e9   : > { %v1715_v9 = vpop.f32.mrb[24].mxu0  ;;  %4473 = vmatprep.mubr.bf16.mxu0 %v5570_v0  ;;  %v1832_v46 = vpop.f32.mrb[24].mxu1  ;;  %4584 = vmatprep.mubr.bf16.mxu1 %v5570_v0 }
 0x1ea   : > { %v1732_v49 = vmax.f32 %v1615_v35, %v1715_v9  ;;  %v1717_v29 = vpop.f32.mrb[25].mxu0  ;;  %v1834_v52 = vpop.f32.mrb[25].mxu1 }
 0x1eb   : > { %v1733_v51 = vmax.f32 %v1616_v39, %v1717_v29  ;;  %v1719_v55 = vpop.f32.mrb[26].mxu0  ;;  %4448 = vmatpush1.bf16.msra.mxu0 %v5370_v27  ;;  %v1836_v33 = vpop.f32.mrb[26].mxu1  ;;  %4559 = vmatpush1.bf16.msra.mxu1 %v5382_v28  ;;  %v5390_v27 = vcombine.low %v4611_v34, %v4612_v3 }
 0x1ec   : > { %v1849_v56 = vmax.f32 %v1732_v49, %v1832_v46  ;;  %v1734_v26 = vmax.f32 %v1617_v44, %v1719_v55  ;;  %v1721_v35 = vpop.f32.mrb[27].mxu0  ;;  %4449 = vmatprep.subr.bf16.mxu0 %v5373_v32  ;;  %v1838_v57 = vpop.f32.mrb[27].mxu1  ;;  %4560 = vmatprep.subr.bf16.mxu1 %v5385_v14  ;;  %v4728_v44 = vld [vmem:[%s6302_s11 + $0x2f8] sm:$0xff]  ;;  %v4615_v49 = vld [vmem:[%s6302_s11 + $0x6f0] sm:$0xff] }
 0x1ed   : > { %v1850_v36 = vmax.f32 %v1733_v51, %v1834_v52  ;;  %v1735_v39 = vmax.f32 %v1618_v50, %v1721_v35  ;;  %v5391_v50 = vcombine.high %v4611_v34, %v4612_v3  ;;  %v5403_v19 = vcombine.high %v4728_v44, %v4729_v1  ;;  %v4616_v46 = vld [vmem:[%s6302_s11 + $0x7f0] sm:$0xff] }
 0x1ee   : > { %v1855_v37 = vadd.f32 %v1849_v56, %v6790_v53  ;;  %v1851_v40 = vmax.f32 %v1734_v26, %v1836_v33  ;;  %v5402_v9 = vcombine.low %v4728_v44, %v4729_v1  ;;  %v5392_v52 = vcombine.low %v4613_v54, %v4614_v58  ;;  %v4617_v33 = vld [vmem:[%s6302_s11 + $0x8f0] sm:$0xff] }
 0x1ef   : > { %v1856_v10 = vadd.f32 %v1850_v36, %v6790_v53  ;;  %v1852_v11 = vmax.f32 %v1735_v39, %v1838_v57  ;;  %4450 = vmatpush1.bf16.msra.mxu0 %v5372_v20  ;;  %4561 = vmatpush1.bf16.msra.mxu1 %v5384_v25  ;;  %v5404_v20 = vcombine.low %v4730_v22, %v4731_v63  ;;  %v4618_v35 = vld [vmem:[%s6302_s11 + $0x9f0] sm:$0xff]  ;;  %v4734_v36 = vld [vmem:[%s6302_s11 + $0x8f8] sm:$0xff] }
 0x1f0   : > { %v1861_v12 = vmax.f32 %v1855_v37, 0.0  ;;  %v1857_v42 = vadd.f32 %v1851_v40, %v6824_v23  ;;  %4669 = vmatprep.subr.bf16.mxu0 %v5389_v5  ;;  %4786 = vmatprep.subr.bf16.mxu1 %v5401_v60  ;;  %v5395_v25 = vcombine.high %v4615_v49, %v4616_v46  ;;  %v5407_v26 = vcombine.high %v4732_v47, %v4733_v48  ;;  %v5513_v5 = vld [vmem:[%s7104_s1 + $0x8] ss:$0 sps:$4 sm:$0xff]   ;;  %v4735_v39 = vld [vmem:[%s6302_s11 + $0x9f8] sm:$0xff] }
 0x1f1   : > { %v1862_v16 = vmax.f32 %v1856_v10, 0.0  ;;  %v1858_v17 = vadd.f32 %v1852_v11, %v6824_v23  ;;  %v1725_v18 = vpop.f32.mrb[28].mxu0  ;;  %v1842_v21 = vpop.f32.mrb[28].mxu1  ;;  %v5394_v60 = vcombine.low %v4615_v49, %v4616_v46  ;;  %v5406_v34 = vcombine.low %v4732_v47, %v4733_v48 }
 0x1f2   : > { %v1863_v61 = vmax.f32 %v1857_v42, 0.0  ;;  %v1736_v59 = vmax.f32 %v1619_v6, %v1725_v18  ;;  %v1727_v62 = vpop.f32.mrb[29].mxu0  ;;  %5374 = vmatmul.mubr.msk.bf16.vlgmr.msra.gmra.mrb[112].mxu0 %vm934_vm0, %v6987_v2  ;;  %5386 = vmatmul.mubr.msk.bf16.vlgmr.msra.gmra.mrb[112].mxu1 %vm934_vm0, %v6987_v2  ;;  %v1844_v31 = vpop.f32.mrb[29].mxu1  ;;  %v5397_v3 = vcombine.high %v4617_v33, %v4618_v35  ;;  %v5409_v40 = vcombine.high %v4734_v36, %v4735_v39 }
 0x1f3   : > { %v5423_v4 = vpack.c.bf16 %v1862_v16, %v1861_v12  ;;  %v1864_v8 = vmax.f32 %v1858_v17, 0.0  ;;  %v1737_v30 = vmax.f32 %v1620_v13, %v1727_v62  ;;  %4670 = vmatpush1.bf16.msra.mxu0 %v5388_v15  ;;  %v1729_v6 = vpop.f32.mrb[30].mxu0  ;;  %4787 = vmatpush1.bf16.msra.mxu1 %v5400_v45  ;;  %v1846_v14 = vpop.f32.mrb[30].mxu1  ;;  %v5396_v12 = vcombine.low %v4617_v33, %v4618_v35 }
 0x1f4   : > { %v1853_v28 = vmax.f32 %v1736_v59, %v1842_v21  ;;  %v1730_v32 = vpop.f32.mrb[31].mxu0  ;;  %4671 = vmatprep.subr.bf16.mxu0 %v5391_v50  ;;  %4788 = vmatprep.subr.bf16.mxu1 %v5403_v19  ;;  %v1847_v38 = vpop.f32.mrb[31].mxu1  ;;  %v5408_v16 = vcombine.low %v4734_v36, %v4735_v39 }
 0x1f5   : > { %5091 = vst [vmem:[%s6851_s23 + $0x18] sm:$0xff] %v5423_v4  ;;  %v5424_v7 = vpack.c.bf16 %v1864_v8, %v1863_v61  ;;  %v1854_v13 = vmax.f32 %v1737_v30, %v1844_v31  ;;  %4483 = vmatprep.mubr.bf16.mxu0 %v5570_v0  ;;  %4594 = vmatprep.mubr.bf16.mxu1 %v5570_v0 }
 0x1f6   : > { %v1859_v29 = vadd.f32 %v1853_v28, %v6844_v41 }
 0x1f7   : > { %5092 = vst [vmem:[%s6851_s23 + $0x20] sm:$0xff] %v5424_v7  ;;  %v1860_v51 = vadd.f32 %v1854_v13, %v6844_v41  ;;  %4672 = vmatpush1.bf16.msra.mxu0 %v5390_v27  ;;  %4789 = vmatpush1.bf16.msra.mxu1 %v5402_v9 }
 0x1f8   : > { %v1865_v55 = vmax.f32 %v1859_v29, 0.0  ;;  %4673 = vmatprep.subr.bf16.mxu0 %v5393_v24  ;;  %4790 = vmatprep.subr.bf16.mxu1 %v5405_v43 }
 0x1f9   : > { %v1866_v56 = vmax.f32 %v1860_v51, 0.0 }
 0x1fa   : > { %5375 = vmatmul.mubr.msk.bf16.gmra.mrb[116].mxu0 %vm934_vm0, %v5513_v5  ;;  %5387 = vmatmul.mubr.msk.bf16.gmra.mrb[116].mxu1 %vm934_vm0, %v5513_v5 }
 0x1fb   : > { %v5425_v57 = vpack.c.bf16 %v1866_v56, %v1865_v55  ;;  %4674 = vmatpush1.bf16.msra.mxu0 %v5392_v52  ;;  %4791 = vmatpush1.bf16.msra.mxu1 %v5404_v20 }
 0x1fc   : > { %4675 = vmatprep.subr.bf16.mxu0 %v5395_v25  ;;  %4792 = vmatprep.subr.bf16.mxu1 %v5407_v26 }
 0x1fd   : > { %5093 = vst [vmem:[%s6851_s23 + $0x28] sm:$0xff] %v5425_v57  ;;  %v1985_v37 = vpop.f32.mrb[32].mxu0  ;;  %4701 = vmatprep.mubr.bf16.mxu0 %v5570_v0  ;;  %v2096_v44 = vpop.f32.mrb[32].mxu1  ;;  %4818 = vmatprep.mubr.bf16.mxu1 %v5570_v0 }
 0x1fe   : > { %v1987_v1 = vpop.f32.mrb[33].mxu0  ;;  %v2113_v10 = vmax.f32 %v1985_v37, %v2096_v44  ;;  %v2098_v11 = vpop.f32.mrb[33].mxu1 }
 0x1ff   : > { %v1989_v15 = vpop.f32.mrb[34].mxu0  ;;  %4676 = vmatpush1.bf16.msra.mxu0 %v5394_v60  ;;  %v2114_v42 = vmax.f32 %v1987_v1, %v2098_v11  ;;  %v2100_v45 = vpop.f32.mrb[34].mxu1  ;;  %4793 = vmatpush1.bf16.msra.mxu1 %v5406_v34 }
 0x200   : > { %v1991_v50 = vpop.f32.mrb[35].mxu0  ;;  %4677 = vmatprep.subr.bf16.mxu0 %v5397_v3  ;;  %v2115_v17 = vmax.f32 %v1989_v15, %v2100_v45  ;;  %v2102_v18 = vpop.f32.mrb[35].mxu1  ;;  %4794 = vmatprep.subr.bf16.mxu1 %v5409_v40 }
 0x201   : > { %v2116_v19 = vmax.f32 %v1991_v50, %v2102_v18 }
 0x203   : > { %4678 = vmatpush1.bf16.msra.mxu0 %v5396_v12  ;;  %4795 = vmatpush1.bf16.msra.mxu1 %v5408_v16 }
 0x205   : > { %v1995_v54 = vpop.f32.mrb[36].mxu0  ;;  %v2106_v61 = vpop.f32.mrb[36].mxu1 }
 0x206   : > { %5398 = vmatmul.mubr.msk.bf16.vlgmr.msra.gmra.mrb[120].mxu0 %vm934_vm0, %v6987_v2  ;;  %v1997_v58 = vpop.f32.mrb[37].mxu0  ;;  %5410 = vmatmul.mubr.msk.bf16.vlgmr.msra.gmra.mrb[120].mxu1 %vm934_vm0, %v6987_v2  ;;  %v2117_v62 = vmax.f32 %v1995_v54, %v2106_v61  ;;  %v2108_v21 = vpop.f32.mrb[37].mxu1 }
 0x207   : > { %v1999_v59 = vpop.f32.mrb[38].mxu0  ;;  %4711 = vmatprep.mubr.bf16.mxu0 %v5570_v0  ;;  %v2118_v63 = vmax.f32 %v1997_v58, %v2108_v21  ;;  %v2110_v4 = vpop.f32.mrb[38].mxu1  ;;  %4828 = vmatprep.mubr.bf16.mxu1 %v5570_v0 }
 0x208   : > { %v2000_v22 = vpop.f32.mrb[39].mxu0  ;;  %v2111_v8 = vpop.f32.mrb[39].mxu1 }
 0x20e   : > { %5399 = vmatmul.mubr.msk.bf16.gmra.mrb[124].mxu0 %vm934_vm0, %v5513_v5  ;;  %5411 = vmatmul.mubr.msk.bf16.gmra.mrb[124].mxu1 %vm934_vm0, %v5513_v5 }
 0x211   : > { %v2213_v30 = vpop.f32.mrb[40].mxu0  ;;  %v2330_v6 = vpop.f32.mrb[40].mxu1 }
 0x212   : > { %v2230_v31 = vmax.f32 %v2113_v10, %v2213_v30  ;;  %v2215_v27 = vpop.f32.mrb[41].mxu0  ;;  %v2332_v28 = vpop.f32.mrb[41].mxu1 }
 0x213   : > { %v2231_v2 = vmax.f32 %v2114_v42, %v2215_v27  ;;  %v2217_v32 = vpop.f32.mrb[42].mxu0  ;;  %v2334_v24 = vpop.f32.mrb[42].mxu1 }
 0x214   : > { %v2347_v9 = vmax.f32 %v2230_v31, %v2330_v6  ;;  %v2232_v14 = vmax.f32 %v2115_v17, %v2217_v32  ;;  %v2219_v7 = vpop.f32.mrb[43].mxu0  ;;  %v2336_v43 = vpop.f32.mrb[43].mxu1 }
 0x215   : > { %v2348_v13 = vmax.f32 %v2231_v2, %v2332_v28  ;;  %v2233_v38 = vmax.f32 %v2116_v19, %v2219_v7 }
 0x216   : > { %v2353_v0 = vadd.f32 %v2347_v9, %v6790_v53  ;;  %v2349_v49 = vmax.f32 %v2232_v14, %v2334_v24 }
 0x217   : > { %v2354_v46 = vadd.f32 %v2348_v13, %v6790_v53  ;;  %v2350_v29 = vmax.f32 %v2233_v38, %v2336_v43 }
 0x218   : > { %v2359_v47 = vmax.f32 %v2353_v0, 0.0  ;;  %v2355_v48 = vadd.f32 %v2349_v49, %v6824_v23 }
 0x219   : > { %v2360_v51 = vmax.f32 %v2354_v46, 0.0  ;;  %v2356_v52 = vadd.f32 %v2350_v29, %v6824_v23  ;;  %v2223_v55 = vpop.f32.mrb[44].mxu0  ;;  %v2340_v26 = vpop.f32.mrb[44].mxu1 }
 0x21a   : > { %v2361_v20 = vmax.f32 %v2355_v48, 0.0  ;;  %v2234_v25 = vmax.f32 %v2117_v62, %v2223_v55  ;;  %v2225_v56 = vpop.f32.mrb[45].mxu0  ;;  %v2342_v36 = vpop.f32.mrb[45].mxu1 }
 0x21b   : > { %v5426_v33 = vpack.c.bf16 %v2360_v51, %v2359_v47  ;;  %v2362_v35 = vmax.f32 %v2356_v52, 0.0  ;;  %v2235_v5 = vmax.f32 %v2118_v63, %v2225_v56  ;;  %v2227_v39 = vpop.f32.mrb[46].mxu0  ;;  %v2344_v34 = vpop.f32.mrb[46].mxu1 }
 0x21c   : > { %v2351_v57 = vmax.f32 %v2234_v25, %v2340_v26  ;;  %v2228_v60 = vpop.f32.mrb[47].mxu0  ;;  %v2345_v40 = vpop.f32.mrb[47].mxu1 }
 0x21d   : > { %5145 = vst [vmem:[%s6851_s23 + $0x30] sm:$0xff] %v5426_v33  ;;  %v5427_v3 = vpack.c.bf16 %v2362_v35, %v2361_v20  ;;  %v2352_v37 = vmax.f32 %v2235_v5, %v2342_v36 }
 0x21e   : > { %v2357_v44 = vadd.f32 %v2351_v57, %v6844_v41 }
 0x21f   : > { %5146 = vst [vmem:[%s6851_s23 + $0x38] sm:$0xff] %v5427_v3  ;;  %v2358_v1 = vadd.f32 %v2352_v37, %v6844_v41 }
 0x220   : > { %v2363_v10 = vmax.f32 %v2357_v44, 0.0 }
 0x221   : > { %v2364_v11 = vmax.f32 %v2358_v1, 0.0 }
 0x223   : > { %v5428_v15 = vpack.c.bf16 %v2364_v11, %v2363_v10 }
 0x225   : > { %5147 = vst [vmem:[%s6851_s23 + $0x40] sm:$0xff] %v5428_v15  ;;  %v2483_v12 = vpop.f32.mrb[48].mxu0  ;;  %v2594_v42 = vpop.f32.mrb[48].mxu1 }
 0x226   : > { %v2485_v45 = vpop.f32.mrb[49].mxu0  ;;  %v2611_v50 = vmax.f32 %v2483_v12, %v2594_v42  ;;  %v2596_v16 = vpop.f32.mrb[49].mxu1 }
 0x227   : > { %v2487_v17 = vpop.f32.mrb[50].mxu0  ;;  %v2612_v18 = vmax.f32 %v2485_v45, %v2596_v16  ;;  %v2598_v19 = vpop.f32.mrb[50].mxu1 }
 0x228   : > { %v2489_v54 = vpop.f32.mrb[51].mxu0  ;;  %v2613_v58 = vmax.f32 %v2487_v17, %v2598_v19  ;;  %v2600_v61 = vpop.f32.mrb[51].mxu1 }
 0x229   : > { %v2614_v59 = vmax.f32 %v2489_v54, %v2600_v61 }
 0x22d   : > { %v2493_v62 = vpop.f32.mrb[52].mxu0  ;;  %v2604_v22 = vpop.f32.mrb[52].mxu1 }
 0x22e   : > { %v2495_v21 = vpop.f32.mrb[53].mxu0  ;;  %v2615_v4 = vmax.f32 %v2493_v62, %v2604_v22  ;;  %v2606_v8 = vpop.f32.mrb[53].mxu1 }
 0x22f   : > { %v2497_v63 = vpop.f32.mrb[54].mxu0  ;;  %v2616_v31 = vmax.f32 %v2495_v21, %v2606_v8  ;;  %v2608_v6 = vpop.f32.mrb[54].mxu1 }
 0x230   : > { %v2498_v30 = vpop.f32.mrb[55].mxu0  ;;  %v2609_v27 = vpop.f32.mrb[55].mxu1 }
 0x239   : > { %v2711_v2 = vpop.f32.mrb[56].mxu0  ;;  %v2828_v32 = vpop.f32.mrb[56].mxu1 }
 0x23a   : > { %v2728_v28 = vmax.f32 %v2611_v50, %v2711_v2  ;;  %v2713_v9 = vpop.f32.mrb[57].mxu0  ;;  %v2830_v24 = vpop.f32.mrb[57].mxu1 }
 0x23b   : > { %v2729_v14 = vmax.f32 %v2612_v18, %v2713_v9  ;;  %v2715_v7 = vpop.f32.mrb[58].mxu0  ;;  %v2832_v43 = vpop.f32.mrb[58].mxu1 }
 0x23c   : > { %v2845_v13 = vmax.f32 %v2728_v28, %v2828_v32  ;;  %v2730_v38 = vmax.f32 %v2613_v58, %v2715_v7  ;;  %v2717_v0 = vpop.f32.mrb[59].mxu0  ;;  %v2834_v29 = vpop.f32.mrb[59].mxu1 }
 0x23d   : > { %v2846_v49 = vmax.f32 %v2729_v14, %v2830_v24  ;;  %v2731_v46 = vmax.f32 %v2614_v59, %v2717_v0 }
 0x23e   : > { %v2851_v47 = vadd.f32 %v2845_v13, %v6790_v53  ;;  %v2847_v48 = vmax.f32 %v2730_v38, %v2832_v43 }
 0x23f   : > { %v2852_v51 = vadd.f32 %v2846_v49, %v6790_v53  ;;  %v2848_v52 = vmax.f32 %v2731_v46, %v2834_v29 }
 0x240   : > { %v2857_v55 = vmax.f32 %v2851_v47, 0.0  ;;  %v2853_v20 = vadd.f32 %v2847_v48, %v6824_v23 }
 0x241   : > { %v2858_v25 = vmax.f32 %v2852_v51, 0.0  ;;  %v2854_v56 = vadd.f32 %v2848_v52, %v6824_v23  ;;  %v2721_v26 = vpop.f32.mrb[60].mxu0  ;;  %v2838_v36 = vpop.f32.mrb[60].mxu1 }
 0x242   : > { %v2859_v33 = vmax.f32 %v2853_v20, 0.0  ;;  %v2732_v35 = vmax.f32 %v2615_v4, %v2721_v26  ;;  %v2723_v5 = vpop.f32.mrb[61].mxu0  ;;  %v2840_v34 = vpop.f32.mrb[61].mxu1 }
 0x243   : > { %v5429_v39 = vpack.c.bf16 %v2858_v25, %v2857_v55  ;;  %v2860_v57 = vmax.f32 %v2854_v56, 0.0  ;;  %v2733_v60 = vmax.f32 %v2616_v31, %v2723_v5  ;;  %v2725_v3 = vpop.f32.mrb[62].mxu0  ;;  %v2842_v44 = vpop.f32.mrb[62].mxu1 }
 0x244   : > { %v2849_v37 = vmax.f32 %v2732_v35, %v2838_v36  ;;  %v2726_v40 = vpop.f32.mrb[63].mxu0  ;;  %v2843_v11 = vpop.f32.mrb[63].mxu1 }
 0x245   : > { %5199 = vst [vmem:[%s6851_s23 + $0x48] sm:$0xff] %v5429_v39  ;;  %v5430_v1 = vpack.c.bf16 %v2860_v57, %v2859_v33  ;;  %v2850_v10 = vmax.f32 %v2733_v60, %v2840_v34 }
 0x246   : > { %v2855_v15 = vadd.f32 %v2849_v37, %v6844_v41 }
 0x247   : > { %5200 = vst [vmem:[%s6851_s23 + $0x50] sm:$0xff] %v5430_v1  ;;  %v2856_v12 = vadd.f32 %v2850_v10, %v6844_v41 }
 0x248   : > { %v2861_v42 = vmax.f32 %v2855_v15, 0.0 }
 0x249   : > { %v2862_v45 = vmax.f32 %v2856_v12, 0.0 }
 0x24b   : > { %v5431_v50 = vpack.c.bf16 %v2862_v45, %v2861_v42 }
 0x24d   : > { %5201 = vst [vmem:[%s6851_s23 + $0x58] sm:$0xff] %v5431_v50  ;;  %v2981_v16 = vpop.f32.mrb[64].mxu0  ;;  %v3092_v17 = vpop.f32.mrb[64].mxu1 }
 0x24e   : > { %v2983_v18 = vpop.f32.mrb[65].mxu0  ;;  %v3109_v19 = vmax.f32 %v2981_v16, %v3092_v17  ;;  %v3094_v54 = vpop.f32.mrb[65].mxu1 }
 0x24f   : > { %v2985_v58 = vpop.f32.mrb[66].mxu0  ;;  %v3110_v61 = vmax.f32 %v2983_v18, %v3094_v54  ;;  %v3096_v59 = vpop.f32.mrb[66].mxu1 }
 0x250   : > { %v2987_v62 = vpop.f32.mrb[67].mxu0  ;;  %v3111_v21 = vmax.f32 %v2985_v58, %v3096_v59  ;;  %v3098_v22 = vpop.f32.mrb[67].mxu1 }
 0x251   : > { %v3112_v63 = vmax.f32 %v2987_v62, %v3098_v22 }
 0x255   : > { %v2991_v4 = vpop.f32.mrb[68].mxu0  ;;  %v3102_v30 = vpop.f32.mrb[68].mxu1 }
 0x256   : > { %v2993_v8 = vpop.f32.mrb[69].mxu0  ;;  %v3113_v6 = vmax.f32 %v2991_v4, %v3102_v30  ;;  %v3104_v27 = vpop.f32.mrb[69].mxu1 }
 0x257   : > { %v2995_v31 = vpop.f32.mrb[70].mxu0  ;;  %v3114_v28 = vmax.f32 %v2993_v8, %v3104_v27  ;;  %v3106_v32 = vpop.f32.mrb[70].mxu1 }
 0x258   : > { %v2996_v2 = vpop.f32.mrb[71].mxu0  ;;  %v3107_v9 = vpop.f32.mrb[71].mxu1 }
 0x261   : > { %v3209_v14 = vpop.f32.mrb[72].mxu0  ;;  %v3326_v7 = vpop.f32.mrb[72].mxu1 }
 0x262   : > { %v3226_v24 = vmax.f32 %v3109_v19, %v3209_v14  ;;  %v3211_v13 = vpop.f32.mrb[73].mxu0  ;;  %v3328_v43 = vpop.f32.mrb[73].mxu1 }
 0x263   : > { %v3227_v38 = vmax.f32 %v3110_v61, %v3211_v13  ;;  %v3213_v0 = vpop.f32.mrb[74].mxu0  ;;  %v3330_v29 = vpop.f32.mrb[74].mxu1 }
 0x264   : > { %v3343_v49 = vmax.f32 %v3226_v24, %v3326_v7  ;;  %v3228_v46 = vmax.f32 %v3111_v21, %v3213_v0  ;;  %v3215_v47 = vpop.f32.mrb[75].mxu0  ;;  %v3332_v52 = vpop.f32.mrb[75].mxu1 }
 0x265   : > { %v3344_v48 = vmax.f32 %v3227_v38, %v3328_v43  ;;  %v3229_v51 = vmax.f32 %v3112_v63, %v3215_v47 }
 0x266   : > { %v3349_v55 = vadd.f32 %v3343_v49, %v6790_v53  ;;  %v3345_v20 = vmax.f32 %v3228_v46, %v3330_v29 }
 0x267   : > { %v3350_v25 = vadd.f32 %v3344_v48, %v6790_v53  ;;  %v3346_v56 = vmax.f32 %v3229_v51, %v3332_v52 }
 0x268   : > { %v3355_v26 = vmax.f32 %v3349_v55, 0.0  ;;  %v3351_v33 = vadd.f32 %v3345_v20, %v6824_v23 }
 0x269   : > { %v3356_v35 = vmax.f32 %v3350_v25, 0.0  ;;  %v3352_v5 = vadd.f32 %v3346_v56, %v6824_v23  ;;  %v3219_v36 = vpop.f32.mrb[76].mxu0  ;;  %v3336_v34 = vpop.f32.mrb[76].mxu1 }
 0x26a   : > { %v3357_v39 = vmax.f32 %v3351_v33, 0.0  ;;  %v3230_v57 = vmax.f32 %v3113_v6, %v3219_v36  ;;  %v3221_v60 = vpop.f32.mrb[77].mxu0  ;;  %v3338_v44 = vpop.f32.mrb[77].mxu1 }
 0x26b   : > { %v5432_v3 = vpack.c.bf16 %v3356_v35, %v3355_v26  ;;  %v3358_v37 = vmax.f32 %v3352_v5, 0.0  ;;  %v3231_v40 = vmax.f32 %v3114_v28, %v3221_v60  ;;  %v3223_v1 = vpop.f32.mrb[78].mxu0  ;;  %v3340_v15 = vpop.f32.mrb[78].mxu1 }
 0x26c   : > { %v3347_v10 = vmax.f32 %v3230_v57, %v3336_v34  ;;  %v3224_v11 = vpop.f32.mrb[79].mxu0  ;;  %v3341_v45 = vpop.f32.mrb[79].mxu1 }
 0x26d   : > { %5253 = vst [vmem:[%s6851_s23 + $0x60] sm:$0xff] %v5432_v3  ;;  %v5433_v12 = vpack.c.bf16 %v3358_v37, %v3357_v39  ;;  %v3348_v42 = vmax.f32 %v3231_v40, %v3338_v44 }
 0x26e   : > { %v3353_v50 = vadd.f32 %v3347_v10, %v6844_v41 }
 0x26f   : > { %5254 = vst [vmem:[%s6851_s23 + $0x68] sm:$0xff] %v5433_v12  ;;  %v3354_v16 = vadd.f32 %v3348_v42, %v6844_v41 }
 0x270   : > { %v3359_v17 = vmax.f32 %v3353_v50, 0.0 }
 0x271   : > { %v3360_v18 = vmax.f32 %v3354_v16, 0.0 }
 0x273   : > { %v5434_v19 = vpack.c.bf16 %v3360_v18, %v3359_v17 }
 0x275   : > { %5255 = vst [vmem:[%s6851_s23 + $0x70] sm:$0xff] %v5434_v19  ;;  %v3479_v54 = vpop.f32.mrb[80].mxu0  ;;  %v3590_v58 = vpop.f32.mrb[80].mxu1 }
 0x276   : > { %v3481_v61 = vpop.f32.mrb[81].mxu0  ;;  %v3607_v59 = vmax.f32 %v3479_v54, %v3590_v58  ;;  %v3592_v62 = vpop.f32.mrb[81].mxu1 }
 0x277   : > { %v3483_v21 = vpop.f32.mrb[82].mxu0  ;;  %v3608_v22 = vmax.f32 %v3481_v61, %v3592_v62  ;;  %v3594_v63 = vpop.f32.mrb[82].mxu1 }
 0x278   : > { %v3485_v4 = vpop.f32.mrb[83].mxu0  ;;  %v3609_v8 = vmax.f32 %v3483_v21, %v3594_v63  ;;  %v3596_v30 = vpop.f32.mrb[83].mxu1 }
 0x279   : > { %v3610_v31 = vmax.f32 %v3485_v4, %v3596_v30 }
 0x27d   : > { %v3489_v6 = vpop.f32.mrb[84].mxu0  ;;  %v3600_v2 = vpop.f32.mrb[84].mxu1 }
 0x27e   : > { %v3491_v27 = vpop.f32.mrb[85].mxu0  ;;  %v3611_v32 = vmax.f32 %v3489_v6, %v3600_v2  ;;  %v3602_v9 = vpop.f32.mrb[85].mxu1 }
 0x27f   : > { %v3493_v28 = vpop.f32.mrb[86].mxu0  ;;  %v3612_v24 = vmax.f32 %v3491_v27, %v3602_v9  ;;  %v3604_v7 = vpop.f32.mrb[86].mxu1 }
 0x280   : > { %v3494_v14 = vpop.f32.mrb[87].mxu0  ;;  %v3605_v13 = vpop.f32.mrb[87].mxu1 }
 0x289   : > { %v3707_v38 = vpop.f32.mrb[88].mxu0  ;;  %v3824_v0 = vpop.f32.mrb[88].mxu1 }
 0x28a   : > { %v3724_v43 = vmax.f32 %v3607_v59, %v3707_v38  ;;  %v3709_v49 = vpop.f32.mrb[89].mxu0  ;;  %v3826_v29 = vpop.f32.mrb[89].mxu1 }
 0x28b   : > { %v3725_v46 = vmax.f32 %v3608_v22, %v3709_v49  ;;  %v3711_v47 = vpop.f32.mrb[90].mxu0  ;;  %v3828_v52 = vpop.f32.mrb[90].mxu1 }
 0x28c   : > { %v3841_v48 = vmax.f32 %v3724_v43, %v3824_v0  ;;  %v3726_v51 = vmax.f32 %v3609_v8, %v3711_v47  ;;  %v3713_v55 = vpop.f32.mrb[91].mxu0  ;;  %v3830_v56 = vpop.f32.mrb[91].mxu1 }
 0x28d   : > { %v3842_v20 = vmax.f32 %v3725_v46, %v3826_v29  ;;  %v3727_v25 = vmax.f32 %v3610_v31, %v3713_v55 }
 0x28e   : > { %v3847_v26 = vadd.f32 %v3841_v48, %v6790_v53  ;;  %v3843_v33 = vmax.f32 %v3726_v51, %v3828_v52 }
 0x28f   : > { %v3848_v35 = vadd.f32 %v3842_v20, %v6790_v53  ;;  %v3844_v5 = vmax.f32 %v3727_v25, %v3830_v56 }
 0x290   : > { %v3853_v36 = vmax.f32 %v3847_v26, 0.0  ;;  %v3849_v39 = vadd.f32 %v3843_v33, %v6824_v23 }
 0x291   : > { %v3854_v57 = vmax.f32 %v3848_v35, 0.0  ;;  %v3850_v60 = vadd.f32 %v3844_v5, %v6824_v23  ;;  %v3717_v34 = vpop.f32.mrb[92].mxu0  ;;  %v3834_v44 = vpop.f32.mrb[92].mxu1 }
 0x292   : > { %v3855_v3 = vmax.f32 %v3849_v39, 0.0  ;;  %v3728_v37 = vmax.f32 %v3611_v32, %v3717_v34  ;;  %v3719_v40 = vpop.f32.mrb[93].mxu0  ;;  %v3836_v15 = vpop.f32.mrb[93].mxu1 }
 0x293   : > { %v5435_v1 = vpack.c.bf16 %v3854_v57, %v3853_v36  ;;  %v3856_v10 = vmax.f32 %v3850_v60, 0.0  ;;  %v3729_v11 = vmax.f32 %v3612_v24, %v3719_v40  ;;  %v3721_v12 = vpop.f32.mrb[94].mxu0  ;;  %v3838_v50 = vpop.f32.mrb[94].mxu1 }
 0x294   : > { %v3845_v42 = vmax.f32 %v3728_v37, %v3834_v44  ;;  %v3722_v45 = vpop.f32.mrb[95].mxu0  ;;  %v3839_v18 = vpop.f32.mrb[95].mxu1 }
 0x295   : > { %5307 = vst [vmem:[%s6851_s23 + $0x78] sm:$0xff] %v5435_v1  ;;  %v5436_v16 = vpack.c.bf16 %v3856_v10, %v3855_v3  ;;  %v3846_v17 = vmax.f32 %v3729_v11, %v3836_v15 }
 0x296   : > { %v3851_v19 = vadd.f32 %v3845_v42, %v6844_v41 }
 0x297   : > { %5308 = vst [vmem:[%s6851_s23 + $0x80] sm:$0xff] %v5436_v16  ;;  %v3852_v54 = vadd.f32 %v3846_v17, %v6844_v41 }
 0x298   : > { %v3857_v58 = vmax.f32 %v3851_v19, 0.0 }
 0x299   : > { %v3858_v61 = vmax.f32 %v3852_v54, 0.0 }
 0x29b   : > { %v5437_v59 = vpack.c.bf16 %v3858_v61, %v3857_v58 }
 0x29d   : > { %5309 = vst [vmem:[%s6851_s23 + $0x88] sm:$0xff] %v5437_v59  ;;  %v3977_v62 = vpop.f32.mrb[96].mxu0  ;;  %v4088_v21 = vpop.f32.mrb[96].mxu1 }
 0x29e   : > { %v3979_v22 = vpop.f32.mrb[97].mxu0  ;;  %v4105_v63 = vmax.f32 %v3977_v62, %v4088_v21  ;;  %v4090_v4 = vpop.f32.mrb[97].mxu1 }
 0x29f   : > { %v3981_v8 = vpop.f32.mrb[98].mxu0  ;;  %v4106_v30 = vmax.f32 %v3979_v22, %v4090_v4  ;;  %v4092_v31 = vpop.f32.mrb[98].mxu1 }
 0x2a0   : > { %v3983_v6 = vpop.f32.mrb[99].mxu0  ;;  %v4107_v27 = vmax.f32 %v3981_v8, %v4092_v31  ;;  %v4094_v2 = vpop.f32.mrb[99].mxu1 }
 0x2a1   : > { %v4108_v28 = vmax.f32 %v3983_v6, %v4094_v2 }
 0x2a5   : > { %v3987_v32 = vpop.f32.mrb[100].mxu0  ;;  %v4098_v14 = vpop.f32.mrb[100].mxu1 }
 0x2a6   : > { %v3989_v9 = vpop.f32.mrb[101].mxu0  ;;  %v4109_v7 = vmax.f32 %v3987_v32, %v4098_v14  ;;  %v4100_v13 = vpop.f32.mrb[101].mxu1 }
 0x2a7   : > { %v3991_v24 = vpop.f32.mrb[102].mxu0  ;;  %v4110_v43 = vmax.f32 %v3989_v9, %v4100_v13  ;;  %v4102_v0 = vpop.f32.mrb[102].mxu1 }
 0x2a8   : > { %v3992_v38 = vpop.f32.mrb[103].mxu0  ;;  %v4103_v49 = vpop.f32.mrb[103].mxu1 }
 0x2b1   : > { %v4205_v46 = vpop.f32.mrb[104].mxu0  ;;  %v4322_v47 = vpop.f32.mrb[104].mxu1 }
 0x2b2   : > { %v4222_v29 = vmax.f32 %v4105_v63, %v4205_v46  ;;  %v4207_v48 = vpop.f32.mrb[105].mxu0  ;;  %v4324_v52 = vpop.f32.mrb[105].mxu1 }
 0x2b3   : > { %v4223_v51 = vmax.f32 %v4106_v30, %v4207_v48  ;;  %v4209_v55 = vpop.f32.mrb[106].mxu0  ;;  %v4326_v56 = vpop.f32.mrb[106].mxu1 }
 0x2b4   : > { %v4339_v20 = vmax.f32 %v4222_v29, %v4322_v47  ;;  %v4224_v25 = vmax.f32 %v4107_v27, %v4209_v55  ;;  %v4211_v26 = vpop.f32.mrb[107].mxu0  ;;  %v4328_v5 = vpop.f32.mrb[107].mxu1 }
 0x2b5   : > { %v4340_v33 = vmax.f32 %v4223_v51, %v4324_v52  ;;  %v4225_v35 = vmax.f32 %v4108_v28, %v4211_v26 }
 0x2b6   : > { %v4345_v36 = vadd.f32 %v4339_v20, %v6790_v53  ;;  %v4341_v39 = vmax.f32 %v4224_v25, %v4326_v56 }
 0x2b7   : > { %v4346_v57 = vadd.f32 %v4340_v33, %v6790_v53  ;;  %v4342_v60 = vmax.f32 %v4225_v35, %v4328_v5 }
 0x2b8   : > { %v4351_v34 = vmax.f32 %v4345_v36, 0.0  ;;  %v4347_v3 = vadd.f32 %v4341_v39, %v6824_v23 }
 0x2b9   : > { %v4352_v37 = vmax.f32 %v4346_v57, 0.0  ;;  %v4348_v40 = vadd.f32 %v4342_v60, %v6824_v23  ;;  %v4215_v44 = vpop.f32.mrb[108].mxu0  ;;  %v4332_v15 = vpop.f32.mrb[108].mxu1 }
 0x2ba   : > { %v4353_v1 = vmax.f32 %v4347_v3, 0.0  ;;  %v4226_v10 = vmax.f32 %v4109_v7, %v4215_v44  ;;  %v4217_v11 = vpop.f32.mrb[109].mxu0  ;;  %v4334_v50 = vpop.f32.mrb[109].mxu1 }
 0x2bb   : > { %v5438_v12 = vpack.c.bf16 %v4352_v37, %v4351_v34  ;;  %v4354_v42 = vmax.f32 %v4348_v40, 0.0  ;;  %v4227_v45 = vmax.f32 %v4110_v43, %v4217_v11  ;;  %v4219_v16 = vpop.f32.mrb[110].mxu0  ;;  %v4336_v19 = vpop.f32.mrb[110].mxu1 }
 0x2bc   : > { %v4343_v17 = vmax.f32 %v4226_v10, %v4332_v15  ;;  %v4220_v18 = vpop.f32.mrb[111].mxu0  ;;  %v4337_v61 = vpop.f32.mrb[111].mxu1 }
 0x2bd   : > { %5361 = vst [vmem:[%s6851_s23 + $0x90] sm:$0xff] %v5438_v12  ;;  %v5439_v54 = vpack.c.bf16 %v4354_v42, %v4353_v1  ;;  %v4344_v58 = vmax.f32 %v4227_v45, %v4334_v50 }
 0x2be   : > { %v4349_v59 = vadd.f32 %v4343_v17, %v6844_v41 }
 0x2bf   : > { %5362 = vst [vmem:[%s6851_s23 + $0x98] sm:$0xff] %v5439_v54  ;;  %v4350_v62 = vadd.f32 %v4344_v58, %v6844_v41 }
 0x2c0   : > { %v4355_v21 = vmax.f32 %v4349_v59, 0.0 }
 0x2c1   : > { %v4356_v22 = vmax.f32 %v4350_v62, 0.0 }
 0x2c3   : > { %v5440_v63 = vpack.c.bf16 %v4356_v22, %v4355_v21 }
 0x2c5   : > { %5363 = vst [vmem:[%s6851_s23 + $0xa0] sm:$0xff] %v5440_v63  ;;  %v4475_v4 = vpop.f32.mrb[112].mxu0  ;;  %v4586_v8 = vpop.f32.mrb[112].mxu1 }
 0x2c6   : > { %v4477_v30 = vpop.f32.mrb[113].mxu0  ;;  %v4603_v31 = vmax.f32 %v4475_v4, %v4586_v8  ;;  %v4588_v6 = vpop.f32.mrb[113].mxu1 }
 0x2c7   : > { %v4479_v27 = vpop.f32.mrb[114].mxu0  ;;  %v4604_v2 = vmax.f32 %v4477_v30, %v4588_v6  ;;  %v4590_v28 = vpop.f32.mrb[114].mxu1 }
 0x2c8   : > { %v4481_v32 = vpop.f32.mrb[115].mxu0  ;;  %v4605_v9 = vmax.f32 %v4479_v27, %v4590_v28  ;;  %v4592_v14 = vpop.f32.mrb[115].mxu1 }
 0x2c9   : > { %v4606_v24 = vmax.f32 %v4481_v32, %v4592_v14 }
 0x2cd   : > { %v4485_v7 = vpop.f32.mrb[116].mxu0  ;;  %v4596_v38 = vpop.f32.mrb[116].mxu1 }
 0x2ce   : > { %v4487_v13 = vpop.f32.mrb[117].mxu0  ;;  %v4607_v0 = vmax.f32 %v4485_v7, %v4596_v38  ;;  %v4598_v49 = vpop.f32.mrb[117].mxu1 }
 0x2cf   : > { %v4489_v43 = vpop.f32.mrb[118].mxu0  ;;  %v4608_v29 = vmax.f32 %v4487_v13, %v4598_v49  ;;  %v4600_v47 = vpop.f32.mrb[118].mxu1 }
 0x2d0   : > { %v4490_v46 = vpop.f32.mrb[119].mxu0  ;;  %v4601_v48 = vpop.f32.mrb[119].mxu1 }
 0x2d9   : > { %v4703_v51 = vpop.f32.mrb[120].mxu0  ;;  %v4820_v55 = vpop.f32.mrb[120].mxu1 }
 0x2da   : > { %v4720_v52 = vmax.f32 %v4603_v31, %v4703_v51  ;;  %v4705_v20 = vpop.f32.mrb[121].mxu0  ;;  %v4822_v56 = vpop.f32.mrb[121].mxu1 }
 0x2db   : > { %v4721_v25 = vmax.f32 %v4604_v2, %v4705_v20  ;;  %v4707_v26 = vpop.f32.mrb[122].mxu0  ;;  %v4824_v5 = vpop.f32.mrb[122].mxu1 }
 0x2dc   : > { %v4837_v33 = vmax.f32 %v4720_v52, %v4820_v55  ;;  %v4722_v35 = vmax.f32 %v4605_v9, %v4707_v26  ;;  %v4709_v36 = vpop.f32.mrb[123].mxu0  ;;  %v4826_v60 = vpop.f32.mrb[123].mxu1 }
 0x2dd   : > { %v4838_v39 = vmax.f32 %v4721_v25, %v4822_v56  ;;  %v4723_v57 = vmax.f32 %v4606_v24, %v4709_v36 }
 0x2de   : > { %v4843_v34 = vadd.f32 %v4837_v33, %v6790_v53  ;;  %v4839_v3 = vmax.f32 %v4722_v35, %v4824_v5 }
 0x2df   : > { %v4844_v37 = vadd.f32 %v4838_v39, %v6790_v53  ;;  %v4840_v40 = vmax.f32 %v4723_v57, %v4826_v60 }
 0x2e0   : > { %v4849_v44 = vmax.f32 %v4843_v34, 0.0  ;;  %v4845_v1 = vadd.f32 %v4839_v3, %v6824_v23 }
 0x2e1   : > { %v4850_v10 = vmax.f32 %v4844_v37, 0.0  ;;  %v4846_v11 = vadd.f32 %v4840_v40, %v6824_v23  ;;  %v4713_v15 = vpop.f32.mrb[124].mxu0  ;;  %v4830_v45 = vpop.f32.mrb[124].mxu1 }
 0x2e2   : > { %v4851_v12 = vmax.f32 %v4845_v1, 0.0  ;;  %v4724_v42 = vmax.f32 %v4607_v0, %v4713_v15  ;;  %v4715_v50 = vpop.f32.mrb[125].mxu0  ;;  %v4832_v19 = vpop.f32.mrb[125].mxu1 }
 0x2e3   : > { %v5441_v16 = vpack.c.bf16 %v4850_v10, %v4849_v44  ;;  %v4852_v17 = vmax.f32 %v4846_v11, 0.0  ;;  %v4725_v18 = vmax.f32 %v4608_v29, %v4715_v50  ;;  %v4717_v53 = vpop.f32.mrb[126].mxu0  ;;  %v4834_v58 = vpop.f32.mrb[126].mxu1 }
 0x2e4   : > { %v4841_v54 = vmax.f32 %v4724_v42, %v4830_v45  ;;  %v4718_v61 = vpop.f32.mrb[127].mxu0  ;;  %v4835_v21 = vpop.f32.mrb[127].mxu1 }
 0x2e5   : > { %5415 = vst [vmem:[%s6851_s23 + $0xa8] sm:$0xff] %v5441_v16  ;;  %v5442_v59 = vpack.c.bf16 %v4852_v17, %v4851_v12  ;;  %v4842_v62 = vmax.f32 %v4725_v18, %v4832_v19 }
 0x2e6   : > { %v4847_v23 = vadd.f32 %v4841_v54, %v6844_v41 }
 0x2e7   : > { %5416 = vst [vmem:[%s6851_s23 + $0xb0] sm:$0xff] %v5442_v59  ;;  %v4848_v22 = vadd.f32 %v4842_v62, %v6844_v41 }
 0x2e8   : > { %v4853_v63 = vmax.f32 %v4847_v23, 0.0 }
 0x2e9   : > { %v4854_v4 = vmax.f32 %v4848_v22, 0.0 }
 0x2eb   : > { %v5443_v8 = vpack.c.bf16 %v4854_v4, %v4853_v63 }
 0x2ed   : > { %5417 = vst [vmem:[%s6851_s23 + $0xb8] sm:$0xff] %v5443_v8 }
 0x2ee PF: > { %s13_s18 = sadd.s32 1, %s5568_s18   ;;  %s7108_s12 = smov %s5548_s13 }
 0x2ef   : > { %p10_p12 = scmp.ge.s32.totalorder %s13_s18, 14   ;;  %s7109_s13 = smov %s5642_s25 }
 0x2f0   : > { %s7110_s14 = smov %s5560_s16  ;;  %s7111_s15 = smov %s5564_s17 }
 0x2f1   : > { %s7112_s16 = smov %s7115_s19  ;;  %s7113_s17 = smov %s7119_s20 }
 0x2f2   :  { %12 = sbr.rel (!%p10_p12) target bundleno = 4 (0x4), region = 97 }

// kernel: net_forward.4
= control target key start
LH: loop header
LB: loop body
LE: loop exit
PB: predicated region body
PF: predicated region fallthrough
CT: control target
= control target key end

     0   :  { %s11442_s12 = smov 0   ;;  %s12865_s0 = inlined_call_operand.vmem [shape: bf16[2,16,608,128], index: 0, kind: input, shape index: {}]   ;;  %s12866_s1 = inlined_call_operand.vmem [shape: bf16[32,608], index: 1, kind: input, shape index: {}]   ;;  %s12867_s2 = inlined_call_operand.vmem [shape: f32[32,1], index: 2, kind: input, shape index: {}]   ;;  %s12868_s3 = inlined_call_operand.vmem [shape: bf16[2,32,128], index: 3, kind: output, shape index: {}]  }
   0x1 LB: > { %s7635_s13 = sadd.s32 4294967295, %s11419_s12   ;;  %p7639_p0 = scmp.ge.s32.totalorder %s11419_s12, 1  ;;  %s11419_s12 = sphi %s11442_s12, %s13_s12  }
   0x2   : > { %p137_p1 = scmp.lt.s32.totalorder %s11419_s12, 3 }
   0x4   : > { %p138_p2 = pnand %p7639_p0, %p137_p1 }
   0x5   : > { %p161_p3 = scmp.lt.s32.totalorder (!%p138_p2), %s7635_s13, 1  ;;  %v11453_v0 = vld [vmem:[%s12866_s1 + $0x4] ss:$20 sps:$4 sm:$0xff] (!%p138_p2)   ;;  %v11461_v1 = vld [vmem:[%s12866_s1 + $0xc] ss:$20 sps:$4 sm:$0xff] (!%p138_p2)   ;;  %v11421_v2 = vmov (!%p138_p2), 0  }
   0x6   : > { %141 = sbr.rel (%p138_p2) target bundleno = 957 (0x3bd), region = 32  ;;  %601 = vmatprep.mubr.bf16.mxu0 (!%p138_p2), %v11453_v0  ;;  %10745 = vset.pattern.permute.xlu0 (!%p138_p2), %v11421_v2  ;;  %v11503_v33 = vld [vmem:[%s12866_s1] ss:$20 sps:$4 sm:$0xff] (!%p138_p2)   ;;  %v11509_v35 = vld [vmem:[%s12866_s1 + $0x8] ss:$20 sps:$4 sm:$0xff] (!%p138_p2)   ;;  %vm562_vm0 = vcmask (!%p138_p2), 785408  }
   0x7   : > { %10746 = vset.pattern.permute.xlu1 (!%p138_p2), %v11421_v2  ;;  %650 = vmatprep.mubr.bf16.mxu1 (!%p138_p2), %v11461_v1  ;;  %v11516_v38 = vld [vmem:[%s12866_s1 + $0x2c] ss:$20 sps:$4 sm:$0xff] (!%p138_p2)   ;;  %v11522_v40 = vld [vmem:[%s12866_s1 + $0x34] ss:$20 sps:$4 sm:$0xff] (!%p138_p2)   ;;  %v11540_v47 = vld [vmem:[%s12866_s1 + $0x30] ss:$20 sps:$4 sm:$0xff] (!%p138_p2)  }
   0x8   : > { %v11533_v45 = vld [vmem:[%s12866_s1 + $0x28] ss:$20 sps:$4 sm:$0xff] (!%p138_p2)   ;;  %v11548_v50 = vld [vmem:[%s12866_s1 + $0x10] ss:$20 sps:$4 sm:$0xff] (!%p138_p2)   ;;  %v11567_v60 = vld [vmem:[%s12866_s1 + $0x38] ss:$20 sps:$4 sm:$0xff] (!%p138_p2)  }
   0xd   : > { %s12870_s13 = smov (!%p161_p3, %s7635_s13), 1 }
   0xe   : > { %s10735_s18 = smul.u32 4864, %s12870_s13 }
  0x10   : > { %s11468_s21 = scalar_lea.vmem %s12865_s0, %s10735_s18 }
  0x11   : > { %v10747_v3 = vld [vmem:[%s11468_s21 + $0x40] sm:$0xff]   ;;  %v10751_v7 = vld [vmem:[%s11468_s21 + $0x48] sm:$0xff]   ;;  %v10755_v11 = vld [vmem:[%s11468_s21 + $0x50] sm:$0xff]  }
  0x12   : > { %v10748_v4 = vld [vmem:[%s11468_s21 + $0xc0] sm:$0xff]   ;;  %9455 = vmatprep.subr.bf16.mxu0 %v10747_v3  ;;  %v10752_v8 = vld [vmem:[%s11468_s21 + $0xc8] sm:$0xff]   ;;  %v10756_v12 = vld [vmem:[%s11468_s21 + $0xd0] sm:$0xff]  }
  0x13   : > { %v10749_v5 = vld [vmem:[%s11468_s21] sm:$0xff]   ;;  %9483 = vmatprep.subr.bf16.mxu1 %v10748_v4  ;;  %v10753_v9 = vld [vmem:[%s11468_s21 + $0x8] sm:$0xff]   ;;  %v10757_v13 = vld [vmem:[%s11468_s21 + $0x10] sm:$0xff]  }
  0x14   : > { %v10750_v6 = vld [vmem:[%s11468_s21 + $0x80] sm:$0xff]   ;;  %9456 = vmatpush3.bf16.msra.mxu0 %v10749_v5  ;;  %v10754_v10 = vld [vmem:[%s11468_s21 + $0x88] sm:$0xff]   ;;  %v10758_v14 = vld [vmem:[%s11468_s21 + $0x90] sm:$0xff]  }
  0x15   : > { %9484 = vmatpush3.bf16.msra.mxu1 %v10750_v6  ;;  %9457 = vmatprep.subr.bf16.mxu0 %v10751_v7  ;;  %v10759_v15 = vld [vmem:[%s11468_s21 + $0x58] sm:$0xff]   ;;  %v10763_v19 = vld [vmem:[%s11468_s21 + $0x60] sm:$0xff]   ;;  %v10767_v23 = vld [vmem:[%s11468_s21 + $0x68] sm:$0xff]  }
  0x16   : > { %9485 = vmatprep.subr.bf16.mxu1 %v10752_v8  ;;  %v10760_v16 = vld [vmem:[%s11468_s21 + $0xd8] sm:$0xff]   ;;  %v10764_v20 = vld [vmem:[%s11468_s21 + $0xe0] sm:$0xff]   ;;  %v10768_v24 = vld [vmem:[%s11468_s21 + $0xe8] sm:$0xff]  }
  0x17   : > { %v10761_v17 = vld [vmem:[%s11468_s21 + $0x18] sm:$0xff]   ;;  %v10765_v21 = vld [vmem:[%s11468_s21 + $0x20] sm:$0xff]   ;;  %v10769_v25 = vld [vmem:[%s11468_s21 + $0x28] sm:$0xff]  }
  0x18   : > { %9458 = vmatpush3.bf16.msra.mxu0 %v10753_v9  ;;  %v10762_v18 = vld [vmem:[%s11468_s21 + $0x98] sm:$0xff]   ;;  %v10766_v22 = vld [vmem:[%s11468_s21 + $0xa0] sm:$0xff]   ;;  %v10770_v26 = vld [vmem:[%s11468_s21 + $0xa8] sm:$0xff]  }
  0x19   : > { %9486 = vmatpush3.bf16.msra.mxu1 %v10754_v10  ;;  %9459 = vmatprep.subr.bf16.mxu0 %v10755_v11  ;;  %v10771_v27 = vld [vmem:[%s11468_s21 + $0x70] sm:$0xff]   ;;  %v10775_v31 = vld [vmem:[%s11468_s21 + $0x78] sm:$0xff]   ;;  %v10784_v37 = vld [vmem:[%s11468_s21 + $0x100] sm:$0xff]  }
  0x1a   : > { %9487 = vmatprep.subr.bf16.mxu1 %v10756_v12  ;;  %v10772_v28 = vld [vmem:[%s11468_s21 + $0xf0] sm:$0xff]   ;;  %v10776_v32 = vld [vmem:[%s11468_s21 + $0xf8] sm:$0xff]   ;;  %v10788_v42 = vld [vmem:[%s11468_s21 + $0x108] sm:$0xff]  }
  0x1b   : > { %v10773_v29 = vld [vmem:[%s11468_s21 + $0x30] sm:$0xff]   ;;  %v10777_v34 = vld [vmem:[%s11468_s21 + $0x38] sm:$0xff]   ;;  %v10792_v48 = vld [vmem:[%s11468_s21 + $0x180] sm:$0xff]  }
  0x1c   : > { %9460 = vmatpush3.bf16.msra.mxu0 %v10757_v13  ;;  %v10774_v30 = vld [vmem:[%s11468_s21 + $0xb0] sm:$0xff]   ;;  %v10778_v36 = vld [vmem:[%s11468_s21 + $0xb8] sm:$0xff]   ;;  %v10793_v49 = vld [vmem:[%s11468_s21 + $0x140] sm:$0xff]  }
  0x1d   : > { %9488 = vmatpush3.bf16.msra.mxu1 %v10758_v14  ;;  %9461 = vmatprep.subr.bf16.mxu0 %v10759_v15  ;;  %v10785_v39 = vld [vmem:[%s11468_s21 + $0x170] sm:$0xff]   ;;  %v10789_v43 = vld [vmem:[%s11468_s21 + $0x178] sm:$0xff]   ;;  %v10795_v52 = vld [vmem:[%s11468_s21 + $0x188] sm:$0xff]  }
  0x1e   : > { %9489 = vmatprep.subr.bf16.mxu1 %v10760_v16  ;;  %v10787_v41 = vld [vmem:[%s11468_s21 + $0x130] sm:$0xff]   ;;  %v10790_v44 = vld [vmem:[%s11468_s21 + $0x138] sm:$0xff]   ;;  %v10798_v53 = vld [vmem:[%s11468_s21 + $0x148] sm:$0xff]  }
  0x1f   : > { %v10791_v46 = vld [vmem:[%s11468_s21 + $0x110] sm:$0xff]   ;;  %v10794_v51 = vld [vmem:[%s11468_s21 + $0x118] sm:$0xff]   ;;  %v10803_v54 = vld [vmem:[%s11468_s21 + $0x120] sm:$0xff]  }
  0x20   : > { %9462 = vmatpush3.bf16.msra.mxu0 %v10761_v17  ;;  %v10804_v55 = vld [vmem:[%s11468_s21 + $0x190] sm:$0xff]   ;;  %v10806_v57 = vld [vmem:[%s11468_s21 + $0x128] sm:$0xff]   ;;  %v10807_v58 = vld [vmem:[%s11468_s21 + $0x198] sm:$0xff]  }
  0x21   : > { %9490 = vmatpush3.bf16.msra.mxu1 %v10762_v18  ;;  %9463 = vmatprep.subr.bf16.mxu0 %v10763_v19  ;;  %v10805_v56 = vld [vmem:[%s11468_s21 + $0x150] sm:$0xff]   ;;  %v10808_v59 = vld [vmem:[%s11468_s21 + $0x158] sm:$0xff]   ;;  %v10811_v62 = vld [vmem:[%s11468_s21 + $0x1a0] sm:$0xff]  }
  0x22   : > { %9491 = vmatprep.subr.bf16.mxu1 %v10764_v20  ;;  %v10812_v61 = vld [vmem:[%s11468_s21 + $0x1f0] sm:$0xff]   ;;  %v10813_v63 = vld [vmem:[%s11468_s21 + $0x160] sm:$0xff]   ;;  %v10816_v3 = vld [vmem:[%s11468_s21 + $0x1f8] sm:$0xff]  }
  0x23   : > { %v10814_v2 = vld [vmem:[%s11468_s21 + $0x1b0] sm:$0xff]   ;;  %v10815_v4 = vld [vmem:[%s11468_s21 + $0x1a8] sm:$0xff]   ;;  %v10818_v6 = vld [vmem:[%s11468_s21 + $0x1b8] sm:$0xff]  }
  0x24   : > { %9464 = vmatpush3.bf16.msra.mxu0 %v10765_v21  ;;  %v10817_v5 = vld [vmem:[%s11468_s21 + $0x168] sm:$0xff]   ;;  %v10819_v7 = vld [vmem:[%s11468_s21 + $0x200] sm:$0xff]   ;;  %v10820_v8 = vld [vmem:[%s11468_s21 + $0x230] sm:$0xff]  }
  0x25   : > { %9492 = vmatpush3.bf16.msra.mxu1 %v10766_v22  ;;  %9465 = vmatprep.subr.bf16.mxu0 %v10767_v23  ;;  %v10821_v9 = vld [vmem:[%s11468_s21 + $0x1c0] sm:$0xff]   ;;  %v10822_v10 = vld [vmem:[%s11468_s21 + $0x208] sm:$0xff]   ;;  %v10823_v11 = vld [vmem:[%s11468_s21 + $0x238] sm:$0xff]  }
  0x26   : > { %9493 = vmatprep.subr.bf16.mxu1 %v10768_v24  ;;  %v10824_v12 = vld [vmem:[%s11468_s21 + $0x1c8] sm:$0xff]   ;;  %v10825_v13 = vld [vmem:[%s11468_s21 + $0x210] sm:$0xff]   ;;  %v10826_v14 = vld [vmem:[%s11468_s21 + $0x240] sm:$0xff]  }
  0x27   : > { %v10827_v15 = vld [vmem:[%s11468_s21 + $0x1d0] sm:$0xff]   ;;  %v10828_v16 = vld [vmem:[%s11468_s21 + $0x218] sm:$0xff]   ;;  %v10829_v17 = vld [vmem:[%s11468_s21 + $0x248] sm:$0xff]  }
  0x28   : > { %9466 = vmatpush3.bf16.msra.mxu0 %v10769_v25  ;;  %v10830_v18 = vld [vmem:[%s11468_s21 + $0x1d8] sm:$0xff]   ;;  %v10831_v19 = vld [vmem:[%s11468_s21 + $0x220] sm:$0xff]   ;;  %v10832_v20 = vld [vmem:[%s11468_s21 + $0x250] sm:$0xff]  }
  0x29   : > { %9494 = vmatpush3.bf16.msra.mxu1 %v10770_v26  ;;  %9467 = vmatprep.subr.bf16.mxu0 %v10771_v27  ;;  %v10833_v21 = vld [vmem:[%s11468_s21 + $0x1e0] sm:$0xff]   ;;  %v10834_v22 = vld [vmem:[%s11468_s21 + $0x228] sm:$0xff]   ;;  %v10835_v23 = vld [vmem:[%s11468_s21 + $0x258] sm:$0xff]  }
  0x2a   : > { %9495 = vmatprep.subr.bf16.mxu1 %v10772_v28  ;;  %v10836_v24 = vld [vmem:[%s11468_s21 + $0x1e8] sm:$0xff]   ;;  %v10837_v25 = vld [vmem:[%s11468_s21 + $0x2a0] sm:$0xff]  }
  0x2b   : > { %v10838_v26 = vld [vmem:[%s11468_s21 + $0x320] sm:$0xff]  }
  0x2c   : > { %9468 = vmatpush3.bf16.msra.mxu0 %v10773_v29  ;;  %v10839_v27 = vld [vmem:[%s11468_s21 + $0x260] sm:$0xff]   ;;  %v10841_v29 = vld [vmem:[%s11468_s21 + $0x2a8] sm:$0xff]  }
  0x2d   : > { %9496 = vmatpush3.bf16.msra.mxu1 %v10774_v30  ;;  %9469 = vmatprep.subr.bf16.mxu0 %v10775_v31  ;;  %v10840_v28 = vld [vmem:[%s11468_s21 + $0x2e0] sm:$0xff]   ;;  %v10842_v30 = vld [vmem:[%s11468_s21 + $0x328] sm:$0xff]  }
  0x2e   : > { %9497 = vmatprep.subr.bf16.mxu1 %v10776_v32  ;;  %v10843_v31 = vld [vmem:[%s11468_s21 + $0x268] sm:$0xff]  }
  0x2f   : > { %v10844_v32 = vld [vmem:[%s11468_s21 + $0x2e8] sm:$0xff]  }
  0x30   : > { %9470 = vmatpush3.bf16.msra.mxu0 %v10777_v34  ;;  %v10845_v34 = vld [vmem:[%s11468_s21 + $0x2b0] sm:$0xff]  }
  0x31   : > { %9498 = vmatpush3.bf16.msra.mxu1 %v10778_v36  ;;  %10479 = vmatprep.subr.bf16.mxu0 %v10784_v37  ;;  %v10846_v36 = vld [vmem:[%s11468_s21 + $0x330] sm:$0xff]  }
  0x32   : > { %9519 = vmatprep.subr.bf16.mxu1 %v10785_v39  ;;  %v10848_v39 = vld [vmem:[%s11468_s21 + $0x2f0] sm:$0xff]  }
  0x33   : > { %602 = vmatmul.mubr.bf16.vlgmr.msra.gmra.mrb[0].mxu0 %v11503_v33 }
  0x34   : > { %651 = vmatmul.mubr.bf16.vlgmr.msra.gmra.mrb[0].mxu1 %v11509_v35  ;;  %10480 = vmatpush3.bf16.msra.mxu0 %v10784_v37  ;;  %v10847_v37 = vld [vmem:[%s11468_s21 + $0x270] sm:$0xff]  }
  0x35   : > { %9520 = vmatpush3.bf16.msra.mxu1 %v10787_v41  ;;  %10481 = vmatprep.subr.bf16.mxu0 %v10788_v42  ;;  %v10849_v41 = vld [vmem:[%s11468_s21 + $0x2b8] sm:$0xff]  }
  0x36   : > { %9521 = vmatprep.subr.bf16.mxu1 %v10789_v43  ;;  %609 = vmatprep.mubr.bf16.mxu0 %v11516_v38  ;;  %v10851_v43 = vld [vmem:[%s11468_s21 + $0x278] sm:$0xff]  }
  0x37   : > { %658 = vmatprep.mubr.bf16.mxu1 %v11522_v40 }
  0x38   : > { %10482 = vmatpush3.bf16.msra.mxu0 %v10788_v42  ;;  %v10850_v42 = vld [vmem:[%s11468_s21 + $0x338] sm:$0xff]  }
  0x39   : > { %9522 = vmatpush3.bf16.msra.mxu1 %v10790_v44  ;;  %10483 = vmatprep.subr.bf16.mxu0 %v10791_v46  ;;  %v10852_v44 = vld [vmem:[%s11468_s21 + $0x2f8] sm:$0xff]  }
  0x3a   : > { %9523 = vmatprep.subr.bf16.mxu1 %v10792_v48  ;;  %v10855_v48 = vld [vmem:[%s11468_s21 + $0x280] sm:$0xff]  }
  0x3b   : > { %610 = vmatmul.mubr.bf16.gmra.mrb[4].mxu0 %v11533_v45 }
  0x3c   : > { %10484 = vmatpush3.bf16.msra.mxu0 %v10791_v46  ;;  %659 = vmatmul.mubr.bf16.gmra.mrb[4].mxu1 %v11540_v47  ;;  %v10853_v46 = vld [vmem:[%s11468_s21 + $0x2c0] sm:$0xff]  }
  0x3d   : > { %9524 = vmatpush3.bf16.msra.mxu1 %v10793_v49  ;;  %10485 = vmatprep.subr.bf16.mxu0 %v10794_v51  ;;  %v10856_v49 = vld [vmem:[%s11468_s21 + $0x300] sm:$0xff]  }
  0x3e   : > { %9525 = vmatprep.subr.bf16.mxu1 %v10795_v52  ;;  %10491 = vmatprep.mubr.msk.bf16.mxu0 %vm562_vm0, %v11548_v50  ;;  %v10858_v52 = vld [vmem:[%s11468_s21 + $0x348] sm:$0xff]  }
  0x3f   : > { %1057 = vmatprep.mubr.bf16.mxu1 %v11453_v0 }
  0x40   : > { %10486 = vmatpush3.bf16.msra.mxu0 %v10794_v51  ;;  %v10857_v51 = vld [vmem:[%s11468_s21 + $0x2c8] sm:$0xff]  }
  0x41   : > { %9526 = vmatpush3.bf16.msra.mxu1 %v10798_v53  ;;  %10487 = vmatprep.subr.bf16.mxu0 %v10803_v54  ;;  %v10859_v53 = vld [vmem:[%s11468_s21 + $0x288] sm:$0xff]  }
  0x42   : > { %9527 = vmatprep.subr.bf16.mxu1 %v10804_v55  ;;  %v10861_v55 = vld [vmem:[%s11468_s21 + $0x2d0] sm:$0xff]  }
  0x44   : > { %10488 = vmatpush3.bf16.msra.mxu0 %v10803_v54  ;;  %v10860_v54 = vld [vmem:[%s11468_s21 + $0x308] sm:$0xff]  }
  0x45   : > { %9528 = vmatpush3.bf16.msra.mxu1 %v10805_v56  ;;  %10489 = vmatprep.subr.bf16.mxu0 %v10806_v57  ;;  %v10862_v56 = vld [vmem:[%s11468_s21 + $0x350] sm:$0xff]  }
  0x46   : > { %9529 = vmatprep.subr.bf16.mxu1 %v10807_v58  ;;  %v185_v58 = vld [vmem:[%s12867_s2 + $0x8] sm:$0xff] }
  0x48   : > { %10490 = vmatpush3.bf16.msra.mxu0 %v10806_v57  ;;  %v10863_v57 = vld [vmem:[%s11468_s21 + $0x290] sm:$0xff]  }
  0x49   : > { %9530 = vmatpush3.bf16.msra.mxu1 %v10808_v59  ;;  %9547 = vmatprep.subr.bf16.mxu0 %v10812_v61  ;;  %v10864_v59 = vld [vmem:[%s11468_s21 + $0x310] sm:$0xff]   ;;  %v10865_v61 = vld [vmem:[%s11468_s21 + $0x2d8] sm:$0xff]  }
  0x4a   : > { %9531 = vmatprep.subr.bf16.mxu1 %v10811_v62  ;;  %v10866_v62 = vld [vmem:[%s11468_s21 + $0x358] sm:$0xff]  }
  0x4b   : > { %10492 = vmatmul.mubr.msk.bf16.vlgmr.msra.gmra.mrb[8].mxu0 %vm562_vm0, %v11567_v60 }
  0x4c   : > { %9548 = vmatpush3.bf16.msra.mxu0 %v10814_v2  ;;  %1106 = vmatprep.mubr.bf16.mxu0 %v11461_v1  ;;  %v10868_v2 = vld [vmem:[%s11468_s21 + $0x318] sm:$0xff]  }
  0x4d   : > { %9532 = vmatpush3.bf16.msra.mxu1 %v10813_v63  ;;  %9549 = vmatprep.subr.bf16.mxu0 %v10816_v3  ;;  %v10867_v63 = vld [vmem:[%s11468_s21 + $0x298] sm:$0xff]   ;;  %v10869_v3 = vld [vmem:[%s11468_s21 + $0x360] sm:$0xff]  }
  0x4e   : > { %9533 = vmatprep.subr.bf16.mxu1 %v10815_v4  ;;  %v10870_v4 = vld [vmem:[%s11468_s21 + $0x3d0] sm:$0xff]  }
  0x50   : > { %9550 = vmatpush3.bf16.msra.mxu0 %v10818_v6  ;;  %v10871_v6 = vld [vmem:[%s11468_s21 + $0x390] sm:$0xff]  }
  0x51   : > { %9534 = vmatpush3.bf16.msra.mxu1 %v10817_v5  ;;  %9551 = vmatprep.subr.bf16.mxu0 %v10819_v7  ;;  %v186_v5 = vld [vmem:[%s12867_s2 + $0x10] sm:$0xff]  ;;  %v10872_v7 = vld [vmem:[%s11468_s21 + $0x368] sm:$0xff]  }
  0x52   : > { %10495 = vmatprep.subr.bf16.mxu1 %v10820_v8  ;;  %276 = vperm.xlu1 %10746, %v186_v5   ;;  %v10924_v5 = vld [vmem:[%s11468_s21 + $0x550] sm:$0xff]  }
  0x54   : > { %1058 = vmatmul.mubr.bf16.vlgmr.msra.gmra.mrb[8].mxu1 %v11503_v33  ;;  %9552 = vmatpush3.bf16.msra.mxu0 %v10821_v9  ;;  %v10873_v9 = vld [vmem:[%s11468_s21 + $0x3d8] sm:$0xff]  }
  0x55   : > { %10496 = vmatpush3.bf16.msra.mxu1 %v10820_v8  ;;  %9553 = vmatprep.subr.bf16.mxu0 %v10822_v10  ;;  %v187_v8 = vld [vmem:[%s12867_s2 + $0x18] sm:$0xff] }
  0x56   : > { %10497 = vmatprep.subr.bf16.mxu1 %v10823_v11  ;;  %1065 = vmatprep.mubr.bf16.mxu1 %v11516_v38  ;;  %v10874_v10 = vld [vmem:[%s11468_s21 + $0x398] sm:$0xff]  }
  0x57   : > { %281 = vperm.xlu1 %10746, %v187_v8   ;;  %v11782_v8 = vld [vmem:[%s12866_s1 + $0x30] ss:$20 sps:$4 sm:$0xff]  }
  0x58   : > { %9554 = vmatpush3.bf16.msra.mxu0 %v10824_v12  ;;  %v10876_v12 = vld [vmem:[%s11468_s21 + $0x3e0] sm:$0xff]  }
  0x59   : > { %10498 = vmatpush3.bf16.msra.mxu1 %v10823_v11  ;;  %9555 = vmatprep.subr.bf16.mxu0 %v10825_v13  ;;  %v10875_v11 = vld [vmem:[%s11468_s21 + $0x370] sm:$0xff]   ;;  %v10879_v13 = vld [vmem:[%s11468_s21 + $0x3e8] sm:$0xff]  }
  0x5a   : > { %10499 = vmatprep.subr.bf16.mxu1 %v10826_v14 }
  0x5c   : > { %9556 = vmatpush3.bf16.msra.mxu0 %v10827_v15  ;;  %1066 = vmatmul.mubr.bf16.gmra.mrb[12].mxu1 %v11533_v45  ;;  %v10884_v15 = vld [vmem:[%s11468_s21 + $0x388] sm:$0xff]  }
  0x5d   : > { %10500 = vmatpush3.bf16.msra.mxu1 %v10826_v14  ;;  %9557 = vmatprep.subr.bf16.mxu0 %v10828_v16  ;;  %v10880_v14 = vld [vmem:[%s11468_s21 + $0x3a8] sm:$0xff]   ;;  %v10885_v16 = vld [vmem:[%s11468_s21 + $0x3f8] sm:$0xff]  }
  0x5e   : > { %10501 = vmatprep.subr.bf16.mxu1 %v10829_v17  ;;  %10507 = vmatprep.mubr.msk.bf16.mxu1 %vm562_vm0, %v11548_v50 }
  0x60   : > { %9558 = vmatpush3.bf16.msra.mxu0 %v10830_v18  ;;  %v10887_v18 = vld [vmem:[%s11468_s21 + $0x400] sm:$0xff]  }
  0x61   : > { %10502 = vmatpush3.bf16.msra.mxu1 %v10829_v17  ;;  %9559 = vmatprep.subr.bf16.mxu0 %v10831_v19  ;;  %v10888_v17 = vld [vmem:[%s11468_s21 + $0x450] sm:$0xff]   ;;  %v10889_v19 = vld [vmem:[%s11468_s21 + $0x3c0] sm:$0xff]  }
  0x62   : > { %10503 = vmatprep.subr.bf16.mxu1 %v10832_v20 }
  0x64   : > { %9560 = vmatpush3.bf16.msra.mxu0 %v10833_v21  ;;  %v10892_v21 = vld [vmem:[%s11468_s21 + $0x458] sm:$0xff]  }
  0x65   : > { %10504 = vmatpush3.bf16.msra.mxu1 %v10832_v20  ;;  %9561 = vmatprep.subr.bf16.mxu0 %v10834_v22  ;;  %v10890_v20 = vld [vmem:[%s11468_s21 + $0x410] sm:$0xff]   ;;  %v10891_v22 = vld [vmem:[%s11468_s21 + $0x408] sm:$0xff]  }
  0x66   : > { %10505 = vmatprep.subr.bf16.mxu1 %v10835_v23 }
  0x68   : > { %9562 = vmatpush3.bf16.msra.mxu0 %v10836_v24  ;;  %v10894_v24 = vld [vmem:[%s11468_s21 + $0x418] sm:$0xff]  }
  0x69   : > { %10506 = vmatpush3.bf16.msra.mxu1 %v10835_v23  ;;  %9583 = vmatprep.subr.bf16.mxu0 %v10837_v25  ;;  %v10893_v23 = vld [vmem:[%s11468_s21 + $0x3c8] sm:$0xff]  }
  0x6a   : > { %9611 = vmatprep.subr.bf16.mxu1 %v10838_v26  ;;  %v11699_v25 = vld [vmem:[%s12866_s1 + $0xc] ss:$20 sps:$4 sm:$0xff]  }
  0x6b   : > { %1107 = vmatmul.mubr.bf16.vlgmr.msra.gmra.mrb[12].mxu0 %v11509_v35  ;;  %v10895_v26 = vld [vmem:[%s11468_s21 + $0x460] sm:$0xff]  }
  0x6c   : > { %10508 = vmatmul.mubr.msk.bf16.vlgmr.msra.gmra.mrb[16].mxu1 %vm562_vm0, %v11567_v60  ;;  %9584 = vmatpush3.bf16.msra.mxu0 %v10839_v27  ;;  %v10896_v27 = vld [vmem:[%s11468_s21 + $0x490] sm:$0xff]  }
  0x6d   : > { %9612 = vmatpush3.bf16.msra.mxu1 %v10840_v28  ;;  %9585 = vmatprep.subr.bf16.mxu0 %v10841_v29  ;;  %v10898_v28 = vld [vmem:[%s11468_s21 + $0x468] sm:$0xff]   ;;  %v10899_v29 = vld [vmem:[%s11468_s21 + $0x498] sm:$0xff]  }
  0x6e   : > { %9613 = vmatprep.subr.bf16.mxu1 %v10842_v30  ;;  %1114 = vmatprep.mubr.bf16.mxu0 %v11522_v40  ;;  %v11710_v30 = vld [vmem:[%s12866_s1] ss:$20 sps:$4 sm:$0xff]  }
  0x6f   : > { %1562 = vmatprep.mubr.bf16.mxu1 %v11461_v1  ;;  %v10854_v1 = vld [vmem:[%s11468_s21 + $0x340] sm:$0xff]  }
  0x70   : > { %9586 = vmatpush3.bf16.msra.mxu0 %v10843_v31  ;;  %v10900_v31 = vld [vmem:[%s11468_s21 + $0x428] sm:$0xff]  }
  0x71   : > { %9614 = vmatpush3.bf16.msra.mxu1 %v10844_v32  ;;  %9587 = vmatprep.subr.bf16.mxu0 %v10845_v34  ;;  %v10901_v32 = vld [vmem:[%s11468_s21 + $0x470] sm:$0xff]   ;;  %v10902_v34 = vld [vmem:[%s11468_s21 + $0x4a0] sm:$0xff]  }
  0x72   : > { %9615 = vmatprep.subr.bf16.mxu1 %v10846_v36  ;;  %v11719_v36 = vld [vmem:[%s12866_s1 + $0x2c] ss:$20 sps:$4 sm:$0xff]  }
  0x73   : > { %1115 = vmatmul.mubr.bf16.gmra.mrb[16].mxu0 %v11540_v47 }
  0x74   : > { %9588 = vmatpush3.bf16.msra.mxu0 %v10847_v37  ;;  %1513 = vmatprep.mubr.bf16.mxu0 %v11453_v0  ;;  %v184_v0 = vld [vmem:[%s12867_s2] sm:$0xff]  ;;  %v10903_v37 = vld [vmem:[%s11468_s21 + $0x430] sm:$0xff]  }
  0x75   : > { %9616 = vmatpush3.bf16.msra.mxu1 %v10848_v39  ;;  %9589 = vmatprep.subr.bf16.mxu0 %v10849_v41  ;;  %v10904_v39 = vld [vmem:[%s11468_s21 + $0x478] sm:$0xff]   ;;  %v10905_v41 = vld [vmem:[%s11468_s21 + $0x4a8] sm:$0xff]  }
  0x76   : > { %9617 = vmatprep.subr.bf16.mxu1 %v10850_v42  ;;  %266 = vperm.xlu0 %10745, %v184_v0   ;;  %v10906_v42 = vld [vmem:[%s11468_s21 + $0x438] sm:$0xff]   ;;  %v10914_v0 = vld [vmem:[%s11468_s21 + $0x580] sm:$0xff]  }
  0x78   : > { %9590 = vmatpush3.bf16.msra.mxu0 %v10851_v43  ;;  %v11729_v43 = vld [vmem:[%s12866_s1 + $0x28] ss:$20 sps:$4 sm:$0xff]  }
  0x79   : > { %9618 = vmatpush3.bf16.msra.mxu1 %v10852_v44  ;;  %9591 = vmatprep.subr.bf16.mxu0 %v10853_v46  ;;  %v10907_v44 = vld [vmem:[%s11468_s21 + $0x480] sm:$0xff]   ;;  %v10908_v46 = vld [vmem:[%s11468_s21 + $0x4b0] sm:$0xff]  }
  0x7a   : > { %9619 = vmatprep.subr.bf16.mxu1 %v10854_v1  ;;  %271 = vperm.xlu0 %10745, %v185_v58   ;;  %v11737_v1 = vld [vmem:[%s12866_s1 + $0x10] ss:$20 sps:$4 sm:$0xff]   ;;  %v11754_v58 = vld [vmem:[%s12866_s1 + $0x8] ss:$20 sps:$4 sm:$0xff]  }
  0x7c   : > { %9592 = vmatpush3.bf16.msra.mxu0 %v10855_v48  ;;  %v10909_v48 = vld [vmem:[%s11468_s21 + $0x440] sm:$0xff]  }
  0x7d   : > { %9620 = vmatpush3.bf16.msra.mxu1 %v10856_v49  ;;  %9593 = vmatprep.subr.bf16.mxu0 %v10857_v51  ;;  %v10910_v49 = vld [vmem:[%s11468_s21 + $0x488] sm:$0xff]   ;;  %v10911_v51 = vld [vmem:[%s11468_s21 + $0x4b8] sm:$0xff]  }
  0x7e   : > { %9621 = vmatprep.subr.bf16.mxu1 %v10858_v52  ;;  %v10912_v52 = vld [vmem:[%s11468_s21 + $0x448] sm:$0xff]  }
  0x80   : > { %9594 = vmatpush3.bf16.msra.mxu0 %v10859_v53  ;;  %v10913_v53 = vld [vmem:[%s11468_s21 + $0x500] sm:$0xff]  }
  0x81   : > { %9622 = vmatpush3.bf16.msra.mxu1 %v10860_v54  ;;  %9595 = vmatprep.subr.bf16.mxu0 %v10861_v55  ;;  %v10915_v54 = vld [vmem:[%s11468_s21 + $0x4c0] sm:$0xff]  }
  0x82   : > { %9623 = vmatprep.subr.bf16.mxu1 %v10862_v56  ;;  %v10916_v55 = vld [vmem:[%s11468_s21 + $0x540] sm:$0xff]   ;;  %v10917_v56 = vld [vmem:[%s11468_s21 + $0x508] sm:$0xff]  }
  0x84   : > { %9596 = vmatpush3.bf16.msra.mxu0 %v10863_v57  ;;  %v10918_v57 = vld [vmem:[%s11468_s21 + $0x588] sm:$0xff]  }
  0x85   : > { %9624 = vmatpush3.bf16.msra.mxu1 %v10864_v59  ;;  %9597 = vmatprep.subr.bf16.mxu0 %v10865_v61  ;;  %v10919_v59 = vld [vmem:[%s11468_s21 + $0x4c8] sm:$0xff]  }
  0x86   : > { %9625 = vmatprep.subr.bf16.mxu1 %v10866_v62  ;;  %v11761_v61 = vld [vmem:[%s12866_s1 + $0x38] ss:$20 sps:$4 sm:$0xff]  }
  0x87   : > { %v10920_v62 = vld [vmem:[%s11468_s21 + $0x548] sm:$0xff]  }
  0x88   : > { %9598 = vmatpush3.bf16.msra.mxu0 %v10867_v63  ;;  %v10921_v63 = vld [vmem:[%s11468_s21 + $0x510] sm:$0xff]  }
  0x89   : > { %9626 = vmatpush3.bf16.msra.mxu1 %v10868_v2  ;;  %10511 = vmatprep.subr.bf16.mxu0 %v10869_v3  ;;  %v11770_v2 = vld [vmem:[%s12866_s1 + $0x34] ss:$20 sps:$4 sm:$0xff]  }
  0x8a   : > { %9647 = vmatprep.subr.bf16.mxu1 %v10870_v4  ;;  %v10923_v4 = vld [vmem:[%s11468_s21 + $0x4d0] sm:$0xff]  }
  0x8b   : > { %1514 = vmatmul.mubr.bf16.vlgmr.msra.gmra.mrb[20].mxu0 %v11503_v33  ;;  %v10877_v33 = vld [vmem:[%s11468_s21 + $0x3a0] sm:$0xff]  }
  0x8c   : > { %1563 = vmatmul.mubr.bf16.vlgmr.msra.gmra.mrb[20].mxu1 %v11509_v35  ;;  %10512 = vmatpush3.bf16.msra.mxu0 %v10869_v3  ;;  %v10878_v35 = vld [vmem:[%s11468_s21 + $0x378] sm:$0xff]   ;;  %v10922_v3 = vld [vmem:[%s11468_s21 + $0x590] sm:$0xff]  }
  0x8d   : > { %9648 = vmatpush3.bf16.msra.mxu1 %v10871_v6  ;;  %10513 = vmatprep.subr.bf16.mxu0 %v10872_v7  ;;  %v10925_v6 = vld [vmem:[%s11468_s21 + $0x518] sm:$0xff]  }
  0x8e   : > { %9649 = vmatprep.subr.bf16.mxu1 %v10873_v9  ;;  %1521 = vmatprep.mubr.bf16.mxu0 %v11516_v38  ;;  %v10881_v38 = vld [vmem:[%s11468_s21 + $0x380] sm:$0xff]   ;;  %v10927_v9 = vld [vmem:[%s11468_s21 + $0x4d8] sm:$0xff]  }
  0x8f   : > { %1570 = vmatprep.mubr.bf16.mxu1 %v11522_v40  ;;  %v10882_v40 = vld [vmem:[%s11468_s21 + $0x3f0] sm:$0xff]  }
  0x90   : > { %10514 = vmatpush3.bf16.msra.mxu0 %v10872_v7  ;;  %v10926_v7 = vld [vmem:[%s11468_s21 + $0x598] sm:$0xff]  }
  0x91   : > { %9650 = vmatpush3.bf16.msra.mxu1 %v10874_v10  ;;  %10515 = vmatprep.subr.bf16.mxu0 %v10875_v11  ;;  %v10928_v10 = vld [vmem:[%s11468_s21 + $0x558] sm:$0xff]  }
  0x92   : > { %9651 = vmatprep.subr.bf16.mxu1 %v10876_v12  ;;  %v10930_v12 = vld [vmem:[%s11468_s21 + $0x5a0] sm:$0xff]  }
  0x93   : > { %1522 = vmatmul.mubr.bf16.gmra.mrb[24].mxu0 %v11533_v45  ;;  %v11679_v45 = vld [vmem:[%s12866_s1 + $0x4] ss:$20 sps:$4 sm:$0xff]  }
  0x94   : > { %10516 = vmatpush3.bf16.msra.mxu0 %v10875_v11  ;;  %1571 = vmatmul.mubr.bf16.gmra.mrb[24].mxu1 %v11540_v47  ;;  %v10883_v47 = vld [vmem:[%s11468_s21 + $0x3b0] sm:$0xff]   ;;  %v10929_v11 = vld [vmem:[%s11468_s21 + $0x520] sm:$0xff]  }
  0x95   : > { %9652 = vmatpush3.bf16.msra.mxu1 %v10877_v33  ;;  %10517 = vmatprep.subr.bf16.mxu0 %v10878_v35  ;;  %v10931_v33 = vld [vmem:[%s11468_s21 + $0x4e0] sm:$0xff]  }
  0x96   : > { %9653 = vmatprep.subr.bf16.mxu1 %v10879_v13  ;;  %10523 = vmatprep.mubr.msk.bf16.mxu0 %vm562_vm0, %v11548_v50  ;;  %v10886_v50 = vld [vmem:[%s11468_s21 + $0x3b8] sm:$0xff]   ;;  %v10933_v13 = vld [vmem:[%s11468_s21 + $0x528] sm:$0xff]  }
  0x97   : > { %1969 = vmatprep.mubr.bf16.mxu1 %v11679_v45 }
  0x98   : > { %10518 = vmatpush3.bf16.msra.mxu0 %v10878_v35  ;;  %v10932_v35 = vld [vmem:[%s11468_s21 + $0x560] sm:$0xff]  }
  0x99   : > { %9654 = vmatpush3.bf16.msra.mxu1 %v10880_v14  ;;  %10519 = vmatprep.subr.bf16.mxu0 %v10881_v38  ;;  %v10934_v14 = vld [vmem:[%s11468_s21 + $0x5a8] sm:$0xff]  }
  0x9a   : > { %9655 = vmatprep.subr.bf16.mxu1 %v10882_v40  ;;  %v10936_v40 = vld [vmem:[%s11468_s21 + $0x568] sm:$0xff]  }
  0x9c   : > { %10520 = vmatpush3.bf16.msra.mxu0 %v10881_v38  ;;  %v10935_v38 = vld [vmem:[%s11468_s21 + $0x4e8] sm:$0xff]  }
  0x9d   : > { %9656 = vmatpush3.bf16.msra.mxu1 %v10883_v47  ;;  %10521 = vmatprep.subr.bf16.mxu0 %v10884_v15  ;;  %v10937_v47 = vld [vmem:[%s11468_s21 + $0x530] sm:$0xff]  }
  0x9e   : > { %9657 = vmatprep.subr.bf16.mxu1 %v10885_v16  ;;  %v10939_v16 = vld [vmem:[%s11468_s21 + $0x4f0] sm:$0xff]  }
  0xa0   : > { %10522 = vmatpush3.bf16.msra.mxu0 %v10884_v15  ;;  %v10938_v15 = vld [vmem:[%s11468_s21 + $0x5b0] sm:$0xff]  }
  0xa1   : > { %9658 = vmatpush3.bf16.msra.mxu1 %v10886_v50  ;;  %9675 = vmatprep.subr.bf16.mxu0 %v10888_v17  ;;  %v10940_v50 = vld [vmem:[%s11468_s21 + $0x570] sm:$0xff]   ;;  %v10941_v17 = vld [vmem:[%s11468_s21 + $0x538] sm:$0xff]  }
  0xa2   : > { %9659 = vmatprep.subr.bf16.mxu1 %v10887_v18  ;;  %v10942_v18 = vld [vmem:[%s11468_s21 + $0x5b8] sm:$0xff]  }
  0xa3   : > { %10524 = vmatmul.mubr.msk.bf16.vlgmr.msra.gmra.mrb[28].mxu0 %vm562_vm0, %v11567_v60  ;;  %v10897_v60 = vld [vmem:[%s11468_s21 + $0x420] sm:$0xff]  }
  0xa4   : > { %9676 = vmatpush3.bf16.msra.mxu0 %v10890_v20  ;;  %2018 = vmatprep.mubr.bf16.mxu0 %v11699_v25  ;;  %v10944_v20 = vld [vmem:[%s11468_s21 + $0x578] sm:$0xff]  }
  0xa5   : > { %9660 = vmatpush3.bf16.msra.mxu1 %v10889_v19  ;;  %9677 = vmatprep.subr.bf16.mxu0 %v10892_v21  ;;  %v10943_v19 = vld [vmem:[%s11468_s21 + $0x4f8] sm:$0xff]   ;;  %v10945_v21 = vld [vmem:[%s11468_s21 + $0x5c0] sm:$0xff]  }
  0xa6   : > { %9661 = vmatprep.subr.bf16.mxu1 %v10891_v22  ;;  %v10946_v22 = vld [vmem:[%s11468_s21 + $0x630] sm:$0xff]  }
  0xa8   : > { %9678 = vmatpush3.bf16.msra.mxu0 %v10894_v24  ;;  %v10948_v24 = vld [vmem:[%s11468_s21 + $0x5c8] sm:$0xff]  }
  0xa9   : > { %9662 = vmatpush3.bf16.msra.mxu1 %v10893_v23  ;;  %9679 = vmatprep.subr.bf16.mxu0 %v10895_v26  ;;  %v10947_v23 = vld [vmem:[%s11468_s21 + $0x5f0] sm:$0xff]   ;;  %v10949_v26 = vld [vmem:[%s11468_s21 + $0x638] sm:$0xff]  }
  0xaa   : > { %10527 = vmatprep.subr.bf16.mxu1 %v10896_v27 }
  0xac   : > { %1970 = vmatmul.mubr.bf16.vlgmr.msra.gmra.mrb[28].mxu1 %v11710_v30  ;;  %9680 = vmatpush3.bf16.msra.mxu0 %v10897_v60  ;;  %v10951_v60 = vld [vmem:[%s11468_s21 + $0x5d0] sm:$0xff]  }
  0xad   : > { %10528 = vmatpush3.bf16.msra.mxu1 %v10896_v27  ;;  %9681 = vmatprep.subr.bf16.mxu0 %v10898_v28  ;;  %v10950_v27 = vld [vmem:[%s11468_s21 + $0x5f8] sm:$0xff]   ;;  %v10952_v28 = vld [vmem:[%s11468_s21 + $0x640] sm:$0xff]  }
  0xae   : > { %10529 = vmatprep.subr.bf16.mxu1 %v10899_v29  ;;  %1977 = vmatprep.mubr.bf16.mxu1 %v11719_v36 }
  0xb0   : > { %9682 = vmatpush3.bf16.msra.mxu0 %v10900_v31  ;;  %v10954_v31 = vld [vmem:[%s11468_s21 + $0x5d8] sm:$0xff]  }
  0xb1   : > { %10530 = vmatpush3.bf16.msra.mxu1 %v10899_v29  ;;  %9683 = vmatprep.subr.bf16.mxu0 %v10901_v32  ;;  %v10953_v29 = vld [vmem:[%s11468_s21 + $0x600] sm:$0xff]   ;;  %v10955_v32 = vld [vmem:[%s11468_s21 + $0x648] sm:$0xff]  }
  0xb2   : > { %10531 = vmatprep.subr.bf16.mxu1 %v10902_v34 }
  0xb4   : > { %9684 = vmatpush3.bf16.msra.mxu0 %v10903_v37  ;;  %1978 = vmatmul.mubr.bf16.gmra.mrb[32].mxu1 %v11729_v43  ;;  %v10957_v37 = vld [vmem:[%s11468_s21 + $0x5e0] sm:$0xff]  }
  0xb5   : > { %10532 = vmatpush3.bf16.msra.mxu1 %v10902_v34  ;;  %9685 = vmatprep.subr.bf16.mxu0 %v10904_v39  ;;  %v10956_v34 = vld [vmem:[%s11468_s21 + $0x608] sm:$0xff]   ;;  %v10958_v39 = vld [vmem:[%s11468_s21 + $0x650] sm:$0xff]  }
  0xb6   : > { %10533 = vmatprep.subr.bf16.mxu1 %v10905_v41  ;;  %10539 = vmatprep.mubr.msk.bf16.mxu1 %vm562_vm0, %v11737_v1 }
  0xb8   : > { %9686 = vmatpush3.bf16.msra.mxu0 %v10906_v42  ;;  %v10960_v42 = vld [vmem:[%s11468_s21 + $0x5e8] sm:$0xff]  }
  0xb9   : > { %10534 = vmatpush3.bf16.msra.mxu1 %v10905_v41  ;;  %9687 = vmatprep.subr.bf16.mxu0 %v10907_v44  ;;  %v10959_v41 = vld [vmem:[%s11468_s21 + $0x610] sm:$0xff]   ;;  %v10961_v44 = vld [vmem:[%s11468_s21 + $0x658] sm:$0xff]  }
  0xba   : > { %10535 = vmatprep.subr.bf16.mxu1 %v10908_v46 }
  0xbc   : > { %9688 = vmatpush3.bf16.msra.mxu0 %v10909_v48  ;;  %v10964_v48 = vld [vmem:[%s11468_s21 + $0x6b0] sm:$0xff]  }
  0xbd   : > { %10536 = vmatpush3.bf16.msra.mxu1 %v10908_v46  ;;  %9689 = vmatprep.subr.bf16.mxu0 %v10910_v49  ;;  %v10962_v46 = vld [vmem:[%s11468_s21 + $0x618] sm:$0xff]   ;;  %v10963_v49 = vld [vmem:[%s11468_s21 + $0x660] sm:$0xff]  }
  0xbe   : > { %10537 = vmatprep.subr.bf16.mxu1 %v10911_v51 }
  0xc0   : > { %9690 = vmatpush3.bf16.msra.mxu0 %v10912_v52  ;;  %v10968_v52 = vld [vmem:[%s11468_s21 + $0x6b8] sm:$0xff]  }
  0xc1   : > { %10538 = vmatpush3.bf16.msra.mxu1 %v10911_v51  ;;  %9711 = vmatprep.subr.bf16.mxu0 %v10913_v53  ;;  %v10966_v51 = vld [vmem:[%s11468_s21 + $0x670] sm:$0xff]   ;;  %v10967_v53 = vld [vmem:[%s11468_s21 + $0x668] sm:$0xff]  }
  0xc2   : > { %9739 = vmatprep.subr.bf16.mxu1 %v10914_v0  ;;  %v10969_v0 = vld [vmem:[%s11468_s21 + $0x628] sm:$0xff]  }
  0xc3   : > { %2019 = vmatmul.mubr.bf16.vlgmr.msra.gmra.mrb[32].mxu0 %v11754_v58 }
  0xc4   : > { %10540 = vmatmul.mubr.msk.bf16.vlgmr.msra.gmra.mrb[36].mxu1 %vm562_vm0, %v11761_v61  ;;  %9712 = vmatpush3.bf16.msra.mxu0 %v10915_v54  ;;  %v10970_v54 = vld [vmem:[%s11468_s21 + $0x678] sm:$0xff]  }
  0xc5   : > { %9740 = vmatpush3.bf16.msra.mxu1 %v10916_v55  ;;  %9713 = vmatprep.subr.bf16.mxu0 %v10917_v56  ;;  %v10971_v55 = vld [vmem:[%s11468_s21 + $0x6c0] sm:$0xff]   ;;  %v10972_v56 = vld [vmem:[%s11468_s21 + $0x6f0] sm:$0xff]  }
  0xc6   : > { %9741 = vmatprep.subr.bf16.mxu1 %v10918_v57  ;;  %2026 = vmatprep.mubr.bf16.mxu0 %v11770_v2 }
  0xc7   : > { %2474 = vmatprep.mubr.bf16.mxu1 %v11699_v25 }
  0xc8   : > { %9714 = vmatpush3.bf16.msra.mxu0 %v10919_v59  ;;  %v10973_v59 = vld [vmem:[%s11468_s21 + $0x680] sm:$0xff]  }
  0xc9   : > { %9742 = vmatpush3.bf16.msra.mxu1 %v10920_v62  ;;  %9715 = vmatprep.subr.bf16.mxu0 %v10921_v63  ;;  %v10974_v62 = vld [vmem:[%s11468_s21 + $0x6c8] sm:$0xff]   ;;  %v10975_v63 = vld [vmem:[%s11468_s21 + $0x6f8] sm:$0xff]  }
  0xca   : > { %9743 = vmatprep.subr.bf16.mxu1 %v10922_v3 }
  0xcb   : > { %2027 = vmatmul.mubr.bf16.gmra.mrb[36].mxu0 %v11782_v8 }
  0xcc   : > { %9716 = vmatpush3.bf16.msra.mxu0 %v10923_v4  ;;  %2425 = vmatprep.mubr.bf16.mxu0 %v11679_v45  ;;  %v10977_v4 = vld [vmem:[%s11468_s21 + $0x6d0] sm:$0xff]  }
  0xcd   : > { %9744 = vmatpush3.bf16.msra.mxu1 %v10924_v5  ;;  %9717 = vmatprep.subr.bf16.mxu0 %v10925_v6  ;;  %v10978_v6 = vld [vmem:[%s11468_s21 + $0x700] sm:$0xff]  }
  0xce   : > { %9745 = vmatprep.subr.bf16.mxu1 %v10926_v7 }
  0xd0   : > { %9718 = vmatpush3.bf16.msra.mxu0 %v10927_v9 }
  0xd1   : > { %9746 = vmatpush3.bf16.msra.mxu1 %v10928_v10  ;;  %9719 = vmatprep.subr.bf16.mxu0 %v10929_v11  ;;  %v11856_v7 = vpop.permute.xlu1 %276  ;;  %v10979_v11 = vld [vmem:[%s11468_s21 + $0x690] sm:$0xff]  }
  0xd2   : > { %9747 = vmatprep.subr.bf16.mxu1 %v10930_v12  ;;  %v10980_v12 = vld [vmem:[%s11468_s21 + $0x6d8] sm:$0xff]  }
  0xd4   : > { %9720 = vmatpush3.bf16.msra.mxu0 %v10931_v33 }
  0xd5   : > { %9748 = vmatpush3.bf16.msra.mxu1 %v10932_v35  ;;  %9721 = vmatprep.subr.bf16.mxu0 %v10933_v13 }
  0xd6   : > { %9749 = vmatprep.subr.bf16.mxu1 %v10934_v14 }
  0xd8   : > { %9722 = vmatpush3.bf16.msra.mxu0 %v10935_v38 }
  0xd9   : > { %9750 = vmatpush3.bf16.msra.mxu1 %v10936_v40  ;;  %9723 = vmatprep.subr.bf16.mxu0 %v10937_v47 }
  0xda   : > { %9751 = vmatprep.subr.bf16.mxu1 %v10938_v15  ;;  %v10981_v15 = vld [vmem:[%s11468_s21 + $0x708] sm:$0xff]  }
  0xdc   : > { %9724 = vmatpush3.bf16.msra.mxu0 %v10939_v16 }
  0xdd   : > { %9752 = vmatpush3.bf16.msra.mxu1 %v10940_v50  ;;  %9725 = vmatprep.subr.bf16.mxu0 %v10941_v17  ;;  %v10982_v50 = vld [vmem:[%s11468_s21 + $0x698] sm:$0xff]  }
  0xde   : > { %9753 = vmatprep.subr.bf16.mxu1 %v10942_v18 }
  0xe0   : > { %9726 = vmatpush3.bf16.msra.mxu0 %v10943_v19  ;;  %v10983_v19 = vld [vmem:[%s11468_s21 + $0x6e0] sm:$0xff]  }
  0xe1   : > { %9754 = vmatpush3.bf16.msra.mxu1 %v10944_v20  ;;  %10543 = vmatprep.subr.bf16.mxu0 %v10945_v21  ;;  %v10984_v20 = vld [vmem:[%s11468_s21 + $0x710] sm:$0xff]  }
  0xe2   : > { %9775 = vmatprep.subr.bf16.mxu1 %v10946_v22  ;;  %v11869_v22 = vpop.permute.xlu1 %281 }
  0xe3   : > { %2426 = vmatmul.mubr.bf16.vlgmr.msra.gmra.mrb[40].mxu0 %v11710_v30 }
  0xe4   : > { %2475 = vmatmul.mubr.bf16.vlgmr.msra.gmra.mrb[40].mxu1 %v11754_v58  ;;  %10544 = vmatpush3.bf16.msra.mxu0 %v10945_v21 }
  0xe5   : > { %9776 = vmatpush3.bf16.msra.mxu1 %v10947_v23  ;;  %10545 = vmatprep.subr.bf16.mxu0 %v10948_v24 }
  0xe6   : > { %9777 = vmatprep.subr.bf16.mxu1 %v10949_v26  ;;  %2433 = vmatprep.mubr.bf16.mxu0 %v11719_v36 }
  0xe7   : > { %2482 = vmatprep.mubr.bf16.mxu1 %v11770_v2 }
  0xe8   : > { %10546 = vmatpush3.bf16.msra.mxu0 %v10948_v24  ;;  %v10985_v24 = vld [vmem:[%s11468_s21 + $0x6a0] sm:$0xff]  }
  0xe9   : > { %9778 = vmatpush3.bf16.msra.mxu1 %v10950_v27  ;;  %10547 = vmatprep.subr.bf16.mxu0 %v10951_v60 }
  0xea   : > { %9779 = vmatprep.subr.bf16.mxu1 %v10952_v28 }
  0xeb   : > { %2434 = vmatmul.mubr.bf16.gmra.mrb[44].mxu0 %v11729_v43 }
  0xec   : > { %10548 = vmatpush3.bf16.msra.mxu0 %v10951_v60  ;;  %2483 = vmatmul.mubr.bf16.gmra.mrb[44].mxu1 %v11782_v8 }
  0xed   : > { %9780 = vmatpush3.bf16.msra.mxu1 %v10953_v29  ;;  %10549 = vmatprep.subr.bf16.mxu0 %v10954_v31 }
  0xee   : > { %9781 = vmatprep.subr.bf16.mxu1 %v10955_v32  ;;  %10555 = vmatprep.mubr.msk.bf16.mxu0 %vm562_vm0, %v11737_v1  ;;  %v10986_v32 = vld [vmem:[%s11468_s21 + $0x6e8] sm:$0xff]  }
  0xef   : > { %2881 = vmatprep.mubr.bf16.mxu1 %v11679_v45  ;;  %v10965_v45 = vld [vmem:[%s11468_s21 + $0x620] sm:$0xff]  }
  0xf0   : > { %10550 = vmatpush3.bf16.msra.mxu0 %v10954_v31 }
  0xf1   : > { %9782 = vmatpush3.bf16.msra.mxu1 %v10956_v34  ;;  %10551 = vmatprep.subr.bf16.mxu0 %v10957_v37 }
  0xf2   : > { %9783 = vmatprep.subr.bf16.mxu1 %v10958_v39  ;;  %v10987_v39 = vld [vmem:[%s11468_s21 + $0x718] sm:$0xff]  }
  0xf4   : > { %10552 = vmatpush3.bf16.msra.mxu0 %v10957_v37 }
  0xf5   : > { %9784 = vmatpush3.bf16.msra.mxu1 %v10959_v41  ;;  %10553 = vmatprep.subr.bf16.mxu0 %v10960_v42  ;;  %v11844_v57 = vpop.permute.xlu0 %266 }
  0xf6   : > { %9785 = vmatprep.subr.bf16.mxu1 %v10961_v44  ;;  %v10988_v44 = vld [vmem:[%s11468_s21 + $0x6a8] sm:$0xff]  }
  0xf8   : > { %10554 = vmatpush3.bf16.msra.mxu0 %v10960_v42 }
  0xf9   : > { %9786 = vmatpush3.bf16.msra.mxu1 %v10962_v46  ;;  %9803 = vmatprep.subr.bf16.mxu0 %v10964_v48  ;;  %v11851_v3 = vpop.permute.xlu0 %271 }
  0xfa   : > { %9787 = vmatprep.subr.bf16.mxu1 %v10963_v49  ;;  %v10989_v49 = vld [vmem:[%s11468_s21 + $0x760] sm:$0xff]  }
  0xfb   : > { %10556 = vmatmul.mubr.msk.bf16.vlgmr.msra.gmra.mrb[48].mxu0 %vm562_vm0, %v11761_v61 }
  0xfc   : > { %9804 = vmatpush3.bf16.msra.mxu0 %v10966_v51  ;;  %2930 = vmatprep.mubr.bf16.mxu0 %v11699_v25  ;;  %v10976_v25 = vld [vmem:[%s11468_s21 + $0x688] sm:$0xff]  }
  0xfd   : > { %9788 = vmatpush3.bf16.msra.mxu1 %v10965_v45  ;;  %9805 = vmatprep.subr.bf16.mxu0 %v10968_v52  ;;  %v10990_v45 = vld [vmem:[%s11468_s21 + $0x7e0] sm:$0xff]  }
  0xfe   : > { %9789 = vmatprep.subr.bf16.mxu1 %v10967_v53  ;;  %v10991_v52 = vld [vmem:[%s11468_s21 + $0x720] sm:$0xff]  }
  0xff   : > { %v10992_v53 = vld [vmem:[%s11468_s21 + $0x7a0] sm:$0xff]  }
 0x100   : > { %9806 = vmatpush3.bf16.msra.mxu0 %v10970_v54  ;;  %v10994_v54 = vld [vmem:[%s11468_s21 + $0x7e8] sm:$0xff]  }
 0x101   : > { %9790 = vmatpush3.bf16.msra.mxu1 %v10969_v0  ;;  %9807 = vmatprep.subr.bf16.mxu0 %v10971_v55  ;;  %v10993_v0 = vld [vmem:[%s11468_s21 + $0x768] sm:$0xff]  }
 0x102   : > { %10559 = vmatprep.subr.bf16.mxu1 %v10972_v56  ;;  %v10995_v55 = vld [vmem:[%s11468_s21 + $0x728] sm:$0xff]  }
 0x104   : > { %2882 = vmatmul.mubr.bf16.vlgmr.msra.gmra.mrb[48].mxu1 %v11710_v30  ;;  %9808 = vmatpush3.bf16.msra.mxu0 %v10973_v59  ;;  %v10997_v59 = vld [vmem:[%s11468_s21 + $0x770] sm:$0xff]  }
 0x105   : > { %10560 = vmatpush3.bf16.msra.mxu1 %v10972_v56  ;;  %9809 = vmatprep.subr.bf16.mxu0 %v10974_v62  ;;  %v10996_v56 = vld [vmem:[%s11468_s21 + $0x7a8] sm:$0xff]  }
 0x106   : > { %v9471_v5 = vpop.f32.mrb[0].mxu0  ;;  %10561 = vmatprep.subr.bf16.mxu1 %v10975_v63  ;;  %2889 = vmatprep.mubr.bf16.mxu1 %v11719_v36 }
 0x107   : > { %v9472_v9 = vpop.f32.mrb[1].mxu0  ;;  %v9499_v10 = vpop.f32.mrb[0].mxu1 }
 0x108   : > { %v9473_v30 = vadd.f32 %v9472_v9, %v9471_v5  ;;  %v9474_v33 = vpop.f32.mrb[2].mxu0  ;;  %9810 = vmatpush3.bf16.msra.mxu0 %v10976_v25  ;;  %v9500_v35 = vpop.f32.mrb[1].mxu1 }
 0x109   : > { %10562 = vmatpush3.bf16.msra.mxu1 %v10975_v63  ;;  %v9475_v13 = vpop.f32.mrb[3].mxu0  ;;  %v9501_v14 = vadd.f32 %v9500_v35, %v9499_v10  ;;  %v9502_v38 = vpop.f32.mrb[2].mxu1  ;;  %9811 = vmatprep.subr.bf16.mxu0 %v10977_v4  ;;  %v10998_v63 = vld [vmem:[%s11468_s21 + $0x7f0] sm:$0xff]   ;;  %v11004_v35 = vld [vmem:[%s11468_s21 + $0x7b8] sm:$0xff]  }
 0x10a   : > { %v604_v36 = vadd.f32 %v9473_v30, %v11844_v57  ;;  %v9476_v40 = vadd.f32 %v9475_v13, %v9474_v33  ;;  %v9503_v47 = vpop.f32.mrb[3].mxu1  ;;  %10563 = vmatprep.subr.bf16.mxu1 %v10978_v6  ;;  %v10999_v4 = vld [vmem:[%s11468_s21 + $0x730] sm:$0xff]   ;;  %v11003_v33 = vld [vmem:[%s11468_s21 + $0x738] sm:$0xff]   ;;  %v11005_v13 = vld [vmem:[%s11468_s21 + $0x780] sm:$0xff]  }
 0x10b   : > { %v9504_v16 = vadd.f32 %v9503_v47, %v9502_v38  ;;  %v11006_v38 = vld [vmem:[%s11468_s21 + $0x800] sm:$0xff]  }
 0x10c   : > { %9812 = vmatpush3.bf16.msra.mxu0 %v10979_v11  ;;  %2890 = vmatmul.mubr.bf16.gmra.mrb[52].mxu1 %v11729_v43  ;;  %v11864_v17 = vadd.f32 %v9501_v14, %v604_v36  ;;  %v607_v18 = vadd.f32 %v9476_v40, %v11851_v3  ;;  %v11001_v11 = vld [vmem:[%s11468_s21 + $0x778] sm:$0xff]   ;;  %v11007_v36 = vld [vmem:[%s11468_s21 + $0x740] sm:$0xff]  }
 0x10d   : > { %10564 = vmatpush3.bf16.msra.mxu1 %v10978_v6  ;;  %9813 = vmatprep.subr.bf16.mxu0 %v10980_v12  ;;  %v11000_v6 = vld [vmem:[%s11468_s21 + $0x7b0] sm:$0xff]   ;;  %v11002_v12 = vld [vmem:[%s11468_s21 + $0x7f8] sm:$0xff]   ;;  %v11008_v40 = vld [vmem:[%s11468_s21 + $0x7c0] sm:$0xff]  }
 0x10e   : > { %10565 = vmatprep.subr.bf16.mxu1 %v10981_v15  ;;  %v9477_v21 = vpop.f32.mrb[4].mxu0  ;;  %10571 = vmatprep.mubr.msk.bf16.mxu1 %vm562_vm0, %v11737_v1  ;;  %v11873_v23 = vadd.f32 %v9504_v16, %v607_v18  ;;  %v11922_v14 = vld [vmem:[%s12866_s1 + $0x4] ss:$20 sps:$4 sm:$0xff]  }
 0x10f   : > { %v9478_v43 = vpop.f32.mrb[5].mxu0  ;;  %v9505_v26 = vpop.f32.mrb[4].mxu1 }
 0x110   : > { %9814 = vmatpush3.bf16.msra.mxu0 %v10982_v50  ;;  %v9479_v27 = vadd.f32 %v9478_v43, %v9477_v21  ;;  %v9480_v60 = vpop.f32.mrb[6].mxu0  ;;  %v9506_v28 = vpop.f32.mrb[5].mxu1  ;;  %v11012_v21 = vld [vmem:[%s11468_s21 + $0x7c8] sm:$0xff]   ;;  %v11015_v43 = vld [vmem:[%s11468_s21 + $0x750] sm:$0xff]  }
 0x111   : > { %10566 = vmatpush3.bf16.msra.mxu1 %v10981_v15  ;;  %9815 = vmatprep.subr.bf16.mxu0 %v10983_v19  ;;  %v9481_v29 = vpop.f32.mrb[7].mxu0  ;;  %v9507_v31 = vadd.f32 %v9506_v28, %v9505_v26  ;;  %v9508_v34 = vpop.f32.mrb[6].mxu1  ;;  %v11009_v15 = vld [vmem:[%s11468_s21 + $0x788] sm:$0xff]   ;;  %v11017_v28 = vld [vmem:[%s11468_s21 + $0x798] sm:$0xff]  }
 0x112   : > { %10567 = vmatprep.subr.bf16.mxu1 %v10984_v20  ;;  %v612_v1 = vadd.f32 %v9479_v27, %v11856_v7  ;;  %v9482_v37 = vadd.f32 %v9481_v29, %v9480_v60  ;;  %v9509_v41 = vpop.f32.mrb[7].mxu1  ;;  %v11011_v19 = vld [vmem:[%s11468_s21 + $0x748] sm:$0xff]   ;;  %v11016_v27 = vld [vmem:[%s11468_s21 + $0x7d0] sm:$0xff]  }
 0x113   : > { %v9510_v42 = vadd.f32 %v9509_v41, %v9508_v34  ;;  %v11021_v41 = vld [vmem:[%s11468_s21 + $0x820] sm:$0xff]  }
 0x114   : > { %9816 = vmatpush3.bf16.msra.mxu0 %v10985_v24  ;;  %v661_v46 = vadd.f32 %v9507_v31, %v612_v1  ;;  %v615_v48 = vadd.f32 %v9482_v37, %v11869_v22  ;;  %v11014_v24 = vld [vmem:[%s11468_s21 + $0x810] sm:$0xff]   ;;  %v11019_v1 = vld [vmem:[%s11468_s21 + $0x758] sm:$0xff]  }
 0x115   : > { %10568 = vmatpush3.bf16.msra.mxu1 %v10984_v20  ;;  %9817 = vmatprep.subr.bf16.mxu0 %v10986_v32  ;;  %v11018_v32 = vld [vmem:[%s11468_s21 + $0x818] sm:$0xff]  }
 0x116   : > { %10569 = vmatprep.subr.bf16.mxu1 %v10987_v39  ;;  %v664_v51 = vadd.f32 %v9510_v42, %v615_v48  ;;  %v11022_v42 = vld [vmem:[%s11468_s21 + $0x890] sm:$0xff]   ;;  %v11025_v48 = vld [vmem:[%s11468_s21 + $0x898] sm:$0xff]  }
 0x118   : > { %9818 = vmatpush3.bf16.msra.mxu0 %v10988_v44  ;;  %v11023_v44 = vld [vmem:[%s11468_s21 + $0x850] sm:$0xff]  }
 0x119   : > { %10570 = vmatpush3.bf16.msra.mxu1 %v10987_v39  ;;  %9839 = vmatprep.subr.bf16.mxu0 %v10989_v49  ;;  %v11020_v39 = vld [vmem:[%s11468_s21 + $0x7d8] sm:$0xff]   ;;  %v11956_v49 = vld [vmem:[%s12866_s1] ss:$20 sps:$4 sm:$0xff]  }
 0x11a   : > { %9867 = vmatprep.subr.bf16.mxu1 %v10990_v45  ;;  %v11962_v45 = vld [vmem:[%s12866_s1 + $0x8] ss:$20 sps:$4 sm:$0xff]  }
 0x11b   : > { %2931 = vmatmul.mubr.bf16.vlgmr.msra.gmra.mrb[52].mxu0 %v11754_v58 }
 0x11c   : > { %10572 = vmatmul.mubr.msk.bf16.vlgmr.msra.gmra.mrb[56].mxu1 %vm562_vm0, %v11761_v61  ;;  %9840 = vmatpush3.bf16.msra.mxu0 %v10991_v52  ;;  %v11901_v61 = vld [vmem:[%s12866_s1 + $0xc] ss:$20 sps:$4 sm:$0xff]   ;;  %v11027_v52 = vld [vmem:[%s11468_s21 + $0x830] sm:$0xff]  }
 0x11d   : > { %9868 = vmatpush3.bf16.msra.mxu1 %v10992_v53  ;;  %9841 = vmatprep.subr.bf16.mxu0 %v10993_v0  ;;  %v11028_v0 = vld [vmem:[%s11468_s21 + $0x8a0] sm:$0xff]  }
 0x11e   : > { %v10493_v62 = vpop.f32.mrb[8].mxu0  ;;  %9869 = vmatprep.subr.bf16.mxu1 %v10994_v54  ;;  %2938 = vmatprep.mubr.bf16.mxu0 %v11770_v2  ;;  %v11971_v54 = vld [vmem:[%s12866_s1 + $0x2c] ss:$20 sps:$4 sm:$0xff]  }
 0x11f   : > { %v11895_v25 = vadd.f32 %v10493_v62, %v661_v46  ;;  %v701_v58 = vpop.f32.mrb[9].mxu0  ;;  %3386 = vmatprep.mubr.bf16.mxu1 %v11901_v61  ;;  %v11024_v46 = vld [vmem:[%s11468_s21 + $0x828] sm:$0xff]   ;;  %v11030_v62 = vld [vmem:[%s11468_s21 + $0x838] sm:$0xff]  }
 0x120   : > { %v11905_v5 = vadd.f32 %v701_v58, %v11864_v17  ;;  %v10494_v2 = vpop.f32.mrb[10].mxu0  ;;  %9842 = vmatpush3.bf16.msra.mxu0 %v10995_v55  ;;  %v11010_v17 = vld [vmem:[%s11468_s21 + $0x808] sm:$0xff]  }
 0x121   : > { %v11908_v9 = vadd.f32 %v10494_v2, %v664_v51  ;;  %9870 = vmatpush3.bf16.msra.mxu1 %v10996_v56  ;;  %v704_v10 = vpop.f32.mrb[11].mxu0  ;;  %9843 = vmatprep.subr.bf16.mxu0 %v10997_v59  ;;  %v11026_v51 = vld [vmem:[%s11468_s21 + $0x858] sm:$0xff]   ;;  %v11029_v59 = vld [vmem:[%s11468_s21 + $0x860] sm:$0xff]  }
 0x122   : > { %v11913_v30 = vadd.f32 %v704_v10, %v11873_v23  ;;  %9871 = vmatprep.subr.bf16.mxu1 %v10998_v63  ;;  %v11013_v23 = vld [vmem:[%s11468_s21 + $0x790] sm:$0xff]  }
 0x123   : > { %2939 = vmatmul.mubr.bf16.gmra.mrb[56].mxu0 %v11782_v8  ;;  %v11979_v63 = vld [vmem:[%s12866_s1 + $0x34] ss:$20 sps:$4 sm:$0xff]  }
 0x124   : > { %9844 = vmatpush3.bf16.msra.mxu0 %v10999_v4  ;;  %3337 = vmatprep.mubr.bf16.mxu0 %v11922_v14 }
 0x125   : > { %9872 = vmatpush3.bf16.msra.mxu1 %v11000_v6  ;;  %9845 = vmatprep.subr.bf16.mxu0 %v11001_v11 }
 0x126   : > { %9873 = vmatprep.subr.bf16.mxu1 %v11002_v12 }
 0x127   : > { %v9535_v8 = vpop.f32.mrb[8].mxu1 }
 0x128   : > { %9846 = vmatpush3.bf16.msra.mxu0 %v11003_v33  ;;  %v9536_v47 = vpop.f32.mrb[9].mxu1 }
 0x129   : > { %9874 = vmatpush3.bf16.msra.mxu1 %v11004_v35  ;;  %9847 = vmatprep.subr.bf16.mxu0 %v11005_v13  ;;  %v11929_v16 = vadd.f32 %v9536_v47, %v9535_v8  ;;  %v9538_v50 = vpop.f32.mrb[10].mxu1  ;;  %v11991_v8 = vld [vmem:[%s12866_s1 + $0x28] ss:$20 sps:$4 sm:$0xff]  }
 0x12a   : > { %9875 = vmatprep.subr.bf16.mxu1 %v11006_v38  ;;  %v9539_v18 = vpop.f32.mrb[11].mxu1  ;;  %v11031_v38 = vld [vmem:[%s11468_s21 + $0x8a8] sm:$0xff]  }
 0x12b   : > { %v11933_v20 = vadd.f32 %v9539_v18, %v9538_v50  ;;  %v1060_v58 = vadd.f32 %v11929_v16, %v11844_v57  ;;  %v11998_v16 = vld [vmem:[%s12866_s1 + $0x30] ss:$20 sps:$4 sm:$0xff]   ;;  %v717_v18 = vmax.f32 %v11913_v30, 0.0 }
 0x12c   : > { %9848 = vmatpush3.bf16.msra.mxu0 %v11007_v36  ;;  %v11032_v36 = vld [vmem:[%s11468_s21 + $0x868] sm:$0xff]   ;;  %v11033_v50 = vld [vmem:[%s11468_s21 + $0x840] sm:$0xff]  }
 0x12d   : > { %9876 = vmatpush3.bf16.msra.mxu1 %v11008_v40  ;;  %9849 = vmatprep.subr.bf16.mxu0 %v11009_v15  ;;  %v1063_v12 = vadd.f32 %v11933_v20, %v11851_v3  ;;  %v716_v40 = vmax.f32 %v11905_v5, 0.0 }
 0x12e   : > { %9877 = vmatprep.subr.bf16.mxu1 %v11010_v17  ;;  %v11034_v17 = vld [vmem:[%s11468_s21 + $0x8b0] sm:$0xff]  }
 0x12f   : > { %v9541_v26 = vpop.f32.mrb[12].mxu1 }
 0x130   : > { %9850 = vmatpush3.bf16.msra.mxu0 %v11011_v19  ;;  %v9542_v60 = vpop.f32.mrb[13].mxu1 }
 0x131   : > { %9878 = vmatpush3.bf16.msra.mxu1 %v11012_v21  ;;  %9851 = vmatprep.subr.bf16.mxu0 %v11013_v23  ;;  %v11941_v29 = vadd.f32 %v9542_v60, %v9541_v26  ;;  %v9544_v31 = vpop.f32.mrb[14].mxu1  ;;  %v12009_v21 = vld [vmem:[%s12866_s1 + $0x10] ss:$20 sps:$4 sm:$0xff]  }
 0x132   : > { %9879 = vmatprep.subr.bf16.mxu1 %v11014_v24  ;;  %v9545_v34 = vpop.f32.mrb[15].mxu1 }
 0x133   : > { %v11945_v37 = vadd.f32 %v9545_v34, %v9544_v31  ;;  %v1068_v30 = vadd.f32 %v11941_v29, %v11856_v7  ;;  %v11037_v29 = vld [vmem:[%s11468_s21 + $0x8b8] sm:$0xff]  }
 0x134   : > { %9852 = vmatpush3.bf16.msra.mxu0 %v11015_v43 }
 0x135   : > { %9880 = vmatpush3.bf16.msra.mxu1 %v11016_v27  ;;  %9853 = vmatprep.subr.bf16.mxu0 %v11017_v28  ;;  %v11035_v27 = vld [vmem:[%s11468_s21 + $0x870] sm:$0xff]   ;;  %v11036_v28 = vld [vmem:[%s11468_s21 + $0x848] sm:$0xff]   ;;  %v1071_v31 = vadd.f32 %v11945_v37, %v11869_v22  ;;  %v719_v37 = vmax.f32 %v11908_v9, 0.0 }
 0x136   : > { %9881 = vmatprep.subr.bf16.mxu1 %v11018_v32  ;;  %v11043_v9 = vld [vmem:[%s11468_s21 + $0x8c8] sm:$0xff]  }
 0x138   : > { %9854 = vmatpush3.bf16.msra.mxu0 %v11019_v1  ;;  %v718_v1 = vmax.f32 %v11895_v25, 0.0  ;;  %v11042_v25 = vld [vmem:[%s11468_s21 + $0x8d0] sm:$0xff]  }
 0x139   : > { %9882 = vmatpush3.bf16.msra.mxu1 %v11020_v39  ;;  %10575 = vmatprep.subr.bf16.mxu0 %v11021_v41 }
 0x13a   : > { %9903 = vmatprep.subr.bf16.mxu1 %v11022_v42  ;;  %v11038_v42 = vld [vmem:[%s11468_s21 + $0x878] sm:$0xff]  }
 0x13b   : > { %3338 = vmatmul.mubr.bf16.vlgmr.msra.gmra.mrb[60].mxu0 %v11956_v49 }
 0x13c   : > { %3387 = vmatmul.mubr.bf16.vlgmr.msra.gmra.mrb[60].mxu1 %v11962_v45  ;;  %10576 = vmatpush3.bf16.msra.mxu0 %v11021_v41 }
 0x13d   : > { %9904 = vmatpush3.bf16.msra.mxu1 %v11023_v44  ;;  %10577 = vmatprep.subr.bf16.mxu0 %v11024_v46  ;;  %v11040_v44 = vld [vmem:[%s11468_s21 + $0x910] sm:$0xff]  }
 0x13e   : > { %v9563_v53 = vpop.f32.mrb[12].mxu0  ;;  %9905 = vmatprep.subr.bf16.mxu1 %v11025_v48  ;;  %3345 = vmatprep.mubr.bf16.mxu0 %v11971_v54  ;;  %v11039_v48 = vld [vmem:[%s11468_s21 + $0x8c0] sm:$0xff]  }
 0x13f   : > { %v9564_v55 = vpop.f32.mrb[13].mxu0  ;;  %v10509_v56 = vpop.f32.mrb[16].mxu1  ;;  %3394 = vmatprep.mubr.bf16.mxu1 %v11979_v63 }
 0x140   : > { %v9565_v4 = vadd.f32 %v9564_v55, %v9563_v53  ;;  %v9566_v2 = vpop.f32.mrb[14].mxu0  ;;  %10578 = vmatpush3.bf16.msra.mxu0 %v11024_v46  ;;  %v1157_v6 = vpop.f32.mrb[17].mxu1  ;;  %v12039_v55 = vld [vmem:[%s12866_s1 + $0x38] ss:$20 sps:$4 sm:$0xff]  }
 0x141   : > { %9906 = vmatpush3.bf16.msra.mxu1 %v11026_v51  ;;  %v9567_v10 = vpop.f32.mrb[15].mxu0  ;;  %10579 = vmatprep.subr.bf16.mxu0 %v11027_v52  ;;  %v10510_v11 = vpop.f32.mrb[18].mxu1 }
 0x142   : > { %v9568_v33 = vadd.f32 %v9567_v10, %v9566_v2  ;;  %v1109_v35 = vadd.f32 %v9565_v4, %v1060_v58  ;;  %9907 = vmatprep.subr.bf16.mxu1 %v11028_v0  ;;  %v1160_v13 = vpop.f32.mrb[19].mxu1  ;;  %v11044_v0 = vld [vmem:[%s11468_s21 + $0x918] sm:$0xff]   ;;  %v11048_v58 = vld [vmem:[%s11468_s21 + $0x950] sm:$0xff]   ;;  %v11049_v4 = vld [vmem:[%s11468_s21 + $0x8e0] sm:$0xff]  }
 0x143   : > { %3346 = vmatmul.mubr.bf16.gmra.mrb[64].mxu0 %v11991_v8  ;;  %v11050_v2 = vld [vmem:[%s11468_s21 + $0x928] sm:$0xff]  }
 0x144   : > { %v1158_v47 = vadd.f32 %v1157_v6, %v1109_v35  ;;  %10580 = vmatpush3.bf16.msra.mxu0 %v11027_v52  ;;  %v1112_v15 = vadd.f32 %v9568_v33, %v1063_v12  ;;  %3395 = vmatmul.mubr.bf16.gmra.mrb[64].mxu1 %v11998_v16  ;;  %v11041_v52 = vld [vmem:[%s11468_s21 + $0x880] sm:$0xff]   ;;  %v11051_v6 = vld [vmem:[%s11468_s21 + $0x958] sm:$0xff]   ;;  %v11052_v10 = vld [vmem:[%s11468_s21 + $0x8e8] sm:$0xff]  }
 0x145   : > { %9908 = vmatpush3.bf16.msra.mxu1 %v11029_v59  ;;  %10581 = vmatprep.subr.bf16.mxu0 %v11030_v62  ;;  %v11046_v59 = vld [vmem:[%s11468_s21 + $0x8d8] sm:$0xff]   ;;  %v11054_v33 = vld [vmem:[%s11468_s21 + $0x960] sm:$0xff]  }
 0x146   : > { %v12004_v19 = vmax.f32 %v716_v40, %v1158_v47  ;;  %v1161_v5 = vadd.f32 %v1160_v13, %v1112_v15  ;;  %v9569_v20 = vpop.f32.mrb[16].mxu0  ;;  %9909 = vmatprep.subr.bf16.mxu1 %v11031_v38  ;;  %10587 = vmatprep.mubr.msk.bf16.mxu0 %vm562_vm0, %v12009_v21  ;;  %v11055_v38 = vld [vmem:[%s11468_s21 + $0x8f0] sm:$0xff]  }
 0x147   : > { %v9570_v23 = vpop.f32.mrb[17].mxu0  ;;  %3793 = vmatprep.mubr.bf16.mxu1 %v11922_v14 }
 0x148   : > { %v12016_v24 = vmax.f32 %v717_v18, %v1161_v5  ;;  %v9571_v43 = vadd.f32 %v9570_v23, %v9569_v20  ;;  %v9572_v26 = vpop.f32.mrb[18].mxu0  ;;  %10582 = vmatpush3.bf16.msra.mxu0 %v11030_v62  ;;  %v11047_v62 = vld [vmem:[%s11468_s21 + $0x920] sm:$0xff]   ;;  %v11056_v18 = vld [vmem:[%s11468_s21 + $0x938] sm:$0xff]  }
 0x149   : > { %9910 = vmatpush3.bf16.msra.mxu1 %v11032_v36  ;;  %v9573_v60 = vpop.f32.mrb[19].mxu0  ;;  %10583 = vmatprep.subr.bf16.mxu0 %v11033_v50 }
 0x14a   : > { %v1117_v32 = vadd.f32 %v9571_v43, %v1068_v30  ;;  %v9574_v34 = vadd.f32 %v9573_v60, %v9572_v26  ;;  %9911 = vmatprep.subr.bf16.mxu1 %v11034_v17  ;;  %v11057_v30 = vld [vmem:[%s11468_s21 + $0x968] sm:$0xff]  }
 0x14c   : > { %v1166_v39 = vadd.f32 %v10509_v56, %v1117_v32  ;;  %v1120_v41 = vadd.f32 %v9574_v34, %v1071_v31  ;;  %10584 = vmatpush3.bf16.msra.mxu0 %v11033_v50  ;;  %v11045_v56 = vld [vmem:[%s11468_s21 + $0x888] sm:$0xff]   ;;  %v11060_v31 = vld [vmem:[%s11468_s21 + $0x970] sm:$0xff]  }
 0x14d   : > { %9912 = vmatpush3.bf16.msra.mxu1 %v11035_v27  ;;  %10585 = vmatprep.subr.bf16.mxu0 %v11036_v28  ;;  %v11058_v27 = vld [vmem:[%s11468_s21 + $0x8f8] sm:$0xff]  }
 0x14e   : > { %v1169_v46 = vadd.f32 %v10510_v11, %v1120_v41  ;;  %9913 = vmatprep.subr.bf16.mxu1 %v11037_v29  ;;  %v12028_v51 = vmax.f32 %v718_v1, %v1166_v39  ;;  %v11053_v11 = vld [vmem:[%s11468_s21 + $0x930] sm:$0xff]   ;;  %v11061_v29 = vld [vmem:[%s11468_s21 + $0x900] sm:$0xff]   ;;  %v11062_v41 = vld [vmem:[%s11468_s21 + $0x948] sm:$0xff]  }
 0x150   : > { %10586 = vmatpush3.bf16.msra.mxu0 %v11036_v28  ;;  %v12032_v53 = vmax.f32 %v719_v37, %v1169_v46  ;;  %v11059_v28 = vld [vmem:[%s11468_s21 + $0x940] sm:$0xff]  }
 0x151   : > { %9914 = vmatpush3.bf16.msra.mxu1 %v11038_v42  ;;  %9931 = vmatprep.subr.bf16.mxu0 %v11040_v44 }
 0x152   : > { %9915 = vmatprep.subr.bf16.mxu1 %v11039_v48 }
 0x153   : > { %10588 = vmatmul.mubr.msk.bf16.vlgmr.msra.gmra.mrb[68].mxu0 %vm562_vm0, %v12039_v55 }
 0x154   : > { %9932 = vmatpush3.bf16.msra.mxu0 %v11042_v25  ;;  %3842 = vmatprep.mubr.bf16.mxu0 %v11901_v61 }
 0x155   : > { %9916 = vmatpush3.bf16.msra.mxu1 %v11041_v52  ;;  %9933 = vmatprep.subr.bf16.mxu0 %v11044_v0 }
 0x156   : > { %9917 = vmatprep.subr.bf16.mxu1 %v11043_v9  ;;  %v11063_v9 = vld [vmem:[%s11468_s21 + $0x978] sm:$0xff]  }
 0x158   : > { %9934 = vmatpush3.bf16.msra.mxu0 %v11046_v59 }
 0x159   : > { %9918 = vmatpush3.bf16.msra.mxu1 %v11045_v56  ;;  %9935 = vmatprep.subr.bf16.mxu0 %v11047_v62 }
 0x15a   : > { %10591 = vmatprep.subr.bf16.mxu1 %v11048_v58 }
 0x15c   : > { %3794 = vmatmul.mubr.bf16.vlgmr.msra.gmra.mrb[68].mxu1 %v11956_v49  ;;  %9936 = vmatpush3.bf16.msra.mxu0 %v11049_v4 }
 0x15d   : > { %10592 = vmatpush3.bf16.msra.mxu1 %v11048_v58  ;;  %9937 = vmatprep.subr.bf16.mxu0 %v11050_v2  ;;  %v11064_v58 = vld [vmem:[%s11468_s21 + $0x908] sm:$0xff]   ;;  %v11065_v2 = vld [vmem:[%s11468_s21 + $0x9c0] sm:$0xff]  }
 0x15e   : > { %v9599_v12 = vpop.f32.mrb[20].mxu0  ;;  %10593 = vmatprep.subr.bf16.mxu1 %v11051_v6  ;;  %3801 = vmatprep.mubr.bf16.mxu1 %v11971_v54 }
 0x15f   : > { %v9600_v35 = vpop.f32.mrb[21].mxu0  ;;  %v9627_v13 = vpop.f32.mrb[20].mxu1 }
 0x160   : > { %v9601_v36 = vadd.f32 %v9600_v35, %v9599_v12  ;;  %v9602_v40 = vpop.f32.mrb[22].mxu0  ;;  %9938 = vmatpush3.bf16.msra.mxu0 %v11052_v10  ;;  %v9628_v47 = vpop.f32.mrb[21].mxu1  ;;  %v11068_v12 = vld [vmem:[%s11468_s21 + $0xa00] sm:$0xff]   ;;  %v11070_v35 = vld [vmem:[%s11468_s21 + $0xa48] sm:$0xff]  }
 0x161   : > { %10594 = vmatpush3.bf16.msra.mxu1 %v11051_v6  ;;  %v9603_v15 = vpop.f32.mrb[23].mxu0  ;;  %v9629_v50 = vadd.f32 %v9628_v47, %v9627_v13  ;;  %v9630_v17 = vpop.f32.mrb[22].mxu1  ;;  %9939 = vmatprep.subr.bf16.mxu0 %v11053_v11  ;;  %v11066_v6 = vld [vmem:[%s11468_s21 + $0xa40] sm:$0xff]   ;;  %v11071_v13 = vld [vmem:[%s11468_s21 + $0x988] sm:$0xff]   ;;  %v11074_v47 = vld [vmem:[%s11468_s21 + $0xa50] sm:$0xff]  }
 0x162   : > { %v1516_v5 = vadd.f32 %v9601_v36, %v11844_v57  ;;  %v9604_v20 = vadd.f32 %v9603_v15, %v9602_v40  ;;  %v9631_v23 = vpop.f32.mrb[23].mxu1  ;;  %10595 = vmatprep.subr.bf16.mxu1 %v11054_v33  ;;  %v11067_v11 = vld [vmem:[%s11468_s21 + $0x980] sm:$0xff]   ;;  %v11073_v36 = vld [vmem:[%s11468_s21 + $0x9d0] sm:$0xff]  }
 0x163   : > { %v9632_v43 = vadd.f32 %v9631_v23, %v9630_v17  ;;  %v11075_v17 = vld [vmem:[%s11468_s21 + $0x990] sm:$0xff]  }
 0x164   : > { %v1519_v26 = vadd.f32 %v9604_v20, %v11851_v3  ;;  %9940 = vmatpush3.bf16.msra.mxu0 %v11055_v38  ;;  %3802 = vmatmul.mubr.bf16.gmra.mrb[72].mxu1 %v11991_v8  ;;  %v1565_v60 = vadd.f32 %v9629_v50, %v1516_v5  ;;  %v11072_v38 = vld [vmem:[%s11468_s21 + $0xa08] sm:$0xff]   ;;  %v11076_v20 = vld [vmem:[%s11468_s21 + $0xa10] sm:$0xff]  }
 0x165   : > { %10596 = vmatpush3.bf16.msra.mxu1 %v11054_v33  ;;  %9941 = vmatprep.subr.bf16.mxu0 %v11056_v18  ;;  %v11069_v33 = vld [vmem:[%s11468_s21 + $0x9c8] sm:$0xff]  }
 0x166   : > { %10597 = vmatprep.subr.bf16.mxu1 %v11057_v30  ;;  %v9605_v32 = vpop.f32.mrb[24].mxu0  ;;  %10603 = vmatprep.mubr.msk.bf16.mxu1 %vm562_vm0, %v12009_v21  ;;  %v12067_v34 = vadd.f32 %v9632_v43, %v1519_v26  ;;  %v11077_v26 = vld [vmem:[%s11468_s21 + $0x9d8] sm:$0xff]  }
 0x167   : > { %v9606_v1 = vpop.f32.mrb[25].mxu0  ;;  %v9633_v39 = vpop.f32.mrb[24].mxu1 }
 0x168   : > { %9942 = vmatpush3.bf16.msra.mxu0 %v11058_v27  ;;  %v9607_v42 = vadd.f32 %v9606_v1, %v9605_v32  ;;  %v9608_v44 = vpop.f32.mrb[26].mxu0  ;;  %v9634_v37 = vpop.f32.mrb[25].mxu1  ;;  %v11082_v1 = vld [vmem:[%s11468_s21 + $0xa60] sm:$0xff]  }
 0x169   : > { %10598 = vmatpush3.bf16.msra.mxu1 %v11057_v30  ;;  %9943 = vmatprep.subr.bf16.mxu0 %v11059_v28  ;;  %v9609_v46 = vpop.f32.mrb[27].mxu0  ;;  %v9635_v48 = vadd.f32 %v9634_v37, %v9633_v39  ;;  %v9636_v52 = vpop.f32.mrb[26].mxu1  ;;  %v11083_v39 = vld [vmem:[%s11468_s21 + $0x9a0] sm:$0xff]   ;;  %v11085_v37 = vld [vmem:[%s11468_s21 + $0x9e8] sm:$0xff]  }
 0x16a   : > { %10599 = vmatprep.subr.bf16.mxu1 %v11060_v31  ;;  %v1524_v25 = vadd.f32 %v9607_v42, %v11856_v7  ;;  %v9610_v0 = vadd.f32 %v9609_v46, %v9608_v44  ;;  %v9637_v56 = vpop.f32.mrb[27].mxu1  ;;  %v11084_v42 = vld [vmem:[%s11468_s21 + $0xa20] sm:$0xff]  }
 0x16b   : > { %v9638_v59 = vadd.f32 %v9637_v56, %v9636_v52  ;;  %v11089_v56 = vld [vmem:[%s11468_s21 + $0x9f0] sm:$0xff]  }
 0x16c   : > { %9944 = vmatpush3.bf16.msra.mxu0 %v11061_v29  ;;  %v1527_v62 = vadd.f32 %v9610_v0, %v11869_v22  ;;  %v1573_v4 = vadd.f32 %v9635_v48, %v1524_v25  ;;  %v11080_v29 = vld [vmem:[%s11468_s21 + $0xa18] sm:$0xff]   ;;  %v11086_v48 = vld [vmem:[%s11468_s21 + $0xa68] sm:$0xff]  }
 0x16d   : > { %10600 = vmatpush3.bf16.msra.mxu1 %v11060_v31  ;;  %9945 = vmatprep.subr.bf16.mxu0 %v11062_v41  ;;  %v11079_v31 = vld [vmem:[%s11468_s21 + $0x998] sm:$0xff]   ;;  %v11087_v25 = vld [vmem:[%s11468_s21 + $0x9a8] sm:$0xff]  }
 0x16e   : > { %10601 = vmatprep.subr.bf16.mxu1 %v11063_v9  ;;  %v1576_v10 = vadd.f32 %v9638_v59, %v1527_v62  ;;  %v11090_v59 = vld [vmem:[%s11468_s21 + $0xa70] sm:$0xff]  }
 0x16f   : > { %v11091_v62 = vld [vmem:[%s11468_s21 + $0x9b0] sm:$0xff]  }
 0x170   : > { %9946 = vmatpush3.bf16.msra.mxu0 %v11064_v58 }
 0x171   : > { %10602 = vmatpush3.bf16.msra.mxu1 %v11063_v9  ;;  %9967 = vmatprep.subr.bf16.mxu0 %v11065_v2  ;;  %v11088_v9 = vld [vmem:[%s11468_s21 + $0xa28] sm:$0xff]  }
 0x172   : > { %9995 = vmatprep.subr.bf16.mxu1 %v11066_v6  ;;  %v11093_v6 = vld [vmem:[%s11468_s21 + $0x9f8] sm:$0xff]  }
 0x173   : > { %3843 = vmatmul.mubr.bf16.vlgmr.msra.gmra.mrb[72].mxu0 %v11962_v45 }
 0x174   : > { %10604 = vmatmul.mubr.msk.bf16.vlgmr.msra.gmra.mrb[76].mxu1 %vm562_vm0, %v12039_v55  ;;  %9968 = vmatpush3.bf16.msra.mxu0 %v11067_v11 }
 0x175   : > { %9996 = vmatpush3.bf16.msra.mxu1 %v11068_v12  ;;  %9969 = vmatprep.subr.bf16.mxu0 %v11069_v33  ;;  %v11094_v12 = vld [vmem:[%s11468_s21 + $0xa78] sm:$0xff]  }
 0x176   : > { %v10525_v40 = vpop.f32.mrb[28].mxu0  ;;  %9997 = vmatprep.subr.bf16.mxu1 %v11070_v35  ;;  %3850 = vmatprep.mubr.bf16.mxu0 %v11979_v63  ;;  %v11095_v35 = vld [vmem:[%s11468_s21 + $0x9b8] sm:$0xff]  }
 0x177   : > { %v12089_v15 = vadd.f32 %v10525_v40, %v1573_v4  ;;  %v1613_v50 = vpop.f32.mrb[29].mxu0  ;;  %4298 = vmatprep.mubr.bf16.mxu1 %v11901_v61  ;;  %v11092_v4 = vld [vmem:[%s11468_s21 + $0xa30] sm:$0xff]  }
 0x178   : > { %v12093_v18 = vadd.f32 %v1613_v50, %v1565_v60  ;;  %v10526_v5 = vpop.f32.mrb[30].mxu0  ;;  %9970 = vmatpush3.bf16.msra.mxu0 %v11071_v13  ;;  %v11078_v60 = vld [vmem:[%s11468_s21 + $0xa58] sm:$0xff]   ;;  %v11098_v40 = vld [vmem:[%s11468_s21 + $0xaf0] sm:$0xff]   ;;  %v11100_v50 = vld [vmem:[%s11468_s21 + $0xa88] sm:$0xff]  }
 0x179   : > { %v1630_v23 = vmax.f32 %v12028_v51, %v12089_v15  ;;  %v12098_v30 = vadd.f32 %v10526_v5, %v1576_v10  ;;  %9998 = vmatpush3.bf16.msra.mxu1 %v11072_v38  ;;  %v1616_v43 = vpop.f32.mrb[31].mxu0  ;;  %9971 = vmatprep.subr.bf16.mxu0 %v11073_v36  ;;  %v11096_v38 = vld [vmem:[%s11468_s21 + $0xa38] sm:$0xff]   ;;  %v11097_v36 = vld [vmem:[%s11468_s21 + $0xa80] sm:$0xff]   ;;  %v11121_v51 = vld [vmem:[%s11468_s21 + $0xae8] sm:$0xff]  }
 0x17a   : > { %v1628_v61 = vmax.f32 %v12004_v19, %v12093_v18  ;;  %v12104_v27 = vadd.f32 %v1616_v43, %v12067_v34  ;;  %9999 = vmatprep.subr.bf16.mxu1 %v11074_v47  ;;  %v11081_v34 = vld [vmem:[%s11468_s21 + $0x9e0] sm:$0xff]   ;;  %v11099_v47 = vld [vmem:[%s11468_s21 + $0xab0] sm:$0xff]   ;;  %v11102_v5 = vld [vmem:[%s11468_s21 + $0xab8] sm:$0xff]  }
 0x17b   : > { %v1631_v28 = vmax.f32 %v12032_v53, %v12098_v30  ;;  %3851 = vmatmul.mubr.bf16.gmra.mrb[76].mxu0 %v11998_v16  ;;  %v11122_v15 = vld [vmem:[%s11468_s21 + $0xb38] sm:$0xff]   ;;  %v12206_v53 = vld [vmem:[%s12866_s1 + $0xc] ss:$20 sps:$4 sm:$0xff]   ;;  %v11124_v30 = vld [vmem:[%s11468_s21 + $0xbb0] sm:$0xff]  }
 0x17c   : > { %v1629_v32 = vmax.f32 %v12016_v24, %v12104_v27  ;;  %9972 = vmatpush3.bf16.msra.mxu0 %v11075_v17  ;;  %4249 = vmatprep.mubr.bf16.mxu0 %v11922_v14  ;;  %v11101_v17 = vld [vmem:[%s11468_s21 + $0xaf8] sm:$0xff]  }
 0x17d   : > { %10000 = vmatpush3.bf16.msra.mxu1 %v11076_v20  ;;  %9973 = vmatprep.subr.bf16.mxu0 %v11077_v26  ;;  %v11103_v20 = vld [vmem:[%s11468_s21 + $0xa90] sm:$0xff]   ;;  %v11104_v26 = vld [vmem:[%s11468_s21 + $0xb00] sm:$0xff]   ;;  %v11113_v24 = vld [vmem:[%s11468_s21 + $0xb18] sm:$0xff]  }
 0x17e   : > { %10001 = vmatprep.subr.bf16.mxu1 %v11078_v60 }
 0x17f   : > { %v9663_v41 = vpop.f32.mrb[28].mxu1 }
 0x180   : > { %9974 = vmatpush3.bf16.msra.mxu0 %v11079_v31  ;;  %v9664_v44 = vpop.f32.mrb[29].mxu1 }
 0x181   : > { %10002 = vmatpush3.bf16.msra.mxu1 %v11080_v29  ;;  %9975 = vmatprep.subr.bf16.mxu0 %v11081_v34  ;;  %v9665_v14 = vadd.f32 %v9664_v44, %v9663_v41  ;;  %v9666_v46 = vpop.f32.mrb[30].mxu1  ;;  %v11105_v41 = vld [vmem:[%s11468_s21 + $0xac0] sm:$0xff]  }
 0x182   : > { %10003 = vmatprep.subr.bf16.mxu1 %v11082_v1  ;;  %v9667_v52 = vpop.f32.mrb[31].mxu1 }
 0x183   : > { %v9668_v0 = vadd.f32 %v9667_v52, %v9666_v46  ;;  %v11108_v52 = vld [vmem:[%s11468_s21 + $0xac8] sm:$0xff]  }
 0x184   : > { %9976 = vmatpush3.bf16.msra.mxu0 %v11083_v39 }
 0x185   : > { %10004 = vmatpush3.bf16.msra.mxu1 %v11084_v42  ;;  %9977 = vmatprep.subr.bf16.mxu0 %v11085_v37  ;;  %v11106_v42 = vld [vmem:[%s11468_s21 + $0xa98] sm:$0xff]  }
 0x186   : > { %10005 = vmatprep.subr.bf16.mxu1 %v11086_v48 }
 0x187   : > { %v9669_v58 = vpop.f32.mrb[32].mxu1 }
 0x188   : > { %9978 = vmatpush3.bf16.msra.mxu0 %v11087_v25  ;;  %v9670_v2 = vpop.f32.mrb[33].mxu1  ;;  %v11109_v25 = vld [vmem:[%s11468_s21 + $0xaa0] sm:$0xff]  }
 0x189   : > { %10006 = vmatpush3.bf16.msra.mxu1 %v11088_v9  ;;  %9979 = vmatprep.subr.bf16.mxu0 %v11089_v56  ;;  %v12128_v10 = vadd.f32 %v9670_v2, %v9669_v58  ;;  %v9672_v11 = vpop.f32.mrb[34].mxu1 }
 0x18a   : > { %10007 = vmatprep.subr.bf16.mxu1 %v11090_v59  ;;  %v9673_v33 = vpop.f32.mrb[35].mxu1 }
 0x18b   : > { %v12132_v13 = vadd.f32 %v9673_v33, %v9672_v11  ;;  %v1980_v19 = vadd.f32 %v12128_v10, %v11856_v7  ;;  %v11114_v11 = vld [vmem:[%s11468_s21 + $0xad8] sm:$0xff]  }
 0x18c   : > { %9980 = vmatpush3.bf16.msra.mxu0 %v11091_v62  ;;  %v11111_v62 = vld [vmem:[%s11468_s21 + $0xad0] sm:$0xff]  }
 0x18d   : > { %10008 = vmatpush3.bf16.msra.mxu1 %v11092_v4  ;;  %9981 = vmatprep.subr.bf16.mxu0 %v11093_v6  ;;  %v11112_v4 = vld [vmem:[%s11468_s21 + $0xaa8] sm:$0xff]   ;;  %v1983_v2 = vadd.f32 %v12132_v13, %v11869_v22 }
 0x18e   : > { %10009 = vmatprep.subr.bf16.mxu1 %v11094_v12  ;;  %v11116_v12 = vld [vmem:[%s11468_s21 + $0xb70] sm:$0xff]  }
 0x190   : > { %9982 = vmatpush3.bf16.msra.mxu0 %v11095_v35  ;;  %v11115_v35 = vld [vmem:[%s11468_s21 + $0xb20] sm:$0xff]  }
 0x191   : > { %10010 = vmatpush3.bf16.msra.mxu1 %v11096_v38  ;;  %10607 = vmatprep.subr.bf16.mxu0 %v11097_v36  ;;  %v11117_v38 = vld [vmem:[%s11468_s21 + $0xae0] sm:$0xff]  }
 0x192   : > { %10031 = vmatprep.subr.bf16.mxu1 %v11098_v40 }
 0x193   : > { %4250 = vmatmul.mubr.bf16.vlgmr.msra.gmra.mrb[80].mxu0 %v11956_v49  ;;  %v1972_v49 = vadd.f32 %v9665_v14, %v11844_v57  ;;  %v11107_v14 = vld [vmem:[%s11468_s21 + $0xb08] sm:$0xff]  }
 0x194   : > { %4299 = vmatmul.mubr.bf16.vlgmr.msra.gmra.mrb[80].mxu1 %v11962_v45  ;;  %10608 = vmatpush3.bf16.msra.mxu0 %v11097_v36  ;;  %v11118_v36 = vld [vmem:[%s11468_s21 + $0xb30] sm:$0xff]  }
 0x195   : > { %10032 = vmatpush3.bf16.msra.mxu1 %v11099_v47  ;;  %10609 = vmatprep.subr.bf16.mxu0 %v11100_v50  ;;  %v11120_v47 = vld [vmem:[%s11468_s21 + $0xb78] sm:$0xff]  }
 0x196   : > { %v9691_v43 = vpop.f32.mrb[32].mxu0  ;;  %10033 = vmatprep.subr.bf16.mxu1 %v11101_v17  ;;  %4257 = vmatprep.mubr.bf16.mxu0 %v11971_v54  ;;  %v1975_v54 = vadd.f32 %v9668_v0, %v11851_v3  ;;  %v11127_v17 = vld [vmem:[%s11468_s21 + $0xbb8] sm:$0xff]  }
 0x197   : > { %v9692_v60 = vpop.f32.mrb[33].mxu0  ;;  %v10541_v31 = vpop.f32.mrb[36].mxu1  ;;  %4306 = vmatprep.mubr.bf16.mxu1 %v11979_v63 }
 0x198   : > { %v9693_v45 = vadd.f32 %v9692_v60, %v9691_v43  ;;  %v9694_v29 = vpop.f32.mrb[34].mxu0  ;;  %10610 = vmatpush3.bf16.msra.mxu0 %v11100_v50  ;;  %v2069_v34 = vpop.f32.mrb[37].mxu1  ;;  %v11119_v50 = vld [vmem:[%s11468_s21 + $0xb28] sm:$0xff]   ;;  %v11129_v43 = vld [vmem:[%s11468_s21 + $0xb90] sm:$0xff]   ;;  %v11130_v60 = vld [vmem:[%s11468_s21 + $0xbc0] sm:$0xff]  }
 0x199   : > { %10034 = vmatpush3.bf16.msra.mxu1 %v11102_v5  ;;  %v9695_v1 = vpop.f32.mrb[35].mxu0  ;;  %10611 = vmatprep.subr.bf16.mxu0 %v11103_v20  ;;  %v10542_v39 = vpop.f32.mrb[38].mxu1  ;;  %v12217_v5 = vld [vmem:[%s12866_s1] ss:$20 sps:$4 sm:$0xff]  }
 0x19a   : > { %v9696_v44 = vadd.f32 %v9695_v1, %v9694_v29  ;;  %v2021_v37 = vadd.f32 %v9693_v45, %v1972_v49  ;;  %10035 = vmatprep.subr.bf16.mxu1 %v11104_v26  ;;  %v2072_v63 = vpop.f32.mrb[39].mxu1  ;;  %v11131_v29 = vld [vmem:[%s11468_s21 + $0xb50] sm:$0xff]  }
 0x19b   : > { %4258 = vmatmul.mubr.bf16.gmra.mrb[84].mxu0 %v11991_v8  ;;  %v11110_v8 = vld [vmem:[%s11468_s21 + $0xb10] sm:$0xff]  }
 0x19c   : > { %v2070_v46 = vadd.f32 %v2069_v34, %v2021_v37  ;;  %10612 = vmatpush3.bf16.msra.mxu0 %v11103_v20  ;;  %v2024_v48 = vadd.f32 %v9696_v44, %v1975_v54  ;;  %4307 = vmatmul.mubr.bf16.gmra.mrb[84].mxu1 %v11998_v16  ;;  %v12167_v16 = vld [vmem:[%s12866_s1 + $0x4] ss:$20 sps:$4 sm:$0xff]   ;;  %v11128_v20 = vld [vmem:[%s11468_s21 + $0xb48] sm:$0xff]  }
 0x19d   : > { %10036 = vmatpush3.bf16.msra.mxu1 %v11105_v41  ;;  %10613 = vmatprep.subr.bf16.mxu0 %v11106_v42  ;;  %v11132_v34 = vld [vmem:[%s11468_s21 + $0xb98] sm:$0xff]  }
 0x19e   : > { %v12159_v0 = vmax.f32 %v1628_v61, %v2070_v46  ;;  %v2073_v9 = vadd.f32 %v2072_v63, %v2024_v48  ;;  %v9697_v56 = vpop.f32.mrb[36].mxu0  ;;  %10037 = vmatprep.subr.bf16.mxu1 %v11107_v14  ;;  %10619 = vmatprep.mubr.msk.bf16.mxu0 %vm562_vm0, %v12009_v21  ;;  %v11133_v46 = vld [vmem:[%s11468_s21 + $0xbc8] sm:$0xff]  }
 0x19f   : > { %v9698_v59 = vpop.f32.mrb[37].mxu0  ;;  %4705 = vmatprep.mubr.bf16.mxu1 %v12167_v16 }
 0x1a0   : > { %v12175_v18 = vmax.f32 %v1629_v32, %v2073_v9  ;;  %v9699_v61 = vadd.f32 %v9698_v59, %v9697_v56  ;;  %v9700_v21 = vpop.f32.mrb[38].mxu0  ;;  %10614 = vmatpush3.bf16.msra.mxu0 %v11106_v42  ;;  %v12238_v9 = vld [vmem:[%s12866_s1 + $0x28] ss:$20 sps:$4 sm:$0xff]   ;;  %v11136_v59 = vld [vmem:[%s11468_s21 + $0xbd0] sm:$0xff]  }
 0x1a1   : > { %10038 = vmatpush3.bf16.msra.mxu1 %v11108_v52  ;;  %v9701_v58 = vpop.f32.mrb[39].mxu0  ;;  %10615 = vmatprep.subr.bf16.mxu0 %v11109_v25 }
 0x1a2   : > { %v2029_v6 = vadd.f32 %v9699_v61, %v1980_v19  ;;  %v9702_v10 = vadd.f32 %v9701_v58, %v9700_v21  ;;  %10039 = vmatprep.subr.bf16.mxu1 %v11110_v8  ;;  %v11135_v8 = vld [vmem:[%s11468_s21 + $0xba0] sm:$0xff]  }
 0x1a3   : > { %v12248_v61 = vld [vmem:[%s12866_s1 + $0x10] ss:$20 sps:$4 sm:$0xff]  }
 0x1a4   : > { %v2078_v27 = vadd.f32 %v10541_v31, %v2029_v6  ;;  %v2032_v32 = vadd.f32 %v9702_v10, %v1983_v2  ;;  %10616 = vmatpush3.bf16.msra.mxu0 %v11109_v25  ;;  %v12226_v31 = vld [vmem:[%s12866_s1 + $0x2c] ss:$20 sps:$4 sm:$0xff]   ;;  %v11134_v25 = vld [vmem:[%s11468_s21 + $0xb58] sm:$0xff]  }
 0x1a5   : > { %10040 = vmatpush3.bf16.msra.mxu1 %v11111_v62  ;;  %10617 = vmatprep.subr.bf16.mxu0 %v11112_v4  ;;  %v11137_v62 = vld [vmem:[%s11468_s21 + $0xb60] sm:$0xff]  }
 0x1a6   : > { %v2081_v33 = vadd.f32 %v10542_v39, %v2032_v32  ;;  %10041 = vmatprep.subr.bf16.mxu1 %v11113_v24  ;;  %v12188_v13 = vmax.f32 %v1630_v23, %v2078_v27  ;;  %v11123_v23 = vld [vmem:[%s11468_s21 + $0xb80] sm:$0xff]   ;;  %v11138_v32 = vld [vmem:[%s11468_s21 + $0xba8] sm:$0xff]  }
 0x1a8   : > { %10618 = vmatpush3.bf16.msra.mxu0 %v11112_v4  ;;  %v12195_v40 = vmax.f32 %v1631_v28, %v2081_v33  ;;  %v11126_v28 = vld [vmem:[%s11468_s21 + $0xb88] sm:$0xff]  }
 0x1a9   : > { %10042 = vmatpush3.bf16.msra.mxu1 %v11114_v11  ;;  %10059 = vmatprep.subr.bf16.mxu0 %v11116_v12 }
 0x1aa   : > { %10043 = vmatprep.subr.bf16.mxu1 %v11115_v35  ;;  %v11139_v35 = vld [vmem:[%s11468_s21 + $0xbd8] sm:$0xff]  }
 0x1ab   : > { %10620 = vmatmul.mubr.msk.bf16.vlgmr.msra.gmra.mrb[88].mxu0 %vm562_vm0, %v12039_v55  ;;  %v11125_v55 = vld [vmem:[%s11468_s21 + $0xb40] sm:$0xff]  }
 0x1ac   : > { %10060 = vmatpush3.bf16.msra.mxu0 %v11118_v36  ;;  %4754 = vmatprep.mubr.bf16.mxu0 %v12206_v53 }
 0x1ad   : > { %10044 = vmatpush3.bf16.msra.mxu1 %v11117_v38  ;;  %10061 = vmatprep.subr.bf16.mxu0 %v11120_v47 }
 0x1ae   : > { %10045 = vmatprep.subr.bf16.mxu1 %v11119_v50  ;;  %v11140_v50 = vld [vmem:[%s11468_s21 + $0xb68] sm:$0xff]  }
 0x1b0   : > { %10062 = vmatpush3.bf16.msra.mxu0 %v11122_v15  ;;  %v11141_v15 = vld [vmem:[%s11468_s21 + $0xc20] sm:$0xff]  }
 0x1b1   : > { %10046 = vmatpush3.bf16.msra.mxu1 %v11121_v51  ;;  %10063 = vmatprep.subr.bf16.mxu0 %v11123_v23  ;;  %v11142_v23 = vld [vmem:[%s11468_s21 + $0xca0] sm:$0xff]  }
 0x1b2   : > { %10623 = vmatprep.subr.bf16.mxu1 %v11124_v30 }
 0x1b4   : > { %4706 = vmatmul.mubr.bf16.vlgmr.msra.gmra.mrb[88].mxu1 %v12217_v5  ;;  %10064 = vmatpush3.bf16.msra.mxu0 %v11125_v55  ;;  %v11143_v55 = vld [vmem:[%s11468_s21 + $0xbe0] sm:$0xff]  }
 0x1b5   : > { %10624 = vmatpush3.bf16.msra.mxu1 %v11124_v30  ;;  %10065 = vmatprep.subr.bf16.mxu0 %v11126_v28  ;;  %v11144_v28 = vld [vmem:[%s11468_s21 + $0xc60] sm:$0xff]  }
 0x1b6   : > { %v9727_v26 = vpop.f32.mrb[40].mxu0  ;;  %10625 = vmatprep.subr.bf16.mxu1 %v11127_v17  ;;  %4713 = vmatprep.mubr.bf16.mxu1 %v12226_v31 }
 0x1b7   : > { %v9728_v49 = vpop.f32.mrb[41].mxu0  ;;  %v9755_v45 = vpop.f32.mrb[40].mxu1 }
 0x1b8   : > { %v9729_v1 = vadd.f32 %v9728_v49, %v9727_v26  ;;  %v9730_v39 = vpop.f32.mrb[42].mxu0  ;;  %10066 = vmatpush3.bf16.msra.mxu0 %v11128_v20  ;;  %v9756_v41 = vpop.f32.mrb[41].mxu1  ;;  %v11146_v20 = vld [vmem:[%s11468_s21 + $0xca8] sm:$0xff]  }
 0x1b9   : > { %10626 = vmatpush3.bf16.msra.mxu1 %v11127_v17  ;;  %v9731_v42 = vpop.f32.mrb[43].mxu0  ;;  %v9757_v54 = vadd.f32 %v9756_v41, %v9755_v45  ;;  %v9758_v44 = vpop.f32.mrb[42].mxu1  ;;  %10067 = vmatprep.subr.bf16.mxu0 %v11129_v43  ;;  %v11145_v17 = vld [vmem:[%s11468_s21 + $0xc28] sm:$0xff]   ;;  %v11149_v45 = vld [vmem:[%s11468_s21 + $0xc30] sm:$0xff]  }
 0x1ba   : > { %v2428_v37 = vadd.f32 %v9729_v1, %v11844_v57  ;;  %v9732_v63 = vadd.f32 %v9731_v42, %v9730_v39  ;;  %v9759_v14 = vpop.f32.mrb[43].mxu1  ;;  %10627 = vmatprep.subr.bf16.mxu1 %v11130_v60  ;;  %v12269_v43 = vld [vmem:[%s12866_s1 + $0x8] ss:$20 sps:$4 sm:$0xff]   ;;  %v11150_v1 = vld [vmem:[%s11468_s21 + $0xcb0] sm:$0xff]  }
 0x1bb   : > { %v9760_v48 = vadd.f32 %v9759_v14, %v9758_v44  ;;  %v11147_v26 = vld [vmem:[%s11468_s21 + $0xbe8] sm:$0xff]   ;;  %v11151_v42 = vld [vmem:[%s11468_s21 + $0xbf0] sm:$0xff]  }
 0x1bc   : > { %v2431_v52 = vadd.f32 %v9732_v63, %v11851_v3  ;;  %10068 = vmatpush3.bf16.msra.mxu0 %v11131_v29  ;;  %4714 = vmatmul.mubr.bf16.gmra.mrb[92].mxu1 %v12238_v9  ;;  %v12241_v56 = vadd.f32 %v9757_v54, %v2428_v37  ;;  %v11148_v49 = vld [vmem:[%s11468_s21 + $0xc68] sm:$0xff]   ;;  %v11152_v37 = vld [vmem:[%s11468_s21 + $0xc70] sm:$0xff]  }
 0x1bd   : > { %10628 = vmatpush3.bf16.msra.mxu1 %v11130_v60  ;;  %10069 = vmatprep.subr.bf16.mxu0 %v11132_v34  ;;  %v12276_v60 = vld [vmem:[%s12866_s1 + $0x38] ss:$20 sps:$4 sm:$0xff]   ;;  %v12285_v34 = vld [vmem:[%s12866_s1 + $0x34] ss:$20 sps:$4 sm:$0xff]  }
 0x1be   : > { %10629 = vmatprep.subr.bf16.mxu1 %v11133_v46  ;;  %v9733_v19 = vpop.f32.mrb[44].mxu0  ;;  %10635 = vmatprep.mubr.msk.bf16.mxu1 %vm562_vm0, %v12248_v61  ;;  %v12252_v21 = vadd.f32 %v9760_v48, %v2431_v52  ;;  %v11153_v48 = vld [vmem:[%s11468_s21 + $0xc38] sm:$0xff]  }
 0x1bf   : > { %v9734_v58 = vpop.f32.mrb[45].mxu0  ;;  %v9761_v4 = vpop.f32.mrb[44].mxu1 }
 0x1c0   : > { %10070 = vmatpush3.bf16.msra.mxu0 %v11134_v25  ;;  %v9735_v2 = vadd.f32 %v9734_v58, %v9733_v19  ;;  %v9736_v6 = vpop.f32.mrb[46].mxu0  ;;  %v9762_v10 = vpop.f32.mrb[45].mxu1  ;;  %v11155_v19 = vld [vmem:[%s11468_s21 + $0xbf8] sm:$0xff]   ;;  %v11157_v58 = vld [vmem:[%s11468_s21 + $0xc40] sm:$0xff]  }
 0x1c1   : > { %10630 = vmatpush3.bf16.msra.mxu1 %v11133_v46  ;;  %10071 = vmatprep.subr.bf16.mxu0 %v11135_v8  ;;  %v9737_v24 = vpop.f32.mrb[47].mxu0  ;;  %v9763_v27 = vadd.f32 %v9762_v10, %v9761_v4  ;;  %v9764_v11 = vpop.f32.mrb[46].mxu1  ;;  %v11158_v4 = vld [vmem:[%s11468_s21 + $0xcc0] sm:$0xff]  }
 0x1c2   : > { %10631 = vmatprep.subr.bf16.mxu1 %v11136_v59  ;;  %v2436_v12 = vadd.f32 %v9735_v2, %v11856_v7  ;;  %v9738_v33 = vadd.f32 %v9737_v24, %v9736_v6  ;;  %v9765_v38 = vpop.f32.mrb[47].mxu1  ;;  %v11159_v2 = vld [vmem:[%s11468_s21 + $0xc00] sm:$0xff]  }
 0x1c3   : > { %v9766_v36 = vadd.f32 %v9765_v38, %v9764_v11  ;;  %v11160_v10 = vld [vmem:[%s11468_s21 + $0xc80] sm:$0xff]  }
 0x1c4   : > { %10072 = vmatpush3.bf16.msra.mxu0 %v11137_v62  ;;  %v2439_v47 = vadd.f32 %v9738_v33, %v11869_v22  ;;  %v2485_v51 = vadd.f32 %v9763_v27, %v2436_v12  ;;  %v11161_v27 = vld [vmem:[%s11468_s21 + $0xc48] sm:$0xff]  }
 0x1c5   : > { %10632 = vmatpush3.bf16.msra.mxu1 %v11136_v59  ;;  %10073 = vmatprep.subr.bf16.mxu0 %v11138_v32  ;;  %v12313_v59 = vld [vmem:[%s12866_s1 + $0x30] ss:$20 sps:$4 sm:$0xff]   ;;  %v11162_v12 = vld [vmem:[%s11468_s21 + $0xcc8] sm:$0xff]  }
 0x1c6   : > { %10633 = vmatprep.subr.bf16.mxu1 %v11139_v35  ;;  %v2488_v30 = vadd.f32 %v9766_v36, %v2439_v47  ;;  %v11164_v36 = vld [vmem:[%s11468_s21 + $0xc88] sm:$0xff]   ;;  %v11165_v47 = vld [vmem:[%s11468_s21 + $0xc50] sm:$0xff]  }
 0x1c8   : > { %10074 = vmatpush3.bf16.msra.mxu0 %v11140_v50  ;;  %v11166_v50 = vld [vmem:[%s11468_s21 + $0xcd0] sm:$0xff]  }
 0x1c9   : > { %10634 = vmatpush3.bf16.msra.mxu1 %v11139_v35  ;;  %10095 = vmatprep.subr.bf16.mxu0 %v11141_v15  ;;  %v11163_v35 = vld [vmem:[%s11468_s21 + $0xc08] sm:$0xff]  }
 0x1ca   : > { %10123 = vmatprep.subr.bf16.mxu1 %v11142_v23  ;;  %v11168_v23 = vld [vmem:[%s11468_s21 + $0xc90] sm:$0xff]  }
 0x1cb   : > { %4755 = vmatmul.mubr.bf16.vlgmr.msra.gmra.mrb[92].mxu0 %v12269_v43 }
 0x1cc   : > { %10636 = vmatmul.mubr.msk.bf16.vlgmr.msra.gmra.mrb[96].mxu1 %vm562_vm0, %v12276_v60  ;;  %10096 = vmatpush3.bf16.msra.mxu0 %v11143_v55  ;;  %v11169_v55 = vld [vmem:[%s11468_s21 + $0xc58] sm:$0xff]  }
 0x1cd   : > { %10124 = vmatpush3.bf16.msra.mxu1 %v11144_v28  ;;  %10097 = vmatprep.subr.bf16.mxu0 %v11145_v17 }
 0x1ce   : > { %v10557_v29 = vpop.f32.mrb[48].mxu0  ;;  %10125 = vmatprep.subr.bf16.mxu1 %v11146_v20  ;;  %4762 = vmatprep.mubr.bf16.mxu0 %v12285_v34  ;;  %v11170_v20 = vld [vmem:[%s11468_s21 + $0xcd8] sm:$0xff]  }
 0x1cf   : > { %v12289_v39 = vadd.f32 %v10557_v29, %v2485_v51  ;;  %v2525_v41 = vpop.f32.mrb[49].mxu0  ;;  %5210 = vmatprep.mubr.bf16.mxu1 %v12206_v53  ;;  %v11167_v51 = vld [vmem:[%s11468_s21 + $0xc10] sm:$0xff]   ;;  %v11172_v29 = vld [vmem:[%s11468_s21 + $0xc98] sm:$0xff]  }
 0x1d0   : > { %v12294_v54 = vadd.f32 %v2525_v41, %v12241_v56  ;;  %v10558_v44 = vpop.f32.mrb[50].mxu0  ;;  %10098 = vmatpush3.bf16.msra.mxu0 %v11147_v26  ;;  %v11154_v56 = vld [vmem:[%s11468_s21 + $0xcb8] sm:$0xff]   ;;  %v11174_v41 = vld [vmem:[%s11468_s21 + $0xd50] sm:$0xff]  }
 0x1d1   : > { %v2542_v63 = vmax.f32 %v12188_v13, %v12289_v39  ;;  %v12299_v14 = vadd.f32 %v10558_v44, %v2488_v30  ;;  %10126 = vmatpush3.bf16.msra.mxu1 %v11148_v49  ;;  %v2528_v46 = vpop.f32.mrb[51].mxu0  ;;  %10099 = vmatprep.subr.bf16.mxu0 %v11149_v45  ;;  %v11171_v49 = vld [vmem:[%s11468_s21 + $0xc18] sm:$0xff]   ;;  %v11176_v44 = vld [vmem:[%s11468_s21 + $0xce8] sm:$0xff]  }
 0x1d2   : > { %v2540_v52 = vmax.f32 %v12159_v0, %v12294_v54  ;;  %v12305_v25 = vadd.f32 %v2528_v46, %v12252_v21  ;;  %10127 = vmatprep.subr.bf16.mxu1 %v11150_v1  ;;  %v11156_v21 = vld [vmem:[%s11468_s21 + $0xc78] sm:$0xff]   ;;  %v11173_v1 = vld [vmem:[%s11468_s21 + $0xce0] sm:$0xff]   ;;  %v11197_v13 = vld [vmem:[%s11468_s21 + $0xd48] sm:$0xff]  }
 0x1d3   : > { %v2543_v8 = vmax.f32 %v12195_v40, %v12299_v14  ;;  %4763 = vmatmul.mubr.bf16.gmra.mrb[96].mxu0 %v12313_v59  ;;  %v11178_v46 = vld [vmem:[%s11468_s21 + $0xd18] sm:$0xff]   ;;  %v11199_v40 = vld [vmem:[%s11468_s21 + $0xde0] sm:$0xff]  }
 0x1d4   : > { %v2541_v62 = vmax.f32 %v12175_v18, %v12305_v25  ;;  %10100 = vmatpush3.bf16.msra.mxu0 %v11151_v42  ;;  %5161 = vmatprep.mubr.bf16.mxu0 %v12167_v16  ;;  %v11175_v42 = vld [vmem:[%s11468_s21 + $0xd10] sm:$0xff]   ;;  %v11189_v18 = vld [vmem:[%s11468_s21 + $0xd78] sm:$0xff]   ;;  %v11201_v14 = vld [vmem:[%s11468_s21 + $0xda0] sm:$0xff]  }
 0x1d5   : > { %10128 = vmatpush3.bf16.msra.mxu1 %v11152_v37  ;;  %10101 = vmatprep.subr.bf16.mxu0 %v11153_v48  ;;  %v11177_v37 = vld [vmem:[%s11468_s21 + $0xd58] sm:$0xff]   ;;  %v11179_v48 = vld [vmem:[%s11468_s21 + $0xcf0] sm:$0xff]  }
 0x1d6   : > { %10129 = vmatprep.subr.bf16.mxu1 %v11154_v56  ;;  %v11198_v39 = vld [vmem:[%s11468_s21 + $0xd98] sm:$0xff]  }
 0x1d7   : > { %v9791_v6 = vpop.f32.mrb[48].mxu1 }
 0x1d8   : > { %10102 = vmatpush3.bf16.msra.mxu0 %v11155_v19  ;;  %v9792_v24 = vpop.f32.mrb[49].mxu1  ;;  %v11180_v19 = vld [vmem:[%s11468_s21 + $0xd60] sm:$0xff]  }
 0x1d9   : > { %10130 = vmatpush3.bf16.msra.mxu1 %v11156_v21  ;;  %10103 = vmatprep.subr.bf16.mxu0 %v11157_v58  ;;  %v9793_v32 = vadd.f32 %v9792_v24, %v9791_v6  ;;  %v9794_v11 = vpop.f32.mrb[50].mxu1 }
 0x1da   : > { %10131 = vmatprep.subr.bf16.mxu1 %v11158_v4  ;;  %v9795_v33 = vpop.f32.mrb[51].mxu1  ;;  %v11181_v4 = vld [vmem:[%s11468_s21 + $0xd20] sm:$0xff]  }
 0x1db   : > { %v9796_v38 = vadd.f32 %v9795_v33, %v9794_v11  ;;  %v2884_v6 = vadd.f32 %v9793_v32, %v11844_v57 }
 0x1dc   : > { %10104 = vmatpush3.bf16.msra.mxu0 %v11159_v2  ;;  %v11182_v2 = vld [vmem:[%s11468_s21 + $0xcf8] sm:$0xff]  }
 0x1dd   : > { %10132 = vmatpush3.bf16.msra.mxu1 %v11160_v10  ;;  %10105 = vmatprep.subr.bf16.mxu0 %v11161_v27  ;;  %v2887_v33 = vadd.f32 %v9796_v38, %v11851_v3 }
 0x1de   : > { %10133 = vmatprep.subr.bf16.mxu1 %v11162_v12 }
 0x1df   : > { %v9797_v15 = vpop.f32.mrb[52].mxu1 }
 0x1e0   : > { %10106 = vmatpush3.bf16.msra.mxu0 %v11163_v35  ;;  %v9798_v30 = vpop.f32.mrb[53].mxu1 }
 0x1e1   : > { %10134 = vmatpush3.bf16.msra.mxu1 %v11164_v36  ;;  %10107 = vmatprep.subr.bf16.mxu0 %v11165_v47  ;;  %v12334_v28 = vadd.f32 %v9798_v30, %v9797_v15  ;;  %v9800_v17 = vpop.f32.mrb[54].mxu1  ;;  %v11184_v15 = vld [vmem:[%s11468_s21 + $0xd28] sm:$0xff]  }
 0x1e2   : > { %10135 = vmatprep.subr.bf16.mxu1 %v11166_v50  ;;  %v9801_v26 = vpop.f32.mrb[55].mxu1  ;;  %v11183_v50 = vld [vmem:[%s11468_s21 + $0xd68] sm:$0xff]  }
 0x1e3   : > { %v12338_v45 = vadd.f32 %v9801_v26, %v9800_v17  ;;  %v11186_v17 = vld [vmem:[%s11468_s21 + $0xd70] sm:$0xff]   ;;  %v2892_v26 = vadd.f32 %v12334_v28, %v11856_v7 }
 0x1e4   : > { %10108 = vmatpush3.bf16.msra.mxu0 %v11167_v51 }
 0x1e5   : > { %10136 = vmatpush3.bf16.msra.mxu1 %v11168_v23  ;;  %10109 = vmatprep.subr.bf16.mxu0 %v11169_v55  ;;  %v11185_v23 = vld [vmem:[%s11468_s21 + $0xd00] sm:$0xff]  }
 0x1e6   : > { %10137 = vmatprep.subr.bf16.mxu1 %v11170_v20 }
 0x1e8   : > { %10110 = vmatpush3.bf16.msra.mxu0 %v11171_v49  ;;  %v11187_v49 = vld [vmem:[%s11468_s21 + $0xd30] sm:$0xff]  }
 0x1e9   : > { %10138 = vmatpush3.bf16.msra.mxu1 %v11172_v29  ;;  %10639 = vmatprep.subr.bf16.mxu0 %v11173_v1 }
 0x1ea   : > { %10159 = vmatprep.subr.bf16.mxu1 %v11174_v41 }
 0x1eb   : > { %5162 = vmatmul.mubr.bf16.vlgmr.msra.gmra.mrb[100].mxu0 %v12217_v5 }
 0x1ec   : > { %5211 = vmatmul.mubr.bf16.vlgmr.msra.gmra.mrb[100].mxu1 %v12269_v43  ;;  %10640 = vmatpush3.bf16.msra.mxu0 %v11173_v1  ;;  %v11188_v1 = vld [vmem:[%s11468_s21 + $0xd08] sm:$0xff]  }
 0x1ed   : > { %10160 = vmatpush3.bf16.msra.mxu1 %v11175_v42  ;;  %10641 = vmatprep.subr.bf16.mxu0 %v11176_v44  ;;  %v11190_v42 = vld [vmem:[%s11468_s21 + $0xd38] sm:$0xff]  }
 0x1ee   : > { %v9819_v56 = vpop.f32.mrb[52].mxu0  ;;  %10161 = vmatprep.subr.bf16.mxu1 %v11177_v37  ;;  %5169 = vmatprep.mubr.bf16.mxu0 %v12226_v31 }
 0x1ef   : > { %v9820_v21 = vpop.f32.mrb[53].mxu0  ;;  %v10573_v58 = vpop.f32.mrb[56].mxu1  ;;  %5218 = vmatprep.mubr.bf16.mxu1 %v12285_v34 }
 0x1f0   : > { %v9821_v10 = vadd.f32 %v9820_v21, %v9819_v56  ;;  %v9822_v24 = vpop.f32.mrb[54].mxu0  ;;  %10642 = vmatpush3.bf16.msra.mxu0 %v11176_v44  ;;  %v2981_v27 = vpop.f32.mrb[57].mxu1  ;;  %v11192_v44 = vld [vmem:[%s11468_s21 + $0xdd0] sm:$0xff]   ;;  %v11196_v21 = vld [vmem:[%s11468_s21 + $0xdd8] sm:$0xff]  }
 0x1f1   : > { %10162 = vmatpush3.bf16.msra.mxu1 %v11178_v46  ;;  %v9823_v11 = vpop.f32.mrb[55].mxu0  ;;  %10643 = vmatprep.subr.bf16.mxu0 %v11179_v48  ;;  %v10574_v12 = vpop.f32.mrb[58].mxu1  ;;  %v11194_v56 = vld [vmem:[%s11468_s21 + $0xd90] sm:$0xff]  }
 0x1f2   : > { %v9824_v35 = vadd.f32 %v9823_v11, %v9822_v24  ;;  %v2933_v36 = vadd.f32 %v9821_v10, %v2884_v6  ;;  %10163 = vmatprep.subr.bf16.mxu1 %v11180_v19  ;;  %v2984_v47 = vpop.f32.mrb[59].mxu1  ;;  %v11206_v10 = vld [vmem:[%s11468_s21 + $0xe20] sm:$0xff]   ;;  %v11207_v11 = vld [vmem:[%s11468_s21 + $0xdb0] sm:$0xff]  }
 0x1f3   : > { %5170 = vmatmul.mubr.bf16.gmra.mrb[104].mxu0 %v12238_v9 }
 0x1f4   : > { %v2982_v32 = vadd.f32 %v2981_v27, %v2933_v36  ;;  %10644 = vmatpush3.bf16.msra.mxu0 %v11179_v48  ;;  %v2936_v51 = vadd.f32 %v9824_v35, %v2887_v33  ;;  %5219 = vmatmul.mubr.bf16.gmra.mrb[104].mxu1 %v12313_v59  ;;  %v11193_v48 = vld [vmem:[%s11468_s21 + $0xd40] sm:$0xff]  }
 0x1f5   : > { %10164 = vmatpush3.bf16.msra.mxu1 %v11181_v4  ;;  %10645 = vmatprep.subr.bf16.mxu0 %v11182_v2  ;;  %v11203_v4 = vld [vmem:[%s11468_s21 + $0xe18] sm:$0xff]  }
 0x1f6   : > { %v12365_v38 = vmax.f32 %v2540_v52, %v2982_v32  ;;  %v2985_v30 = vadd.f32 %v2984_v47, %v2936_v51  ;;  %v9825_v55 = vpop.f32.mrb[56].mxu0  ;;  %10165 = vmatprep.subr.bf16.mxu1 %v11183_v50  ;;  %10651 = vmatprep.mubr.msk.bf16.mxu0 %vm562_vm0, %v12248_v61  ;;  %v11208_v50 = vld [vmem:[%s11468_s21 + $0xdf8] sm:$0xff]  }
 0x1f7   : > { %v9826_v20 = vpop.f32.mrb[57].mxu0  ;;  %5617 = vmatprep.mubr.bf16.mxu1 %v12167_v16  ;;  %v2895_v16 = vadd.f32 %v12338_v45, %v11869_v22  ;;  %v11191_v45 = vld [vmem:[%s11468_s21 + $0xd80] sm:$0xff]  }
 0x1f8   : > { %v12376_v0 = vmax.f32 %v2541_v62, %v2985_v30  ;;  %v9827_v54 = vadd.f32 %v9826_v20, %v9825_v55  ;;  %v9828_v52 = vpop.f32.mrb[58].mxu0  ;;  %10646 = vmatpush3.bf16.msra.mxu0 %v11182_v2  ;;  %v11204_v2 = vld [vmem:[%s11468_s21 + $0xda8] sm:$0xff]   ;;  %v11210_v55 = vld [vmem:[%s11468_s21 + $0xdb8] sm:$0xff]   ;;  %v11211_v20 = vld [vmem:[%s11468_s21 + $0xe00] sm:$0xff]  }
 0x1f9   : > { %10166 = vmatpush3.bf16.msra.mxu1 %v11184_v15  ;;  %v9829_v29 = vpop.f32.mrb[59].mxu0  ;;  %10647 = vmatprep.subr.bf16.mxu0 %v11185_v23  ;;  %v11209_v15 = vld [vmem:[%s11468_s21 + $0xe28] sm:$0xff]  }
 0x1fa   : > { %v2941_v28 = vadd.f32 %v9827_v54, %v2892_v26  ;;  %v9830_v41 = vadd.f32 %v9829_v29, %v9828_v52  ;;  %10167 = vmatprep.subr.bf16.mxu1 %v11186_v17  ;;  %v11212_v26 = vld [vmem:[%s11468_s21 + $0xe30] sm:$0xff]  }
 0x1fc   : > { %v2990_v25 = vadd.f32 %v10573_v58, %v2941_v28  ;;  %v2944_v62 = vadd.f32 %v9830_v41, %v2895_v16  ;;  %10648 = vmatpush3.bf16.msra.mxu0 %v11185_v23  ;;  %v11195_v58 = vld [vmem:[%s11468_s21 + $0xd88] sm:$0xff]  }
 0x1fd   : > { %10168 = vmatpush3.bf16.msra.mxu1 %v11187_v49  ;;  %10649 = vmatprep.subr.bf16.mxu0 %v11188_v1  ;;  %v11213_v49 = vld [vmem:[%s11468_s21 + $0xdc0] sm:$0xff]   ;;  %v11214_v16 = vld [vmem:[%s11468_s21 + $0xe08] sm:$0xff]  }
 0x1fe   : > { %v2993_v37 = vadd.f32 %v10574_v12, %v2944_v62  ;;  %10169 = vmatprep.subr.bf16.mxu1 %v11189_v18  ;;  %v12389_v46 = vmax.f32 %v2542_v63, %v2990_v25  ;;  %v11200_v63 = vld [vmem:[%s11468_s21 + $0xe10] sm:$0xff]  }
 0x200   : > { %10650 = vmatpush3.bf16.msra.mxu0 %v11188_v1  ;;  %v12396_v19 = vmax.f32 %v2543_v8, %v2993_v37  ;;  %v11202_v8 = vld [vmem:[%s11468_s21 + $0xde8] sm:$0xff]  }
 0x201   : > { %10170 = vmatpush3.bf16.msra.mxu1 %v11190_v42  ;;  %10187 = vmatprep.subr.bf16.mxu0 %v11192_v44  ;;  %v11215_v44 = vld [vmem:[%s11468_s21 + $0xe38] sm:$0xff]  }
 0x202   : > { %10171 = vmatprep.subr.bf16.mxu1 %v11191_v45 }
 0x203   : > { %10652 = vmatmul.mubr.msk.bf16.vlgmr.msra.gmra.mrb[108].mxu0 %vm562_vm0, %v12276_v60 }
 0x204   : > { %10188 = vmatpush3.bf16.msra.mxu0 %v11194_v56  ;;  %5666 = vmatprep.mubr.bf16.mxu0 %v12206_v53  ;;  %v11205_v53 = vld [vmem:[%s11468_s21 + $0xdf0] sm:$0xff]   ;;  %v11216_v56 = vld [vmem:[%s11468_s21 + $0xdc8] sm:$0xff]  }
 0x205   : > { %10172 = vmatpush3.bf16.msra.mxu1 %v11193_v48  ;;  %10189 = vmatprep.subr.bf16.mxu0 %v11196_v21 }
 0x206   : > { %10173 = vmatprep.subr.bf16.mxu1 %v11195_v58  ;;  %v11217_v58 = vld [vmem:[%s11468_s21 + $0xe80] sm:$0xff]  }
 0x208   : > { %10190 = vmatpush3.bf16.msra.mxu0 %v11198_v39 }
 0x209   : > { %10174 = vmatpush3.bf16.msra.mxu1 %v11197_v13  ;;  %10191 = vmatprep.subr.bf16.mxu0 %v11199_v40  ;;  %v11218_v13 = vld [vmem:[%s11468_s21 + $0xf00] sm:$0xff]  }
 0x20a   : > { %10655 = vmatprep.subr.bf16.mxu1 %v11200_v63  ;;  %v11219_v40 = vld [vmem:[%s11468_s21 + $0xe40] sm:$0xff]  }
 0x20c   : > { %5618 = vmatmul.mubr.bf16.vlgmr.msra.gmra.mrb[108].mxu1 %v12217_v5  ;;  %10192 = vmatpush3.bf16.msra.mxu0 %v11201_v14  ;;  %v11221_v14 = vld [vmem:[%s11468_s21 + $0xe88] sm:$0xff]  }
 0x20d   : > { %10656 = vmatpush3.bf16.msra.mxu1 %v11200_v63  ;;  %10193 = vmatprep.subr.bf16.mxu0 %v11202_v8  ;;  %v11220_v63 = vld [vmem:[%s11468_s21 + $0xec0] sm:$0xff]   ;;  %v11222_v8 = vld [vmem:[%s11468_s21 + $0xf08] sm:$0xff]  }
 0x20e   : > { %v9855_v6 = vpop.f32.mrb[60].mxu0  ;;  %10657 = vmatprep.subr.bf16.mxu1 %v11203_v4  ;;  %5625 = vmatprep.mubr.bf16.mxu1 %v12226_v31 }
 0x20f   : > { %v9856_v24 = vpop.f32.mrb[61].mxu0  ;;  %v9883_v27 = vpop.f32.mrb[60].mxu1 }
 0x210   : > { %v9857_v12 = vadd.f32 %v9856_v24, %v9855_v6  ;;  %v9858_v33 = vpop.f32.mrb[62].mxu0  ;;  %10194 = vmatpush3.bf16.msra.mxu0 %v11204_v2  ;;  %v9884_v5 = vpop.f32.mrb[61].mxu1  ;;  %v11224_v2 = vld [vmem:[%s11468_s21 + $0xec8] sm:$0xff]  }
 0x211   : > { %10658 = vmatpush3.bf16.msra.mxu1 %v11203_v4  ;;  %v9859_v35 = vpop.f32.mrb[63].mxu0  ;;  %v9885_v36 = vadd.f32 %v9884_v5, %v9883_v27  ;;  %v9886_v47 = vpop.f32.mrb[62].mxu1  ;;  %10195 = vmatprep.subr.bf16.mxu0 %v11205_v53  ;;  %v11223_v4 = vld [vmem:[%s11468_s21 + $0xe48] sm:$0xff]   ;;  %v11225_v53 = vld [vmem:[%s11468_s21 + $0xe90] sm:$0xff]  }
 0x212   : > { %v3340_v32 = vadd.f32 %v9857_v12, %v11844_v57  ;;  %v9860_v31 = vadd.f32 %v9859_v35, %v9858_v33  ;;  %v9887_v51 = vpop.f32.mrb[63].mxu1  ;;  %10659 = vmatprep.subr.bf16.mxu1 %v11206_v10 }
 0x213   : > { %v9888_v23 = vadd.f32 %v9887_v51, %v9886_v47  ;;  %v11231_v51 = vld [vmem:[%s11468_s21 + $0xe58] sm:$0xff]  }
 0x214   : > { %v3343_v30 = vadd.f32 %v9860_v31, %v11851_v3  ;;  %10196 = vmatpush3.bf16.msra.mxu0 %v11207_v11  ;;  %5626 = vmatmul.mubr.bf16.gmra.mrb[112].mxu1 %v12238_v9  ;;  %v12422_v17 = vadd.f32 %v9885_v36, %v3340_v32  ;;  %v11229_v36 = vld [vmem:[%s11468_s21 + $0xe98] sm:$0xff]  }
 0x215   : > { %10660 = vmatpush3.bf16.msra.mxu1 %v11206_v10  ;;  %10197 = vmatprep.subr.bf16.mxu0 %v11208_v50  ;;  %v11226_v10 = vld [vmem:[%s11468_s21 + $0xf10] sm:$0xff]   ;;  %v11230_v32 = vld [vmem:[%s11468_s21 + $0xf18] sm:$0xff]  }
 0x216   : > { %10661 = vmatprep.subr.bf16.mxu1 %v11209_v15  ;;  %v9861_v54 = vpop.f32.mrb[64].mxu0  ;;  %10667 = vmatprep.mubr.msk.bf16.mxu1 %vm562_vm0, %v12248_v61  ;;  %v12428_v52 = vadd.f32 %v9888_v23, %v3343_v30  ;;  %v11232_v23 = vld [vmem:[%s11468_s21 + $0xed8] sm:$0xff]  }
 0x217   : > { %v9862_v29 = vpop.f32.mrb[65].mxu0  ;;  %v9889_v1 = vpop.f32.mrb[64].mxu1  ;;  %v12484_v30 = vld [vmem:[%s12866_s1 + $0x4] ss:$20 sps:$4 sm:$0xff]  }
 0x218   : > { %10198 = vmatpush3.bf16.msra.mxu0 %v11210_v55  ;;  %v9863_v9 = vadd.f32 %v9862_v29, %v9861_v54  ;;  %v9864_v28 = vpop.f32.mrb[66].mxu0  ;;  %v9890_v41 = vpop.f32.mrb[65].mxu1  ;;  %v11233_v55 = vld [vmem:[%s11468_s21 + $0xea0] sm:$0xff]  }
 0x219   : > { %10662 = vmatpush3.bf16.msra.mxu1 %v11209_v15  ;;  %10199 = vmatprep.subr.bf16.mxu0 %v11211_v20  ;;  %v9865_v18 = vpop.f32.mrb[67].mxu0  ;;  %v9891_v25 = vadd.f32 %v9890_v41, %v9889_v1  ;;  %v9892_v62 = vpop.f32.mrb[66].mxu1  ;;  %v11238_v1 = vld [vmem:[%s11468_s21 + $0xf28] sm:$0xff]  }
 0x21a   : > { %10663 = vmatprep.subr.bf16.mxu1 %v11212_v26  ;;  %v3348_v61 = vadd.f32 %v9863_v9, %v11856_v7  ;;  %v9866_v42 = vadd.f32 %v9865_v18, %v9864_v28  ;;  %v9893_v37 = vpop.f32.mrb[67].mxu1  ;;  %v11239_v9 = vld [vmem:[%s11468_s21 + $0xe68] sm:$0xff]   ;;  %v11241_v18 = vld [vmem:[%s11468_s21 + $0xeb0] sm:$0xff]  }
 0x21b   : > { %v9894_v45 = vadd.f32 %v9893_v37, %v9892_v62  ;;  %v11240_v41 = vld [vmem:[%s11468_s21 + $0xee8] sm:$0xff]   ;;  %v11243_v62 = vld [vmem:[%s11468_s21 + $0xe70] sm:$0xff]   ;;  %v11245_v37 = vld [vmem:[%s11468_s21 + $0xeb8] sm:$0xff]  }
 0x21c   : > { %10200 = vmatpush3.bf16.msra.mxu0 %v11213_v49  ;;  %v3351_v48 = vadd.f32 %v9866_v42, %v11869_v22  ;;  %v3397_v21 = vadd.f32 %v9891_v25, %v3348_v61  ;;  %v11242_v25 = vld [vmem:[%s11468_s21 + $0xf30] sm:$0xff]  }
 0x21d   : > { %10664 = vmatpush3.bf16.msra.mxu1 %v11212_v26  ;;  %10201 = vmatprep.subr.bf16.mxu0 %v11214_v16  ;;  %v11236_v26 = vld [vmem:[%s11468_s21 + $0xee0] sm:$0xff]   ;;  %v11244_v42 = vld [vmem:[%s11468_s21 + $0xef0] sm:$0xff]  }
 0x21e   : > { %10665 = vmatprep.subr.bf16.mxu1 %v11215_v44  ;;  %v3400_v39 = vadd.f32 %v9894_v45, %v3351_v48 }
 0x220   : > { %10202 = vmatpush3.bf16.msra.mxu0 %v11216_v56  ;;  %v11246_v56 = vld [vmem:[%s11468_s21 + $0xf38] sm:$0xff]  }
 0x221   : > { %10666 = vmatpush3.bf16.msra.mxu1 %v11215_v44  ;;  %10223 = vmatprep.subr.bf16.mxu0 %v11217_v58  ;;  %v11247_v58 = vld [vmem:[%s11468_s21 + $0xe78] sm:$0xff]  }
 0x222   : > { %10251 = vmatprep.subr.bf16.mxu1 %v11218_v13 }
 0x223   : > { %5667 = vmatmul.mubr.bf16.vlgmr.msra.gmra.mrb[112].mxu0 %v12269_v43  ;;  %v11227_v43 = vld [vmem:[%s11468_s21 + $0xe50] sm:$0xff]  }
 0x224   : > { %10668 = vmatmul.mubr.msk.bf16.vlgmr.msra.gmra.mrb[116].mxu1 %vm562_vm0, %v12276_v60  ;;  %10224 = vmatpush3.bf16.msra.mxu0 %v11219_v40  ;;  %v12456_v60 = vld [vmem:[%s12866_s1 + $0xc] ss:$20 sps:$4 sm:$0xff]  }
 0x225   : > { %10252 = vmatpush3.bf16.msra.mxu1 %v11220_v63  ;;  %10225 = vmatprep.subr.bf16.mxu0 %v11221_v14  ;;  %v11249_v40 = vld [vmem:[%s11468_s21 + $0xf40] sm:$0xff]   ;;  %v11250_v63 = vld [vmem:[%s11468_s21 + $0xfb0] sm:$0xff]  }
 0x226   : > { %v10589_v6 = vpop.f32.mrb[68].mxu0  ;;  %10253 = vmatprep.subr.bf16.mxu1 %v11222_v8  ;;  %5674 = vmatprep.mubr.bf16.mxu0 %v12285_v34  ;;  %v11228_v34 = vld [vmem:[%s11468_s21 + $0xed0] sm:$0xff]   ;;  %v11252_v8 = vld [vmem:[%s11468_s21 + $0xf48] sm:$0xff]  }
 0x227   : > { %v12450_v24 = vadd.f32 %v10589_v6, %v3397_v21  ;;  %v3437_v27 = vpop.f32.mrb[69].mxu0  ;;  %6122 = vmatprep.mubr.bf16.mxu1 %v12456_v60  ;;  %v11251_v14 = vld [vmem:[%s11468_s21 + $0xf70] sm:$0xff]   ;;  %v11254_v6 = vld [vmem:[%s11468_s21 + $0xf78] sm:$0xff]  }
 0x228   : > { %v12460_v11 = vadd.f32 %v3437_v27, %v12422_v17  ;;  %v10590_v12 = vpop.f32.mrb[70].mxu0  ;;  %10226 = vmatpush3.bf16.msra.mxu0 %v11223_v4  ;;  %v11235_v17 = vld [vmem:[%s11468_s21 + $0xe60] sm:$0xff]   ;;  %v11253_v4 = vld [vmem:[%s11468_s21 + $0xfb8] sm:$0xff]  }
 0x229   : > { %v3454_v33 = vmax.f32 %v12389_v46, %v12450_v24  ;;  %v12465_v5 = vadd.f32 %v10590_v12, %v3400_v39  ;;  %10254 = vmatpush3.bf16.msra.mxu1 %v11224_v2  ;;  %v3440_v35 = vpop.f32.mrb[71].mxu0  ;;  %10227 = vmatprep.subr.bf16.mxu0 %v11225_v53  ;;  %v11248_v39 = vld [vmem:[%s11468_s21 + $0xef8] sm:$0xff]   ;;  %v12517_v2 = vld [vmem:[%s12866_s1] ss:$20 sps:$4 sm:$0xff]  }
 0x22a   : > { %v3452_v47 = vmax.f32 %v12365_v38, %v12460_v11  ;;  %v12471_v50 = vadd.f32 %v3440_v35, %v12428_v52  ;;  %10255 = vmatprep.subr.bf16.mxu1 %v11226_v10  ;;  %v11237_v52 = vld [vmem:[%s11468_s21 + $0xea8] sm:$0xff]   ;;  %v11255_v10 = vld [vmem:[%s11468_s21 + $0xf50] sm:$0xff]   ;;  %v11274_v24 = vld [vmem:[%s11468_s21 + $0xff8] sm:$0xff]  }
 0x22b   : > { %v3455_v31 = vmax.f32 %v12396_v19, %v12465_v5  ;;  %5675 = vmatmul.mubr.bf16.gmra.mrb[116].mxu0 %v12313_v59  ;;  %v11234_v59 = vld [vmem:[%s11468_s21 + $0xf20] sm:$0xff]   ;;  %v12523_v53 = vld [vmem:[%s12866_s1 + $0x8] ss:$20 sps:$4 sm:$0xff]   ;;  %v12607_v46 = vld [vmem:[%s12866_s1 + $0x38] ss:$20 sps:$4 sm:$0xff]  }
 0x22c   : > { %v3453_v15 = vmax.f32 %v12376_v0, %v12471_v50  ;;  %10228 = vmatpush3.bf16.msra.mxu0 %v11227_v43  ;;  %6073 = vmatprep.mubr.bf16.mxu0 %v12484_v30  ;;  %v11256_v43 = vld [vmem:[%s11468_s21 + $0xfc0] sm:$0xff]   ;;  %v11265_v0 = vld [vmem:[%s11468_s21 + $0xfd8] sm:$0xff]   ;;  %v11273_v19 = vld [vmem:[%s11468_s21 + $0xfa8] sm:$0xff]  }
 0x22d   : > { %10256 = vmatpush3.bf16.msra.mxu1 %v11228_v34  ;;  %10229 = vmatprep.subr.bf16.mxu0 %v11229_v36  ;;  %v12532_v12 = vld [vmem:[%s12866_s1 + $0x2c] ss:$20 sps:$4 sm:$0xff]   ;;  %v12538_v36 = vld [vmem:[%s12866_s1 + $0x34] ss:$20 sps:$4 sm:$0xff]  }
 0x22e   : > { %10257 = vmatprep.subr.bf16.mxu1 %v11230_v32  ;;  %v11276_v5 = vld [vmem:[%s11468_s21 + $0x1070] sm:$0xff]  }
 0x22f   : > { %v9919_v20 = vpop.f32.mrb[68].mxu1 }
 0x230   : > { %10230 = vmatpush3.bf16.msra.mxu0 %v11231_v51  ;;  %v9920_v54 = vpop.f32.mrb[69].mxu1 }
 0x231   : > { %10258 = vmatpush3.bf16.msra.mxu1 %v11232_v23  ;;  %10231 = vmatprep.subr.bf16.mxu0 %v11233_v55  ;;  %v9921_v49 = vadd.f32 %v9920_v54, %v9919_v20  ;;  %v9922_v29 = vpop.f32.mrb[70].mxu1  ;;  %v11257_v20 = vld [vmem:[%s11468_s21 + $0xf80] sm:$0xff]  }
 0x232   : > { %10259 = vmatprep.subr.bf16.mxu1 %v11234_v59  ;;  %v9923_v16 = vpop.f32.mrb[71].mxu1 }
 0x233   : > { %v12494_v28 = vadd.f32 %v9923_v16, %v9922_v29  ;;  %v3796_v32 = vadd.f32 %v9921_v49, %v11844_v57  ;;  %v12550_v16 = vld [vmem:[%s12866_s1 + $0x28] ss:$20 sps:$4 sm:$0xff]  }
 0x234   : > { %10232 = vmatpush3.bf16.msra.mxu0 %v11235_v17 }
 0x235   : > { %10260 = vmatpush3.bf16.msra.mxu1 %v11236_v26  ;;  %10233 = vmatprep.subr.bf16.mxu0 %v11237_v52  ;;  %v11258_v26 = vld [vmem:[%s11468_s21 + $0xf58] sm:$0xff]   ;;  %v3799_v54 = vadd.f32 %v12494_v28, %v11851_v3  ;;  %v12557_v28 = vld [vmem:[%s12866_s1 + $0x30] ss:$20 sps:$4 sm:$0xff]  }
 0x236   : > { %10261 = vmatprep.subr.bf16.mxu1 %v11238_v1  ;;  %v11259_v1 = vld [vmem:[%s11468_s21 + $0xfc8] sm:$0xff]  }
 0x237   : > { %v9925_v61 = vpop.f32.mrb[72].mxu1 }
 0x238   : > { %10234 = vmatpush3.bf16.msra.mxu0 %v11239_v9  ;;  %v9926_v44 = vpop.f32.mrb[73].mxu1 }
 0x239   : > { %10262 = vmatpush3.bf16.msra.mxu1 %v11240_v41  ;;  %10235 = vmatprep.subr.bf16.mxu0 %v11241_v18  ;;  %v12502_v45 = vadd.f32 %v9926_v44, %v9925_v61  ;;  %v9928_v48 = vpop.f32.mrb[74].mxu1  ;;  %v11260_v18 = vld [vmem:[%s11468_s21 + $0xf88] sm:$0xff]   ;;  %v11262_v44 = vld [vmem:[%s11468_s21 + $0xfd0] sm:$0xff]  }
 0x23a   : > { %10263 = vmatprep.subr.bf16.mxu1 %v11242_v25  ;;  %v9929_v21 = vpop.f32.mrb[75].mxu1  ;;  %v11261_v25 = vld [vmem:[%s11468_s21 + $0xf60] sm:$0xff]  }
 0x23b   : > { %v12506_v13 = vadd.f32 %v9929_v21, %v9928_v48  ;;  %v3804_v38 = vadd.f32 %v12502_v45, %v11856_v7  ;;  %v11263_v21 = vld [vmem:[%s11468_s21 + $0xf90] sm:$0xff]  }
 0x23c   : > { %10236 = vmatpush3.bf16.msra.mxu0 %v11243_v62 }
 0x23d   : > { %10264 = vmatpush3.bf16.msra.mxu1 %v11244_v42  ;;  %10237 = vmatprep.subr.bf16.mxu0 %v11245_v37  ;;  %v12570_v37 = vld [vmem:[%s12866_s1 + $0x10] ss:$20 sps:$4 sm:$0xff]  }
 0x23e   : > { %10265 = vmatprep.subr.bf16.mxu1 %v11246_v56 }
 0x240   : > { %10238 = vmatpush3.bf16.msra.mxu0 %v11247_v58 }
 0x241   : > { %10266 = vmatpush3.bf16.msra.mxu1 %v11248_v39  ;;  %10671 = vmatprep.subr.bf16.mxu0 %v11249_v40  ;;  %v11264_v39 = vld [vmem:[%s11468_s21 + $0xf68] sm:$0xff]  }
 0x242   : > { %10287 = vmatprep.subr.bf16.mxu1 %v11250_v63 }
 0x243   : > { %6074 = vmatmul.mubr.bf16.vlgmr.msra.gmra.mrb[120].mxu0 %v12517_v2 }
 0x244   : > { %6123 = vmatmul.mubr.bf16.vlgmr.msra.gmra.mrb[120].mxu1 %v12523_v53  ;;  %10672 = vmatpush3.bf16.msra.mxu0 %v11249_v40  ;;  %v3807_v40 = vadd.f32 %v12506_v13, %v11869_v22  ;;  %v11267_v13 = vld [vmem:[%s11468_s21 + $0xfe0] sm:$0xff]  }
 0x245   : > { %10288 = vmatpush3.bf16.msra.mxu1 %v11251_v14  ;;  %10673 = vmatprep.subr.bf16.mxu0 %v11252_v8  ;;  %v11266_v14 = vld [vmem:[%s11468_s21 + $0xf98] sm:$0xff]  }
 0x246   : > { %v9947_v27 = vpop.f32.mrb[72].mxu0  ;;  %10289 = vmatprep.subr.bf16.mxu1 %v11253_v4  ;;  %6081 = vmatprep.mubr.bf16.mxu0 %v12532_v12 }
 0x247   : > { %v9948_v34 = vpop.f32.mrb[73].mxu0  ;;  %v10605_v35 = vpop.f32.mrb[76].mxu1  ;;  %6130 = vmatprep.mubr.bf16.mxu1 %v12538_v36 }
 0x248   : > { %v9949_v51 = vadd.f32 %v9948_v34, %v9947_v27  ;;  %v9950_v23 = vpop.f32.mrb[74].mxu0  ;;  %10674 = vmatpush3.bf16.msra.mxu0 %v11252_v8  ;;  %v3893_v55 = vpop.f32.mrb[77].mxu1  ;;  %v11268_v8 = vld [vmem:[%s11468_s21 + $0x1030] sm:$0xff]   ;;  %v11272_v34 = vld [vmem:[%s11468_s21 + $0x1038] sm:$0xff]  }
 0x249   : > { %10290 = vmatpush3.bf16.msra.mxu1 %v11254_v6  ;;  %v9951_v59 = vpop.f32.mrb[75].mxu0  ;;  %10675 = vmatprep.subr.bf16.mxu0 %v11255_v10  ;;  %v10606_v17 = vpop.f32.mrb[78].mxu1  ;;  %v11270_v27 = vld [vmem:[%s11468_s21 + $0xff0] sm:$0xff]  }
 0x24a   : > { %v9952_v52 = vadd.f32 %v9951_v59, %v9950_v23  ;;  %v3845_v29 = vadd.f32 %v9949_v51, %v3796_v32  ;;  %10291 = vmatprep.subr.bf16.mxu1 %v11256_v43  ;;  %v3896_v49 = vpop.f32.mrb[79].mxu1  ;;  %v11278_v32 = vld [vmem:[%s11468_s21 + $0x1048] sm:$0xff]   ;;  %v11279_v51 = vld [vmem:[%s11468_s21 + $0x1078] sm:$0xff]  }
 0x24b   : > { %6082 = vmatmul.mubr.bf16.gmra.mrb[124].mxu0 %v12550_v16  ;;  %v11280_v23 = vld [vmem:[%s11468_s21 + $0x1008] sm:$0xff]  }
 0x24c   : > { %v3894_v9 = vadd.f32 %v3893_v55, %v3845_v29  ;;  %10676 = vmatpush3.bf16.msra.mxu0 %v11255_v10  ;;  %v3848_v41 = vadd.f32 %v9952_v52, %v3799_v54  ;;  %6131 = vmatmul.mubr.bf16.gmra.mrb[124].mxu1 %v12557_v28  ;;  %v11269_v10 = vld [vmem:[%s11468_s21 + $0xfa0] sm:$0xff]   ;;  %v11281_v55 = vld [vmem:[%s11468_s21 + $0x1050] sm:$0xff]   ;;  %v11284_v52 = vld [vmem:[%s11468_s21 + $0x1058] sm:$0xff]  }
 0x24d   : > { %10292 = vmatpush3.bf16.msra.mxu1 %v11257_v20  ;;  %10677 = vmatprep.subr.bf16.mxu0 %v11258_v26  ;;  %v11283_v54 = vld [vmem:[%s11468_s21 + $0x1010] sm:$0xff]  }
 0x24e   : > { %v12564_v62 = vmax.f32 %v3452_v47, %v3894_v9  ;;  %v3897_v61 = vadd.f32 %v3896_v49, %v3848_v41  ;;  %v9953_v42 = vpop.f32.mrb[76].mxu0  ;;  %10293 = vmatprep.subr.bf16.mxu1 %v11259_v1  ;;  %10683 = vmatprep.mubr.msk.bf16.mxu0 %vm562_vm0, %v12570_v37 }
 0x24f   : > { %v9954_v48 = vpop.f32.mrb[77].mxu0  ;;  %6529 = vmatprep.mubr.bf16.mxu1 %v12484_v30 }
 0x250   : > { %v12580_v11 = vmax.f32 %v3453_v15, %v3897_v61  ;;  %v9955_v47 = vadd.f32 %v9954_v48, %v9953_v42  ;;  %v9956_v56 = vpop.f32.mrb[78].mxu0  ;;  %10678 = vmatpush3.bf16.msra.mxu0 %v11258_v26 }
 0x251   : > { %10294 = vmatpush3.bf16.msra.mxu1 %v11260_v18  ;;  %v9957_v58 = vpop.f32.mrb[79].mxu0  ;;  %10679 = vmatprep.subr.bf16.mxu0 %v11261_v25 }
 0x252   : > { %v3853_v45 = vadd.f32 %v9955_v47, %v3804_v38  ;;  %v9958_v63 = vadd.f32 %v9957_v58, %v9956_v56  ;;  %10295 = vmatprep.subr.bf16.mxu1 %v11262_v44  ;;  %v11285_v44 = vld [vmem:[%s11468_s21 + $0x1088] sm:$0xff]   ;;  %v11286_v47 = vld [vmem:[%s11468_s21 + $0x1018] sm:$0xff]   ;;  %v11288_v58 = vld [vmem:[%s11468_s21 + $0x1090] sm:$0xff]  }
 0x254   : > { %v3902_v50 = vadd.f32 %v10605_v35, %v3853_v45  ;;  %v3856_v15 = vadd.f32 %v9958_v63, %v3807_v40  ;;  %10680 = vmatpush3.bf16.msra.mxu0 %v11261_v25  ;;  %v11271_v35 = vld [vmem:[%s11468_s21 + $0xfe8] sm:$0xff]   ;;  %v11289_v45 = vld [vmem:[%s11468_s21 + $0x1020] sm:$0xff]  }
 0x255   : > { %10296 = vmatpush3.bf16.msra.mxu1 %v11263_v21  ;;  %10681 = vmatprep.subr.bf16.mxu0 %v11264_v39  ;;  %v11287_v21 = vld [vmem:[%s11468_s21 + $0x1060] sm:$0xff]  }
 0x256   : > { %v3905_v4 = vadd.f32 %v10606_v17, %v3856_v15  ;;  %10297 = vmatprep.subr.bf16.mxu1 %v11265_v0  ;;  %v12593_v6 = vmax.f32 %v3454_v33, %v3902_v50  ;;  %v11275_v33 = vld [vmem:[%s11468_s21 + $0x1040] sm:$0xff]  }
 0x257   : > { %v11282_v17 = vld [vmem:[%s11468_s21 + $0x1080] sm:$0xff]  }
 0x258   : > { %10682 = vmatpush3.bf16.msra.mxu0 %v11264_v39  ;;  %v12600_v43 = vmax.f32 %v3455_v31, %v3905_v4  ;;  %v11277_v31 = vld [vmem:[%s11468_s21 + $0x1000] sm:$0xff]  }
 0x259   : > { %10298 = vmatpush3.bf16.msra.mxu1 %v11266_v14  ;;  %10315 = vmatprep.subr.bf16.mxu0 %v11268_v8 }
 0x25a   : > { %10299 = vmatprep.subr.bf16.mxu1 %v11267_v13  ;;  %v11290_v13 = vld [vmem:[%s11468_s21 + $0x1068] sm:$0xff]  }
 0x25b   : > { %10684 = vmatmul.mubr.msk.bf16.vlgmr.msra.gmra.mrb[128].mxu0 %vm562_vm0, %v12607_v46 }
 0x25c   : > { %10316 = vmatpush3.bf16.msra.mxu0 %v11270_v27  ;;  %6578 = vmatprep.mubr.bf16.mxu0 %v12456_v60 }
 0x25d   : > { %10300 = vmatpush3.bf16.msra.mxu1 %v11269_v10  ;;  %10317 = vmatprep.subr.bf16.mxu0 %v11272_v34 }
 0x25e   : > { %10301 = vmatprep.subr.bf16.mxu1 %v11271_v35  ;;  %v11291_v35 = vld [vmem:[%s11468_s21 + $0x1098] sm:$0xff]  }
 0x260   : > { %10318 = vmatpush3.bf16.msra.mxu0 %v11274_v24 }
 0x261   : > { %10302 = vmatpush3.bf16.msra.mxu1 %v11273_v19  ;;  %10319 = vmatprep.subr.bf16.mxu0 %v11275_v33 }
 0x262   : > { %10687 = vmatprep.subr.bf16.mxu1 %v11276_v5 }
 0x264   : > { %6530 = vmatmul.mubr.bf16.vlgmr.msra.gmra.mrb[128].mxu1 %v12517_v2  ;;  %10320 = vmatpush3.bf16.msra.mxu0 %v11277_v31 }
 0x265   : > { %10688 = vmatpush3.bf16.msra.mxu1 %v11276_v5  ;;  %10321 = vmatprep.subr.bf16.mxu0 %v11278_v32  ;;  %v11292_v5 = vld [vmem:[%s11468_s21 + $0x1028] sm:$0xff]   ;;  %v11293_v32 = vld [vmem:[%s11468_s21 + $0x10e0] sm:$0xff]  }
 0x266   : > { %v9983_v59 = vpop.f32.mrb[80].mxu0  ;;  %10689 = vmatprep.subr.bf16.mxu1 %v11279_v51  ;;  %6537 = vmatprep.mubr.bf16.mxu1 %v12532_v12 }
 0x267   : > { %v9984_v20 = vpop.f32.mrb[81].mxu0  ;;  %v10011_v26 = vpop.f32.mrb[80].mxu1 }
 0x268   : > { %v9985_v29 = vadd.f32 %v9984_v20, %v9983_v59  ;;  %v9986_v49 = vpop.f32.mrb[82].mxu0  ;;  %10322 = vmatpush3.bf16.msra.mxu0 %v11280_v23  ;;  %v10012_v1 = vpop.f32.mrb[81].mxu1  ;;  %v11296_v59 = vld [vmem:[%s11468_s21 + $0x1120] sm:$0xff]   ;;  %v11298_v20 = vld [vmem:[%s11468_s21 + $0x1168] sm:$0xff]  }
 0x269   : > { %10690 = vmatpush3.bf16.msra.mxu1 %v11279_v51  ;;  %v9987_v9 = vpop.f32.mrb[83].mxu0  ;;  %v10013_v41 = vadd.f32 %v10012_v1, %v10011_v26  ;;  %v10014_v18 = vpop.f32.mrb[82].mxu1  ;;  %10323 = vmatprep.subr.bf16.mxu0 %v11281_v55  ;;  %v11294_v51 = vld [vmem:[%s11468_s21 + $0x1160] sm:$0xff]   ;;  %v11299_v26 = vld [vmem:[%s11468_s21 + $0x10a8] sm:$0xff]  }
 0x26a   : > { %v4252_v25 = vadd.f32 %v9985_v29, %v11844_v57  ;;  %v9988_v61 = vadd.f32 %v9987_v9, %v9986_v49  ;;  %v10015_v42 = vpop.f32.mrb[83].mxu1  ;;  %10691 = vmatprep.subr.bf16.mxu1 %v11282_v17  ;;  %v11295_v55 = vld [vmem:[%s11468_s21 + $0x10a0] sm:$0xff]   ;;  %v11302_v49 = vld [vmem:[%s11468_s21 + $0x1170] sm:$0xff]  }
 0x26b   : > { %v10016_v48 = vadd.f32 %v10015_v42, %v10014_v18 }
 0x26c   : > { %v4255_v38 = vadd.f32 %v9988_v61, %v11851_v3  ;;  %10324 = vmatpush3.bf16.msra.mxu0 %v11283_v54  ;;  %6538 = vmatmul.mubr.bf16.gmra.mrb[132].mxu1 %v12550_v16  ;;  %v4301_v56 = vadd.f32 %v10013_v41, %v4252_v25  ;;  %v11300_v54 = vld [vmem:[%s11468_s21 + $0x1128] sm:$0xff]   ;;  %v11303_v25 = vld [vmem:[%s11468_s21 + $0x10b0] sm:$0xff]  }
 0x26d   : > { %10692 = vmatpush3.bf16.msra.mxu1 %v11282_v17  ;;  %10325 = vmatprep.subr.bf16.mxu0 %v11284_v52  ;;  %v11297_v17 = vld [vmem:[%s11468_s21 + $0x10e8] sm:$0xff]   ;;  %v11301_v52 = vld [vmem:[%s11468_s21 + $0x10f0] sm:$0xff]  }
 0x26e   : > { %10693 = vmatprep.subr.bf16.mxu1 %v11285_v44  ;;  %v9989_v39 = vpop.f32.mrb[84].mxu0  ;;  %10699 = vmatprep.mubr.msk.bf16.mxu1 %vm562_vm0, %v12570_v37  ;;  %v12635_v40 = vadd.f32 %v10016_v48, %v4255_v38  ;;  %v11304_v48 = vld [vmem:[%s11468_s21 + $0x1130] sm:$0xff]   ;;  %v11305_v38 = vld [vmem:[%s11468_s21 + $0x10f8] sm:$0xff]  }
 0x26f   : > { %v9990_v63 = vpop.f32.mrb[85].mxu0  ;;  %v10017_v0 = vpop.f32.mrb[84].mxu1 }
 0x270   : > { %10326 = vmatpush3.bf16.msra.mxu0 %v11286_v47  ;;  %v9991_v50 = vadd.f32 %v9990_v63, %v9989_v39  ;;  %v9992_v15 = vpop.f32.mrb[86].mxu0  ;;  %v10018_v14 = vpop.f32.mrb[85].mxu1  ;;  %v11307_v39 = vld [vmem:[%s11468_s21 + $0x10b8] sm:$0xff]   ;;  %v11310_v63 = vld [vmem:[%s11468_s21 + $0x1180] sm:$0xff]  }
 0x271   : > { %10694 = vmatpush3.bf16.msra.mxu1 %v11285_v44  ;;  %10327 = vmatprep.subr.bf16.mxu0 %v11287_v21  ;;  %v9993_v8 = vpop.f32.mrb[87].mxu0  ;;  %v10019_v4 = vadd.f32 %v10018_v14, %v10017_v0  ;;  %v10020_v10 = vpop.f32.mrb[86].mxu1  ;;  %v11312_v14 = vld [vmem:[%s11468_s21 + $0x1140] sm:$0xff]  }
 0x272   : > { %10695 = vmatprep.subr.bf16.mxu1 %v11288_v58  ;;  %v4260_v27 = vadd.f32 %v9991_v50, %v11856_v7  ;;  %v9994_v34 = vadd.f32 %v9993_v8, %v9992_v15  ;;  %v10021_v19 = vpop.f32.mrb[87].mxu1  ;;  %v11311_v50 = vld [vmem:[%s11468_s21 + $0x10c0] sm:$0xff]   ;;  %v11313_v8 = vld [vmem:[%s11468_s21 + $0x1108] sm:$0xff]  }
 0x273   : > { %v10022_v24 = vadd.f32 %v10021_v19, %v10020_v10  ;;  %v11317_v19 = vld [vmem:[%s11468_s21 + $0x1110] sm:$0xff]  }
 0x274   : > { %10328 = vmatpush3.bf16.msra.mxu0 %v11289_v45  ;;  %v4263_v33 = vadd.f32 %v9994_v34, %v11869_v22  ;;  %v4309_v31 = vadd.f32 %v10019_v4, %v4260_v27  ;;  %v11309_v45 = vld [vmem:[%s11468_s21 + $0x1100] sm:$0xff]   ;;  %v11315_v34 = vld [vmem:[%s11468_s21 + $0x10c8] sm:$0xff]  }
 0x275   : > { %10696 = vmatpush3.bf16.msra.mxu1 %v11288_v58  ;;  %10329 = vmatprep.subr.bf16.mxu0 %v11290_v13  ;;  %v11314_v13 = vld [vmem:[%s11468_s21 + $0x1188] sm:$0xff]  }
 0x276   : > { %10697 = vmatprep.subr.bf16.mxu1 %v11291_v35  ;;  %v4312_v23 = vadd.f32 %v10022_v24, %v4263_v33  ;;  %v11318_v24 = vld [vmem:[%s11468_s21 + $0x1190] sm:$0xff]  }
 0x278   : > { %10330 = vmatpush3.bf16.msra.mxu0 %v11292_v5  ;;  %v11319_v5 = vld [vmem:[%s11468_s21 + $0x10d0] sm:$0xff]  }
 0x279   : > { %10698 = vmatpush3.bf16.msra.mxu1 %v11291_v35  ;;  %10351 = vmatprep.subr.bf16.mxu0 %v11293_v32  ;;  %v11316_v35 = vld [vmem:[%s11468_s21 + $0x1148] sm:$0xff]   ;;  %v11320_v32 = vld [vmem:[%s11468_s21 + $0x1150] sm:$0xff]  }
 0x27a   : > { %10379 = vmatprep.subr.bf16.mxu1 %v11294_v51  ;;  %v11321_v51 = vld [vmem:[%s11468_s21 + $0x1118] sm:$0xff]  }
 0x27b   : > { %6579 = vmatmul.mubr.bf16.vlgmr.msra.gmra.mrb[132].mxu0 %v12523_v53 }
 0x27c   : > { %10700 = vmatmul.mubr.msk.bf16.vlgmr.msra.gmra.mrb[136].mxu1 %vm562_vm0, %v12607_v46  ;;  %10352 = vmatpush3.bf16.msra.mxu0 %v11295_v55 }
 0x27d   : > { %10380 = vmatpush3.bf16.msra.mxu1 %v11296_v59  ;;  %10353 = vmatprep.subr.bf16.mxu0 %v11297_v17  ;;  %v11322_v59 = vld [vmem:[%s11468_s21 + $0x1198] sm:$0xff]  }
 0x27e   : > { %v10621_v29 = vpop.f32.mrb[88].mxu0  ;;  %10381 = vmatprep.subr.bf16.mxu1 %v11298_v20  ;;  %6586 = vmatprep.mubr.bf16.mxu0 %v12538_v36 }
 0x27f   : > { %v12657_v1 = vadd.f32 %v10621_v29, %v4309_v31  ;;  %v4349_v9 = vpop.f32.mrb[89].mxu0  ;;  %7034 = vmatprep.mubr.bf16.mxu1 %v12456_v60  ;;  %v11326_v29 = vld [vmem:[%s11468_s21 + $0x1210] sm:$0xff]  }
 0x280   : > { %v12660_v41 = vadd.f32 %v4349_v9, %v4301_v56  ;;  %v10622_v18 = vpop.f32.mrb[90].mxu0  ;;  %10354 = vmatpush3.bf16.msra.mxu0 %v11299_v26  ;;  %v11306_v56 = vld [vmem:[%s11468_s21 + $0x1178] sm:$0xff]   ;;  %v11328_v9 = vld [vmem:[%s11468_s21 + $0x11a8] sm:$0xff]  }
 0x281   : > { %v4366_v61 = vmax.f32 %v12593_v6, %v12657_v1  ;;  %v12665_v42 = vadd.f32 %v10622_v18, %v4312_v23  ;;  %10382 = vmatpush3.bf16.msra.mxu1 %v11300_v54  ;;  %v4352_v44 = vpop.f32.mrb[91].mxu0  ;;  %10355 = vmatprep.subr.bf16.mxu0 %v11301_v52  ;;  %v11323_v26 = vld [vmem:[%s11468_s21 + $0x10d8] sm:$0xff]   ;;  %v11325_v52 = vld [vmem:[%s11468_s21 + $0x11a0] sm:$0xff]   ;;  %v11349_v1 = vld [vmem:[%s11468_s21 + $0x1208] sm:$0xff]  }
 0x282   : > { %v4364_v60 = vmax.f32 %v12564_v62, %v12660_v41  ;;  %v12672_v47 = vadd.f32 %v4352_v44, %v12635_v40  ;;  %10383 = vmatprep.subr.bf16.mxu1 %v11302_v49  ;;  %v11308_v40 = vld [vmem:[%s11468_s21 + $0x1138] sm:$0xff]   ;;  %v11327_v49 = vld [vmem:[%s11468_s21 + $0x11d0] sm:$0xff]  }
 0x283   : > { %v4367_v21 = vmax.f32 %v12600_v43, %v12665_v42  ;;  %6587 = vmatmul.mubr.bf16.gmra.mrb[136].mxu0 %v12557_v28  ;;  %v11324_v54 = vld [vmem:[%s11468_s21 + $0x1158] sm:$0xff]   ;;  %v11331_v44 = vld [vmem:[%s11468_s21 + $0x11b0] sm:$0xff]   ;;  %v11410_v43 = vld [vmem:[%s12866_s1 + $0xc] ss:$20 sps:$4 sm:$0xff]  }
 0x284   : > { %v4365_v58 = vmax.f32 %v12580_v11, %v12672_v47  ;;  %10356 = vmatpush3.bf16.msra.mxu0 %v11303_v25  ;;  %6985 = vmatprep.mubr.bf16.mxu0 %v12484_v30  ;;  %v11329_v18 = vld [vmem:[%s11468_s21 + $0x1218] sm:$0xff]   ;;  %v11354_v42 = vld [vmem:[%s11468_s21 + $0x12d0] sm:$0xff]  }
 0x285   : > { %10384 = vmatpush3.bf16.msra.mxu1 %v11304_v48  ;;  %10357 = vmatprep.subr.bf16.mxu0 %v11305_v38  ;;  %v11330_v25 = vld [vmem:[%s11468_s21 + $0x11d8] sm:$0xff]   ;;  %v11332_v38 = vld [vmem:[%s11468_s21 + $0x1220] sm:$0xff]  }
 0x286   : > { %10385 = vmatprep.subr.bf16.mxu1 %v11306_v56  ;;  %v11341_v11 = vld [vmem:[%s11468_s21 + $0x1238] sm:$0xff]  }
 0x287   : > { %v10047_v0 = vpop.f32.mrb[88].mxu1  ;;  %v11350_v6 = vld [vmem:[%s11468_s21 + $0x1258] sm:$0xff]  }
 0x288   : > { %10358 = vmatpush3.bf16.msra.mxu0 %v11307_v39  ;;  %v10048_v15 = vpop.f32.mrb[89].mxu1 }
 0x289   : > { %10386 = vmatpush3.bf16.msra.mxu1 %v11308_v40  ;;  %10359 = vmatprep.subr.bf16.mxu0 %v11309_v45  ;;  %v10049_v30 = vadd.f32 %v10048_v15, %v10047_v0  ;;  %v10050_v4 = vpop.f32.mrb[90].mxu1  ;;  %v11333_v15 = vld [vmem:[%s11468_s21 + $0x11e0] sm:$0xff]  }
 0x28a   : > { %10387 = vmatprep.subr.bf16.mxu1 %v11310_v63  ;;  %v10051_v10 = vpop.f32.mrb[91].mxu1 }
 0x28b   : > { %v12689_v27 = vadd.f32 %v10051_v10, %v10050_v4  ;;  %v4708_v40 = vadd.f32 %v10049_v30, %v11844_v57 }
 0x28c   : > { %10360 = vmatpush3.bf16.msra.mxu0 %v11311_v50 }
 0x28d   : > { %10388 = vmatpush3.bf16.msra.mxu1 %v11312_v14  ;;  %10361 = vmatprep.subr.bf16.mxu0 %v11313_v8  ;;  %v11334_v14 = vld [vmem:[%s11468_s21 + $0x11b8] sm:$0xff]   ;;  %v4711_v8 = vadd.f32 %v12689_v27, %v11851_v3 }
 0x28e   : > { %10389 = vmatprep.subr.bf16.mxu1 %v11314_v13  ;;  %v11335_v13 = vld [vmem:[%s11468_s21 + $0x1228] sm:$0xff]  }
 0x28f   : > { %v10053_v33 = vpop.f32.mrb[92].mxu1 }
 0x290   : > { %10362 = vmatpush3.bf16.msra.mxu0 %v11315_v34  ;;  %v10054_v31 = vpop.f32.mrb[93].mxu1 }
 0x291   : > { %10390 = vmatpush3.bf16.msra.mxu1 %v11316_v35  ;;  %10363 = vmatprep.subr.bf16.mxu0 %v11317_v19  ;;  %v12698_v23 = vadd.f32 %v10054_v31, %v10053_v33  ;;  %v10056_v55 = vpop.f32.mrb[94].mxu1  ;;  %v11336_v35 = vld [vmem:[%s11468_s21 + $0x11e8] sm:$0xff]   ;;  %v11337_v19 = vld [vmem:[%s11468_s21 + $0x11c0] sm:$0xff]  }
 0x292   : > { %10391 = vmatprep.subr.bf16.mxu1 %v11318_v24  ;;  %v10057_v17 = vpop.f32.mrb[95].mxu1 }
 0x293   : > { %v12701_v20 = vadd.f32 %v10057_v17, %v10056_v55  ;;  %v4716_v62 = vadd.f32 %v12698_v23, %v11856_v7  ;;  %v11340_v17 = vld [vmem:[%s11468_s21 + $0x11c8] sm:$0xff]  }
 0x294   : > { %10364 = vmatpush3.bf16.msra.mxu0 %v11319_v5  ;;  %v11338_v5 = vld [vmem:[%s11468_s21 + $0x1230] sm:$0xff]  }
 0x295   : > { %10392 = vmatpush3.bf16.msra.mxu1 %v11320_v32  ;;  %10365 = vmatprep.subr.bf16.mxu0 %v11321_v51  ;;  %v11409_v32 = vld [vmem:[%s12866_s1 + $0x4] ss:$20 sps:$4 sm:$0xff]  }
 0x296   : > { %10393 = vmatprep.subr.bf16.mxu1 %v11322_v59  ;;  %v11339_v59 = vld [vmem:[%s11468_s21 + $0x11f0] sm:$0xff]  }
 0x298   : > { %10366 = vmatpush3.bf16.msra.mxu0 %v11323_v26  ;;  %v4719_v26 = vadd.f32 %v12701_v20, %v11869_v22 }
 0x299   : > { %10394 = vmatpush3.bf16.msra.mxu1 %v11324_v54  ;;  %10703 = vmatprep.subr.bf16.mxu0 %v11325_v52 }
 0x29a   : > { %10415 = vmatprep.subr.bf16.mxu1 %v11326_v29  ;;  %v11344_v29 = vld [vmem:[%s11468_s21 + $0x1290] sm:$0xff]  }
 0x29b   : > { %6986 = vmatmul.mubr.bf16.vlgmr.msra.gmra.mrb[140].mxu0 %v12517_v2 }
 0x29c   : > { %7035 = vmatmul.mubr.bf16.vlgmr.msra.gmra.mrb[140].mxu1 %v12523_v53  ;;  %10704 = vmatpush3.bf16.msra.mxu0 %v11325_v52  ;;  %v11342_v52 = vld [vmem:[%s11468_s21 + $0x11f8] sm:$0xff]  }
 0x29d   : > { %10416 = vmatpush3.bf16.msra.mxu1 %v11327_v49  ;;  %10705 = vmatprep.subr.bf16.mxu0 %v11328_v9 }
 0x29e   : > { %v10075_v48 = vpop.f32.mrb[92].mxu0  ;;  %10417 = vmatprep.subr.bf16.mxu1 %v11329_v18  ;;  %6993 = vmatprep.mubr.bf16.mxu0 %v12532_v12  ;;  %v11346_v18 = vld [vmem:[%s11468_s21 + $0x1250] sm:$0xff]  }
 0x29f   : > { %v10076_v56 = vpop.f32.mrb[93].mxu0  ;;  %v10637_v39 = vpop.f32.mrb[96].mxu1  ;;  %7042 = vmatprep.mubr.bf16.mxu1 %v12538_v36 }
 0x2a0   : > { %v10077_v53 = vadd.f32 %v10076_v56, %v10075_v48  ;;  %v10078_v45 = vpop.f32.mrb[94].mxu0  ;;  %10706 = vmatpush3.bf16.msra.mxu0 %v11328_v9  ;;  %v4805_v63 = vpop.f32.mrb[97].mxu1  ;;  %v11343_v9 = vld [vmem:[%s11468_s21 + $0x1240] sm:$0xff]   ;;  %v11348_v48 = vld [vmem:[%s11468_s21 + $0x1298] sm:$0xff]   ;;  %v11353_v56 = vld [vmem:[%s11468_s21 + $0x12a8] sm:$0xff]  }
 0x2a1   : > { %10418 = vmatpush3.bf16.msra.mxu1 %v11330_v25  ;;  %v10079_v0 = vpop.f32.mrb[95].mxu0  ;;  %10707 = vmatprep.subr.bf16.mxu0 %v11331_v44  ;;  %v10638_v50 = vpop.f32.mrb[98].mxu1 }
 0x2a2   : > { %v10080_v4 = vadd.f32 %v10079_v0, %v10078_v45  ;;  %v4757_v36 = vadd.f32 %v10077_v53, %v4708_v40  ;;  %10419 = vmatprep.subr.bf16.mxu1 %v11332_v38  ;;  %v4808_v30 = vpop.f32.mrb[99].mxu1  ;;  %v11347_v38 = vld [vmem:[%s11468_s21 + $0x1248] sm:$0xff]   ;;  %v11356_v53 = vld [vmem:[%s11468_s21 + $0x12b0] sm:$0xff]  }
 0x2a3   : > { %6994 = vmatmul.mubr.bf16.gmra.mrb[144].mxu0 %v12550_v16  ;;  %v11355_v40 = vld [vmem:[%s11468_s21 + $0x1268] sm:$0xff]  }
 0x2a4   : > { %v4806_v10 = vadd.f32 %v4805_v63, %v4757_v36  ;;  %10708 = vmatpush3.bf16.msra.mxu0 %v11331_v44  ;;  %v4760_v34 = vadd.f32 %v10080_v4, %v4711_v8  ;;  %7043 = vmatmul.mubr.bf16.gmra.mrb[144].mxu1 %v12557_v28  ;;  %v11345_v44 = vld [vmem:[%s11468_s21 + $0x1200] sm:$0xff]  }
 0x2a5   : > { %10420 = vmatpush3.bf16.msra.mxu1 %v11333_v15  ;;  %10709 = vmatprep.subr.bf16.mxu0 %v11334_v14  ;;  %v11360_v63 = vld [vmem:[%s11468_s21 + $0x12e0] sm:$0xff]  }
 0x2a6   : > { %v12730_v27 = vmax.f32 %v4364_v60, %v4806_v10  ;;  %v4809_v24 = vadd.f32 %v4808_v30, %v4760_v34  ;;  %v10081_v33 = vpop.f32.mrb[96].mxu0  ;;  %10421 = vmatprep.subr.bf16.mxu1 %v11335_v13  ;;  %10715 = vmatprep.mubr.msk.bf16.mxu0 %vm562_vm0, %v12570_v37  ;;  %v11359_v13 = vld [vmem:[%s11468_s21 + $0x12b8] sm:$0xff]  }
 0x2a7   : > { %v10082_v31 = vpop.f32.mrb[97].mxu0  ;;  %7441 = vmatprep.mubr.bf16.mxu1 %v11409_v32 }
 0x2a8   : > { %v12743_v41 = vmax.f32 %v4365_v58, %v4809_v24  ;;  %v10083_v60 = vadd.f32 %v10082_v31, %v10081_v33  ;;  %v10084_v51 = vpop.f32.mrb[98].mxu0  ;;  %10710 = vmatpush3.bf16.msra.mxu0 %v11334_v14  ;;  %v11361_v33 = vld [vmem:[%s11468_s21 + $0x1278] sm:$0xff]   ;;  %v11362_v31 = vld [vmem:[%s11468_s21 + $0x12c0] sm:$0xff]  }
 0x2a9   : > { %10422 = vmatpush3.bf16.msra.mxu1 %v11336_v35  ;;  %v10085_v55 = vpop.f32.mrb[99].mxu0  ;;  %10711 = vmatprep.subr.bf16.mxu0 %v11337_v19  ;;  %v11363_v35 = vld [vmem:[%s11468_s21 + $0x12e8] sm:$0xff]  }
 0x2aa   : > { %v4765_v23 = vadd.f32 %v10083_v60, %v4716_v62  ;;  %v10086_v54 = vadd.f32 %v10085_v55, %v10084_v51  ;;  %10423 = vmatprep.subr.bf16.mxu1 %v11338_v5  ;;  %v11366_v62 = vld [vmem:[%s11468_s21 + $0x12f0] sm:$0xff]  }
 0x2ac   : > { %v4814_v47 = vadd.f32 %v10637_v39, %v4765_v23  ;;  %v4768_v58 = vadd.f32 %v10086_v54, %v4719_v26  ;;  %10712 = vmatpush3.bf16.msra.mxu0 %v11337_v19  ;;  %v11357_v39 = vld [vmem:[%s11468_s21 + $0x12d8] sm:$0xff]  }
 0x2ad   : > { %10424 = vmatpush3.bf16.msra.mxu1 %v11339_v59  ;;  %10713 = vmatprep.subr.bf16.mxu0 %v11340_v17  ;;  %v11364_v59 = vld [vmem:[%s11468_s21 + $0x1280] sm:$0xff]  }
 0x2ae   : > { %v4817_v49 = vadd.f32 %v10638_v50, %v4768_v58  ;;  %10425 = vmatprep.subr.bf16.mxu1 %v11341_v11  ;;  %v12756_v20 = vmax.f32 %v4366_v61, %v4814_v47  ;;  %v11351_v61 = vld [vmem:[%s11468_s21 + $0x12a0] sm:$0xff]   ;;  %v11365_v11 = vld [vmem:[%s11468_s21 + $0x12c8] sm:$0xff]  }
 0x2b0   : > { %10714 = vmatpush3.bf16.msra.mxu0 %v11340_v17  ;;  %v12762_v25 = vmax.f32 %v4367_v21, %v4817_v49  ;;  %v11352_v21 = vld [vmem:[%s11468_s21 + $0x1260] sm:$0xff]  }
 0x2b1   : > { %10426 = vmatpush3.bf16.msra.mxu1 %v11342_v52  ;;  %10443 = vmatprep.subr.bf16.mxu0 %v11344_v29  ;;  %v11368_v29 = vld [vmem:[%s11468_s21 + $0x12f8] sm:$0xff]  }
 0x2b2   : > { %10427 = vmatprep.subr.bf16.mxu1 %v11343_v9 }
 0x2b3   : > { %10716 = vmatmul.mubr.msk.bf16.vlgmr.msra.gmra.mrb[148].mxu0 %vm562_vm0, %v12607_v46 }
 0x2b4   : > { %10444 = vmatpush3.bf16.msra.mxu0 %v11346_v18  ;;  %7490 = vmatprep.mubr.bf16.mxu0 %v11410_v43  ;;  %v11367_v18 = vld [vmem:[%s11468_s21 + $0x1288] sm:$0xff]  }
 0x2b5   : > { %10428 = vmatpush3.bf16.msra.mxu1 %v11345_v44  ;;  %10445 = vmatprep.subr.bf16.mxu0 %v11348_v48 }
 0x2b6   : > { %10429 = vmatprep.subr.bf16.mxu1 %v11347_v38  ;;  %v11411_v38 = vld [vmem:[%s12866_s1 + $0x8] ss:$20 sps:$4 sm:$0xff]  }
 0x2b8   : > { %10446 = vmatpush3.bf16.msra.mxu0 %v11350_v6  ;;  %v11412_v6 = vld [vmem:[%s12866_s1 + $0x34] ss:$20 sps:$4 sm:$0xff]  }
 0x2b9   : > { %10430 = vmatpush3.bf16.msra.mxu1 %v11349_v1  ;;  %10447 = vmatprep.subr.bf16.mxu0 %v11351_v61 }
 0x2ba   : > { %10719 = vmatprep.subr.bf16.mxu1 %v11354_v42 }
 0x2bc   : > { %7442 = vmatmul.mubr.bf16.vlgmr.msra.gmra.mrb[148].mxu1 %v12517_v2  ;;  %10448 = vmatpush3.bf16.msra.mxu0 %v11352_v21  ;;  %v11358_v2 = vld [vmem:[%s11468_s21 + $0x1270] sm:$0xff]   ;;  %s9439_s21 = sshll.u32 %s12870_s13, 4 }
 0x2bd   : > { %10449 = vmatprep.subr.bf16.mxu0 %v11353_v56  ;;  %10720 = vmatpush3.bf16.msra.mxu1 %v11354_v42  ;;  %s170_s15 = scalar_lea.vmem %s12868_s3, %s9439_s21 }
 0x2be   : > { %v10111_v45 = vpop.f32.mrb[100].mxu0  ;;  %7449 = vmatprep.mubr.bf16.mxu1 %v12532_v12  ;;  %10721 = vmatprep.subr.bf16.mxu1 %v11357_v39 }
 0x2bf   : > { %v10112_v0 = vpop.f32.mrb[101].mxu0  ;;  %v10139_v50 = vpop.f32.mrb[100].mxu1 }
 0x2c0   : > { %v10113_v15 = vadd.f32 %v10112_v0, %v10111_v45  ;;  %v10114_v14 = vpop.f32.mrb[102].mxu0  ;;  %10450 = vmatpush3.bf16.msra.mxu0 %v11355_v40  ;;  %v10140_v8 = vpop.f32.mrb[101].mxu1 }
 0x2c1   : > { %v10115_v4 = vpop.f32.mrb[103].mxu0  ;;  %v10141_v36 = vadd.f32 %v10140_v8, %v10139_v50  ;;  %v10142_v30 = vpop.f32.mrb[102].mxu1  ;;  %10451 = vmatprep.subr.bf16.mxu0 %v11356_v53  ;;  %10722 = vmatpush3.bf16.msra.mxu1 %v11357_v39 }
 0x2c2   : > { %v5164_v12 = vadd.f32 %v10113_v15, %v11844_v57  ;;  %v10116_v10 = vadd.f32 %v10115_v4, %v10114_v14  ;;  %v10143_v34 = vpop.f32.mrb[103].mxu1  ;;  %10723 = vmatprep.subr.bf16.mxu1 %v11360_v63 }
 0x2c3   : > { %v10144_v19 = vadd.f32 %v10143_v34, %v10142_v30 }
 0x2c4   : > { %v5167_v24 = vadd.f32 %v10116_v10, %v11851_v3  ;;  %7450 = vmatmul.mubr.bf16.gmra.mrb[152].mxu1 %v12550_v16  ;;  %10452 = vmatpush3.bf16.msra.mxu0 %v11358_v2  ;;  %v5213_v5 = vadd.f32 %v10141_v36, %v5164_v12 }
 0x2c5   : > { %10453 = vmatprep.subr.bf16.mxu0 %v11359_v13  ;;  %10724 = vmatpush3.bf16.msra.mxu1 %v11360_v63 }
 0x2c6   : > { %10725 = vmatprep.subr.bf16.mxu1 %v11363_v35  ;;  %v10117_v32 = vpop.f32.mrb[104].mxu0  ;;  %10731 = vmatprep.mubr.msk.bf16.mxu1 %vm562_vm0, %v12570_v37  ;;  %v5216_v60 = vadd.f32 %v10144_v19, %v5167_v24 }
 0x2c7   : > { %v10118_v51 = vpop.f32.mrb[105].mxu0  ;;  %v10145_v55 = vpop.f32.mrb[104].mxu1 }
 0x2c8   : > { %10454 = vmatpush3.bf16.msra.mxu0 %v11361_v33  ;;  %v10119_v16 = vadd.f32 %v10118_v51, %v10117_v32  ;;  %v10120_v17 = vpop.f32.mrb[106].mxu0  ;;  %v10146_v26 = vpop.f32.mrb[105].mxu1 }
 0x2c9   : > { %10455 = vmatprep.subr.bf16.mxu0 %v11362_v31  ;;  %10726 = vmatpush3.bf16.msra.mxu1 %v11363_v35  ;;  %v10121_v23 = vpop.f32.mrb[107].mxu0  ;;  %v10147_v54 = vadd.f32 %v10146_v26, %v10145_v55  ;;  %v10148_v47 = vpop.f32.mrb[106].mxu1 }
 0x2ca   : > { %v5172_v58 = vadd.f32 %v10119_v16, %v11856_v7  ;;  %v10122_v52 = vadd.f32 %v10121_v23, %v10120_v17  ;;  %10727 = vmatprep.subr.bf16.mxu1 %v11366_v62  ;;  %v10149_v37 = vpop.f32.mrb[107].mxu1 }
 0x2cb   : > { %v10150_v49 = vadd.f32 %v10149_v37, %v10148_v47 }
 0x2cc   : > { %10456 = vmatpush3.bf16.msra.mxu0 %v11364_v59  ;;  %v5175_v9 = vadd.f32 %v10122_v52, %v11869_v22  ;;  %v5221_v44 = vadd.f32 %v10147_v54, %v5172_v58 }
 0x2cd   : > { %10457 = vmatprep.subr.bf16.mxu0 %v11365_v11  ;;  %10728 = vmatpush3.bf16.msra.mxu1 %v11366_v62 }
 0x2ce   : > { %10729 = vmatprep.subr.bf16.mxu1 %v11368_v29  ;;  %v5224_v48 = vadd.f32 %v10150_v49, %v5175_v9 }
 0x2d0   : > { %10458 = vmatpush3.bf16.msra.mxu0 %v11367_v18 }
 0x2d1   : > { %10730 = vmatpush3.bf16.msra.mxu1 %v11368_v29 }
 0x2d3   : > { %7491 = vmatmul.mubr.bf16.vlgmr.msra.gmra.mrb[152].mxu0 %v11411_v38 }
 0x2d4   : > { %10732 = vmatmul.mubr.msk.bf16.vlgmr.msra.gmra.mrb[156].mxu1 %vm562_vm0, %v12607_v46  ;;  %7498 = vmatprep.mubr.bf16.mxu0 %v11412_v6 }
 0x2d6   : > { %v10653_v43 = vpop.f32.mrb[108].mxu0 }
 0x2d7   : > { %v5270_v1 = vadd.f32 %v10653_v43, %v5221_v44  ;;  %v5261_v61 = vpop.f32.mrb[109].mxu0 }
 0x2d8   : > { %v5262_v42 = vadd.f32 %v5261_v61, %v5213_v5  ;;  %v10654_v21 = vpop.f32.mrb[110].mxu0 }
 0x2d9   : > { %v5278_v56 = vmax.f32 %v12756_v20, %v5270_v1  ;;  %v5273_v39 = vadd.f32 %v10654_v21, %v5224_v48  ;;  %v5264_v40 = vpop.f32.mrb[111].mxu0 }
 0x2da   : > { %v5276_v53 = vmax.f32 %v12730_v27, %v5262_v42  ;;  %v5265_v45 = vadd.f32 %v5264_v40, %v5216_v60 }
 0x2db   : > { %v5279_v63 = vmax.f32 %v12762_v25, %v5273_v39  ;;  %7499 = vmatmul.mubr.bf16.gmra.mrb[156].mxu0 %v12557_v28 }
 0x2dc   : > { %v5277_v46 = vmax.f32 %v12743_v41, %v5265_v45 }
 0x2df   : > { %v10175_v0 = vpop.f32.mrb[108].mxu1 }
 0x2e0   : > { %v10176_v50 = vpop.f32.mrb[109].mxu1 }
 0x2e1   : > { %v10177_v15 = vadd.f32 %v10176_v50, %v10175_v0  ;;  %v10178_v14 = vpop.f32.mrb[110].mxu1 }
 0x2e2   : > { %v10179_v8 = vpop.f32.mrb[111].mxu1 }
 0x2e3   : > { %v10180_v2 = vadd.f32 %v10179_v8, %v10178_v14  ;;  %v5620_v25 = vadd.f32 %v10177_v15, %v11844_v57 }
 0x2e5   : > { %v5623_v33 = vadd.f32 %v10180_v2, %v11851_v3 }
 0x2e7   : > { %v10181_v4 = vpop.f32.mrb[112].mxu1 }
 0x2e8   : > { %v10182_v36 = vpop.f32.mrb[113].mxu1 }
 0x2e9   : > { %v10183_v20 = vadd.f32 %v10182_v36, %v10181_v4  ;;  %v10184_v30 = vpop.f32.mrb[114].mxu1 }
 0x2ea   : > { %v10185_v13 = vpop.f32.mrb[115].mxu1 }
 0x2eb   : > { %v10186_v12 = vadd.f32 %v10185_v13, %v10184_v30  ;;  %v5628_v17 = vadd.f32 %v10183_v20, %v11856_v7 }
 0x2ed   : > { %v5631_v47 = vadd.f32 %v10186_v12, %v11869_v22 }
 0x2f6   : > { %v10203_v27 = vpop.f32.mrb[112].mxu0 }
 0x2f7   : > { %v10204_v10 = vpop.f32.mrb[113].mxu0  ;;  %v10669_v34 = vpop.f32.mrb[116].mxu1 }
 0x2f8   : > { %v10205_v28 = vadd.f32 %v10204_v10, %v10203_v27  ;;  %v10206_v35 = vpop.f32.mrb[114].mxu0  ;;  %v5717_v41 = vpop.f32.mrb[117].mxu1 }
 0x2f9   : > { %v10207_v19 = vpop.f32.mrb[115].mxu0  ;;  %v10670_v24 = vpop.f32.mrb[118].mxu1 }
 0x2fa   : > { %v10208_v5 = vadd.f32 %v10207_v19, %v10206_v35  ;;  %v5669_v31 = vadd.f32 %v10205_v28, %v5620_v25  ;;  %v5720_v32 = vpop.f32.mrb[119].mxu1 }
 0x2fc   : > { %v5718_v62 = vadd.f32 %v5717_v41, %v5669_v31  ;;  %v5672_v60 = vadd.f32 %v10208_v5, %v5623_v33 }
 0x2fe   : > { %v12816_v51 = vmax.f32 %v5276_v53, %v5718_v62  ;;  %v5721_v55 = vadd.f32 %v5720_v32, %v5672_v60  ;;  %v10209_v59 = vpop.f32.mrb[116].mxu0 }
 0x2ff   : > { %v10210_v16 = vpop.f32.mrb[117].mxu0 }
 0x300   : > { %v12819_v26 = vmax.f32 %v5277_v46, %v5721_v55  ;;  %v10211_v23 = vadd.f32 %v10210_v16, %v10209_v59  ;;  %v10212_v54 = vpop.f32.mrb[118].mxu0 }
 0x301   : > { %v10213_v11 = vpop.f32.mrb[119].mxu0 }
 0x302   : > { %v5677_v58 = vadd.f32 %v10211_v23, %v5628_v17  ;;  %v10214_v52 = vadd.f32 %v10213_v11, %v10212_v54 }
 0x304   : > { %v5726_v37 = vadd.f32 %v10669_v34, %v5677_v58  ;;  %v5680_v29 = vadd.f32 %v10214_v52, %v5631_v47 }
 0x306   : > { %v5729_v49 = vadd.f32 %v10670_v24, %v5680_v29  ;;  %v12822_v9 = vmax.f32 %v5278_v56, %v5726_v37 }
 0x308   : > { %v12824_v18 = vmax.f32 %v5279_v63, %v5729_v49 }
 0x316   : > { %v10239_v44 = vpop.f32.mrb[120].mxu0 }
 0x317   : > { %v10240_v48 = vpop.f32.mrb[121].mxu0  ;;  %v10267_v38 = vpop.f32.mrb[120].mxu1 }
 0x318   : > { %v10241_v6 = vadd.f32 %v10240_v48, %v10239_v44  ;;  %v10242_v43 = vpop.f32.mrb[122].mxu0  ;;  %v10268_v1 = vpop.f32.mrb[121].mxu1 }
 0x319   : > { %v10243_v61 = vpop.f32.mrb[123].mxu0  ;;  %v10269_v42 = vadd.f32 %v10268_v1, %v10267_v38  ;;  %v10270_v21 = vpop.f32.mrb[122].mxu1 }
 0x31a   : > { %v6076_v39 = vadd.f32 %v10241_v6, %v11844_v57  ;;  %v10244_v40 = vadd.f32 %v10243_v61, %v10242_v43  ;;  %v10271_v53 = vpop.f32.mrb[123].mxu1 }
 0x31b   : > { %v10272_v45 = vadd.f32 %v10271_v53, %v10270_v21 }
 0x31c   : > { %v6079_v46 = vadd.f32 %v10244_v40, %v11851_v3  ;;  %v6125_v56 = vadd.f32 %v10269_v42, %v6076_v39 }
 0x31e   : > { %v10245_v0 = vpop.f32.mrb[124].mxu0  ;;  %v6128_v63 = vadd.f32 %v10272_v45, %v6079_v46 }
 0x31f   : > { %v10246_v50 = vpop.f32.mrb[125].mxu0  ;;  %v10273_v15 = vpop.f32.mrb[124].mxu1 }
 0x320   : > { %v10247_v14 = vadd.f32 %v10246_v50, %v10245_v0  ;;  %v10248_v8 = vpop.f32.mrb[126].mxu0  ;;  %v10274_v2 = vpop.f32.mrb[125].mxu1 }
 0x321   : > { %v10249_v4 = vpop.f32.mrb[127].mxu0  ;;  %v10275_v36 = vadd.f32 %v10274_v2, %v10273_v15  ;;  %v10276_v20 = vpop.f32.mrb[126].mxu1 }
 0x322   : > { %v6084_v30 = vadd.f32 %v10247_v14, %v11856_v7  ;;  %v10250_v13 = vadd.f32 %v10249_v4, %v10248_v8  ;;  %v10277_v12 = vpop.f32.mrb[127].mxu1 }
 0x323   : > { %v10278_v27 = vadd.f32 %v10277_v12, %v10276_v20 }
 0x324   : > { %v6087_v10 = vadd.f32 %v10250_v13, %v11869_v22  ;;  %v6133_v34 = vadd.f32 %v10275_v36, %v6084_v30 }
 0x326   : > { %v6136_v25 = vadd.f32 %v10278_v27, %v6087_v10 }
 0x32e   : > { %v10685_v28 = vpop.f32.mrb[128].mxu0 }
 0x32f   : > { %v6182_v35 = vadd.f32 %v10685_v28, %v6133_v34  ;;  %v6173_v41 = vpop.f32.mrb[129].mxu0 }
 0x330   : > { %v6174_v19 = vadd.f32 %v6173_v41, %v6125_v56  ;;  %v10686_v24 = vpop.f32.mrb[130].mxu0 }
 0x331   : > { %v6190_v33 = vmax.f32 %v12822_v9, %v6182_v35  ;;  %v6185_v5 = vadd.f32 %v10686_v24, %v6136_v25  ;;  %v6176_v31 = vpop.f32.mrb[131].mxu0 }
 0x332   : > { %v6188_v32 = vmax.f32 %v12816_v51, %v6174_v19  ;;  %v6177_v62 = vadd.f32 %v6176_v31, %v6128_v63 }
 0x333   : > { %v6191_v60 = vmax.f32 %v12824_v18, %v6185_v5 }
 0x334   : > { %v6189_v55 = vmax.f32 %v12819_v26, %v6177_v62 }
 0x337   : > { %v10303_v59 = vpop.f32.mrb[128].mxu1 }
 0x338   : > { %v10304_v16 = vpop.f32.mrb[129].mxu1 }
 0x339   : > { %v10305_v17 = vadd.f32 %v10304_v16, %v10303_v59  ;;  %v10306_v23 = vpop.f32.mrb[130].mxu1 }
 0x33a   : > { %v10307_v54 = vpop.f32.mrb[131].mxu1 }
 0x33b   : > { %v10308_v11 = vadd.f32 %v10307_v54, %v10306_v23  ;;  %v6532_v48 = vadd.f32 %v10305_v17, %v11844_v57 }
 0x33d   : > { %v6535_v1 = vadd.f32 %v10308_v11, %v11851_v3 }
 0x33f   : > { %v10309_v47 = vpop.f32.mrb[132].mxu1 }
 0x340   : > { %v10310_v58 = vpop.f32.mrb[133].mxu1 }
 0x341   : > { %v10311_v52 = vadd.f32 %v10310_v58, %v10309_v47  ;;  %v10312_v37 = vpop.f32.mrb[134].mxu1 }
 0x342   : > { %v10313_v29 = vpop.f32.mrb[135].mxu1 }
 0x343   : > { %v10314_v49 = vadd.f32 %v10313_v29, %v10312_v37  ;;  %v6540_v0 = vadd.f32 %v10311_v52, %v11856_v7 }
 0x345   : > { %v6543_v8 = vadd.f32 %v10314_v49, %v11869_v22 }
 0x34e   : > { %v10331_v9 = vpop.f32.mrb[132].mxu0 }
 0x34f   : > { %v10332_v44 = vpop.f32.mrb[133].mxu0  ;;  %v10701_v51 = vpop.f32.mrb[136].mxu1 }
 0x350   : > { %v10333_v18 = vadd.f32 %v10332_v44, %v10331_v9  ;;  %v10334_v38 = vpop.f32.mrb[134].mxu0  ;;  %v6629_v26 = vpop.f32.mrb[137].mxu1 }
 0x351   : > { %v10335_v6 = vpop.f32.mrb[135].mxu0  ;;  %v10702_v43 = vpop.f32.mrb[138].mxu1 }
 0x352   : > { %v10336_v61 = vadd.f32 %v10335_v6, %v10334_v38  ;;  %v6581_v42 = vadd.f32 %v10333_v18, %v6532_v48  ;;  %v6632_v21 = vpop.f32.mrb[139].mxu1 }
 0x354   : > { %v6630_v39 = vadd.f32 %v6629_v26, %v6581_v42  ;;  %v6584_v40 = vadd.f32 %v10336_v61, %v6535_v1 }
 0x356   : > { %v12836_v53 = vmax.f32 %v6188_v32, %v6630_v39  ;;  %v6633_v45 = vadd.f32 %v6632_v21, %v6584_v40  ;;  %v10337_v46 = vpop.f32.mrb[136].mxu0 }
 0x357   : > { %v10338_v56 = vpop.f32.mrb[137].mxu0 }
 0x358   : > { %v12839_v63 = vmax.f32 %v6189_v55, %v6633_v45  ;;  %v10339_v50 = vadd.f32 %v10338_v56, %v10337_v46  ;;  %v10340_v15 = vpop.f32.mrb[138].mxu0 }
 0x359   : > { %v10341_v14 = vpop.f32.mrb[139].mxu0 }
 0x35a   : > { %v6589_v2 = vadd.f32 %v10339_v50, %v6540_v0  ;;  %v10342_v4 = vadd.f32 %v10341_v14, %v10340_v15 }
 0x35c   : > { %v6638_v36 = vadd.f32 %v10701_v51, %v6589_v2  ;;  %v6592_v20 = vadd.f32 %v10342_v4, %v6543_v8 }
 0x35e   : > { %v6641_v30 = vadd.f32 %v10702_v43, %v6592_v20  ;;  %v12842_v13 = vmax.f32 %v6190_v33, %v6638_v36 }
 0x360   : > { %v12844_v12 = vmax.f32 %v6191_v60, %v6641_v30 }
 0x36e   : > { %v10367_v27 = vpop.f32.mrb[140].mxu0 }
 0x36f   : > { %v10368_v10 = vpop.f32.mrb[141].mxu0  ;;  %v10395_v34 = vpop.f32.mrb[140].mxu1 }
 0x370   : > { %v10369_v25 = vadd.f32 %v10368_v10, %v10367_v27  ;;  %v10370_v28 = vpop.f32.mrb[142].mxu0  ;;  %v10396_v35 = vpop.f32.mrb[141].mxu1 }
 0x371   : > { %v10371_v41 = vpop.f32.mrb[143].mxu0  ;;  %v10397_v19 = vadd.f32 %v10396_v35, %v10395_v34  ;;  %v10398_v24 = vpop.f32.mrb[142].mxu1 }
 0x372   : > { %v6988_v5 = vadd.f32 %v10369_v25, %v11844_v57  ;;  %v10372_v31 = vadd.f32 %v10371_v41, %v10370_v28  ;;  %v10399_v32 = vpop.f32.mrb[143].mxu1 }
 0x373   : > { %v10400_v62 = vadd.f32 %v10399_v32, %v10398_v24 }
 0x374   : > { %v6991_v55 = vadd.f32 %v10372_v31, %v11851_v3  ;;  %v7037_v33 = vadd.f32 %v10397_v19, %v6988_v5 }
 0x376   : > { %v10373_v59 = vpop.f32.mrb[144].mxu0  ;;  %v7040_v60 = vadd.f32 %v10400_v62, %v6991_v55 }
 0x377   : > { %v10374_v16 = vpop.f32.mrb[145].mxu0  ;;  %v10401_v17 = vpop.f32.mrb[144].mxu1 }
 0x378   : > { %v10375_v23 = vadd.f32 %v10374_v16, %v10373_v59  ;;  %v10376_v54 = vpop.f32.mrb[146].mxu0  ;;  %v10402_v11 = vpop.f32.mrb[145].mxu1 }
 0x379   : > { %v10377_v47 = vpop.f32.mrb[147].mxu0  ;;  %v10403_v58 = vadd.f32 %v10402_v11, %v10401_v17  ;;  %v10404_v52 = vpop.f32.mrb[146].mxu1 }
 0x37a   : > { %v6996_v37 = vadd.f32 %v10375_v23, %v11856_v7  ;;  %v10378_v29 = vadd.f32 %v10377_v47, %v10376_v54  ;;  %v10405_v49 = vpop.f32.mrb[147].mxu1 }
 0x37b   : > { %v10406_v9 = vadd.f32 %v10405_v49, %v10404_v52 }
 0x37c   : > { %v6999_v44 = vadd.f32 %v10378_v29, %v11869_v22  ;;  %v7045_v51 = vadd.f32 %v10403_v58, %v6996_v37 }
 0x37e   : > { %v7048_v48 = vadd.f32 %v10406_v9, %v6999_v44 }
 0x386   : > { %v10717_v18 = vpop.f32.mrb[148].mxu0 }
 0x387   : > { %v7094_v38 = vadd.f32 %v10717_v18, %v7045_v51  ;;  %v7085_v26 = vpop.f32.mrb[149].mxu0 }
 0x388   : > { %v7086_v6 = vadd.f32 %v7085_v26, %v7037_v33  ;;  %v10718_v43 = vpop.f32.mrb[150].mxu0 }
 0x389   : > { %v7102_v1 = vmax.f32 %v12842_v13, %v7094_v38  ;;  %v7097_v61 = vadd.f32 %v10718_v43, %v7048_v48  ;;  %v7088_v42 = vpop.f32.mrb[151].mxu0 }
 0x38a   : > { %v7100_v21 = vmax.f32 %v12836_v53, %v7086_v6  ;;  %v7089_v39 = vadd.f32 %v7088_v42, %v7040_v60 }
 0x38b   : > { %v7103_v40 = vmax.f32 %v12844_v12, %v7097_v61 }
 0x38c   : > { %v7101_v45 = vmax.f32 %v12839_v63, %v7089_v39 }
 0x38f   : > { %v10431_v46 = vpop.f32.mrb[148].mxu1 }
 0x390   : > { %v10432_v56 = vpop.f32.mrb[149].mxu1 }
 0x391   : > { %v10433_v0 = vadd.f32 %v10432_v56, %v10431_v46  ;;  %v10434_v50 = vpop.f32.mrb[150].mxu1 }
 0x392   : > { %v10435_v15 = vpop.f32.mrb[151].mxu1 }
 0x393   : > { %v10436_v14 = vadd.f32 %v10435_v15, %v10434_v50  ;;  %v7444_v12 = vadd.f32 %v10433_v0, %v11844_v57 }
 0x395   : > { %v7447_v35 = vadd.f32 %v10436_v14, %v11851_v3 }
 0x397   : > { %v10437_v8 = vpop.f32.mrb[152].mxu1 }
 0x398   : > { %v10438_v2 = vpop.f32.mrb[153].mxu1 }
 0x399   : > { %v10439_v4 = vadd.f32 %v10438_v2, %v10437_v8  ;;  %v10440_v36 = vpop.f32.mrb[154].mxu1 }
 0x39a   : > { %v10441_v20 = vpop.f32.mrb[155].mxu1 }
 0x39b   : > { %v10442_v30 = vadd.f32 %v10441_v20, %v10440_v36  ;;  %v7452_v59 = vadd.f32 %v10439_v4, %v11856_v7 }
 0x39d   : > { %v7455_v17 = vadd.f32 %v10442_v30, %v11869_v22 }
 0x3a6   : > { %v10459_v13 = vpop.f32.mrb[152].mxu0 }
 0x3a7   : > { %v10460_v53 = vpop.f32.mrb[153].mxu0  ;;  %v10733_v27 = vpop.f32.mrb[156].mxu1 }
 0x3a8   : > { %v10461_v10 = vadd.f32 %v10460_v53, %v10459_v13  ;;  %v10462_v63 = vpop.f32.mrb[154].mxu0  ;;  %v7541_v34 = vpop.f32.mrb[157].mxu1 }
 0x3a9   : > { %v10463_v25 = vpop.f32.mrb[155].mxu0  ;;  %v10734_v28 = vpop.f32.mrb[158].mxu1 }
 0x3aa   : > { %v10464_v41 = vadd.f32 %v10463_v25, %v10462_v63  ;;  %v7493_v19 = vadd.f32 %v10461_v10, %v7444_v12  ;;  %v7544_v24 = vpop.f32.mrb[159].mxu1 }
 0x3ac   : > { %v7542_v5 = vadd.f32 %v7541_v34, %v7493_v19  ;;  %v7496_v31 = vadd.f32 %v10464_v41, %v7447_v35 }
 0x3ae   : > { %v7556_v32 = vmax.f32 %v7100_v21, %v7542_v5  ;;  %v7545_v62 = vadd.f32 %v7544_v24, %v7496_v31  ;;  %v10465_v55 = vpop.f32.mrb[156].mxu0 }
 0x3af   : > { %v10466_v33 = vpop.f32.mrb[157].mxu0 }
 0x3b0   : > { %v7557_v57 = vmax.f32 %v7101_v45, %v7545_v62  ;;  %v10467_v60 = vadd.f32 %v10466_v33, %v10465_v55  ;;  %v10468_v16 = vpop.f32.mrb[158].mxu0 }
 0x3b1   : > { %v10469_v3 = vpop.f32.mrb[159].mxu0 }
 0x3b2   : > { %v9447_v23 = vpack.c.bf16 %v7557_v57, %v7556_v32  ;;  %v7501_v54 = vadd.f32 %v10467_v60, %v7452_v59  ;;  %v10470_v11 = vadd.f32 %v10469_v3, %v10468_v16 }
 0x3b4   : > { %9448 = vst [vmem:[%s170_s15] sm:$0xff] %v9447_v23   ;;  %v7550_v47 = vadd.f32 %v10733_v27, %v7501_v54  ;;  %v7504_v58 = vadd.f32 %v10470_v11, %v7455_v17 }
 0x3b6   : > { %v7558_v52 = vmax.f32 %v7102_v1, %v7550_v47  ;;  %v7553_v37 = vadd.f32 %v10734_v28, %v7504_v58 }
 0x3b8   : > { %v7559_v29 = vmax.f32 %v7103_v40, %v7553_v37 }
 0x3ba   : > { %v9452_v7 = vpack.c.bf16 %v7559_v29, %v7558_v52 }
 0x3bc   : > { %9454 = vst [vmem:[%s170_s15 + $0x8] sm:$0xff] %v9452_v7  }
 0x3bd PF: > { %s13_s12 = sadd.s32 1, %s11419_s12  }
 0x3be   : > { %p10_p4 = scmp.ge.s32.totalorder %s13_s12, 4  }
 0x3c0   :  { %12 = sbr.rel (!%p10_p4) target bundleno = 1 (0x1), region = 77 }

// kernel: net_forward.5
= control target key start
LH: loop header
LB: loop body
LE: loop exit
PB: predicated region body
PF: predicated region fallthrough
CT: control target
= control target key end

     0   :  { %vm2923_vm0 = vcmask 1043456   ;;  %vm4090_vm1 = vmmov 0   ;;  %vm2919_vm2 = vcmask 982016   ;;  %vm3024_vm3 = vcmask 1041408   ;;  %s5017_s1 = inlined_call_operand.vmem [shape: bf16[4096,120], index: 1, kind: input, shape index: {}]   ;;  %s5018_s0 = inlined_call_operand.vmem [shape: bf16[8,4096], index: 0, kind: input, shape index: {}]   ;;  %s5019_s2 = inlined_call_operand.vmem [shape: f32[1,120], index: 2, kind: input, shape index: {}]   ;;  %s5020_s3 = inlined_call_operand.vmem [shape: bf16[120,84], index: 3, kind: input, shape index: {}]   ;;  %s5021_s5 = inlined_call_operand.vmem [shape: bf16[84,12], index: 5, kind: input, shape index: {}]   ;;  %s5022_s4 = inlined_call_operand.vmem [shape: f32[1,84], index: 4, kind: input, shape index: {}]   ;;  %s5023_s6 = inlined_call_operand.vmem [shape: f32[1,12], index: 6, kind: input, shape index: {}]   ;;  %s5024_s7 = inlined_call_operand.vmem [shape: f32[8,12], index: 7, kind: output, shape index: {}]  }
   0x1   :  { %v3787_v0 = vld [vmem:[%s5017_s1 + $0x40] sm:$0xff]   ;;  %v3791_v4 = vld [vmem:[%s5017_s1 + $0x48] sm:$0xff]   ;;  %v3795_v8 = vld [vmem:[%s5017_s1 + $0x50] sm:$0xff]   ;;  %vm3020_vm4 = vcmask 687104   ;;  %vm3068_vm5 = vcmask 97280  }
   0x2   :  { %v3788_v1 = vld [vmem:[%s5017_s1 + $0xc0] sm:$0xff]   ;;  %3381 = vmatprep.subr.bf16.mxu0 %v3787_v0  ;;  %v3792_v5 = vld [vmem:[%s5017_s1 + $0xc8] sm:$0xff]   ;;  %v3796_v9 = vld [vmem:[%s5017_s1 + $0xd0] sm:$0xff]  }
   0x3   :  { %v3789_v2 = vld [vmem:[%s5017_s1] sm:$0xff]   ;;  %3403 = vmatprep.subr.bf16.mxu1 %v3788_v1  ;;  %v3793_v6 = vld [vmem:[%s5017_s1 + $0x8] sm:$0xff]   ;;  %v3797_v10 = vld [vmem:[%s5017_s1 + $0x10] sm:$0xff]  }
   0x4   :  { %v3790_v3 = vld [vmem:[%s5017_s1 + $0x80] sm:$0xff]   ;;  %3382 = vmatpush3.bf16.msra.mxu0 %v3789_v2  ;;  %v3794_v7 = vld [vmem:[%s5017_s1 + $0x88] sm:$0xff]   ;;  %v3798_v11 = vld [vmem:[%s5017_s1 + $0x90] sm:$0xff]  }
   0x5   :  { %3404 = vmatpush3.bf16.msra.mxu1 %v3790_v3  ;;  %3383 = vmatprep.subr.bf16.mxu0 %v3791_v4  ;;  %v3799_v12 = vld [vmem:[%s5017_s1 + $0x58] sm:$0xff]   ;;  %v3803_v16 = vld [vmem:[%s5017_s1 + $0x60] sm:$0xff]   ;;  %v3807_v20 = vld [vmem:[%s5017_s1 + $0x68] sm:$0xff]  }
   0x6   :  { %3405 = vmatprep.subr.bf16.mxu1 %v3792_v5  ;;  %v3800_v13 = vld [vmem:[%s5017_s1 + $0xd8] sm:$0xff]   ;;  %v3804_v17 = vld [vmem:[%s5017_s1 + $0xe0] sm:$0xff]   ;;  %v3808_v21 = vld [vmem:[%s5017_s1 + $0xe8] sm:$0xff]  }
   0x7   :  { %v3801_v14 = vld [vmem:[%s5017_s1 + $0x18] sm:$0xff]   ;;  %v3805_v18 = vld [vmem:[%s5017_s1 + $0x20] sm:$0xff]   ;;  %v3809_v22 = vld [vmem:[%s5017_s1 + $0x28] sm:$0xff]  }
   0x8   :  { %3384 = vmatpush3.bf16.msra.mxu0 %v3793_v6  ;;  %v3802_v15 = vld [vmem:[%s5017_s1 + $0x98] sm:$0xff]   ;;  %v3806_v19 = vld [vmem:[%s5017_s1 + $0xa0] sm:$0xff]   ;;  %v3810_v23 = vld [vmem:[%s5017_s1 + $0xa8] sm:$0xff]  }
   0x9   :  { %3406 = vmatpush3.bf16.msra.mxu1 %v3794_v7  ;;  %3385 = vmatprep.subr.bf16.mxu0 %v3795_v8  ;;  %v3811_v24 = vld [vmem:[%s5017_s1 + $0x70] sm:$0xff]   ;;  %v3815_v28 = vld [vmem:[%s5017_s1 + $0x78] sm:$0xff]   ;;  %v27_v32 = vld [vmem:[%s5018_s0] sm:$0xff] }
   0xa   :  { %3407 = vmatprep.subr.bf16.mxu1 %v3796_v9  ;;  %v3812_v25 = vld [vmem:[%s5017_s1 + $0xf0] sm:$0xff]   ;;  %v3816_v29 = vld [vmem:[%s5017_s1 + $0xf8] sm:$0xff]   ;;  %v28_v33 = vld [vmem:[%s5018_s0 + $0x8] sm:$0xff]  ;;  %v3075_v34 = vcombine.low %v27_v32, %v27_v32  ;;  %v3076_v35 = vcombine.high %v27_v32, %v27_v32 }
   0xb   :  { %v3813_v26 = vld [vmem:[%s5017_s1 + $0x30] sm:$0xff]   ;;  %v3817_v30 = vld [vmem:[%s5017_s1 + $0x38] sm:$0xff]   ;;  %v3077_v36 = vcombine.low %v28_v33, %v28_v33  ;;  %v3078_v37 = vcombine.high %v28_v33, %v28_v33  ;;  %v3823_v38 = vld [vmem:[%s5017_s1 + $0x140] sm:$0xff]  }
   0xc   :  { %3386 = vmatpush3.bf16.msra.mxu0 %v3797_v10  ;;  %v3814_v27 = vld [vmem:[%s5017_s1 + $0xb0] sm:$0xff]   ;;  %v3818_v31 = vld [vmem:[%s5017_s1 + $0xb8] sm:$0xff]   ;;  %v3824_v39 = vld [vmem:[%s5017_s1 + $0x1c0] sm:$0xff]   ;;  %2242 = vmatprep.mubr.bf16.mxu0 %v3076_v35 }
   0xd   :  { %3408 = vmatpush3.bf16.msra.mxu1 %v3798_v11  ;;  %3387 = vmatprep.subr.bf16.mxu0 %v3799_v12  ;;  %v3825_v40 = vld [vmem:[%s5017_s1 + $0x100] sm:$0xff]   ;;  %v3827_v42 = vld [vmem:[%s5017_s1 + $0x148] sm:$0xff]   ;;  %v3831_v46 = vld [vmem:[%s5017_s1 + $0x150] sm:$0xff]  }
   0xe   :  { %3409 = vmatprep.subr.bf16.mxu1 %v3800_v13  ;;  %2282 = vmatprep.mubr.bf16.mxu1 %v3078_v37  ;;  %v3826_v41 = vld [vmem:[%s5017_s1 + $0x180] sm:$0xff]   ;;  %v3828_v43 = vld [vmem:[%s5017_s1 + $0x1c8] sm:$0xff]   ;;  %v3832_v47 = vld [vmem:[%s5017_s1 + $0x1d0] sm:$0xff]  }
   0xf   :  { %v3829_v44 = vld [vmem:[%s5017_s1 + $0x108] sm:$0xff]   ;;  %v3833_v48 = vld [vmem:[%s5017_s1 + $0x110] sm:$0xff]   ;;  %v3835_v50 = vld [vmem:[%s5017_s1 + $0x158] sm:$0xff]  }
  0x10   :  { %3388 = vmatpush3.bf16.msra.mxu0 %v3801_v14  ;;  %v3830_v45 = vld [vmem:[%s5017_s1 + $0x188] sm:$0xff]   ;;  %v3834_v49 = vld [vmem:[%s5017_s1 + $0x190] sm:$0xff]   ;;  %v3836_v51 = vld [vmem:[%s5017_s1 + $0x1d8] sm:$0xff]  }
  0x11   :  { %3410 = vmatpush3.bf16.msra.mxu1 %v3802_v15  ;;  %3389 = vmatprep.subr.bf16.mxu0 %v3803_v16  ;;  %v3837_v52 = vld [vmem:[%s5017_s1 + $0x118] sm:$0xff]   ;;  %v3839_v54 = vld [vmem:[%s5017_s1 + $0x160] sm:$0xff]   ;;  %v3843_v58 = vld [vmem:[%s5017_s1 + $0x168] sm:$0xff]  }
  0x12   :  { %3411 = vmatprep.subr.bf16.mxu1 %v3804_v17  ;;  %v3838_v53 = vld [vmem:[%s5017_s1 + $0x198] sm:$0xff]   ;;  %v3840_v55 = vld [vmem:[%s5017_s1 + $0x1e0] sm:$0xff]   ;;  %v3844_v59 = vld [vmem:[%s5017_s1 + $0x1e8] sm:$0xff]  }
  0x13   :  { %v3841_v56 = vld [vmem:[%s5017_s1 + $0x120] sm:$0xff]   ;;  %v3845_v60 = vld [vmem:[%s5017_s1 + $0x128] sm:$0xff]   ;;  %v3847_v62 = vld [vmem:[%s5017_s1 + $0x170] sm:$0xff]  }
  0x14   :  { %3390 = vmatpush3.bf16.msra.mxu0 %v3805_v18  ;;  %v3842_v57 = vld [vmem:[%s5017_s1 + $0x1a0] sm:$0xff]   ;;  %v3846_v61 = vld [vmem:[%s5017_s1 + $0x1a8] sm:$0xff]   ;;  %v3848_v63 = vld [vmem:[%s5017_s1 + $0x1f0] sm:$0xff]  }
  0x15   :  { %3412 = vmatpush3.bf16.msra.mxu1 %v3806_v19  ;;  %3391 = vmatprep.subr.bf16.mxu0 %v3807_v20  ;;  %v3849_v0 = vld [vmem:[%s5017_s1 + $0x130] sm:$0xff]   ;;  %v3851_v2 = vld [vmem:[%s5017_s1 + $0x178] sm:$0xff]   ;;  %v3859_v12 = vld [vmem:[%s5017_s1 + $0x240] sm:$0xff]  }
  0x16   :  { %3413 = vmatprep.subr.bf16.mxu1 %v3808_v21  ;;  %v3850_v1 = vld [vmem:[%s5017_s1 + $0x1b0] sm:$0xff]   ;;  %v3852_v3 = vld [vmem:[%s5017_s1 + $0x1f8] sm:$0xff]   ;;  %v3860_v13 = vld [vmem:[%s5017_s1 + $0x2c0] sm:$0xff]  }
  0x17   :  { %v3853_v4 = vld [vmem:[%s5017_s1 + $0x138] sm:$0xff]   ;;  %v29_v6 = vld [vmem:[%s5018_s0 + $0x10] sm:$0xff]  ;;  %v3861_v14 = vld [vmem:[%s5017_s1 + $0x200] sm:$0xff]  }
  0x18   :  { %3392 = vmatpush3.bf16.msra.mxu0 %v3809_v22  ;;  %v3854_v5 = vld [vmem:[%s5017_s1 + $0x1b8] sm:$0xff]   ;;  %v3079_v7 = vcombine.low %v29_v6, %v29_v6  ;;  %v3080_v8 = vcombine.high %v29_v6, %v29_v6  ;;  %v3862_v15 = vld [vmem:[%s5017_s1 + $0x280] sm:$0xff]   ;;  %v3863_v16 = vld [vmem:[%s5017_s1 + $0x248] sm:$0xff]  }
  0x19   :  { %3414 = vmatpush3.bf16.msra.mxu1 %v3810_v23  ;;  %3393 = vmatprep.subr.bf16.mxu0 %v3811_v24  ;;  %v30_v9 = vld [vmem:[%s5018_s0 + $0x18] sm:$0xff]  ;;  %v3864_v17 = vld [vmem:[%s5017_s1 + $0x2c8] sm:$0xff]   ;;  %v3867_v20 = vld [vmem:[%s5017_s1 + $0x250] sm:$0xff]  }
  0x1a   :  { %3415 = vmatprep.subr.bf16.mxu1 %v3812_v25  ;;  %v3081_v10 = vcombine.low %v30_v9, %v30_v9  ;;  %v3082_v11 = vcombine.high %v30_v9, %v30_v9  ;;  %v3865_v18 = vld [vmem:[%s5017_s1 + $0x208] sm:$0xff]   ;;  %v3868_v21 = vld [vmem:[%s5017_s1 + $0x2d0] sm:$0xff]   ;;  %v3871_v24 = vld [vmem:[%s5017_s1 + $0x258] sm:$0xff]  }
  0x1b   :  { %v3866_v19 = vld [vmem:[%s5017_s1 + $0x288] sm:$0xff]   ;;  %v3869_v22 = vld [vmem:[%s5017_s1 + $0x210] sm:$0xff]   ;;  %v3872_v25 = vld [vmem:[%s5017_s1 + $0x2d8] sm:$0xff]  }
  0x1c   :  { %3394 = vmatpush3.bf16.msra.mxu0 %v3813_v26  ;;  %v3870_v23 = vld [vmem:[%s5017_s1 + $0x290] sm:$0xff]   ;;  %v3873_v26 = vld [vmem:[%s5017_s1 + $0x218] sm:$0xff]   ;;  %v3879_v32 = vld [vmem:[%s5017_s1 + $0x268] sm:$0xff]  }
  0x1d   :  { %3416 = vmatpush3.bf16.msra.mxu1 %v3814_v27  ;;  %3395 = vmatprep.subr.bf16.mxu0 %v3815_v28  ;;  %v3874_v27 = vld [vmem:[%s5017_s1 + $0x298] sm:$0xff]   ;;  %v3875_v28 = vld [vmem:[%s5017_s1 + $0x260] sm:$0xff]   ;;  %v3880_v33 = vld [vmem:[%s5017_s1 + $0x2e8] sm:$0xff]  }
  0x1e   :  { %3417 = vmatprep.subr.bf16.mxu1 %v3816_v29  ;;  %v3876_v29 = vld [vmem:[%s5017_s1 + $0x2e0] sm:$0xff]   ;;  %v3882_v35 = vld [vmem:[%s5017_s1 + $0x2a8] sm:$0xff]   ;;  %v3884_v37 = vld [vmem:[%s5017_s1 + $0x2f0] sm:$0xff]  }
  0x1f   :  { %v3915_v6 = vld [vmem:[%s5017_s1 + $0x368] sm:$0xff]  }
  0x20   :  { %3396 = vmatpush3.bf16.msra.mxu0 %v3817_v30  ;;  %v3877_v30 = vld [vmem:[%s5017_s1 + $0x220] sm:$0xff]   ;;  %v3918_v9 = vld [vmem:[%s5017_s1 + $0x3a8] sm:$0xff]  }
  0x21   :  { %3418 = vmatpush3.bf16.msra.mxu1 %v3818_v31  ;;  %3425 = vmatprep.subr.bf16.mxu0 %v3823_v38  ;;  %v3878_v31 = vld [vmem:[%s5017_s1 + $0x2a0] sm:$0xff]   ;;  %v3885_v38 = vld [vmem:[%s5017_s1 + $0x230] sm:$0xff]  }
  0x22   :  { %3447 = vmatprep.subr.bf16.mxu1 %v3824_v39  ;;  %v3886_v39 = vld [vmem:[%s5017_s1 + $0x2b0] sm:$0xff]  }
  0x23   :  { %2243 = vmatmul.mubr.bf16.vlgmr.msra.gmra.mrb[0].mxu0 %v3075_v34  ;;  %v3881_v34 = vld [vmem:[%s5017_s1 + $0x228] sm:$0xff]  }
  0x24   :  { %2283 = vmatmul.mubr.bf16.vlgmr.msra.gmra.mrb[0].mxu1 %v3077_v36  ;;  %3426 = vmatpush3.bf16.msra.mxu0 %v3825_v40  ;;  %v3883_v36 = vld [vmem:[%s5017_s1 + $0x270] sm:$0xff]   ;;  %v3887_v40 = vld [vmem:[%s5017_s1 + $0x278] sm:$0xff]  }
  0x25   :  { %3448 = vmatpush3.bf16.msra.mxu1 %v3826_v41  ;;  %3427 = vmatprep.subr.bf16.mxu0 %v3827_v42  ;;  %v3888_v41 = vld [vmem:[%s5017_s1 + $0x2f8] sm:$0xff]  }
  0x26   :  { %3449 = vmatprep.subr.bf16.mxu1 %v3828_v43  ;;  %2322 = vmatprep.mubr.bf16.mxu0 %v3080_v8  ;;  %v3889_v42 = vld [vmem:[%s5017_s1 + $0x238] sm:$0xff]   ;;  %v3917_v8 = vld [vmem:[%s5017_s1 + $0x328] sm:$0xff]  }
  0x27   :  { %2362 = vmatprep.mubr.bf16.mxu1 %v3082_v11  ;;  %v3890_v43 = vld [vmem:[%s5017_s1 + $0x2b8] sm:$0xff]   ;;  %v3920_v11 = vld [vmem:[%s5017_s1 + $0x3f0] sm:$0xff]  }
  0x28   :  { %3428 = vmatpush3.bf16.msra.mxu0 %v3829_v44  ;;  %v31_v44 = vld [vmem:[%s5018_s0 + $0x20] sm:$0xff] }
  0x29   :  { %3450 = vmatpush3.bf16.msra.mxu1 %v3830_v45  ;;  %3429 = vmatprep.subr.bf16.mxu0 %v3831_v46  ;;  %v32_v45 = vld [vmem:[%s5018_s0 + $0x28] sm:$0xff]  ;;  %v3083_v46 = vcombine.low %v31_v44, %v31_v44 }
  0x2a   :  { %3451 = vmatprep.subr.bf16.mxu1 %v3832_v47  ;;  %v3084_v47 = vcombine.high %v31_v44, %v31_v44  ;;  %v3951_v44 = vld [vmem:[%s5017_s1 + $0x468] sm:$0xff]  }
  0x2c   :  { %3430 = vmatpush3.bf16.msra.mxu0 %v3833_v48  ;;  %v3085_v48 = vcombine.low %v32_v45, %v32_v45 }
  0x2d   :  { %3452 = vmatpush3.bf16.msra.mxu1 %v3834_v49  ;;  %3431 = vmatprep.subr.bf16.mxu0 %v3835_v50  ;;  %v3086_v49 = vcombine.high %v32_v45, %v32_v45  ;;  %v3895_v50 = vld [vmem:[%s5017_s1 + $0x340] sm:$0xff]   ;;  %v3952_v45 = vld [vmem:[%s5017_s1 + $0x4e8] sm:$0xff]  }
  0x2e   :  { %3453 = vmatprep.subr.bf16.mxu1 %v3836_v51  ;;  %v3896_v51 = vld [vmem:[%s5017_s1 + $0x3c0] sm:$0xff]  }
  0x30   :  { %3432 = vmatpush3.bf16.msra.mxu0 %v3837_v52  ;;  %v3897_v52 = vld [vmem:[%s5017_s1 + $0x300] sm:$0xff]  }
  0x31   :  { %3454 = vmatpush3.bf16.msra.mxu1 %v3838_v53  ;;  %3433 = vmatprep.subr.bf16.mxu0 %v3839_v54  ;;  %v3898_v53 = vld [vmem:[%s5017_s1 + $0x380] sm:$0xff]   ;;  %v3899_v54 = vld [vmem:[%s5017_s1 + $0x348] sm:$0xff]  }
  0x32   :  { %3455 = vmatprep.subr.bf16.mxu1 %v3840_v55  ;;  %v3900_v55 = vld [vmem:[%s5017_s1 + $0x3c8] sm:$0xff]  }
  0x34   :  { %3434 = vmatpush3.bf16.msra.mxu0 %v3841_v56  ;;  %v3901_v56 = vld [vmem:[%s5017_s1 + $0x308] sm:$0xff]  }
  0x35   :  { %3456 = vmatpush3.bf16.msra.mxu1 %v3842_v57  ;;  %3435 = vmatprep.subr.bf16.mxu0 %v3843_v58  ;;  %v3902_v57 = vld [vmem:[%s5017_s1 + $0x388] sm:$0xff]   ;;  %v3903_v58 = vld [vmem:[%s5017_s1 + $0x350] sm:$0xff]  }
  0x36   :  { %3457 = vmatprep.subr.bf16.mxu1 %v3844_v59  ;;  %v3904_v59 = vld [vmem:[%s5017_s1 + $0x3d0] sm:$0xff]  }
  0x38   :  { %3436 = vmatpush3.bf16.msra.mxu0 %v3845_v60  ;;  %v3905_v60 = vld [vmem:[%s5017_s1 + $0x310] sm:$0xff]  }
  0x39   :  { %3458 = vmatpush3.bf16.msra.mxu1 %v3846_v61  ;;  %3437 = vmatprep.subr.bf16.mxu0 %v3847_v62  ;;  %v3906_v61 = vld [vmem:[%s5017_s1 + $0x390] sm:$0xff]   ;;  %v3907_v62 = vld [vmem:[%s5017_s1 + $0x358] sm:$0xff]  }
  0x3a   :  { %3459 = vmatprep.subr.bf16.mxu1 %v3848_v63  ;;  %v3908_v63 = vld [vmem:[%s5017_s1 + $0x3d8] sm:$0xff]  }
  0x3c   :  { %3438 = vmatpush3.bf16.msra.mxu0 %v3849_v0  ;;  %v3909_v0 = vld [vmem:[%s5017_s1 + $0x318] sm:$0xff]  }
  0x3d   :  { %3460 = vmatpush3.bf16.msra.mxu1 %v3850_v1  ;;  %3439 = vmatprep.subr.bf16.mxu0 %v3851_v2  ;;  %v3910_v1 = vld [vmem:[%s5017_s1 + $0x398] sm:$0xff]   ;;  %v3911_v2 = vld [vmem:[%s5017_s1 + $0x360] sm:$0xff]  }
  0x3e   :  { %3461 = vmatprep.subr.bf16.mxu1 %v3852_v3  ;;  %v3912_v3 = vld [vmem:[%s5017_s1 + $0x3e0] sm:$0xff]  }
  0x40   :  { %3440 = vmatpush3.bf16.msra.mxu0 %v3853_v4  ;;  %v3913_v4 = vld [vmem:[%s5017_s1 + $0x320] sm:$0xff]  }
  0x41   :  { %3462 = vmatpush3.bf16.msra.mxu1 %v3854_v5  ;;  %3469 = vmatprep.subr.bf16.mxu0 %v3859_v12  ;;  %v3914_v5 = vld [vmem:[%s5017_s1 + $0x3a0] sm:$0xff]   ;;  %v3921_v12 = vld [vmem:[%s5017_s1 + $0x330] sm:$0xff]  }
  0x42   :  { %3491 = vmatprep.subr.bf16.mxu1 %v3860_v13  ;;  %v3922_v13 = vld [vmem:[%s5017_s1 + $0x3b0] sm:$0xff]  }
  0x43   :  { %2323 = vmatmul.mubr.bf16.vlgmr.msra.gmra.mrb[4].mxu0 %v3079_v7  ;;  %v3916_v7 = vld [vmem:[%s5017_s1 + $0x3e8] sm:$0xff]  }
  0x44   :  { %2363 = vmatmul.mubr.bf16.vlgmr.msra.gmra.mrb[4].mxu1 %v3081_v10  ;;  %3470 = vmatpush3.bf16.msra.mxu0 %v3861_v14  ;;  %v3919_v10 = vld [vmem:[%s5017_s1 + $0x370] sm:$0xff]   ;;  %v3923_v14 = vld [vmem:[%s5017_s1 + $0x378] sm:$0xff]  }
  0x45   :  { %3492 = vmatpush3.bf16.msra.mxu1 %v3862_v15  ;;  %3471 = vmatprep.subr.bf16.mxu0 %v3863_v16  ;;  %v3924_v15 = vld [vmem:[%s5017_s1 + $0x3f8] sm:$0xff]  }
  0x46   :  { %3493 = vmatprep.subr.bf16.mxu1 %v3864_v17  ;;  %2402 = vmatprep.mubr.bf16.mxu0 %v3084_v47  ;;  %v3925_v16 = vld [vmem:[%s5017_s1 + $0x338] sm:$0xff]   ;;  %v3954_v47 = vld [vmem:[%s5017_s1 + $0x4a8] sm:$0xff]  }
  0x47   :  { %2442 = vmatprep.mubr.bf16.mxu1 %v3086_v49  ;;  %v3926_v17 = vld [vmem:[%s5017_s1 + $0x3b8] sm:$0xff]   ;;  %v3956_v49 = vld [vmem:[%s5017_s1 + $0x4f0] sm:$0xff]  }
  0x48   :  { %3472 = vmatpush3.bf16.msra.mxu0 %v3865_v18  ;;  %v33_v18 = vld [vmem:[%s5018_s0 + $0x30] sm:$0xff] }
  0x49   :  { %3494 = vmatpush3.bf16.msra.mxu1 %v3866_v19  ;;  %3473 = vmatprep.subr.bf16.mxu0 %v3867_v20  ;;  %v34_v19 = vld [vmem:[%s5018_s0 + $0x38] sm:$0xff]  ;;  %v3087_v20 = vcombine.low %v33_v18, %v33_v18 }
  0x4a   :  { %3495 = vmatprep.subr.bf16.mxu1 %v3868_v21  ;;  %v3088_v21 = vcombine.high %v33_v18, %v33_v18  ;;  %v3987_v18 = vld [vmem:[%s5017_s1 + $0x568] sm:$0xff]  }
  0x4c   :  { %3474 = vmatpush3.bf16.msra.mxu0 %v3869_v22  ;;  %v3089_v22 = vcombine.low %v34_v19, %v34_v19 }
  0x4d   :  { %3496 = vmatpush3.bf16.msra.mxu1 %v3870_v23  ;;  %3475 = vmatprep.subr.bf16.mxu0 %v3871_v24  ;;  %v3931_v23 = vld [vmem:[%s5017_s1 + $0x440] sm:$0xff]   ;;  %v3090_v24 = vcombine.high %v34_v19, %v34_v19  ;;  %v3988_v19 = vld [vmem:[%s5017_s1 + $0x5e8] sm:$0xff]  }
  0x4e   :  { %3497 = vmatprep.subr.bf16.mxu1 %v3872_v25  ;;  %v3932_v25 = vld [vmem:[%s5017_s1 + $0x4c0] sm:$0xff]  }
  0x50   :  { %3476 = vmatpush3.bf16.msra.mxu0 %v3873_v26  ;;  %v3933_v26 = vld [vmem:[%s5017_s1 + $0x400] sm:$0xff]  }
  0x51   :  { %3498 = vmatpush3.bf16.msra.mxu1 %v3874_v27  ;;  %3477 = vmatprep.subr.bf16.mxu0 %v3875_v28  ;;  %v3934_v27 = vld [vmem:[%s5017_s1 + $0x480] sm:$0xff]   ;;  %v3935_v28 = vld [vmem:[%s5017_s1 + $0x448] sm:$0xff]  }
  0x52   :  { %3499 = vmatprep.subr.bf16.mxu1 %v3876_v29  ;;  %v3936_v29 = vld [vmem:[%s5017_s1 + $0x4c8] sm:$0xff]  }
  0x54   :  { %3478 = vmatpush3.bf16.msra.mxu0 %v3877_v30  ;;  %v3937_v30 = vld [vmem:[%s5017_s1 + $0x408] sm:$0xff]  }
  0x55   :  { %3500 = vmatpush3.bf16.msra.mxu1 %v3878_v31  ;;  %3479 = vmatprep.subr.bf16.mxu0 %v3879_v32  ;;  %v3938_v31 = vld [vmem:[%s5017_s1 + $0x488] sm:$0xff]   ;;  %v3939_v32 = vld [vmem:[%s5017_s1 + $0x450] sm:$0xff]  }
  0x56   :  { %3501 = vmatprep.subr.bf16.mxu1 %v3880_v33  ;;  %v3940_v33 = vld [vmem:[%s5017_s1 + $0x4d0] sm:$0xff]  }
  0x58   :  { %3480 = vmatpush3.bf16.msra.mxu0 %v3881_v34  ;;  %v3941_v34 = vld [vmem:[%s5017_s1 + $0x410] sm:$0xff]  }
  0x59   :  { %3502 = vmatpush3.bf16.msra.mxu1 %v3882_v35  ;;  %3481 = vmatprep.subr.bf16.mxu0 %v3883_v36  ;;  %v3942_v35 = vld [vmem:[%s5017_s1 + $0x490] sm:$0xff]   ;;  %v3943_v36 = vld [vmem:[%s5017_s1 + $0x458] sm:$0xff]  }
  0x5a   :  { %3503 = vmatprep.subr.bf16.mxu1 %v3884_v37  ;;  %v3944_v37 = vld [vmem:[%s5017_s1 + $0x4d8] sm:$0xff]  }
  0x5c   :  { %3482 = vmatpush3.bf16.msra.mxu0 %v3885_v38  ;;  %v3945_v38 = vld [vmem:[%s5017_s1 + $0x418] sm:$0xff]  }
  0x5d   :  { %3504 = vmatpush3.bf16.msra.mxu1 %v3886_v39  ;;  %3483 = vmatprep.subr.bf16.mxu0 %v3887_v40  ;;  %v3946_v39 = vld [vmem:[%s5017_s1 + $0x498] sm:$0xff]   ;;  %v3947_v40 = vld [vmem:[%s5017_s1 + $0x460] sm:$0xff]  }
  0x5e   :  { %3505 = vmatprep.subr.bf16.mxu1 %v3888_v41  ;;  %v3948_v41 = vld [vmem:[%s5017_s1 + $0x4e0] sm:$0xff]  }
  0x60   :  { %3484 = vmatpush3.bf16.msra.mxu0 %v3889_v42  ;;  %v3949_v42 = vld [vmem:[%s5017_s1 + $0x420] sm:$0xff]  }
  0x61   :  { %3506 = vmatpush3.bf16.msra.mxu1 %v3890_v43  ;;  %3513 = vmatprep.subr.bf16.mxu0 %v3895_v50  ;;  %v3950_v43 = vld [vmem:[%s5017_s1 + $0x4a0] sm:$0xff]   ;;  %v3957_v50 = vld [vmem:[%s5017_s1 + $0x430] sm:$0xff]  }
  0x62   :  { %3535 = vmatprep.subr.bf16.mxu1 %v3896_v51  ;;  %v3958_v51 = vld [vmem:[%s5017_s1 + $0x4b0] sm:$0xff]  }
  0x63   :  { %2403 = vmatmul.mubr.bf16.vlgmr.msra.gmra.mrb[8].mxu0 %v3083_v46  ;;  %v3953_v46 = vld [vmem:[%s5017_s1 + $0x428] sm:$0xff]  }
  0x64   :  { %2443 = vmatmul.mubr.bf16.vlgmr.msra.gmra.mrb[8].mxu1 %v3085_v48  ;;  %3514 = vmatpush3.bf16.msra.mxu0 %v3897_v52  ;;  %v3955_v48 = vld [vmem:[%s5017_s1 + $0x470] sm:$0xff]   ;;  %v3959_v52 = vld [vmem:[%s5017_s1 + $0x478] sm:$0xff]  }
  0x65   :  { %3536 = vmatpush3.bf16.msra.mxu1 %v3898_v53  ;;  %3515 = vmatprep.subr.bf16.mxu0 %v3899_v54  ;;  %v3960_v53 = vld [vmem:[%s5017_s1 + $0x4f8] sm:$0xff]  }
  0x66   :  { %3537 = vmatprep.subr.bf16.mxu1 %v3900_v55  ;;  %2482 = vmatprep.mubr.bf16.mxu0 %v3088_v21  ;;  %v3961_v54 = vld [vmem:[%s5017_s1 + $0x438] sm:$0xff]   ;;  %v3990_v21 = vld [vmem:[%s5017_s1 + $0x5a8] sm:$0xff]  }
  0x67   :  { %2522 = vmatprep.mubr.bf16.mxu1 %v3090_v24  ;;  %v3962_v55 = vld [vmem:[%s5017_s1 + $0x4b8] sm:$0xff]   ;;  %v3993_v24 = vld [vmem:[%s5017_s1 + $0x530] sm:$0xff]  }
  0x68   :  { %3516 = vmatpush3.bf16.msra.mxu0 %v3901_v56  ;;  %v35_v56 = vld [vmem:[%s5018_s0 + $0x40] sm:$0xff] }
  0x69   :  { %3538 = vmatpush3.bf16.msra.mxu1 %v3902_v57  ;;  %3517 = vmatprep.subr.bf16.mxu0 %v3903_v58  ;;  %v3091_v57 = vcombine.low %v35_v56, %v35_v56  ;;  %v3092_v58 = vcombine.high %v35_v56, %v35_v56  ;;  %v4023_v56 = vld [vmem:[%s5017_s1 + $0x668] sm:$0xff]  }
  0x6a   :  { %3539 = vmatprep.subr.bf16.mxu1 %v3904_v59  ;;  %v36_v59 = vld [vmem:[%s5018_s0 + $0x48] sm:$0xff] }
  0x6c   :  { %3518 = vmatpush3.bf16.msra.mxu0 %v3905_v60  ;;  %v3093_v60 = vcombine.low %v36_v59, %v36_v59 }
  0x6d   :  { %3540 = vmatpush3.bf16.msra.mxu1 %v3906_v61  ;;  %3519 = vmatprep.subr.bf16.mxu0 %v3907_v62  ;;  %v3094_v61 = vcombine.high %v36_v59, %v36_v59  ;;  %v3967_v62 = vld [vmem:[%s5017_s1 + $0x540] sm:$0xff]   ;;  %v4026_v59 = vld [vmem:[%s5017_s1 + $0x6a8] sm:$0xff]  }
  0x6e   :  { %3541 = vmatprep.subr.bf16.mxu1 %v3908_v63  ;;  %v3968_v63 = vld [vmem:[%s5017_s1 + $0x5c0] sm:$0xff]  }
  0x70   :  { %3520 = vmatpush3.bf16.msra.mxu0 %v3909_v0  ;;  %v3969_v0 = vld [vmem:[%s5017_s1 + $0x500] sm:$0xff]  }
  0x71   :  { %3542 = vmatpush3.bf16.msra.mxu1 %v3910_v1  ;;  %3521 = vmatprep.subr.bf16.mxu0 %v3911_v2  ;;  %v3970_v1 = vld [vmem:[%s5017_s1 + $0x580] sm:$0xff]   ;;  %v3971_v2 = vld [vmem:[%s5017_s1 + $0x548] sm:$0xff]  }
  0x72   :  { %3543 = vmatprep.subr.bf16.mxu1 %v3912_v3  ;;  %v3972_v3 = vld [vmem:[%s5017_s1 + $0x5c8] sm:$0xff]  }
  0x74   :  { %3522 = vmatpush3.bf16.msra.mxu0 %v3913_v4  ;;  %v3973_v4 = vld [vmem:[%s5017_s1 + $0x508] sm:$0xff]  }
  0x75   :  { %3544 = vmatpush3.bf16.msra.mxu1 %v3914_v5  ;;  %3523 = vmatprep.subr.bf16.mxu0 %v3915_v6  ;;  %v3974_v5 = vld [vmem:[%s5017_s1 + $0x588] sm:$0xff]   ;;  %v3975_v6 = vld [vmem:[%s5017_s1 + $0x550] sm:$0xff]  }
  0x76   :  { %3545 = vmatprep.subr.bf16.mxu1 %v3916_v7  ;;  %v3976_v7 = vld [vmem:[%s5017_s1 + $0x5d0] sm:$0xff]  }
  0x78   :  { %3524 = vmatpush3.bf16.msra.mxu0 %v3917_v8  ;;  %v3977_v8 = vld [vmem:[%s5017_s1 + $0x510] sm:$0xff]  }
  0x79   :  { %3546 = vmatpush3.bf16.msra.mxu1 %v3918_v9  ;;  %3525 = vmatprep.subr.bf16.mxu0 %v3919_v10  ;;  %v3978_v9 = vld [vmem:[%s5017_s1 + $0x590] sm:$0xff]   ;;  %v3979_v10 = vld [vmem:[%s5017_s1 + $0x558] sm:$0xff]  }
  0x7a   :  { %3547 = vmatprep.subr.bf16.mxu1 %v3920_v11  ;;  %v3980_v11 = vld [vmem:[%s5017_s1 + $0x5d8] sm:$0xff]  }
  0x7c   :  { %3526 = vmatpush3.bf16.msra.mxu0 %v3921_v12  ;;  %v3981_v12 = vld [vmem:[%s5017_s1 + $0x518] sm:$0xff]  }
  0x7d   :  { %3548 = vmatpush3.bf16.msra.mxu1 %v3922_v13  ;;  %3527 = vmatprep.subr.bf16.mxu0 %v3923_v14  ;;  %v3982_v13 = vld [vmem:[%s5017_s1 + $0x598] sm:$0xff]   ;;  %v3983_v14 = vld [vmem:[%s5017_s1 + $0x560] sm:$0xff]  }
  0x7e   :  { %3549 = vmatprep.subr.bf16.mxu1 %v3924_v15  ;;  %v3984_v15 = vld [vmem:[%s5017_s1 + $0x5e0] sm:$0xff]  }
  0x80   :  { %3528 = vmatpush3.bf16.msra.mxu0 %v3925_v16  ;;  %v3985_v16 = vld [vmem:[%s5017_s1 + $0x520] sm:$0xff]  }
  0x81   :  { %3550 = vmatpush3.bf16.msra.mxu1 %v3926_v17  ;;  %3557 = vmatprep.subr.bf16.mxu0 %v3931_v23  ;;  %v3986_v17 = vld [vmem:[%s5017_s1 + $0x5a0] sm:$0xff]   ;;  %v3992_v23 = vld [vmem:[%s5017_s1 + $0x5f0] sm:$0xff]  }
  0x82   :  { %3579 = vmatprep.subr.bf16.mxu1 %v3932_v25  ;;  %v3994_v25 = vld [vmem:[%s5017_s1 + $0x5b0] sm:$0xff]  }
  0x83   :  { %2483 = vmatmul.mubr.bf16.vlgmr.msra.gmra.mrb[12].mxu0 %v3087_v20  ;;  %v3989_v20 = vld [vmem:[%s5017_s1 + $0x528] sm:$0xff]  }
  0x84   :  { %2523 = vmatmul.mubr.bf16.vlgmr.msra.gmra.mrb[12].mxu1 %v3089_v22  ;;  %3558 = vmatpush3.bf16.msra.mxu0 %v3933_v26  ;;  %v3991_v22 = vld [vmem:[%s5017_s1 + $0x570] sm:$0xff]   ;;  %v3995_v26 = vld [vmem:[%s5017_s1 + $0x578] sm:$0xff]  }
  0x85   :  { %3580 = vmatpush3.bf16.msra.mxu1 %v3934_v27  ;;  %3559 = vmatprep.subr.bf16.mxu0 %v3935_v28  ;;  %v3996_v27 = vld [vmem:[%s5017_s1 + $0x5f8] sm:$0xff]  }
  0x86   :  { %3581 = vmatprep.subr.bf16.mxu1 %v3936_v29  ;;  %2562 = vmatprep.mubr.bf16.mxu0 %v3092_v58  ;;  %v3997_v28 = vld [vmem:[%s5017_s1 + $0x538] sm:$0xff]   ;;  %v4025_v58 = vld [vmem:[%s5017_s1 + $0x628] sm:$0xff]  }
  0x87   :  { %2602 = vmatprep.mubr.bf16.mxu1 %v3094_v61  ;;  %v3998_v29 = vld [vmem:[%s5017_s1 + $0x5b8] sm:$0xff]   ;;  %v4028_v61 = vld [vmem:[%s5017_s1 + $0x6f0] sm:$0xff]  }
  0x88   :  { %3560 = vmatpush3.bf16.msra.mxu0 %v3937_v30  ;;  %v37_v30 = vld [vmem:[%s5018_s0 + $0x50] sm:$0xff] }
  0x89   :  { %3582 = vmatpush3.bf16.msra.mxu1 %v3938_v31  ;;  %3561 = vmatprep.subr.bf16.mxu0 %v3939_v32  ;;  %v38_v31 = vld [vmem:[%s5018_s0 + $0x58] sm:$0xff]  ;;  %v3095_v32 = vcombine.low %v37_v30, %v37_v30 }
  0x8a   :  { %3583 = vmatprep.subr.bf16.mxu1 %v3940_v33  ;;  %v3096_v33 = vcombine.high %v37_v30, %v37_v30  ;;  %v4058_v30 = vld [vmem:[%s5017_s1 + $0x7a0] sm:$0xff]  }
  0x8c   :  { %3562 = vmatpush3.bf16.msra.mxu0 %v3941_v34  ;;  %v3097_v34 = vcombine.low %v38_v31, %v38_v31 }
  0x8d   :  { %3584 = vmatpush3.bf16.msra.mxu1 %v3942_v35  ;;  %3563 = vmatprep.subr.bf16.mxu0 %v3943_v36  ;;  %v3098_v35 = vcombine.high %v38_v31, %v38_v31  ;;  %v4003_v36 = vld [vmem:[%s5017_s1 + $0x640] sm:$0xff]  }
  0x8e   :  { %3585 = vmatprep.subr.bf16.mxu1 %v3944_v37  ;;  %v4004_v37 = vld [vmem:[%s5017_s1 + $0x6c0] sm:$0xff]  }
  0x90   :  { %3564 = vmatpush3.bf16.msra.mxu0 %v3945_v38  ;;  %v4005_v38 = vld [vmem:[%s5017_s1 + $0x600] sm:$0xff]  }
  0x91   :  { %3586 = vmatpush3.bf16.msra.mxu1 %v3946_v39  ;;  %3565 = vmatprep.subr.bf16.mxu0 %v3947_v40  ;;  %v4006_v39 = vld [vmem:[%s5017_s1 + $0x680] sm:$0xff]   ;;  %v4007_v40 = vld [vmem:[%s5017_s1 + $0x648] sm:$0xff]  }
  0x92   :  { %3587 = vmatprep.subr.bf16.mxu1 %v3948_v41  ;;  %v4008_v41 = vld [vmem:[%s5017_s1 + $0x6c8] sm:$0xff]  }
  0x94   :  { %3566 = vmatpush3.bf16.msra.mxu0 %v3949_v42  ;;  %v4009_v42 = vld [vmem:[%s5017_s1 + $0x608] sm:$0xff]  }
  0x95   :  { %3588 = vmatpush3.bf16.msra.mxu1 %v3950_v43  ;;  %3567 = vmatprep.subr.bf16.mxu0 %v3951_v44  ;;  %v4010_v43 = vld [vmem:[%s5017_s1 + $0x688] sm:$0xff]   ;;  %v4011_v44 = vld [vmem:[%s5017_s1 + $0x650] sm:$0xff]  }
  0x96   :  { %3589 = vmatprep.subr.bf16.mxu1 %v3952_v45  ;;  %v4012_v45 = vld [vmem:[%s5017_s1 + $0x6d0] sm:$0xff]  }
  0x98   :  { %3568 = vmatpush3.bf16.msra.mxu0 %v3953_v46  ;;  %v4013_v46 = vld [vmem:[%s5017_s1 + $0x610] sm:$0xff]  }
  0x99   :  { %3590 = vmatpush3.bf16.msra.mxu1 %v3954_v47  ;;  %3569 = vmatprep.subr.bf16.mxu0 %v3955_v48  ;;  %v4014_v47 = vld [vmem:[%s5017_s1 + $0x690] sm:$0xff]   ;;  %v4015_v48 = vld [vmem:[%s5017_s1 + $0x658] sm:$0xff]  }
  0x9a   :  { %3591 = vmatprep.subr.bf16.mxu1 %v3956_v49  ;;  %v4016_v49 = vld [vmem:[%s5017_s1 + $0x6d8] sm:$0xff]  }
  0x9c   :  { %3570 = vmatpush3.bf16.msra.mxu0 %v3957_v50  ;;  %v4017_v50 = vld [vmem:[%s5017_s1 + $0x618] sm:$0xff]  }
  0x9d   :  { %3592 = vmatpush3.bf16.msra.mxu1 %v3958_v51  ;;  %3571 = vmatprep.subr.bf16.mxu0 %v3959_v52  ;;  %v4018_v51 = vld [vmem:[%s5017_s1 + $0x698] sm:$0xff]   ;;  %v4019_v52 = vld [vmem:[%s5017_s1 + $0x660] sm:$0xff]  }
  0x9e   :  { %3593 = vmatprep.subr.bf16.mxu1 %v3960_v53  ;;  %v4020_v53 = vld [vmem:[%s5017_s1 + $0x6e0] sm:$0xff]  }
  0xa0   :  { %3572 = vmatpush3.bf16.msra.mxu0 %v3961_v54  ;;  %v4021_v54 = vld [vmem:[%s5017_s1 + $0x620] sm:$0xff]  }
  0xa1   :  { %3594 = vmatpush3.bf16.msra.mxu1 %v3962_v55  ;;  %3601 = vmatprep.subr.bf16.mxu0 %v3967_v62  ;;  %v4022_v55 = vld [vmem:[%s5017_s1 + $0x6a0] sm:$0xff]   ;;  %v4029_v62 = vld [vmem:[%s5017_s1 + $0x630] sm:$0xff]  }
  0xa2   :  { %3623 = vmatprep.subr.bf16.mxu1 %v3968_v63  ;;  %v4030_v63 = vld [vmem:[%s5017_s1 + $0x6b0] sm:$0xff]  }
  0xa3   :  { %2563 = vmatmul.mubr.bf16.vlgmr.msra.gmra.mrb[16].mxu0 %v3091_v57  ;;  %v4024_v57 = vld [vmem:[%s5017_s1 + $0x6e8] sm:$0xff]  }
  0xa4   :  { %2603 = vmatmul.mubr.bf16.vlgmr.msra.gmra.mrb[16].mxu1 %v3093_v60  ;;  %3602 = vmatpush3.bf16.msra.mxu0 %v3969_v0  ;;  %v4027_v60 = vld [vmem:[%s5017_s1 + $0x670] sm:$0xff]   ;;  %v4031_v0 = vld [vmem:[%s5017_s1 + $0x678] sm:$0xff]  }
  0xa5   :  { %3624 = vmatpush3.bf16.msra.mxu1 %v3970_v1  ;;  %3603 = vmatprep.subr.bf16.mxu0 %v3971_v2  ;;  %v4032_v1 = vld [vmem:[%s5017_s1 + $0x6f8] sm:$0xff]  }
  0xa6   :  { %3625 = vmatprep.subr.bf16.mxu1 %v3972_v3  ;;  %2642 = vmatprep.mubr.bf16.mxu0 %v3096_v33  ;;  %v4033_v2 = vld [vmem:[%s5017_s1 + $0x638] sm:$0xff]  }
  0xa7   :  { %2682 = vmatprep.mubr.bf16.mxu1 %v3098_v35  ;;  %v4034_v3 = vld [vmem:[%s5017_s1 + $0x6b8] sm:$0xff]  }
  0xa8   :  { %3604 = vmatpush3.bf16.msra.mxu0 %v3973_v4  ;;  %v39_v4 = vld [vmem:[%s5018_s0 + $0x60] sm:$0xff] }
  0xa9   :  { %3626 = vmatpush3.bf16.msra.mxu1 %v3974_v5  ;;  %3605 = vmatprep.subr.bf16.mxu0 %v3975_v6  ;;  %v40_v5 = vld [vmem:[%s5018_s0 + $0x68] sm:$0xff]  ;;  %v3099_v6 = vcombine.low %v39_v4, %v39_v4 }
  0xaa   :  { %3627 = vmatprep.subr.bf16.mxu1 %v3976_v7  ;;  %v3100_v7 = vcombine.high %v39_v4, %v39_v4 }
  0xac   :  { %3606 = vmatpush3.bf16.msra.mxu0 %v3977_v8  ;;  %v3101_v8 = vcombine.low %v40_v5, %v40_v5 }
  0xad   :  { %3628 = vmatpush3.bf16.msra.mxu1 %v3978_v9  ;;  %3607 = vmatprep.subr.bf16.mxu0 %v3979_v10  ;;  %v4039_v9 = vld [vmem:[%s5017_s1 + $0x740] sm:$0xff]   ;;  %v3102_v10 = vcombine.high %v40_v5, %v40_v5 }
  0xae   :  { %3629 = vmatprep.subr.bf16.mxu1 %v3980_v11  ;;  %v4040_v11 = vld [vmem:[%s5017_s1 + $0x7c0] sm:$0xff]  }
  0xb0   :  { %3608 = vmatpush3.bf16.msra.mxu0 %v3981_v12  ;;  %v4041_v12 = vld [vmem:[%s5017_s1 + $0x700] sm:$0xff]  }
  0xb1   :  { %3630 = vmatpush3.bf16.msra.mxu1 %v3982_v13  ;;  %3609 = vmatprep.subr.bf16.mxu0 %v3983_v14  ;;  %v4042_v13 = vld [vmem:[%s5017_s1 + $0x780] sm:$0xff]   ;;  %v4043_v14 = vld [vmem:[%s5017_s1 + $0x748] sm:$0xff]  }
  0xb2   :  { %3631 = vmatprep.subr.bf16.mxu1 %v3984_v15  ;;  %v4044_v15 = vld [vmem:[%s5017_s1 + $0x7c8] sm:$0xff]  }
  0xb4   :  { %3610 = vmatpush3.bf16.msra.mxu0 %v3985_v16  ;;  %v4045_v16 = vld [vmem:[%s5017_s1 + $0x708] sm:$0xff]  }
  0xb5   :  { %3632 = vmatpush3.bf16.msra.mxu1 %v3986_v17  ;;  %3611 = vmatprep.subr.bf16.mxu0 %v3987_v18  ;;  %v4046_v17 = vld [vmem:[%s5017_s1 + $0x788] sm:$0xff]   ;;  %v4047_v18 = vld [vmem:[%s5017_s1 + $0x750] sm:$0xff]  }
  0xb6   :  { %3633 = vmatprep.subr.bf16.mxu1 %v3988_v19  ;;  %v4048_v19 = vld [vmem:[%s5017_s1 + $0x7d0] sm:$0xff]  }
  0xb8   :  { %3612 = vmatpush3.bf16.msra.mxu0 %v3989_v20  ;;  %v4049_v20 = vld [vmem:[%s5017_s1 + $0x710] sm:$0xff]  }
  0xb9   :  { %3634 = vmatpush3.bf16.msra.mxu1 %v3990_v21  ;;  %3613 = vmatprep.subr.bf16.mxu0 %v3991_v22  ;;  %v4050_v21 = vld [vmem:[%s5017_s1 + $0x790] sm:$0xff]   ;;  %v4051_v22 = vld [vmem:[%s5017_s1 + $0x758] sm:$0xff]  }
  0xba   :  { %3635 = vmatprep.subr.bf16.mxu1 %v3992_v23  ;;  %v4052_v23 = vld [vmem:[%s5017_s1 + $0x7d8] sm:$0xff]  }
  0xbc   :  { %3614 = vmatpush3.bf16.msra.mxu0 %v3993_v24  ;;  %v4053_v24 = vld [vmem:[%s5017_s1 + $0x718] sm:$0xff]  }
  0xbd   :  { %3636 = vmatpush3.bf16.msra.mxu1 %v3994_v25  ;;  %3615 = vmatprep.subr.bf16.mxu0 %v3995_v26  ;;  %v4054_v25 = vld [vmem:[%s5017_s1 + $0x798] sm:$0xff]   ;;  %v4055_v26 = vld [vmem:[%s5017_s1 + $0x760] sm:$0xff]  }
  0xbe   :  { %3637 = vmatprep.subr.bf16.mxu1 %v3996_v27  ;;  %v4056_v27 = vld [vmem:[%s5017_s1 + $0x7e0] sm:$0xff]  }
  0xc0   :  { %3616 = vmatpush3.bf16.msra.mxu0 %v3997_v28  ;;  %v4057_v28 = vld [vmem:[%s5017_s1 + $0x720] sm:$0xff]  }
  0xc1   :  { %3638 = vmatpush3.bf16.msra.mxu1 %v3998_v29  ;;  %3645 = vmatprep.subr.bf16.mxu0 %v4003_v36 }
  0xc2   :  { %3667 = vmatprep.subr.bf16.mxu1 %v4004_v37  ;;  %v4059_v37 = vld [vmem:[%s5017_s1 + $0x768] sm:$0xff]  }
  0xc3   :  { %2643 = vmatmul.mubr.bf16.vlgmr.msra.gmra.mrb[20].mxu0 %v3095_v32  ;;  %v3074_v32 = vld [vmem:[%s5019_s2] ss:$0 sm:$0xff] }
  0xc4   :  { %2683 = vmatmul.mubr.bf16.vlgmr.msra.gmra.mrb[20].mxu1 %v3097_v34  ;;  %3646 = vmatpush3.bf16.msra.mxu0 %v4005_v38 }
  0xc5   :  { %3668 = vmatpush3.bf16.msra.mxu1 %v4006_v39  ;;  %3647 = vmatprep.subr.bf16.mxu0 %v4007_v40  ;;  %v4060_v39 = vld [vmem:[%s5017_s1 + $0x7e8] sm:$0xff]  }
  0xc6   :  { %3669 = vmatprep.subr.bf16.mxu1 %v4008_v41  ;;  %2722 = vmatprep.mubr.bf16.mxu0 %v3100_v7 }
  0xc7   :  { %2762 = vmatprep.mubr.bf16.mxu1 %v3102_v10 }
  0xc8   :  { %3648 = vmatpush3.bf16.msra.mxu0 %v4009_v42  ;;  %v4061_v42 = vld [vmem:[%s5017_s1 + $0x728] sm:$0xff]  }
  0xc9   :  { %3670 = vmatpush3.bf16.msra.mxu1 %v4010_v43  ;;  %3649 = vmatprep.subr.bf16.mxu0 %v4011_v44  ;;  %v4062_v44 = vld [vmem:[%s5017_s1 + $0x7a8] sm:$0xff]  }
  0xca   :  { %3671 = vmatprep.subr.bf16.mxu1 %v4012_v45 }
  0xcc   :  { %3650 = vmatpush3.bf16.msra.mxu0 %v4013_v46 }
  0xcd   :  { %3672 = vmatpush3.bf16.msra.mxu1 %v4014_v47  ;;  %3651 = vmatprep.subr.bf16.mxu0 %v4015_v48  ;;  %v4063_v47 = vld [vmem:[%s5017_s1 + $0x770] sm:$0xff]  }
  0xce   :  { %3673 = vmatprep.subr.bf16.mxu1 %v4016_v49  ;;  %v4064_v48 = vld [vmem:[%s5017_s1 + $0x7f0] sm:$0xff]  }
  0xcf   :  { %v4065_v49 = vld [vmem:[%s5017_s1 + $0x730] sm:$0xff]  }
  0xd0   :  { %3652 = vmatpush3.bf16.msra.mxu0 %v4017_v50  ;;  %v4066_v50 = vld [vmem:[%s5017_s1 + $0x7b0] sm:$0xff]  }
  0xd1   :  { %3674 = vmatpush3.bf16.msra.mxu1 %v4018_v51  ;;  %3653 = vmatprep.subr.bf16.mxu0 %v4019_v52  ;;  %v4067_v51 = vld [vmem:[%s5017_s1 + $0x778] sm:$0xff]  }
  0xd2   :  { %3675 = vmatprep.subr.bf16.mxu1 %v4020_v53  ;;  %v4068_v52 = vld [vmem:[%s5017_s1 + $0x7f8] sm:$0xff]  }
  0xd3   :  { %v4069_v53 = vld [vmem:[%s5017_s1 + $0x738] sm:$0xff]  }
  0xd4   :  { %3654 = vmatpush3.bf16.msra.mxu0 %v4021_v54  ;;  %v4070_v54 = vld [vmem:[%s5017_s1 + $0x7b8] sm:$0xff]  }
  0xd5   :  { %3676 = vmatpush3.bf16.msra.mxu1 %v4022_v55  ;;  %3655 = vmatprep.subr.bf16.mxu0 %v4023_v56  ;;  %v41_v55 = vld [vmem:[%s5018_s0 + $0x70] sm:$0xff]  ;;  %v42_v56 = vld [vmem:[%s5018_s0 + $0x78] sm:$0xff] }
  0xd6   :  { %3677 = vmatprep.subr.bf16.mxu1 %v4024_v57  ;;  %v3103_v57 = vcombine.low %v41_v55, %v41_v55 }
  0xd8   :  { %3656 = vmatpush3.bf16.msra.mxu0 %v4025_v58  ;;  %v3104_v58 = vcombine.high %v41_v55, %v41_v55 }
  0xd9   :  { %3678 = vmatpush3.bf16.msra.mxu1 %v4026_v59  ;;  %3657 = vmatprep.subr.bf16.mxu0 %v4027_v60  ;;  %v3105_v59 = vcombine.low %v42_v56, %v42_v56  ;;  %v3106_v60 = vcombine.high %v42_v56, %v42_v56 }
  0xda   :  { %3679 = vmatprep.subr.bf16.mxu1 %v4028_v61 }
  0xdc   :  { %3658 = vmatpush3.bf16.msra.mxu0 %v4029_v62 }
  0xdd   :  { %3680 = vmatpush3.bf16.msra.mxu1 %v4030_v63  ;;  %3659 = vmatprep.subr.bf16.mxu0 %v4031_v0 }
  0xde   :  { %3681 = vmatprep.subr.bf16.mxu1 %v4032_v1 }
  0xe0   :  { %3660 = vmatpush3.bf16.msra.mxu0 %v4033_v2 }
  0xe1   :  { %3682 = vmatpush3.bf16.msra.mxu1 %v4034_v3  ;;  %3689 = vmatprep.subr.bf16.mxu0 %v4039_v9 }
  0xe2   :  { %3711 = vmatprep.subr.bf16.mxu1 %v4040_v11 }
  0xe3   :  { %2723 = vmatmul.mubr.bf16.vlgmr.msra.gmra.mrb[24].mxu0 %v3099_v6 }
  0xe4   :  { %2763 = vmatmul.mubr.bf16.vlgmr.msra.gmra.mrb[24].mxu1 %v3101_v8  ;;  %3690 = vmatpush3.bf16.msra.mxu0 %v4041_v12 }
  0xe5   :  { %3712 = vmatpush3.bf16.msra.mxu1 %v4042_v13  ;;  %3691 = vmatprep.subr.bf16.mxu0 %v4043_v14 }
  0xe6   :  { %3713 = vmatprep.subr.bf16.mxu1 %v4044_v15  ;;  %2802 = vmatprep.mubr.bf16.mxu0 %v3104_v58 }
  0xe7   :  { %2842 = vmatprep.mubr.bf16.mxu1 %v3106_v60 }
  0xe8   :  { %3692 = vmatpush3.bf16.msra.mxu0 %v4045_v16 }
  0xe9   :  { %3714 = vmatpush3.bf16.msra.mxu1 %v4046_v17  ;;  %3693 = vmatprep.subr.bf16.mxu0 %v4047_v18 }
  0xea   :  { %3715 = vmatprep.subr.bf16.mxu1 %v4048_v19 }
  0xec   :  { %3694 = vmatpush3.bf16.msra.mxu0 %v4049_v20 }
  0xed   :  { %3716 = vmatpush3.bf16.msra.mxu1 %v4050_v21  ;;  %3695 = vmatprep.subr.bf16.mxu0 %v4051_v22  ;;  %v4089_v21 = vmov 0.0   ;;  %v4075_v22 = vld [vmem:[%s5020_s3] sm:$0xff]  }
  0xee   :  { %3717 = vmatprep.subr.bf16.mxu1 %v4052_v23  ;;  %v4076_v23 = vld [vmem:[%s5020_s3 + $0x8] sm:$0xff]  }
  0xf0   :  { %3696 = vmatpush3.bf16.msra.mxu0 %v4053_v24  ;;  %v4077_v24 = vld [vmem:[%s5020_s3 + $0x10] sm:$0xff]  }
  0xf1   :  { %3718 = vmatpush3.bf16.msra.mxu1 %v4054_v25  ;;  %3697 = vmatprep.subr.bf16.mxu0 %v4055_v26  ;;  %v4078_v25 = vld [vmem:[%s5020_s3 + $0x18] sm:$0xff]   ;;  %v4079_v26 = vld [vmem:[%s5020_s3 + $0x20] sm:$0xff]  }
  0xf2   :  { %3719 = vmatprep.subr.bf16.mxu1 %v4056_v27 }
  0xf4   :  { %3698 = vmatpush3.bf16.msra.mxu0 %v4057_v28 }
  0xf5   :  { %3720 = vmatpush3.bf16.msra.mxu1 %v4058_v30  ;;  %3699 = vmatprep.subr.bf16.mxu0 %v4059_v37 }
  0xf6   :  { %v3397_v29 = vpop.f32.mrb[0].mxu0  ;;  %3721 = vmatprep.subr.bf16.mxu1 %v4060_v39 }
  0xf7   :  { %v3419_v31 = vpop.f32.mrb[0].mxu1  ;;  %v3398_v33 = vpop.f32.mrb[1].mxu0 }
  0xf8   :  { %v3420_v34 = vpop.f32.mrb[1].mxu1  ;;  %v3399_v35 = vadd.f32 %v3398_v33, %v3397_v29  ;;  %v3400_v38 = vpop.f32.mrb[2].mxu0  ;;  %3700 = vmatpush3.bf16.msra.mxu0 %v4061_v42 }
  0xf9   :  { %v3421_v36 = vadd.f32 %v3420_v34, %v3419_v31  ;;  %v3422_v40 = vpop.f32.mrb[2].mxu1  ;;  %v3401_v43 = vpop.f32.mrb[3].mxu0  ;;  %3722 = vmatpush3.bf16.msra.mxu1 %v4062_v44  ;;  %3701 = vmatprep.subr.bf16.mxu0 %v4063_v47  ;;  %v4084_v44 = vld [vmem:[%s5021_s5 + $0x8] sm:$0xff]  }
  0xfa   :  { %v2245_v41 = vadd.f32 %v3399_v35, %v3074_v32  ;;  %v3423_v45 = vpop.f32.mrb[3].mxu1  ;;  %3723 = vmatprep.subr.bf16.mxu1 %v4064_v48  ;;  %v4081_v40 = vld [vmem:[%s5020_s3 + $0x30] sm:$0xff]   ;;  %v4083_v43 = vld [vmem:[%s5021_s5] sm:$0xff]  }
  0xfb   :  { %v4085_v45 = vld [vmem:[%s5021_s5 + $0x10] sm:$0xff]  }
  0xfc   :  { %v2285_v46 = vadd.f32 %v3421_v36, %v2245_v41  ;;  %3702 = vmatpush3.bf16.msra.mxu0 %v4065_v49  ;;  %v4080_v36 = vld [vmem:[%s5020_s3 + $0x28] sm:$0xff]   ;;  %v4082_v41 = vld [vmem:[%s5020_s3 + $0x38] ss:$0 sps:$4 sm:$0xff]  }
  0xfd   :  { %3724 = vmatpush3.bf16.msra.mxu1 %v4066_v50  ;;  %3703 = vmatprep.subr.bf16.mxu0 %v4067_v51  ;;  %v2925_v42 = vsel %vm2923_vm0, %v4082_v41, 0 }
  0xfe   :  { %3725 = vmatprep.subr.bf16.mxu1 %v4068_v52 }
 0x100   :  { %3704 = vmatpush3.bf16.msra.mxu0 %v4069_v53 }
 0x101   :  { %3726 = vmatpush3.bf16.msra.mxu1 %v4070_v54  ;;  %3749 = vmatprep.subr.bf16.mxu0 %v4089_v21 }
 0x102   :  { %3769 = vmatprep.subr.bf16.mxu1 %v4089_v21 }
 0x103   :  { %2803 = vmatmul.mubr.bf16.vlgmr.msra.gmra.mrb[28].mxu0 %v3103_v57 }
 0x104   :  { %2843 = vmatmul.mubr.bf16.vlgmr.msra.gmra.mrb[28].mxu1 %v3105_v59  ;;  %3750 = vmatpush3.bf16.msra.mxu0 %v4075_v22 }
 0x105   :  { %3751 = vmatprep.subr.bf16.mxu0 %v4089_v21  ;;  %3765 = vmatprep.mubr.msk.bf16.mxu0 %vm4090_vm1, %v4089_v21 }
 0x106   :  { %3781 = vmatprep.mubr.msk.bf16.mxu1 %vm4090_vm1, %v4089_v21  ;;  %3770 = vmatpush3.bf16.msra.mxu1 %v4083_v43 }
 0x107   :  { %3771 = vmatprep.subr.bf16.mxu1 %v4089_v21 }
 0x108   :  { %3752 = vmatpush3.bf16.msra.mxu0 %v4076_v23 }
 0x109   :  { %3753 = vmatprep.subr.bf16.mxu0 %v4089_v21 }
 0x10a   :  { %3772 = vmatpush3.bf16.msra.mxu1 %v4084_v44 }
 0x10b   :  { %3773 = vmatprep.subr.bf16.mxu1 %v4089_v21 }
 0x10c   :  { %3754 = vmatpush3.bf16.msra.mxu0 %v4077_v24 }
 0x10d   :  { %3755 = vmatprep.subr.bf16.mxu0 %v4089_v21 }
 0x10e   :  { %3774 = vmatpush3.bf16.msra.mxu1 %v4085_v45 }
 0x10f   :  { %3775 = vmatprep.subr.bf16.mxu1 %v4089_v21 }
 0x110   :  { %3756 = vmatpush3.bf16.msra.mxu0 %v4078_v25 }
 0x111   :  { %3757 = vmatprep.subr.bf16.mxu0 %v4089_v21 }
 0x114   :  { %3758 = vmatpush3.bf16.msra.mxu0 %v4079_v26 }
 0x115   :  { %3759 = vmatprep.subr.bf16.mxu0 %v4089_v21 }
 0x116   :  { %v3441_v61 = vpop.f32.mrb[4].mxu0 }
 0x117   :  { %v3463_v62 = vpop.f32.mrb[4].mxu1  ;;  %v3442_v63 = vpop.f32.mrb[5].mxu0 }
 0x118   :  { %v3464_v0 = vpop.f32.mrb[5].mxu1  ;;  %v3443_v1 = vadd.f32 %v3442_v63, %v3441_v61  ;;  %v3444_v3 = vpop.f32.mrb[6].mxu0  ;;  %3760 = vmatpush3.bf16.msra.mxu0 %v4080_v36 }
 0x119   :  { %v3465_v2 = vadd.f32 %v3464_v0, %v3463_v62  ;;  %v3466_v4 = vpop.f32.mrb[6].mxu1  ;;  %v3445_v5 = vpop.f32.mrb[7].mxu0  ;;  %3761 = vmatprep.subr.bf16.mxu0 %v4089_v21 }
 0x11a   :  { %v3467_v6 = vpop.f32.mrb[7].mxu1  ;;  %v2325_v7 = vadd.f32 %v3443_v1, %v2285_v46  ;;  %v4086_v46 = vld [vmem:[%s5021_s5 + $0x18] sm:$0xff]  }
 0x11b   :  { %3776 = vmatpush3.bf16.msra.mxu1 %v4086_v46 }
 0x11c   :  { %v2365_v8 = vadd.f32 %v3465_v2, %v2325_v7  ;;  %3762 = vmatpush3.bf16.msra.mxu0 %v4081_v40  ;;  %3777 = vmatprep.subr.bf16.mxu1 %v4089_v21 }
 0x11d   :  { %3763 = vmatprep.subr.bf16.mxu0 %v4089_v21 }
 0x120   :  { %3764 = vmatpush3.bf16.msra.mxu0 %v2925_v42 }
 0x136   :  { %v3485_v9 = vpop.f32.mrb[8].mxu0 }
 0x137   :  { %v3507_v10 = vpop.f32.mrb[8].mxu1  ;;  %v3486_v11 = vpop.f32.mrb[9].mxu0 }
 0x138   :  { %v3487_v12 = vadd.f32 %v3486_v11, %v3485_v9  ;;  %v3508_v13 = vpop.f32.mrb[9].mxu1  ;;  %v3488_v14 = vpop.f32.mrb[10].mxu0 }
 0x139   :  { %v3509_v15 = vadd.f32 %v3508_v13, %v3507_v10  ;;  %v3510_v16 = vpop.f32.mrb[10].mxu1  ;;  %v3489_v17 = vpop.f32.mrb[11].mxu0 }
 0x13a   :  { %v2405_v18 = vadd.f32 %v3487_v12, %v2365_v8  ;;  %v3511_v19 = vpop.f32.mrb[11].mxu1 }
 0x13c   :  { %v2445_v20 = vadd.f32 %v3509_v15, %v2405_v18 }
 0x156   :  { %v3529_v27 = vpop.f32.mrb[12].mxu0 }
 0x157   :  { %v3551_v28 = vpop.f32.mrb[12].mxu1  ;;  %v3530_v29 = vpop.f32.mrb[13].mxu0 }
 0x158   :  { %v3531_v30 = vadd.f32 %v3530_v29, %v3529_v27  ;;  %v3552_v31 = vpop.f32.mrb[13].mxu1  ;;  %v3532_v32 = vpop.f32.mrb[14].mxu0 }
 0x159   :  { %v3553_v33 = vadd.f32 %v3552_v31, %v3551_v28  ;;  %v3554_v34 = vpop.f32.mrb[14].mxu1  ;;  %v3533_v35 = vpop.f32.mrb[15].mxu0 }
 0x15a   :  { %v2485_v37 = vadd.f32 %v3531_v30, %v2445_v20  ;;  %v3555_v38 = vpop.f32.mrb[15].mxu1  ;;  %v4087_v34 = vld [vmem:[%s5021_s5 + $0x20] sm:$0xff]   ;;  %v4088_v35 = vld [vmem:[%s5021_s5 + $0x28] ss:$0 sps:$4 sm:$0x33]  }
 0x15b   :  { %3778 = vmatpush3.bf16.msra.mxu1 %v4087_v34  ;;  %v3026_v36 = vsel %vm3024_vm3, %v4088_v35, 0 }
 0x15c   :  { %v2525_v39 = vadd.f32 %v3553_v33, %v2485_v37  ;;  %3779 = vmatprep.subr.bf16.mxu1 %v4089_v21  ;;  %v3363_v37 = vld [vmem:[%s5022_s4] ss:$0 sm:$0xff] }
 0x15d   :  { %v3373_v21 = vld [vmem:[%s5023_s6] ss:$0 sm:$0xff] }
 0x15f   :  { %3780 = vmatpush3.bf16.msra.mxu1 %v3026_v36 }
 0x176   :  { %v3573_v47 = vpop.f32.mrb[16].mxu0 }
 0x177   :  { %v3595_v48 = vpop.f32.mrb[16].mxu1  ;;  %v3574_v49 = vpop.f32.mrb[17].mxu0 }
 0x178   :  { %v3596_v50 = vpop.f32.mrb[17].mxu1  ;;  %v3575_v51 = vadd.f32 %v3574_v49, %v3573_v47  ;;  %v3576_v53 = vpop.f32.mrb[18].mxu0 }
 0x179   :  { %v3597_v52 = vadd.f32 %v3596_v50, %v3595_v48  ;;  %v3598_v54 = vpop.f32.mrb[18].mxu1  ;;  %v3577_v55 = vpop.f32.mrb[19].mxu0 }
 0x17a   :  { %v3599_v56 = vpop.f32.mrb[19].mxu1  ;;  %v2565_v57 = vadd.f32 %v3575_v51, %v2525_v39 }
 0x17c   :  { %v2605_v58 = vadd.f32 %v3597_v52, %v2565_v57 }
 0x196   :  { %v3617_v59 = vpop.f32.mrb[20].mxu0 }
 0x197   :  { %v3639_v60 = vpop.f32.mrb[20].mxu1  ;;  %v3618_v61 = vpop.f32.mrb[21].mxu0 }
 0x198   :  { %v3619_v62 = vadd.f32 %v3618_v61, %v3617_v59  ;;  %v3640_v63 = vpop.f32.mrb[21].mxu1  ;;  %v3620_v0 = vpop.f32.mrb[22].mxu0 }
 0x199   :  { %v3641_v1 = vadd.f32 %v3640_v63, %v3639_v60  ;;  %v3642_v2 = vpop.f32.mrb[22].mxu1  ;;  %v3621_v3 = vpop.f32.mrb[23].mxu0 }
 0x19a   :  { %v2645_v4 = vadd.f32 %v3619_v62, %v2605_v58  ;;  %v3643_v5 = vpop.f32.mrb[23].mxu1 }
 0x19c   :  { %v2685_v6 = vadd.f32 %v3641_v1, %v2645_v4 }
 0x1b6   :  { %v3661_v7 = vpop.f32.mrb[24].mxu0 }
 0x1b7   :  { %v3683_v8 = vpop.f32.mrb[24].mxu1  ;;  %v3662_v9 = vpop.f32.mrb[25].mxu0 }
 0x1b8   :  { %v3663_v10 = vadd.f32 %v3662_v9, %v3661_v7  ;;  %v3684_v11 = vpop.f32.mrb[25].mxu1  ;;  %v3664_v12 = vpop.f32.mrb[26].mxu0 }
 0x1b9   :  { %v3685_v13 = vadd.f32 %v3684_v11, %v3683_v8  ;;  %v3686_v14 = vpop.f32.mrb[26].mxu1  ;;  %v3665_v15 = vpop.f32.mrb[27].mxu0 }
 0x1ba   :  { %v2725_v16 = vadd.f32 %v3663_v10, %v2685_v6  ;;  %v3687_v17 = vpop.f32.mrb[27].mxu1 }
 0x1bc   :  { %v2765_v18 = vadd.f32 %v3685_v13, %v2725_v16 }
 0x1d6   :  { %v3705_v19 = vpop.f32.mrb[28].mxu0 }
 0x1d7   :  { %v3727_v20 = vpop.f32.mrb[28].mxu1  ;;  %v3706_v22 = vpop.f32.mrb[29].mxu0 }
 0x1d8   :  { %v3707_v23 = vadd.f32 %v3706_v22, %v3705_v19  ;;  %v3728_v24 = vpop.f32.mrb[29].mxu1  ;;  %v3708_v25 = vpop.f32.mrb[30].mxu0 }
 0x1d9   :  { %v3729_v26 = vadd.f32 %v3728_v24, %v3727_v20  ;;  %v3730_v27 = vpop.f32.mrb[30].mxu1  ;;  %v3709_v28 = vpop.f32.mrb[31].mxu0 }
 0x1da   :  { %v2805_v29 = vadd.f32 %v3707_v23, %v2765_v18  ;;  %v3731_v30 = vpop.f32.mrb[31].mxu1 }
 0x1dc   :  { %v2845_v31 = vadd.f32 %v3729_v26, %v2805_v29 }
 0x1de   :  { %v2850_v32 = vmax.f32 %v2845_v31, 0.0 }
 0x1e0   :  { %v2851_v33 = vpack.c.bf16 %v2850_v32, %v2850_v32 }
 0x1e2   :  { %3766 = vmatmul.mubr.msk.bf16.vlgmr.msra.gmra.mrb[32].mxu0 %vm2919_vm2, %v2851_v33 }
 0x2b5   :  { %v2961_v38 = vpop.f32.mrb[32].mxu0 }
 0x2b6   :  { %v2962_v39 = vadd.f32 %v3363_v37, %v2961_v38  ;;  %v3767_v40 = vpop.f32.mrb[33].mxu0 }
 0x2b7   :  { %v2964_v41 = vpop.f32.mrb[34].mxu0 }
 0x2b8   :  { %v2967_v42 = vmax.f32 %v2962_v39, 0.0  ;;  %v3768_v43 = vpop.f32.mrb[35].mxu0 }
 0x2ba   :  { %v2968_v44 = vpack.c.bf16 %v2967_v42, %v2967_v42 }
 0x2bc   :  { %3782 = vmatmul.mubr.msk.bf16.vlgmr.msra.gmra.mrb[32].mxu1 %vm3020_vm4, %v2968_v44 }
 0x38f   :  { %v3062_v45 = vpop.f32.mrb[32].mxu1 }
 0x390   :  { %v3063_v46 = vadd.f32 %v3373_v21, %v3062_v45  ;;  %v3783_v47 = vpop.f32.mrb[33].mxu1 }
 0x391   :  { %v3065_v48 = vpop.f32.mrb[34].mxu1 }
 0x392   :  { %3069 = vst.msk [vmem:[%s5024_s7] sm:$0xff] %vm3068_vm5, %v3063_v46  ;;  %v3784_v49 = vpop.f32.mrb[35].mxu1 }

</bundles_post_ra>
